<compile_context>
chip_gen: v6e
topology: v6e:2x2x1
jax: 0.10.0
libtpu: 0.0.40
codegen_flags: <defaults>
</compile_context>

<pallas_src>
import jax
import jax.numpy as jnp
from jax.experimental import pallas as pl
from jax.experimental.pallas import tpu as pltpu

EPS = 1e-5


def fused_bn_add_relu_conv_bn_kernel(
    x149_ref,   # (P, C1)  f32   full block (same block every grid step)
    x148_ref,   # (P, C1)  f32
    g1_ref,     # (1, C1)  f32   BN1 gamma
    b1_ref,     # (1, C1)  f32   BN1 beta
    w_ref,      # (C1, TC2) bf16 per-step slice of the 1x1 conv weight
    g2_ref,     # (1, TC2) f32   BN2 gamma slice
    b2_ref,     # (1, TC2) f32   BN2 beta slice
    out_ref,    # (P, TC2) f32
    x152_ref,   # scratch (P, C1) bf16 — hoisted BN1 + add + relu result
):
    p = x152_ref.shape[0]
    inv_p = 1.0 / p

    # ---- BN1 + residual add + relu: computed ONCE (first grid step), reused
    #      from VMEM scratch on any later step.  Valid because the C2 grid
    #      axis is "arbitrary" (sequential on one TensorCore). ----
    @pl.when(pl.program_id(0) == 0)
    def _():
        x149 = x149_ref[...]
        x148 = x148_ref[...]
        mean1 = jnp.sum(x149, axis=0, keepdims=True) * inv_p
        d1 = x149 - mean1                                  # centered (two-pass) var
        var1 = jnp.sum(d1 * d1, axis=0, keepdims=True) * inv_p
        scale1 = g1_ref[...] * jax.lax.rsqrt(var1 + EPS)
        x152 = jnp.maximum(d1 * scale1 + b1_ref[...] + x148, 0.0)
        x152_ref[...] = x152.astype(jnp.bfloat16)

    # ---- 1x1 conv == channel matmul: bf16 operands, f32 accumulate on MXU ----
    x153 = jnp.dot(x152_ref[...], w_ref[...],
                   preferred_element_type=jnp.float32)

    # ---- BN2 over this block's output channels (per-channel stats, so a C2
    #      split across grid steps would be exact) ----
    mean2 = jnp.sum(x153, axis=0, keepdims=True) * inv_p
    d2 = x153 - mean2
    var2 = jnp.sum(d2 * d2, axis=0, keepdims=True) * inv_p
    scale2 = g2_ref[...] * jax.lax.rsqrt(var2 + EPS)
    out_ref[...] = d2 * scale2 + b2_ref[...]


def prepare_conv_weight(conv_w):
    """One-time layout prep: (C2, C1, 1, 1) f32 -> (C1, C2) bf16.
    Do this at parameter-load time, NOT per forward call."""
    c2, c1 = conv_w.shape[0], conv_w.shape[1]
    return jnp.asarray(conv_w.reshape(c2, c1).T, dtype=jnp.bfloat16)


def fused_forward_pc(x149_pc, x148_pc, gamma1, beta1, w_c1c2_bf16, gamma2, beta2,
                     *, c2_block=None):
    """Channels-last, spatially-flattened forward.
    x149_pc, x148_pc: (P, C1) f32.  w_c1c2_bf16: (C1, C2) bf16.  Returns (P, C2) f32.
    Default c2_block=None -> single grid step (whole C2), the fastest config on
    single-TensorCore v5e/v6e and safe everywhere.
    """
    P, C1 = x149_pc.shape
    C2 = w_c1c2_bf16.shape[1]
    tc2 = C2 if c2_block is None else min(c2_block, C2)
    assert C2 % tc2 == 0 and tc2 % 128 == 0
    n_blocks = C2 // tc2

    g1 = gamma1.reshape(1, C1).astype(jnp.float32)
    b1 = beta1.reshape(1, C1).astype(jnp.float32)
    g2 = gamma2.reshape(1, C2).astype(jnp.float32)
    b2 = beta2.reshape(1, C2).astype(jnp.float32)

    return pl.pallas_call(
        fused_bn_add_relu_conv_bn_kernel,
        out_shape=jax.ShapeDtypeStruct((P, C2), jnp.float32),
        grid=(n_blocks,),
        in_specs=[
            pl.BlockSpec((P, C1), lambda j: (0, 0)),
            pl.BlockSpec((P, C1), lambda j: (0, 0)),
            pl.BlockSpec((1, C1), lambda j: (0, 0)),
            pl.BlockSpec((1, C1), lambda j: (0, 0)),
            pl.BlockSpec((C1, tc2), lambda j: (0, j)),
            pl.BlockSpec((1, tc2), lambda j: (0, j)),
            pl.BlockSpec((1, tc2), lambda j: (0, j)),
        ],
        out_specs=pl.BlockSpec((P, tc2), lambda j: (0, j)),
        scratch_shapes=[pltpu.VMEM((P, C1), jnp.bfloat16)],
        compiler_params=pltpu.CompilerParams(
            # Sequential: BN1 hoist under pl.when(pid==0) requires it.
            # TODO(synk): for v7x cross-TensorCore sharding of a 2-block C2
            # grid, use pltpu.CORE_PARALLEL and move BN1 back into every step.
            dimension_semantics=("arbitrary",),
            vmem_limit_bytes=16 << 20,   # ~6 MiB working set + headroom
        ),
    )(x149_pc, x148_pc, g1, b1, w_c1c2_bf16, g2, b2)


def reference_forward(x149, x148, gamma1, beta1, conv_w, gamma2, beta2):
    """Pure-JAX reference matching PyTorch training-mode forward semantics (NCHW)."""
    def bn(x, g, b):
        mean = jnp.mean(x, axis=(0, 2, 3), keepdims=True)
        var = jnp.mean((x - mean) ** 2, axis=(0, 2, 3), keepdims=True)
        return g[None, :, None, None] * (x - mean) * jax.lax.rsqrt(var + EPS) \
            + b[None, :, None, None]

    x150 = bn(x149, gamma1, beta1)
    x152 = jnp.maximum(x148 + x150, 0.0)
    x153 = jnp.einsum('nchw,oc->nohw', x152, conv_w.reshape(conv_w.shape[0], -1))
    return bn(x153, gamma2, beta2)


if __name__ == "__main__":
    # Channel sizes are fixed by the module (BatchNorm2d(2048), Conv2d(2048, 512)).
    N, C1, H, W = 1, 2048, 7, 7
    C2 = 512
    P = N * H * W

    key = jax.random.PRNGKey(0)
    k1, k2, k3 = jax.random.split(key, 3)

    x149 = jax.random.normal(k1, (N, C1, H, W), dtype=jnp.float32)
    x148 = jax.random.normal(k2, (N, C1, H, W), dtype=jnp.float32)

    # BatchNorm params: PyTorch default init (weight=1, bias=0)
    gamma1 = jnp.ones((C1,), jnp.float32)
    beta1 = jnp.zeros((C1,), jnp.float32)
    gamma2 = jnp.ones((C2,), jnp.float32)
    beta2 = jnp.zeros((C2,), jnp.float32)

    # Conv2d(2048, 512, 1x1, bias=False) weight
    conv_w = jax.random.normal(k3, (C2, C1, 1, 1), dtype=jnp.float32) * 0.02

    # --- one-time layout prep (model-load / boundary cost, not per call) ---
    w_c1c2_bf16 = prepare_conv_weight(conv_w)                         # (C1, C2) bf16
    x149_pc = jnp.transpose(x149, (0, 2, 3, 1)).reshape(P, C1)        # channels-last
    x148_pc = jnp.transpose(x148, (0, 2, 3, 1)).reshape(P, C1)

    out_pc = fused_forward_pc(x149_pc, x148_pc, gamma1, beta1,
                              w_c1c2_bf16, gamma2, beta2)
    out_pc = jax.block_until_ready(out_pc)

    out = jnp.transpose(out_pc.reshape(N, H, W, C2), (0, 3, 1, 2))
    ref = reference_forward(x149, x148, gamma1, beta1, conv_w, gamma2, beta2)

    assert out.shape == (N, C2, H, W)
    # Loose tolerance is a deliberate precision choice: x152 and the conv
    # weight are bf16 on the MXU (f32 accumulate); BN stat math stays f32.
    assert jnp.allclose(out, ref, atol=2e-2, rtol=2e-2), \
        float(jnp.max(jnp.abs(out - ref)))

    print("KERNEL_OK")
</pallas_src>

<mosaic_0001>
module attributes {stable_mosaic.version = 11 : i64} {
  func.func @fused_bn_add_relu_conv_bn_kernel(%arg0: i32, %arg1: memref<49x2048xf32, #tpu.memory_space<vmem>>, %arg2: memref<49x2048xf32, #tpu.memory_space<vmem>>, %arg3: memref<1x2048xf32, #tpu.memory_space<vmem>>, %arg4: memref<1x2048xf32, #tpu.memory_space<vmem>>, %arg5: memref<2048x512xbf16, #tpu.memory_space<vmem>>, %arg6: memref<1x512xf32, #tpu.memory_space<vmem>>, %arg7: memref<1x512xf32, #tpu.memory_space<vmem>>, %arg8: memref<49x512xf32, #tpu.memory_space<vmem>>, %arg9: memref<49x2048xbf16, #tpu.memory_space<vmem>>) attributes {dimension_semantics = [#tpu.dimension_semantics<arbitrary>], iteration_bounds = array<i64: 1>, scalar_prefetch = 0 : i64, scratch_operands = 1 : i64, tpu.core_type = #tpu.core_type<tc>, window_params = [{pipeline_mode = #tpu.pipeline_mode<synchronous>, transform_indices = @transform_0, window_bounds = array<i64: 49, 2048>}, {pipeline_mode = #tpu.pipeline_mode<synchronous>, transform_indices = @transform_1, window_bounds = array<i64: 49, 2048>}, {pipeline_mode = #tpu.pipeline_mode<synchronous>, transform_indices = @transform_2, window_bounds = array<i64: 1, 2048>}, {pipeline_mode = #tpu.pipeline_mode<synchronous>, transform_indices = @transform_3, window_bounds = array<i64: 1, 2048>}, {transform_indices = @transform_4, window_bounds = array<i64: 2048, 512>}, {transform_indices = @transform_5, window_bounds = array<i64: 1, 512>}, {transform_indices = @transform_6, window_bounds = array<i64: 1, 512>}, {transform_indices = @transform_7, window_bounds = array<i64: 49, 512>}]} {
    %c0_i32 = arith.constant 0 : i32
    %0 = arith.cmpi eq, %arg0, %c0_i32 : i32
    %1 = arith.extui %0 : i1 to i32
    %c0_i32_0 = arith.constant 0 : i32
    %2 = arith.cmpi ne, %1, %c0_i32_0 : i32
    scf.if %2 {
      %c0_15 = arith.constant 0 : index
      %c0_16 = arith.constant 0 : index
      %28 = vector.load %arg1[%c0_15, %c0_16] : memref<49x2048xf32, #tpu.memory_space<vmem>>, vector<49x2048xf32>
      %c0_17 = arith.constant 0 : index
      %c0_18 = arith.constant 0 : index
      %29 = vector.load %arg2[%c0_17, %c0_18] : memref<49x2048xf32, #tpu.memory_space<vmem>>, vector<49x2048xf32>
      %cst_19 = arith.constant dense<0.000000e+00> : vector<2048xf32>
      %30 = vector.multi_reduction <add>, %28, %cst_19 [0] : vector<49x2048xf32> to vector<2048xf32>
      %31 = vector.shape_cast %30 : vector<2048xf32> to vector<1x2048xf32>
      %cst_20 = arith.constant 0.0204081628 : f32
      %32 = vector.broadcast %cst_20 : f32 to vector<1x2048xf32>
      %33 = arith.mulf %31, %32 : vector<1x2048xf32>
      %34 = vector.broadcast %33 : vector<1x2048xf32> to vector<49x2048xf32>
      %35 = arith.subf %28, %34 : vector<49x2048xf32>
      %36 = arith.mulf %35, %35 : vector<49x2048xf32>
      %cst_21 = arith.constant dense<0.000000e+00> : vector<2048xf32>
      %37 = vector.multi_reduction <add>, %36, %cst_21 [0] : vector<49x2048xf32> to vector<2048xf32>
      %38 = vector.shape_cast %37 : vector<2048xf32> to vector<1x2048xf32>
      %cst_22 = arith.constant 0.0204081628 : f32
      %39 = vector.broadcast %cst_22 : f32 to vector<1x2048xf32>
      %40 = arith.mulf %38, %39 : vector<1x2048xf32>
      %c0_23 = arith.constant 0 : index
      %c0_24 = arith.constant 0 : index
      %41 = vector.load %arg3[%c0_23, %c0_24] : memref<1x2048xf32, #tpu.memory_space<vmem>>, vector<1x2048xf32>
      %cst_25 = arith.constant 9.99999974E-6 : f32
      %42 = vector.broadcast %cst_25 : f32 to vector<1x2048xf32>
      %43 = arith.addf %40, %42 : vector<1x2048xf32>
      %44 = math.rsqrt %43 : vector<1x2048xf32>
      %45 = arith.mulf %41, %44 : vector<1x2048xf32>
      %46 = vector.broadcast %45 : vector<1x2048xf32> to vector<49x2048xf32>
      %47 = arith.mulf %35, %46 : vector<49x2048xf32>
      %c0_26 = arith.constant 0 : index
      %c0_27 = arith.constant 0 : index
      %48 = vector.load %arg4[%c0_26, %c0_27] : memref<1x2048xf32, #tpu.memory_space<vmem>>, vector<1x2048xf32>
      %49 = vector.broadcast %48 : vector<1x2048xf32> to vector<49x2048xf32>
      %50 = arith.addf %47, %49 : vector<49x2048xf32>
      %51 = arith.addf %50, %29 : vector<49x2048xf32>
      %cst_28 = arith.constant 0.000000e+00 : f32
      %52 = vector.broadcast %cst_28 : f32 to vector<49x2048xf32>
      %53 = arith.maximumf %51, %52 : vector<49x2048xf32>
      %54 = arith.truncf %53 : vector<49x2048xf32> to vector<49x2048xbf16>
      %c0_29 = arith.constant 0 : index
      %c0_30 = arith.constant 0 : index
      %55 = vector.load %arg9[%c0_29, %c0_30] : memref<49x2048xbf16, #tpu.memory_space<vmem>>, vector<49x2048xbf16>
      tpu.vector_store %arg9[%c0_29, %c0_30], %54 {strides = array<i32>} : memref<49x2048xbf16, #tpu.memory_space<vmem>>, vector<49x2048xbf16>,
    } else {
    }
    %c0 = arith.constant 0 : index
    %c0_1 = arith.constant 0 : index
    %3 = vector.load %arg9[%c0, %c0_1] : memref<49x2048xbf16, #tpu.memory_space<vmem>>, vector<49x2048xbf16>
    %c0_2 = arith.constant 0 : index
    %c0_3 = arith.constant 0 : index
    %4 = vector.load %arg5[%c0_2, %c0_3] : memref<2048x512xbf16, #tpu.memory_space<vmem>>, vector<2048x512xbf16>
    %cst = arith.constant dense<0.000000e+00> : vector<49x512xf32>
    %5 = tpu.matmul %3, %4, %cst {dimension_numbers = #tpu.dot_dimension_numbers<[1], [0], [0], [1], [0, 0, 1, 1], [], []>} : vector<49x2048xbf16>, vector<2048x512xbf16>, vector<49x512xf32> -> vector<49x512xf32>
    %cst_4 = arith.constant dense<0.000000e+00> : vector<512xf32>
    %6 = vector.multi_reduction <add>, %5, %cst_4 [0] : vector<49x512xf32> to vector<512xf32>
    %7 = vector.shape_cast %6 : vector<512xf32> to vector<1x512xf32>
    %cst_5 = arith.constant 0.0204081628 : f32
    %8 = vector.broadcast %cst_5 : f32 to vector<1x512xf32>
    %9 = arith.mulf %7, %8 : vector<1x512xf32>
    %10 = vector.broadcast %9 : vector<1x512xf32> to vector<49x512xf32>
    %11 = arith.subf %5, %10 : vector<49x512xf32>
    %12 = arith.mulf %11, %11 : vector<49x512xf32>
    %cst_6 = arith.constant dense<0.000000e+00> : vector<512xf32>
    %13 = vector.multi_reduction <add>, %12, %cst_6 [0] : vector<49x512xf32> to vector<512xf32>
    %14 = vector.shape_cast %13 : vector<512xf32> to vector<1x512xf32>
    %cst_7 = arith.constant 0.0204081628 : f32
    %15 = vector.broadcast %cst_7 : f32 to vector<1x512xf32>
    %16 = arith.mulf %14, %15 : vector<1x512xf32>
    %c0_8 = arith.constant 0 : index
    %c0_9 = arith.constant 0 : index
    %17 = vector.load %arg6[%c0_8, %c0_9] : memref<1x512xf32, #tpu.memory_space<vmem>>, vector<1x512xf32>
    %cst_10 = arith.constant 9.99999974E-6 : f32
    %18 = vector.broadcast %cst_10 : f32 to vector<1x512xf32>
    %19 = arith.addf %16, %18 : vector<1x512xf32>
    %20 = math.rsqrt %19 : vector<1x512xf32>
    %21 = arith.mulf %17, %20 : vector<1x512xf32>
    %22 = vector.broadcast %21 : vector<1x512xf32> to vector<49x512xf32>
    %23 = arith.mulf %11, %22 : vector<49x512xf32>
    %c0_11 = arith.constant 0 : index
    %c0_12 = arith.constant 0 : index
    %24 = vector.load %arg7[%c0_11, %c0_12] : memref<1x512xf32, #tpu.memory_space<vmem>>, vector<1x512xf32>
    %25 = vector.broadcast %24 : vector<1x512xf32> to vector<49x512xf32>
    %26 = arith.addf %23, %25 : vector<49x512xf32>
    %c0_13 = arith.constant 0 : index
    %c0_14 = arith.constant 0 : index
    %27 = vector.load %arg8[%c0_13, %c0_14] : memref<49x512xf32, #tpu.memory_space<vmem>>, vector<49x512xf32>
    tpu.vector_store %arg8[%c0_13, %c0_14], %26 {strides = array<i32>} : memref<49x512xf32, #tpu.memory_space<vmem>>, vector<49x512xf32>,
    return
  }
  func.func @transform_0(%arg0: i32) -> (i32, i32) {
    %c0_i32 = arith.constant 0 : i32
    %c0_i32_0 = arith.constant 0 : i32
    %c0_i32_1 = arith.constant 0 : i32
    return %c0_i32, %c0_i32_0 : i32, i32
  }
  func.func @transform_1(%arg0: i32) -> (i32, i32) {
    %c0_i32 = arith.constant 0 : i32
    %c0_i32_0 = arith.constant 0 : i32
    %c0_i32_1 = arith.constant 0 : i32
    return %c0_i32, %c0_i32_0 : i32, i32
  }
  func.func @transform_2(%arg0: i32) -> (i32, i32) {
    %c0_i32 = arith.constant 0 : i32
    %c0_i32_0 = arith.constant 0 : i32
    %c0_i32_1 = arith.constant 0 : i32
    return %c0_i32, %c0_i32_0 : i32, i32
  }
  func.func @transform_3(%arg0: i32) -> (i32, i32) {
    %c0_i32 = arith.constant 0 : i32
    %c0_i32_0 = arith.constant 0 : i32
    %c0_i32_1 = arith.constant 0 : i32
    return %c0_i32, %c0_i32_0 : i32, i32
  }
  func.func @transform_4(%arg0: i32) -> (i32, i32) {
    %c0_i32 = arith.constant 0 : i32
    %c0_i32_0 = arith.constant 0 : i32
    return %c0_i32, %arg0 : i32, i32
  }
  func.func @transform_5(%arg0: i32) -> (i32, i32) {
    %c0_i32 = arith.constant 0 : i32
    %c0_i32_0 = arith.constant 0 : i32
    return %c0_i32, %arg0 : i32, i32
  }
  func.func @transform_6(%arg0: i32) -> (i32, i32) {
    %c0_i32 = arith.constant 0 : i32
    %c0_i32_0 = arith.constant 0 : i32
    return %c0_i32, %arg0 : i32, i32
  }
  func.func @transform_7(%arg0: i32) -> (i32, i32) {
    %c0_i32 = arith.constant 0 : i32
    %c0_i32_0 = arith.constant 0 : i32
    return %c0_i32, %arg0 : i32, i32
  }
}

</mosaic_0001>

<bundles_post_ra>
// kernel: tpu_custom_call.1
= control target key start
LH: loop header
LB: loop body
LE: loop exit
PB: predicated region body
PF: predicated region fallthrough
CT: control target
= control target key end

     0   :  { %12 = vsyncpa [#allocation4], 0  ;;  %s11520_s0 = inlined_call_operand.hbm [shape: f32[49,2048], index: 0, kind: input, shape index: {}]   ;;  %s11521_s1 = inlined_call_operand.hbm [shape: f32[49,2048], index: 1, kind: input, shape index: {}]   ;;  %s11522_s2 = inlined_call_operand.hbm [shape: f32[1,2048], index: 2, kind: input, shape index: {}]   ;;  %s11523_s3 = inlined_call_operand.hbm [shape: f32[1,2048], index: 3, kind: input, shape index: {}]   ;;  %s11524_s4 = inlined_call_operand.hbm [shape: bf16[2048,512], index: 4, kind: input, shape index: {}]   ;;  %s11525_s5 = inlined_call_operand.hbm [shape: f32[1,512], index: 5, kind: input, shape index: {}]   ;;  %s11526_s6 = inlined_call_operand.hbm [shape: f32[1,512], index: 6, kind: input, shape index: {}]   ;;  %s11527_s7 = inlined_call_operand.hbm [shape: f32[49,512], index: 7, kind: output, shape index: {}]  }
   0x1   :  { %13 = vsyncpa [#allocation7], 0 }
   0x2   :  { %14 = vsyncpa [#allocation10], 0 }
   0x3   :  { %15 = vsyncpa [#allocation13], 0 }
   0x4   :  { %16 = vsyncpa [#allocation5], 0  ;;  %s8875_s24 = smov [#allocation6]   ;;  %s8876_s26 = smov [#allocation9]  }
   0x5   :  { %s34_s25 = sshll.u32 %s8875_s24, 4  ;;  %s57_s27 = sshll.u32 %s8876_s26, 4  ;;  %s35_s25 = int_to_ptr.vmem [resolvable:$true] %s34_s25  ;;  %s58_s27 = int_to_ptr.vmem [resolvable:$true] %s57_s27 }
   0x6   :  { %s8713_s28 = scalar_lea.vmem %s35_s25, 14336  ;;  %p8718_p1 = scmp.lt.s32.totalorder %s35_s25, %s35_s25 }
   0x7   :  { %p8714_p0 = scmp.ne.s32.totalorder %s35_s25, %s8713_s28  ;;  %p8719_p2 = scmp.lt.s32.totalorder %s8713_s28, %s8713_s28 }
   0x9   :  { %p8720_p3 = por %p8719_p2, %p8718_p1 }
   0xb   :  { %p8721_p4 = pnand %p8720_p3, %p8714_p0 }
   0xd   :  { %8724 = shalt.err (!%p8721_p4)
}
   0xe   :  { %s8877_s29 = smov 2048   ;;  %s8878_s30 = smov 128  }
   0xf   :  { %40 = dma.hbm_to_vmem [thread:$0]  %s11521_s1, 14336, %s35_s25, [#allocation7], %s8877_s29, %s8877_s29, %s8878_s30  }
  0x10   :  { %s8733_s10 = scalar_lea.vmem %s58_s27, 256  ;;  %p8738_p6 = scmp.lt.s32.totalorder %s58_s27, %s58_s27 }
  0x11   :  { %p8734_p5 = scmp.ne.s32.totalorder %s58_s27, %s8733_s10  ;;  %p8739_p7 = scmp.lt.s32.totalorder %s8733_s10, %s8733_s10 }
  0x13   :  { %p8740_p8 = por %p8739_p7, %p8738_p6 }
  0x15   :  { %p8741_p9 = pnand %p8740_p8, %p8734_p5 }
  0x17   :  { %8744 = shalt.err (!%p8741_p9)
}
  0x18   :  { %60 = dma.hbm_to_vmem [thread:$0]  %s11523_s3, 256, %s58_s27, [#allocation10]  }
  0x19   :  { %s8879_s13 = smov [#allocation12]   ;;  %s8880_s15 = smov [#allocation3]  }
  0x1a   :  { %s79_s14 = sshll.u32 %s8879_s13, 4  ;;  %s22_s16 = sshll.u32 %s8880_s15, 4  ;;  %s80_s14 = int_to_ptr.vmem [resolvable:$true] %s79_s14  ;;  %s23_s16 = int_to_ptr.vmem [resolvable:$true] %s22_s16 }
  0x1b   :  { %s8753_s17 = scalar_lea.vmem %s80_s14, 64  ;;  %p8758_p11 = scmp.lt.s32.totalorder %s80_s14, %s80_s14 }
  0x1c   :  { %p8754_p10 = scmp.ne.s32.totalorder %s80_s14, %s8753_s17  ;;  %p8759_p12 = scmp.lt.s32.totalorder %s8753_s17, %s8753_s17 }
  0x1e   :  { %p8760_p13 = por %p8759_p12, %p8758_p11 }
  0x20   :  { %p8761_p0 = pnand %p8760_p13, %p8754_p10 }
  0x22   :  { %8764 = shalt.err (!%p8761_p0)
}
  0x23   :  { %82 = dma.hbm_to_vmem [thread:$0]  %s11525_s5, 64, %s80_s14, [#allocation13]  }
  0x24   :  { %s8773_s19 = scalar_lea.vmem %s23_s16, 14336  ;;  %p8778_p2 = scmp.lt.s32.totalorder %s23_s16, %s23_s16 }
  0x25   :  { %p8774_p1 = scmp.ne.s32.totalorder %s23_s16, %s8773_s19  ;;  %p8779_p3 = scmp.lt.s32.totalorder %s8773_s19, %s8773_s19 }
  0x27   :  { %p8780_p4 = por %p8779_p3, %p8778_p2 }
  0x29   :  { %p8781_p5 = pnand %p8780_p4, %p8774_p1 }
  0x2b   :  { %8784 = shalt.err (!%p8781_p5)
}
  0x2c   :  { %28 = dma.hbm_to_vmem [thread:$0]  %s11520_s0, 14336, %s23_s16, [#allocation4], %s8877_s29, %s8877_s29, %s8878_s30  }
  0x2d   :  { %s8881_s21 = smov [#allocation8]   ;;  %s8882_s23 = smov [#allocation11]  }
  0x2e   :  { %s47_s22 = sshll.u32 %s8881_s21, 4  ;;  %s66_s24 = sshll.u32 %s8882_s23, 4  ;;  %s48_s22 = int_to_ptr.vmem [resolvable:$true] %s47_s22  ;;  %s67_s24 = int_to_ptr.vmem [resolvable:$true] %s66_s24 }
  0x2f   :  { %s8793_s5 = scalar_lea.vmem %s48_s22, 256  ;;  %p8798_p7 = scmp.lt.s32.totalorder %s48_s22, %s48_s22 }
  0x30   :  { %p8794_p6 = scmp.ne.s32.totalorder %s48_s22, %s8793_s5  ;;  %p8799_p8 = scmp.lt.s32.totalorder %s8793_s5, %s8793_s5 }
  0x32   :  { %p8800_p9 = por %p8799_p8, %p8798_p7 }
  0x34   :  { %p8801_p10 = pnand %p8800_p9, %p8794_p6 }
  0x36   :  { %8804 = shalt.err (!%p8801_p10)
}
  0x37   :  { %50 = dma.hbm_to_vmem [thread:$0]  %s11522_s2, 256, %s48_s22, [#allocation7]  }
  0x38   :  { %s8813_s27 = scalar_lea.vmem %s67_s24, 65536  ;;  %p8818_p12 = scmp.lt.s32.totalorder %s67_s24, %s67_s24 }
  0x39   :  { %p8814_p11 = scmp.ne.s32.totalorder %s67_s24, %s8813_s27  ;;  %p8819_p13 = scmp.lt.s32.totalorder %s8813_s27, %s8813_s27 }
  0x3b   :  { %p8820_p0 = por %p8819_p13, %p8818_p12 }
  0x3d   :  { %p8821_p1 = pnand %p8820_p0, %p8814_p11 }
  0x3f   :  { %8824 = shalt.err (!%p8821_p1)
}
  0x40   :  { %s8883_s0 = smov 256   ;;  %s8884_s28 = smov 16  }
  0x41   :  { %72 = dma.hbm_to_vmem [thread:$0]  %s11524_s4, 65536, %s67_s24, [#allocation10], %s8883_s0, %s8883_s0, %s8884_s28  }
  0x42   :  { %s8885_s8 = smov [#allocation14]  }
  0x43   :  { %s89_s9 = sshll.u32 %s8885_s8, 4  ;;  %s90_s9 = int_to_ptr.vmem [resolvable:$true] %s89_s9 }
  0x44   :  { %s8833_s10 = scalar_lea.vmem %s90_s9, 64  ;;  %p8838_p3 = scmp.lt.s32.totalorder %s90_s9, %s90_s9 }
  0x45   :  { %p8834_p2 = scmp.ne.s32.totalorder %s90_s9, %s8833_s10  ;;  %p8839_p4 = scmp.lt.s32.totalorder %s8833_s10, %s8833_s10 }
  0x47   :  { %p8840_p5 = por %p8839_p4, %p8838_p3 }
  0x49   :  { %p8841_p6 = pnand %p8840_p5, %p8834_p2 }
  0x4b   :  { %8844 = shalt.err (!%p8841_p6)
}
  0x4c   :  { %92 = dma.hbm_to_vmem [thread:$0]  %s11526_s6, 64, %s90_s9, [#allocation13]  }
  0x4d   :  { %8865 = dma.done.wait [#allocation4], 14336  }
  0x4e   :  { %8866 = vsyncadd [#allocation4], 4294952960 }
  0x4f   :  { %8867 = dma.done.wait [#allocation7], 14592  }
  0x50   :  { %8868 = vsyncadd [#allocation7], 4294952704 }
  0x51   :  { %8869 = dma.done.wait [#allocation10], 65792  }
  0x52   :  { %8870 = vsyncadd [#allocation10], 4294901504 }
  0x53   :  { %8871 = dma.done.wait [#allocation13], 128  }
  0x54   :  { %8872 = vsyncadd [#allocation13], 4294967168  ;;  %v7830_v0 = vld [vmem:[#allocation11 + $0xe4] ss:$16 sps:$4 sm:$0xff]   ;;  %v7834_v2 = vld [vmem:[#allocation11 + $0xe0] ss:$16 sps:$4 sm:$0xff]  }
  0x55   :  { %v7832_v1 = vld [vmem:[#allocation11 + $0x2e4] ss:$16 sps:$4 sm:$0xff]   ;;  %5636 = vmatprep.subr.bf16.mxu0 %v7830_v0  ;;  %v7835_v3 = vld [vmem:[#allocation11 + $0x2e0] ss:$16 sps:$4 sm:$0xff]   ;;  %v8959_v51 = vld [vmem:[#allocation3 + $0x8] sm:$0xff]  ;;  %vm347_vm0 = vcmask 1040384  }
  0x56   :  { %5707 = vmatprep.subr.bf16.mxu1 %v7832_v1  ;;  %v7836_v4 = vld [vmem:[#allocation11 + $0xc4] ss:$16 sps:$4 sm:$0xff]   ;;  %5637 = vmatpush1.bf16.msra.mxu0 %v7834_v2  ;;  %v7840_v6 = vld [vmem:[#allocation11 + $0xc0] ss:$16 sps:$4 sm:$0xff]   ;;  %v8963_v53 = vld [vmem:[#allocation3 + $0x18] sm:$0xff]  ;;  %vm2184_vm2 = vcmask 1044484  }
  0x57   :  { %5708 = vmatpush1.bf16.msra.mxu1 %v7835_v3  ;;  %v7838_v5 = vld [vmem:[#allocation11 + $0x2c4] ss:$16 sps:$4 sm:$0xff]   ;;  %5638 = vmatprep.subr.bf16.mxu0 %v7836_v4  ;;  %v7841_v7 = vld [vmem:[#allocation11 + $0x2c0] ss:$16 sps:$4 sm:$0xff]   ;;  %v8967_v55 = vld [vmem:[#allocation3 + $0x28] sm:$0xff]  ;;  %s8887_s4 = smov [#allocation15]  }
  0x58   :  { %5709 = vmatprep.subr.bf16.mxu1 %v7838_v5  ;;  %v7842_v8 = vld [vmem:[#allocation11 + $0xa4] ss:$16 sps:$4 sm:$0xff]   ;;  %v7846_v10 = vld [vmem:[#allocation11 + $0xa0] ss:$16 sps:$4 sm:$0xff]   ;;  %v8971_v57 = vld [vmem:[#allocation3 + $0x38] sm:$0xff]  ;;  %s7112_s6 = sshll.u32 %s8887_s4, 4  ;;  %s11506_s6 = int_to_ptr.vmem [resolvable:$true] %s7112_s6 }
  0x59   :  { %v7844_v9 = vld [vmem:[#allocation11 + $0x2a4] ss:$16 sps:$4 sm:$0xff]   ;;  %v7847_v11 = vld [vmem:[#allocation11 + $0x2a0] ss:$16 sps:$4 sm:$0xff]   ;;  %v8975_v59 = vld [vmem:[#allocation3 + $0x88] sm:$0xff]  ;;  %s8845_s12 = scalar_lea.vmem %s11506_s6, 3584  ;;  %p8850_p8 = scmp.lt.s32.totalorder %s11506_s6, %s11506_s6 }
  0x5a   :  { %5639 = vmatpush1.bf16.msra.mxu0 %v7840_v6  ;;  %v7848_v12 = vld [vmem:[#allocation11 + $0x84] ss:$16 sps:$4 sm:$0xff]   ;;  %v7852_v14 = vld [vmem:[#allocation11 + $0x80] ss:$16 sps:$4 sm:$0xff]   ;;  %v8979_v63 = vld [vmem:[#allocation3 + $0x98] sm:$0xff]  ;;  %v356_v2 = vadd.f32 %v8975_v59, %v8959_v51  ;;  %p8846_p7 = scmp.ne.s32.totalorder %s11506_s6, %s8845_s12  ;;  %p8851_p9 = scmp.lt.s32.totalorder %s8845_s12, %s8845_s12 }
  0x5b   :  { %5710 = vmatpush1.bf16.msra.mxu1 %v7841_v7  ;;  %5640 = vmatprep.subr.bf16.mxu0 %v7842_v8  ;;  %v7850_v13 = vld [vmem:[#allocation11 + $0x284] ss:$16 sps:$4 sm:$0xff]   ;;  %v7853_v15 = vld [vmem:[#allocation11 + $0x280] ss:$16 sps:$4 sm:$0xff]   ;;  %v8987_v5 = vld [vmem:[#allocation3 + $0xa8] sm:$0xff] }
  0x5c   :  { %5711 = vmatprep.subr.bf16.mxu1 %v7844_v9  ;;  %v7854_v16 = vld [vmem:[#allocation11 + $0x64] ss:$16 sps:$4 sm:$0xff]   ;;  %v7858_v18 = vld [vmem:[#allocation11 + $0x60] ss:$16 sps:$4 sm:$0xff]   ;;  %v8991_v7 = vld [vmem:[#allocation3 + $0xb8] sm:$0xff]  ;;  %v382_v9 = vadd.f32 %v8979_v63, %v8963_v53  ;;  %p8852_p10 = por %p8851_p9, %p8850_p8 }
  0x5d   :  { %v7856_v17 = vld [vmem:[#allocation11 + $0x264] ss:$16 sps:$4 sm:$0xff]   ;;  %v7859_v19 = vld [vmem:[#allocation11 + $0x260] ss:$16 sps:$4 sm:$0xff]   ;;  %vm2182_vm1 = vsmask.f32 256 }
  0x5e   :  { %5641 = vmatpush1.bf16.msra.mxu0 %v7846_v10  ;;  %v7860_v20 = vld [vmem:[#allocation11 + $0x44] ss:$16 sps:$4 sm:$0xff]   ;;  %v7864_v22 = vld [vmem:[#allocation11 + $0x40] ss:$16 sps:$4 sm:$0xff]   ;;  %vm2185_vm3 = vsmask.f32 4352  ;;  %vm9629_vm4 = vmand %vm347_vm0, %vm2182_vm1  ;;  %p8853_p11 = pnand %p8852_p10, %p8846_p7 }
  0x5f   :  { %5712 = vmatpush1.bf16.msra.mxu1 %v7847_v11  ;;  %5642 = vmatprep.subr.bf16.mxu0 %v7848_v12  ;;  %v7862_v21 = vld [vmem:[#allocation11 + $0x244] ss:$16 sps:$4 sm:$0xff]   ;;  %v7865_v23 = vld [vmem:[#allocation11 + $0x240] ss:$16 sps:$4 sm:$0xff]   ;;  %v9001_v12 = vld [vmem:[#allocation3 + $0x108] sm:$0xff] }
  0x60   :  { %5713 = vmatprep.subr.bf16.mxu1 %v7850_v13  ;;  %v7866_v24 = vld [vmem:[#allocation11 + $0x24] ss:$16 sps:$4 sm:$0xff]   ;;  %v7870_v26 = vld [vmem:[#allocation11 + $0x20] ss:$16 sps:$4 sm:$0xff]   ;;  %vm9638_vm5 = vmand %vm2184_vm2, %vm2185_vm3 }
  0x61   :  { %v7868_v25 = vld [vmem:[#allocation11 + $0x224] ss:$16 sps:$4 sm:$0xff]   ;;  %v7871_v27 = vld [vmem:[#allocation11 + $0x220] ss:$16 sps:$4 sm:$0xff]   ;;  %vm9653_vm6 = vmor %vm9638_vm5, %vm9629_vm4 }
  0x62   :  { %5643 = vmatpush1.bf16.msra.mxu0 %v7852_v14  ;;  %v7872_v28 = vld [vmem:[#allocation11 + $0x4] ss:$16 sps:$4 sm:$0xff]   ;;  %v7876_v30 = vld [vmem:[#allocation11] ss:$16 sps:$4 sm:$0xff]   ;;  %v408_v14 = vadd.f32 %v8987_v5, %v8967_v55 }
  0x63   :  { %5714 = vmatpush1.bf16.msra.mxu1 %v7853_v15  ;;  %5644 = vmatprep.subr.bf16.mxu0 %v7854_v16  ;;  %v7874_v29 = vld [vmem:[#allocation11 + $0x204] ss:$16 sps:$4 sm:$0xff]   ;;  %v7877_v31 = vld [vmem:[#allocation11 + $0x200] ss:$16 sps:$4 sm:$0xff]   ;;  %v434_v16 = vadd.f32 %v8991_v7, %v8971_v57 }
  0x64   :  { %5715 = vmatprep.subr.bf16.mxu1 %v7856_v17  ;;  %v7878_v32 = vld [vmem:[#allocation11 + $0x1e4] ss:$16 sps:$4 sm:$0xff]   ;;  %v7882_v34 = vld [vmem:[#allocation11 + $0x1e0] ss:$16 sps:$4 sm:$0xff]   ;;  %v9011_v17 = vld [vmem:[#allocation3 + $0x118] sm:$0xff] }
  0x65   :  { %v7880_v33 = vld [vmem:[#allocation11 + $0x3e4] ss:$16 sps:$4 sm:$0xff]   ;;  %v7883_v35 = vld [vmem:[#allocation11 + $0x3e0] ss:$16 sps:$4 sm:$0xff]  }
  0x66   :  { %5645 = vmatpush1.bf16.msra.mxu0 %v7858_v18  ;;  %v7884_v36 = vld [vmem:[#allocation11 + $0x1c4] ss:$16 sps:$4 sm:$0xff]   ;;  %v7888_v38 = vld [vmem:[#allocation11 + $0x1c0] ss:$16 sps:$4 sm:$0xff]  }
  0x67   :  { %5716 = vmatpush1.bf16.msra.mxu1 %v7859_v19  ;;  %5646 = vmatprep.subr.bf16.mxu0 %v7860_v20  ;;  %v7886_v37 = vld [vmem:[#allocation11 + $0x3c4] ss:$16 sps:$4 sm:$0xff]   ;;  %v7889_v39 = vld [vmem:[#allocation11 + $0x3c0] ss:$16 sps:$4 sm:$0xff]   ;;  %v9015_v19 = vld [vmem:[#allocation3 + $0x128] sm:$0xff] }
  0x68   :  { %5717 = vmatprep.subr.bf16.mxu1 %v7862_v21  ;;  %v7890_v40 = vld [vmem:[#allocation11 + $0x1a4] ss:$16 sps:$4 sm:$0xff]   ;;  %v7894_v42 = vld [vmem:[#allocation11 + $0x1a0] ss:$16 sps:$4 sm:$0xff]   ;;  %v357_v21 = vadd.f32 %v356_v2, %v9001_v12 }
  0x69   :  { %v7892_v41 = vld [vmem:[#allocation11 + $0x3a4] ss:$16 sps:$4 sm:$0xff]   ;;  %v7895_v43 = vld [vmem:[#allocation11 + $0x3a0] ss:$16 sps:$4 sm:$0xff]  }
  0x6a   :  { %5647 = vmatpush1.bf16.msra.mxu0 %v7864_v22  ;;  %v7896_v44 = vld [vmem:[#allocation11 + $0x184] ss:$16 sps:$4 sm:$0xff]   ;;  %v7900_v46 = vld [vmem:[#allocation11 + $0x180] ss:$16 sps:$4 sm:$0xff]  }
  0x6b   :  { %5718 = vmatpush1.bf16.msra.mxu1 %v7865_v23  ;;  %5648 = vmatprep.subr.bf16.mxu0 %v7866_v24  ;;  %v7898_v45 = vld [vmem:[#allocation11 + $0x384] ss:$16 sps:$4 sm:$0xff]   ;;  %v7901_v47 = vld [vmem:[#allocation11 + $0x380] ss:$16 sps:$4 sm:$0xff]  }
  0x6c   :  { %5719 = vmatprep.subr.bf16.mxu1 %v7868_v25  ;;  %v8957_v48 = vld [vmem:[#allocation3] sm:$0xff]  ;;  %v8961_v52 = vld [vmem:[#allocation3 + $0x10] sm:$0xff] }
  0x6d   :  { %v7902_v49 = vld [vmem:[#allocation11 + $0x164] ss:$16 sps:$4 sm:$0xff]   ;;  %v7906_v60 = vld [vmem:[#allocation11 + $0x160] ss:$16 sps:$4 sm:$0xff]  }
  0x6e   :  { %5649 = vmatpush1.bf16.msra.mxu0 %v7870_v26  ;;  %v7904_v50 = vld [vmem:[#allocation11 + $0x364] ss:$16 sps:$4 sm:$0xff]   ;;  %v7907_v61 = vld [vmem:[#allocation11 + $0x360] ss:$16 sps:$4 sm:$0xff]   ;;  %v9022_v26 = vld [vmem:[#allocation3 + $0x138] sm:$0xff] }
  0x6f   :  { %5720 = vmatpush1.bf16.msra.mxu1 %v7871_v27  ;;  %5650 = vmatprep.subr.bf16.mxu0 %v7872_v28  ;;  %v8965_v54 = vld [vmem:[#allocation3 + $0x20] sm:$0xff]  ;;  %v8969_v56 = vld [vmem:[#allocation3 + $0x30] sm:$0xff]  ;;  %v383_v28 = vadd.f32 %v382_v9, %v9011_v17 }
  0x70   :  { %5721 = vmatprep.subr.bf16.mxu1 %v7874_v29  ;;  %v8973_v58 = vld [vmem:[#allocation3 + $0x80] sm:$0xff]  ;;  %v8977_v62 = vld [vmem:[#allocation3 + $0x90] sm:$0xff] }
  0x71   :  { %v8981_v0 = vld [vmem:[#allocation3 + $0xa0] sm:$0xff]  ;;  %v342_v1 = vadd.f32 %v8973_v58, %v8957_v48  ;;  %v8989_v6 = vld [vmem:[#allocation3 + $0xb0] sm:$0xff]  ;;  %v369_v8 = vadd.f32 %v8977_v62, %v8961_v52 }
  0x72   :  { %5651 = vmatpush1.bf16.msra.mxu0 %v7876_v30  ;;  %v7908_v3 = vld [vmem:[#allocation11 + $0x144] ss:$16 sps:$4 sm:$0xff]   ;;  %v395_v10 = vadd.f32 %v8981_v0, %v8965_v54  ;;  %v421_v15 = vadd.f32 %v8989_v6, %v8969_v56  ;;  %v7912_v23 = vld [vmem:[#allocation11 + $0x140] ss:$16 sps:$4 sm:$0xff]   ;;  %v409_v30 = vadd.f32 %v408_v14, %v9015_v19 }
  0x73   :  { %5722 = vmatpush1.bf16.msra.mxu1 %v7877_v31  ;;  %5652 = vmatprep.subr.bf16.mxu0 %v7878_v32  ;;  %v7910_v4 = vld [vmem:[#allocation11 + $0x344] ss:$16 sps:$4 sm:$0xff]   ;;  %v7913_v24 = vld [vmem:[#allocation11 + $0x340] ss:$16 sps:$4 sm:$0xff]  }
  0x74   :  { %5723 = vmatprep.subr.bf16.mxu1 %v7880_v33  ;;  %v8999_v11 = vld [vmem:[#allocation3 + $0x100] sm:$0xff]  ;;  %v9003_v13 = vld [vmem:[#allocation3 + $0x110] sm:$0xff]  ;;  %v9029_v33 = vld [vmem:[#allocation3 + $0x188] sm:$0xff] }
  0x75   :  { %v9013_v18 = vld [vmem:[#allocation3 + $0x120] sm:$0xff]  ;;  %v343_v20 = vadd.f32 %v342_v1, %v8999_v11  ;;  %v370_v22 = vadd.f32 %v369_v8, %v9003_v13  ;;  %v9020_v25 = vld [vmem:[#allocation3 + $0x130] sm:$0xff]  ;;  %v9058_v8 = vld [vmem:[#allocation3 + $0x218] sm:$0xff] }
  0x76   :  { %5653 = vmatpush2.bf16.msra.mxu0 %v7882_v34  ;;  %v9024_v27 = vld [vmem:[#allocation3 + $0x180] sm:$0xff]  ;;  %v396_v29 = vadd.f32 %v395_v10, %v9013_v18  ;;  %v9031_v34 = vld [vmem:[#allocation3 + $0x190] sm:$0xff]  ;;  %11777 = vst [vmem:[#allocation26_spill] sm:$0xff] %v9058_v8 }
  0x77   :  { %5724 = vmatpush2.bf16.msra.mxu1 %v7883_v35  ;;  %5654 = vmatprep.subr.bf16.mxu0 %v7884_v36  ;;  %v7914_v31 = vld [vmem:[#allocation11 + $0x124] ss:$16 sps:$4 sm:$0xff]   ;;  %v9033_v35 = vld [vmem:[#allocation3 + $0x198] sm:$0xff]  ;;  %v344_v36 = vadd.f32 %v343_v20, %v9024_v27  ;;  %v7919_v1 = vld [vmem:[#allocation11 + $0x320] ss:$16 sps:$4 sm:$0xff]  }
  0x78   :  { %5725 = vmatprep.subr.bf16.mxu1 %v7886_v37  ;;  %v7916_v32 = vld [vmem:[#allocation11 + $0x324] ss:$16 sps:$4 sm:$0xff]   ;;  %v422_v37 = vadd.f32 %v421_v15, %v9020_v25 }
  0x79   :  { %v9056_v2 = vld [vmem:[#allocation3 + $0x210] sm:$0xff] }
  0x7a   :  { %5655 = vmatpush2.bf16.msra.mxu0 %v7888_v38  ;;  %v435_v38 = vadd.f32 %v434_v16, %v9022_v26  ;;  %11776 = vst [vmem:[#allocation25_spill] sm:$0xff] %v9056_v2  ;;  %v7920_v14 = vld [vmem:[#allocation11 + $0x104] ss:$16 sps:$4 sm:$0xff]   ;;  %v9065_v16 = vld [vmem:[#allocation3 + $0x228] sm:$0xff] }
  0x7b   :  { %5726 = vmatpush2.bf16.msra.mxu1 %v7889_v39  ;;  %5656 = vmatprep.subr.bf16.mxu0 %v7890_v40  ;;  %v9038_v39 = vld [vmem:[#allocation3 + $0x1a0] sm:$0xff]  ;;  %v9040_v40 = vld [vmem:[#allocation3 + $0x1a8] sm:$0xff]  ;;  %11779 = vst [vmem:[#allocation28_spill] sm:$0xff] %v9065_v16  ;;  %v9067_v20 = vld [vmem:[#allocation3 + $0x230] sm:$0xff] }
  0x7c   :  { %5727 = vmatprep.subr.bf16.mxu1 %v7892_v41  ;;  %v9042_v41 = vld [vmem:[#allocation3 + $0x1b0] sm:$0xff]  ;;  %11780 = vst [vmem:[#allocation29_spill] sm:$0xff] %v9067_v20 }
  0x7d   :  { %11772 = vst [vmem:[#allocation21_spill] sm:$0xff] %v9042_v41  ;;  %v7922_v15 = vld [vmem:[#allocation11 + $0x304] ss:$16 sps:$4 sm:$0xff]  }
  0x7e   :  { %5657 = vmatpush2.bf16.msra.mxu0 %v7894_v42  ;;  %v358_v42 = vadd.f32 %v357_v21, %v9029_v33  ;;  %v9069_v21 = vld [vmem:[#allocation3 + $0x238] sm:$0xff] }
  0x7f   :  { %5728 = vmatpush2.bf16.msra.mxu1 %v7895_v43  ;;  %5658 = vmatprep.subr.bf16.mxu0 %v7896_v44  ;;  %v371_v43 = vadd.f32 %v370_v22, %v9031_v34  ;;  %v384_v44 = vadd.f32 %v383_v28, %v9033_v35  ;;  %11781 = vst [vmem:[#allocation30_spill] sm:$0xff] %v9069_v21 }
  0x80   :  { %5729 = vmatprep.subr.bf16.mxu1 %v7898_v45  ;;  %v9047_v45 = vld [vmem:[#allocation3 + $0x1b8] sm:$0xff] }
  0x81   :  { %11773 = vst [vmem:[#allocation22_spill] sm:$0xff] %v9047_v45  ;;  %v436_v10 = vadd.f32 %v435_v38, %v9047_v45  ;;  %v372_v22 = vadd.f32 %v371_v43, %v9056_v2  ;;  %v385_v28 = vadd.f32 %v384_v44, %v9058_v8  ;;  %v9085_v43 = vld [vmem:[#allocation3 + $0x2a8] sm:$0xff]  ;;  %v7924_v44 = vld [vmem:[#allocation11 + $0x100] ss:$16 sps:$4 sm:$0xff]   ;;  %v9091_v2 = vld [vmem:[#allocation3 + $0x2b8] sm:$0xff] }
  0x82   :  { %5659 = vmatpush2.bf16.msra.mxu0 %v7900_v46  ;;  %v9049_v46 = vld [vmem:[#allocation3 + $0x200] sm:$0xff]  ;;  %11787 = vst [vmem:[#allocation36_spill] sm:$0xff] %v9085_v43  ;;  %v9089_v8 = vld [vmem:[#allocation3 + $0x2b0] sm:$0xff]  ;;  %11789 = vst [vmem:[#allocation38_spill] sm:$0xff] %v9091_v2 }
  0x83   :  { %5730 = vmatpush2.bf16.msra.mxu1 %v7901_v47  ;;  %5660 = vmatprep.subr.bf16.mxu0 %v7902_v49  ;;  %11774 = vst [vmem:[#allocation23_spill] sm:$0xff] %v9049_v46  ;;  %v9051_v47 = vld [vmem:[#allocation3 + $0x208] sm:$0xff]  ;;  %v397_v49 = vadd.f32 %v396_v29, %v9038_v39  ;;  %v9073_v29 = vld [vmem:[#allocation3 + $0x280] sm:$0xff]  ;;  %11788 = vst [vmem:[#allocation37_spill] sm:$0xff] %v9089_v8 }
  0x84   :  { %5731 = vmatprep.subr.bf16.mxu1 %v7904_v50  ;;  %11775 = vst [vmem:[#allocation24_spill] sm:$0xff] %v9051_v47  ;;  %v410_v50 = vadd.f32 %v409_v30, %v9040_v40  ;;  %v359_v9 = vadd.f32 %v358_v42, %v9051_v47  ;;  %11782 = vst [vmem:[#allocation31_spill] sm:$0xff] %v9073_v29  ;;  %v9075_v30 = vld [vmem:[#allocation3 + $0x288] sm:$0xff]  ;;  %v9081_v42 = vld [vmem:[#allocation3 + $0x298] sm:$0xff] }
  0x85   :  { %11783 = vst [vmem:[#allocation32_spill] sm:$0xff] %v9075_v30  ;;  %11785 = vst [vmem:[#allocation34_spill] sm:$0xff] %v9081_v42  ;;  %v9083_v47 = vld [vmem:[#allocation3 + $0x2a0] sm:$0xff] }
  0x86   :  { %5661 = vmatpush2.bf16.msra.mxu0 %v7906_v60  ;;  %v423_v60 = vadd.f32 %v422_v37, %v9042_v41  ;;  %v411_v38 = vadd.f32 %v410_v50, %v9065_v16  ;;  %11786 = vst [vmem:[#allocation35_spill] sm:$0xff] %v9083_v47  ;;  %v9097_v50 = vld [vmem:[#allocation3 + $0x308] sm:$0x1]  ;;  %v9099_v16 = vld [vmem:[#allocation3 + $0x310] sm:$0x1] }
  0x87   :  { %5732 = vmatpush2.bf16.msra.mxu1 %v7907_v61  ;;  %5662 = vmatprep.subr.bf16.mxu0 %v7908_v3  ;;  %v7918_v61 = vld [vmem:[#allocation11 + $0x120] ss:$16 sps:$4 sm:$0xff]   ;;  %11791 = vst [vmem:[#allocation40_spill] sm:$0xff] %v9097_v50  ;;  %11792 = vst [vmem:[#allocation41_spill] sm:$0xff] %v9099_v16 }
  0x88   :  { %5733 = vmatprep.subr.bf16.mxu1 %v7910_v4  ;;  %v9060_v3 = vld [vmem:[#allocation3 + $0x220] sm:$0xff]  ;;  %v345_v4 = vadd.f32 %v344_v36, %v9049_v46  ;;  %v9077_v36 = vld [vmem:[#allocation3 + $0x290] sm:$0xff]  ;;  %v9107_v46 = vld [vmem:[#allocation3 + $0x328] sm:$0x1] }
  0x89   :  { %11778 = vst [vmem:[#allocation27_spill] sm:$0xff] %v9060_v3  ;;  %11784 = vst [vmem:[#allocation33_spill] sm:$0xff] %v9077_v36  ;;  %v398_v37 = vadd.f32 %v397_v49, %v9060_v3  ;;  %v9093_v49 = vld [vmem:[#allocation3 + $0x300] sm:$0x1]  ;;  %v9101_v3 = vld [vmem:[#allocation3 + $0x318] sm:$0x1] }
  0x8a   :  { %5663 = vmatpush2.bf16.msra.mxu0 %v7912_v23  ;;  %v424_v23 = vadd.f32 %v423_v60, %v9067_v20  ;;  %11790 = vst [vmem:[#allocation39_spill] sm:$0xff] %v9093_v49  ;;  %11793 = vst [vmem:[#allocation42_spill] sm:$0xff] %v9101_v3  ;;  %v373_v60 = vadd.f32 %v372_v22, %v9077_v36  ;;  %v9105_v20 = vld [vmem:[#allocation3 + $0x320] sm:$0x1]  ;;  %v361_v22 = vsel %vm347_vm0, %v9097_v50, 0.0 }
  0x8b   :  { %5734 = vmatpush2.bf16.msra.mxu1 %v7913_v24  ;;  %5664 = vmatprep.subr.bf16.mxu0 %v7914_v31  ;;  %v437_v24 = vadd.f32 %v436_v10, %v9069_v21  ;;  %v346_v31 = vadd.f32 %v345_v4, %v9073_v29  ;;  %v386_v10 = vadd.f32 %v385_v28, %v9081_v42  ;;  %v7925_v21 = vld [vmem:[#allocation11 + $0x300] ss:$16 sps:$4 sm:$0xff]   ;;  %v9119_v42 = vld [vmem:[#allocation3 + $0x338] sm:$0x1]  ;;  %v400_v50 = vsel %vm347_vm0, %v9105_v20, 0.0 }
  0x8c   :  { %5735 = vmatprep.subr.bf16.mxu1 %v7916_v32  ;;  %v360_v32 = vadd.f32 %v359_v9, %v9075_v30  ;;  %11794 = vst [vmem:[#allocation43_spill] sm:$0xff] %v9105_v20  ;;  %11795 = vst [vmem:[#allocation44_spill] sm:$0xff] %v9107_v46  ;;  %v399_v4 = vadd.f32 %v398_v37, %v9083_v47  ;;  %v412_v9 = vadd.f32 %v411_v38, %v9085_v43  ;;  %v9117_v28 = vld [vmem:[#allocation3 + $0x330] sm:$0x1]  ;;  %v7931_v43 = vld [vmem:[#allocation11 + $0x6e4] ss:$16 sps:$4 sm:$0xff]  }
  0x8d   :  { %v348_v30 = vsel %vm347_vm0, %v9093_v49, 0.0  ;;  %11796 = vst [vmem:[#allocation45_spill] sm:$0xff] %v9117_v28  ;;  %11797 = vst [vmem:[#allocation46_spill] sm:$0xff] %v9119_v42 }
  0x8e   :  { %5665 = vmatpush2.bf16.msra.mxu0 %v7918_v61  ;;  %v425_v61 = vadd.f32 %v424_v23, %v9089_v8  ;;  %v349_v36 = vadd.f32 %v348_v30, %v346_v31  ;;  %v362_v37 = vadd.f32 %v361_v22, %v360_v32  ;;  %v413_v23 = vsel %vm347_vm0, %v9107_v46, 0.0 }
  0x8f   :  { %5736 = vmatpush2.bf16.msra.mxu1 %v7919_v1  ;;  %5666 = vmatprep.subr.bf16.mxu0 %v7920_v14  ;;  %v438_v1 = vadd.f32 %v437_v24, %v9091_v2  ;;  %v374_v14 = vsel %vm347_vm0, %v9099_v16, 0.0  ;;  %v401_v30 = vadd.f32 %v400_v50, %v399_v4  ;;  %v414_v31 = vadd.f32 %v413_v23, %v412_v9 }
  0x90   :  { %5737 = vmatprep.subr.bf16.mxu1 %v7922_v15  ;;  %v387_v15 = vsel %vm347_vm0, %v9101_v3, 0.0  ;;  %v375_v38 = vadd.f32 %v374_v14, %v373_v60  ;;  %v350_v24 = vrot.slane %v349_v36, 4  ;;  %v363_v2 = vrot.slane %v362_v37, 4  ;;  %v7928_v3 = vld [vmem:[#allocation11 + $0x4e4] ss:$16 sps:$4 sm:$0xff]  }
  0x91   :  { %v388_v49 = vadd.f32 %v387_v15, %v386_v10  ;;  %v426_v16 = vsel %vm347_vm0, %v9117_v28, 0.0  ;;  %v439_v60 = vsel %vm347_vm0, %v9119_v42, 0.0  ;;  %v402_v15 = vrot.slane %v401_v30, 4 }
  0x92   :  { %5667 = vmatpush2.bf16.msra.mxu0 %v7924_v44  ;;  %v376_v32 = vrot.slane %v375_v38, 4  ;;  %v351_v10 = vadd.f32 %v350_v24, %v349_v36  ;;  %v364_v14 = vadd.f32 %v363_v2, %v362_v37  ;;  %v415_v20 = vrot.slane %v414_v31, 4 }
  0x93   :  { %5738 = vmatpush2.bf16.msra.mxu1 %v7925_v21  ;;  %v389_v22 = vrot.slane %v388_v49, 4  ;;  %v427_v21 = vadd.f32 %v426_v16, %v425_v61  ;;  %v440_v8 = vadd.f32 %v439_v60, %v438_v1  ;;  %v403_v9 = vadd.f32 %v402_v15, %v401_v30  ;;  %5778 = vmatprep.subr.bf16.mxu0 %v7928_v3 }
  0x94   :  { %v377_v46 = vadd.f32 %v376_v32, %v375_v38  ;;  %v352_v50 = vrot.slane %v351_v10, 2  ;;  %v365_v4 = vrot.slane %v364_v14, 2  ;;  %v416_v23 = vadd.f32 %v415_v20, %v414_v31  ;;  %5849 = vmatprep.subr.bf16.mxu1 %v7931_v43 }
  0x95   :  { %v390_v44 = vadd.f32 %v389_v22, %v388_v49  ;;  %v428_v29 = vrot.slane %v427_v21, 4  ;;  %v441_v45 = vrot.slane %v440_v8, 4  ;;  %v404_v37 = vrot.slane %v403_v9, 2 }
  0x96   :  { %v378_v47 = vrot.slane %v377_v46, 2  ;;  %v353_v36 = vadd.f32 %v352_v50, %v351_v10  ;;  %v366_v2 = vadd.f32 %v365_v4, %v364_v14  ;;  %v417_v24 = vrot.slane %v416_v23, 2 }
  0x97   :  { %v391_v28 = vrot.slane %v390_v44, 2  ;;  %v429_v49 = vadd.f32 %v428_v29, %v427_v21  ;;  %v442_v16 = vadd.f32 %v441_v45, %v440_v8  ;;  %v405_v32 = vadd.f32 %v404_v37, %v403_v9 }
  0x98   :  { %v379_v42 = vadd.f32 %v378_v47, %v377_v46  ;;  %v354_v61 = vrot.slane %v353_v36, 1  ;;  %v367_v1 = vrot.slane %v366_v2, 1  ;;  %v418_v22 = vadd.f32 %v417_v24, %v416_v23 }
  0x99   :  { %v392_v38 = vadd.f32 %v391_v28, %v390_v44  ;;  %v430_v3 = vrot.slane %v429_v49, 2  ;;  %v443_v31 = vrot.slane %v442_v16, 2  ;;  %v406_v41 = vrot.slane %v405_v32, 1 }
  0x9a   :  { %v380_v30 = vrot.slane %v379_v42, 1  ;;  %v355_v60 = vadd.f32 %v354_v61, %v353_v36  ;;  %v368_v15 = vadd.f32 %v367_v1, %v366_v2  ;;  %v419_v43 = vrot.slane %v418_v22, 1 }
  0x9b   :  { %v393_v20 = vrot.slane %v392_v38, 1  ;;  %v431_v50 = vadd.f32 %v430_v3, %v429_v49  ;;  %v444_v4 = vadd.f32 %v443_v31, %v442_v16  ;;  %v407_v46 = vadd.f32 %v406_v41, %v405_v32 }
  0x9c   :  { %v381_v10 = vadd.f32 %v380_v30, %v379_v42  ;;  %v420_v47 = vadd.f32 %v419_v43, %v418_v22  ;;  %v551_v29 = vmul.f32 0.020408163, %v355_v60  ;;  %v552_v45 = vmul.f32 0.020408163, %v368_v15  ;;  %v11842_v15 = vld [vmem:[#allocation28_spill] sm:$0xff] }
  0x9d   :  { %v394_v14 = vadd.f32 %v393_v20, %v392_v38  ;;  %v432_v8 = vrot.slane %v431_v50, 1  ;;  %v445_v28 = vrot.slane %v444_v4, 1  ;;  %v555_v9 = vmul.f32 0.020408163, %v407_v46  ;;  %v11848_v46 = vld [vmem:[#allocation31_spill] sm:$0xff] }
  0x9e   :  { %v553_v44 = vmul.f32 0.020408163, %v381_v10  ;;  %v556_v23 = vmul.f32 0.020408163, %v420_v47  ;;  %v9134_v37 = vsub.f32 %v8957_v48, %v551_v29  ;;  %v9137_v36 = vsub.f32 %v8959_v51, %v552_v45  ;;  %v11844_v10 = vld [vmem:[#allocation29_spill] sm:$0xff] }
  0x9f   :  { %v554_v21 = vmul.f32 0.020408163, %v394_v14  ;;  %v433_v42 = vadd.f32 %v432_v8, %v431_v50  ;;  %v446_v2 = vadd.f32 %v445_v28, %v444_v4  ;;  %v9146_v38 = vsub.f32 %v8965_v54, %v555_v9  ;;  %v11846_v50 = vld [vmem:[#allocation30_spill] sm:$0xff]  ;;  %v11850_v8 = vld [vmem:[#allocation32_spill] sm:$0xff] }
  0xa0   :  { %11798 = vst [vmem:[#allocation47_spill] sm:$0xff] %v9134_v37  ;;  %11799 = vst [vmem:[#allocation48_spill] sm:$0xff] %v9137_v36  ;;  %v9140_v24 = vsub.f32 %v8961_v52, %v553_v44  ;;  %v9149_v49 = vsub.f32 %v8967_v55, %v556_v23  ;;  %v9152_v48 = vsub.f32 %v8973_v58, %v551_v29 }
  0xa1   :  { %v9143_v41 = vsub.f32 %v8963_v53, %v554_v21  ;;  %11802 = vst [vmem:[#allocation51_spill] sm:$0xff] %v9146_v38  ;;  %v9155_v51 = vsub.f32 %v8975_v59, %v552_v45  ;;  %v557_v16 = vmul.f32 0.020408163, %v433_v42  ;;  %v558_v61 = vmul.f32 0.020408163, %v446_v2  ;;  %v11852_v42 = vld [vmem:[#allocation33_spill] sm:$0xff] }
  0xa2   :  { %11800 = vst [vmem:[#allocation49_spill] sm:$0xff] %v9140_v24  ;;  %11803 = vst [vmem:[#allocation52_spill] sm:$0xff] %v9149_v49  ;;  %v9158_v52 = vsub.f32 %v8977_v62, %v553_v44  ;;  %v9161_v53 = vsub.f32 %v8979_v63, %v554_v21  ;;  %v9164_v54 = vsub.f32 %v8981_v0, %v555_v9 }
  0xa3   :  { %11801 = vst [vmem:[#allocation50_spill] sm:$0xff] %v9143_v41  ;;  %11804 = vst [vmem:[#allocation53_spill] sm:$0xff] %v9152_v48  ;;  %v9167_v55 = vsub.f32 %v8987_v5, %v556_v23  ;;  %v9170_v58 = vsub.f32 %v8999_v11, %v551_v29  ;;  %v9173_v59 = vsub.f32 %v9001_v12, %v552_v45 }
  0xa4   :  { %11805 = vst [vmem:[#allocation54_spill] sm:$0xff] %v9155_v51  ;;  %11806 = vst [vmem:[#allocation55_spill] sm:$0xff] %v9158_v52  ;;  %v9176_v1 = vsub.f32 %v8969_v56, %v557_v16  ;;  %v9179_v62 = vsub.f32 %v8971_v57, %v558_v61  ;;  %v9182_v63 = vsub.f32 %v8989_v6, %v557_v16 }
  0xa5   :  { %11807 = vst [vmem:[#allocation56_spill] sm:$0xff] %v9161_v53  ;;  %11808 = vst [vmem:[#allocation57_spill] sm:$0xff] %v9164_v54  ;;  %v9185_v0 = vsub.f32 %v8991_v7, %v558_v61  ;;  %v9188_v5 = vsub.f32 %v9003_v13, %v553_v44  ;;  %v9191_v11 = vsub.f32 %v9011_v17, %v554_v21 }
  0xa6   :  { %11809 = vst [vmem:[#allocation58_spill] sm:$0xff] %v9167_v55  ;;  %11810 = vst [vmem:[#allocation59_spill] sm:$0xff] %v9170_v58  ;;  %v9194_v12 = vsub.f32 %v9013_v18, %v555_v9  ;;  %v9197_v56 = vsub.f32 %v9015_v19, %v556_v23  ;;  %v9200_v57 = vsub.f32 %v9020_v25, %v557_v16 }
  0xa7   :  { %11811 = vst [vmem:[#allocation60_spill] sm:$0xff] %v9173_v59  ;;  %11812 = vst [vmem:[#allocation61_spill] sm:$0xff] %v9176_v1  ;;  %v9203_v6 = vsub.f32 %v9022_v26, %v558_v61  ;;  %v9206_v7 = vsub.f32 %v9024_v27, %v551_v29  ;;  %v9209_v13 = vsub.f32 %v9029_v33, %v552_v45  ;;  %v11828_v26 = vld [vmem:[#allocation21_spill] sm:$0xff]  ;;  %v11830_v27 = vld [vmem:[#allocation22_spill] sm:$0xff] }
  0xa8   :  { %11813 = vst [vmem:[#allocation62_spill] sm:$0xff] %v9179_v62  ;;  %11814 = vst [vmem:[#allocation63_spill] sm:$0xff] %v9182_v63  ;;  %v9212_v17 = vsub.f32 %v9031_v34, %v553_v44  ;;  %v9215_v18 = vsub.f32 %v9033_v35, %v554_v21  ;;  %v9218_v19 = vsub.f32 %v9038_v39, %v555_v9  ;;  %v11832_v33 = vld [vmem:[#allocation23_spill] sm:$0xff]  ;;  %v11834_v34 = vld [vmem:[#allocation24_spill] sm:$0xff] }
  0xa9   :  { %11815 = vst [vmem:[#allocation64_spill] sm:$0xff] %v9185_v0  ;;  %11816 = vst [vmem:[#allocation65_spill] sm:$0xff] %v9188_v5  ;;  %v9221_v25 = vsub.f32 %v9040_v40, %v556_v23  ;;  %v9224_v32 = vsub.f32 %v11828_v26, %v557_v16  ;;  %v9227_v22 = vsub.f32 %v11830_v27, %v558_v61  ;;  %v11836_v35 = vld [vmem:[#allocation25_spill] sm:$0xff]  ;;  %v11838_v39 = vld [vmem:[#allocation26_spill] sm:$0xff] }
  0xaa   :  { %11817 = vst [vmem:[#allocation66_spill] sm:$0xff] %v9191_v11  ;;  %11818 = vst [vmem:[#allocation67_spill] sm:$0xff] %v9194_v12  ;;  %v9230_v30 = vsub.f32 %v11832_v33, %v551_v29  ;;  %v9233_v20 = vsub.f32 %v11834_v34, %v552_v45  ;;  %v9236_v3 = vsub.f32 %v11836_v35, %v553_v44  ;;  %v11840_v40 = vld [vmem:[#allocation27_spill] sm:$0xff]  ;;  %v11854_v26 = vld [vmem:[#allocation34_spill] sm:$0xff] }
  0xab   :  { %11819 = vst [vmem:[#allocation68_spill] sm:$0xff] %v9197_v56  ;;  %11820 = vst [vmem:[#allocation69_spill] sm:$0xff] %v9200_v57  ;;  %v9239_v31 = vsub.f32 %v11838_v39, %v554_v21  ;;  %v9242_v60 = vsub.f32 %v11840_v40, %v555_v9  ;;  %v9245_v43 = vsub.f32 %v11842_v15, %v556_v23  ;;  %v11856_v33 = vld [vmem:[#allocation35_spill] sm:$0xff]  ;;  %v11858_v35 = vld [vmem:[#allocation36_spill] sm:$0xff] }
  0xac   :  { %11821 = vst [vmem:[#allocation70_spill] sm:$0xff] %v9203_v6  ;;  %11822 = vst [vmem:[#allocation71_spill] sm:$0xff] %v9206_v7  ;;  %v9248_v14 = vsub.f32 %v11844_v10, %v557_v16  ;;  %v9251_v4 = vsub.f32 %v11846_v50, %v558_v61  ;;  %v9254_v47 = vsub.f32 %v11848_v46, %v551_v29  ;;  %v11860_v40 = vld [vmem:[#allocation37_spill] sm:$0xff]  ;;  %v11862_v10 = vld [vmem:[#allocation38_spill] sm:$0xff] }
  0xad   :  { %11823 = vst [vmem:[#allocation72_spill] sm:$0xff] %v9209_v13  ;;  %11824 = vst [vmem:[#allocation73_spill] sm:$0xff] %v9212_v17  ;;  %v9257_v28 = vsub.f32 %v11850_v8, %v552_v45  ;;  %v9260_v2 = vsub.f32 %v11852_v42, %v553_v44  ;;  %v9263_v27 = vsub.f32 %v11854_v26, %v554_v21  ;;  %v11864_v46 = vld [vmem:[#allocation39_spill] sm:$0xff]  ;;  %v11866_v42 = vld [vmem:[#allocation40_spill] sm:$0xff] }
  0xae   :  { %11825 = vst [vmem:[#allocation74_spill] sm:$0xff] %v9215_v18  ;;  %11826 = vst [vmem:[#allocation75_spill] sm:$0xff] %v9218_v19  ;;  %v9266_v34 = vsub.f32 %v11856_v33, %v555_v9  ;;  %v9269_v39 = vsub.f32 %v11858_v35, %v556_v23  ;;  %v9272_v15 = vsub.f32 %v11860_v40, %v557_v16  ;;  %v11868_v26 = vld [vmem:[#allocation41_spill] sm:$0xff]  ;;  %v11870_v33 = vld [vmem:[#allocation42_spill] sm:$0xff] }
  0xaf   :  { %11827 = vst [vmem:[#allocation76_spill] sm:$0xff] %v9221_v25  ;;  %11829 = vst [vmem:[#allocation21_spill] sm:$0xff] %v9224_v32  ;;  %v9275_v50 = vsub.f32 %v11862_v10, %v558_v61  ;;  %v9278_v8 = vsub.f32 %v11864_v46, %v551_v29  ;;  %v11872_v35 = vld [vmem:[#allocation43_spill] sm:$0xff]  ;;  %v11874_v40 = vld [vmem:[#allocation44_spill] sm:$0xff] }
  0xb0   :  { %11831 = vst [vmem:[#allocation22_spill] sm:$0xff] %v9227_v22  ;;  %11833 = vst [vmem:[#allocation23_spill] sm:$0xff] %v9230_v30  ;;  %v11876_v10 = vld [vmem:[#allocation45_spill] sm:$0xff]  ;;  %v11878_v29 = vld [vmem:[#allocation46_spill] sm:$0xff] }
  0xb1   :  { %11835 = vst [vmem:[#allocation24_spill] sm:$0xff] %v9233_v20  ;;  %11837 = vst [vmem:[#allocation25_spill] sm:$0xff] %v9236_v3  ;;  %v9299_v46 = vsub.f32 %v11878_v29, %v558_v61  ;;  %v9317_v61 = vmul.f32 %v9176_v1, %v9176_v1  ;;  %v700_v29 = vmul.f32 %v9167_v55, %v9167_v55 }
  0xb2   :  { %11839 = vst [vmem:[#allocation26_spill] sm:$0xff] %v9239_v31  ;;  %11841 = vst [vmem:[#allocation27_spill] sm:$0xff] %v9242_v60  ;;  %v9341_v1 = vmul.f32 %v9185_v0, %v9185_v0  ;;  %v714_v55 = vmul.f32 %v9191_v11, %v9191_v11  ;;  %v9357_v0 = vmul.f32 %v9200_v57, %v9200_v57 }
  0xb3   :  { %11843 = vst [vmem:[#allocation28_spill] sm:$0xff] %v9245_v43  ;;  %11845 = vst [vmem:[#allocation29_spill] sm:$0xff] %v9248_v14  ;;  %v728_v11 = vmul.f32 %v9209_v13, %v9209_v13  ;;  %v731_v57 = vmul.f32 %v9218_v19, %v9218_v19  ;;  %v745_v19 = vmul.f32 %v9236_v3, %v9236_v3 }
  0xb4   :  { %11847 = vst [vmem:[#allocation30_spill] sm:$0xff] %v9251_v4  ;;  %11849 = vst [vmem:[#allocation31_spill] sm:$0xff] %v9254_v47  ;;  %v748_v13 = vmul.f32 %v9245_v43, %v9245_v43  ;;  %v759_v3 = vmul.f32 %v9254_v47, %v9254_v47 }
  0xb5   :  { %11851 = vst [vmem:[#allocation32_spill] sm:$0xff] %v9257_v28  ;;  %11853 = vst [vmem:[#allocation33_spill] sm:$0xff] %v9260_v2  ;;  %v9281_v2 = vsub.f32 %v11866_v42, %v552_v45  ;;  %v679_v45 = vmul.f32 %v9134_v37, %v9134_v37  ;;  %v9321_v42 = vmul.f32 %v9179_v62, %v9179_v62 }
  0xb6   :  { %11855 = vst [vmem:[#allocation34_spill] sm:$0xff] %v9263_v27  ;;  %11857 = vst [vmem:[#allocation35_spill] sm:$0xff] %v9266_v34  ;;  %v9284_v27 = vsub.f32 %v11868_v26, %v553_v44  ;;  %v9287_v34 = vsub.f32 %v11870_v33, %v554_v21  ;;  %v680_v44 = vmul.f32 %v9137_v36, %v9137_v36 }
  0xb7   :  { %11859 = vst [vmem:[#allocation36_spill] sm:$0xff] %v9269_v39  ;;  %11861 = vst [vmem:[#allocation37_spill] sm:$0xff] %v9272_v15  ;;  %v9290_v39 = vsub.f32 %v11872_v35, %v555_v9  ;;  %v9293_v15 = vsub.f32 %v11874_v40, %v556_v23  ;;  %v681_v21 = vmul.f32 %v9140_v24, %v9140_v24 }
  0xb8   :  { %11863 = vst [vmem:[#allocation38_spill] sm:$0xff] %v9275_v50  ;;  %11865 = vst [vmem:[#allocation39_spill] sm:$0xff] %v9278_v8  ;;  %v9296_v50 = vsub.f32 %v11876_v10, %v557_v16  ;;  %v682_v9 = vmul.f32 %v9143_v41, %v9143_v41  ;;  %v683_v23 = vmul.f32 %v9146_v38, %v9146_v38 }
  0xb9   :  { %11867 = vst [vmem:[#allocation40_spill] sm:$0xff] %v9281_v2  ;;  %11869 = vst [vmem:[#allocation41_spill] sm:$0xff] %v9284_v27  ;;  %v9313_v16 = vmul.f32 %v9149_v49, %v9149_v49  ;;  %v695_v26 = vmul.f32 %v9152_v48, %v9152_v48  ;;  %v696_v33 = vmul.f32 %v9155_v51, %v9155_v51 }
  0xba   :  { %11871 = vst [vmem:[#allocation42_spill] sm:$0xff] %v9287_v34  ;;  %11873 = vst [vmem:[#allocation43_spill] sm:$0xff] %v9290_v39  ;;  %v697_v35 = vmul.f32 %v9158_v52, %v9158_v52  ;;  %v698_v40 = vmul.f32 %v9161_v53, %v9161_v53  ;;  %v699_v10 = vmul.f32 %v9164_v54, %v9164_v54 }
  0xbb   :  { %11875 = vst [vmem:[#allocation44_spill] sm:$0xff] %v9293_v15  ;;  %11877 = vst [vmem:[#allocation45_spill] sm:$0xff] %v9296_v50  ;;  %v9337_v62 = vmul.f32 %v9182_v63, %v9182_v63  ;;  %v711_v49 = vmul.f32 %v9170_v58, %v9170_v58  ;;  %v712_v38 = vmul.f32 %v9173_v59, %v9173_v59 }
  0xbc   :  { %11879 = vst [vmem:[#allocation46_spill] sm:$0xff] %v9299_v46  ;;  %v713_v54 = vmul.f32 %v9188_v5, %v9188_v5  ;;  %v715_v63 = vmul.f32 %v9194_v12, %v9194_v12  ;;  %v716_v53 = vmul.f32 %v9197_v56, %v9197_v56  ;;  %v9361_v58 = vmul.f32 %v9203_v6, %v9203_v6 }
  0xbd   :  { %v727_v5 = vmul.f32 %v9206_v7, %v9206_v7  ;;  %v729_v12 = vmul.f32 %v9212_v17, %v9212_v17  ;;  %v730_v56 = vmul.f32 %v9215_v18, %v9215_v18  ;;  %v732_v59 = vmul.f32 %v9221_v25, %v9221_v25  ;;  %v11885_v52 = vld [vmem:[#allocation34_spill] sm:$0xff]  ;;  %v11886_v41 = vld [vmem:[#allocation35_spill] sm:$0xff] }
  0xbe   :  { %11880 = vst [vmem:[#allocation77_spill] sm:$0xff] %v9361_v58  ;;  %v9377_v6 = vmul.f32 %v9224_v32, %v9224_v32  ;;  %v9381_v7 = vmul.f32 %v9227_v22, %v9227_v22  ;;  %v743_v17 = vmul.f32 %v9230_v30, %v9230_v30  ;;  %v744_v18 = vmul.f32 %v9233_v20, %v9233_v20  ;;  %v11884_v20 = vld [vmem:[#allocation33_spill] sm:$0xff]  ;;  %v11887_v24 = vld [vmem:[#allocation36_spill] sm:$0xff] }
  0xbf   :  { %v746_v25 = vmul.f32 %v9239_v31, %v9239_v31  ;;  %v747_v32 = vmul.f32 %v9242_v60, %v9242_v60  ;;  %v9397_v22 = vmul.f32 %v9248_v14, %v9248_v14  ;;  %v9401_v30 = vmul.f32 %v9251_v4, %v9251_v4  ;;  %v11888_v4 = vld [vmem:[#allocation37_spill] sm:$0xff]  ;;  %v11890_v47 = vld [vmem:[#allocation38_spill] sm:$0xff] }
  0xc0   :  { %11881 = vst [vmem:[#allocation78_spill] sm:$0xff] %v9381_v7  ;;  %v760_v31 = vmul.f32 %v9257_v28, %v9257_v28  ;;  %v761_v60 = vmul.f32 %v11884_v20, %v11884_v20  ;;  %v762_v43 = vmul.f32 %v11885_v52, %v11885_v52  ;;  %v763_v14 = vmul.f32 %v11886_v41, %v11886_v41 }
  0xc1   :  { %11882 = vst [vmem:[#allocation79_spill] sm:$0xff] %v9397_v22  ;;  %11883 = vst [vmem:[#allocation80_spill] sm:$0xff] %v9401_v30  ;;  %v764_v51 = vmul.f32 %v11887_v24, %v11887_v24  ;;  %v9417_v48 = vmul.f32 %v11888_v4, %v11888_v4  ;;  %v9421_v36 = vmul.f32 %v11890_v47, %v11890_v47 }
  0xc2   :  { %v775_v20 = vmul.f32 %v9278_v8, %v9278_v8  ;;  %v776_v52 = vmul.f32 %v9281_v2, %v9281_v2  ;;  %v777_v41 = vmul.f32 %v9284_v27, %v9284_v27  ;;  %v778_v24 = vmul.f32 %v9287_v34, %v9287_v34 }
  0xc3   :  { %11889 = vst [vmem:[#allocation81_spill] sm:$0xff] %v9417_v48  ;;  %11891 = vst [vmem:[#allocation82_spill] sm:$0xff] %v9421_v36  ;;  %v779_v4 = vmul.f32 %v9290_v39, %v9290_v39  ;;  %v780_v28 = vmul.f32 %v9293_v15, %v9293_v15  ;;  %v781_v47 = vmul.f32 %v9296_v50, %v9296_v50 }
  0xc4   :  { %v9439_v8 = vmul.f32 %v9299_v46, %v9299_v46  ;;  %v791_v2 = vadd.f32 %v695_v26, %v679_v45  ;;  %v796_v37 = vsel %vm347_vm0, %v775_v20, 0.0  ;;  %v804_v27 = vadd.f32 %v696_v33, %v680_v44 }
  0xc5   :  { %v809_v36 = vsel %vm347_vm0, %v776_v52, 0.0  ;;  %v817_v34 = vadd.f32 %v697_v35, %v681_v21  ;;  %v822_v30 = vsel %vm347_vm0, %v777_v41, 0.0  ;;  %v830_v48 = vadd.f32 %v698_v40, %v682_v9 }
  0xc6   :  { %v792_v39 = vadd.f32 %v791_v2, %v711_v49  ;;  %v835_v15 = vsel %vm347_vm0, %v778_v24, 0.0  ;;  %v843_v7 = vadd.f32 %v699_v10, %v683_v23  ;;  %v805_v22 = vadd.f32 %v804_v27, %v712_v38 }
  0xc7   :  { %v818_v50 = vadd.f32 %v817_v34, %v713_v54  ;;  %v848_v58 = vsel %vm347_vm0, %v779_v4, 0.0  ;;  %v856_v46 = vadd.f32 %v700_v29, %v9313_v16  ;;  %v831_v26 = vadd.f32 %v830_v48, %v714_v55  ;;  %v11894_v34 = vld [vmem:[#allocation78_spill] sm:$0xff] }
  0xc8   :  { %v793_v45 = vadd.f32 %v792_v39, %v727_v5  ;;  %v844_v20 = vadd.f32 %v843_v7, %v715_v63  ;;  %v861_v44 = vsel %vm347_vm0, %v780_v28, 0.0  ;;  %v806_v52 = vadd.f32 %v805_v22, %v728_v11  ;;  %v11892_v22 = vld [vmem:[#allocation77_spill] sm:$0xff] }
  0xc9   :  { %v819_v21 = vadd.f32 %v818_v50, %v729_v12  ;;  %v857_v33 = vadd.f32 %v856_v46, %v716_v53  ;;  %v869_v41 = vadd.f32 %v9337_v62, %v9317_v61  ;;  %v832_v24 = vadd.f32 %v831_v26, %v730_v56  ;;  %v11896_v50 = vld [vmem:[#allocation80_spill] sm:$0xff] }
  0xca   :  { %v794_v49 = vadd.f32 %v793_v45, %v743_v17  ;;  %v845_v2 = vadd.f32 %v844_v20, %v731_v57  ;;  %v874_v38 = vsel %vm347_vm0, %v781_v47, 0.0  ;;  %v807_v54 = vadd.f32 %v806_v52, %v744_v18  ;;  %v11895_v39 = vld [vmem:[#allocation81_spill] sm:$0xff] }
  0xcb   :  { %v820_v4 = vadd.f32 %v819_v21, %v745_v19  ;;  %v858_v27 = vadd.f32 %v857_v33, %v732_v59  ;;  %v870_v5 = vadd.f32 %v869_v41, %v9357_v0  ;;  %v833_v55 = vadd.f32 %v832_v24, %v746_v25  ;;  %v11893_v0 = vld [vmem:[#allocation79_spill] sm:$0xff] }
  0xcc   :  { %v795_v48 = vadd.f32 %v794_v49, %v759_v3  ;;  %v846_v63 = vadd.f32 %v845_v2, %v747_v32  ;;  %v882_v11 = vadd.f32 %v9341_v1, %v9321_v42  ;;  %v808_v53 = vadd.f32 %v807_v54, %v760_v31 }
  0xcd   :  { %v821_v12 = vadd.f32 %v820_v4, %v761_v60  ;;  %v859_v7 = vadd.f32 %v858_v27, %v748_v13  ;;  %v871_v62 = vadd.f32 %v870_v5, %v9377_v6  ;;  %v834_v57 = vadd.f32 %v833_v55, %v762_v43 }
  0xce   :  { %v797_v56 = vadd.f32 %v796_v37, %v795_v48  ;;  %v847_v17 = vadd.f32 %v846_v63, %v763_v14  ;;  %v883_v18 = vadd.f32 %v882_v11, %v11892_v22  ;;  %v810_v19 = vadd.f32 %v809_v36, %v808_v53 }
  0xcf   :  { %v823_v59 = vadd.f32 %v822_v30, %v821_v12  ;;  %v860_v47 = vadd.f32 %v859_v7, %v764_v51  ;;  %v872_v3 = vadd.f32 %v871_v62, %v11893_v0  ;;  %v836_v32 = vadd.f32 %v835_v15, %v834_v57 }
  0xd0   :  { %v798_v25 = vrot.slane %v797_v56, 4  ;;  %v849_v28 = vadd.f32 %v848_v58, %v847_v17  ;;  %v884_v1 = vadd.f32 %v883_v18, %v11894_v34  ;;  %v811_v31 = vrot.slane %v810_v19, 4  ;;  %v11897_v58 = vld [vmem:[#allocation82_spill] sm:$0xff] }
  0xd1   :  { %v824_v60 = vrot.slane %v823_v59, 4  ;;  %v862_v13 = vadd.f32 %v861_v44, %v860_v47  ;;  %v873_v6 = vadd.f32 %v872_v3, %v11895_v39  ;;  %v837_v43 = vrot.slane %v836_v32, 4 }
  0xd2   :  { %v799_v37 = vadd.f32 %v798_v25, %v797_v56  ;;  %v850_v14 = vrot.slane %v849_v28, 4  ;;  %v885_v46 = vadd.f32 %v884_v1, %v11896_v50  ;;  %v812_v36 = vadd.f32 %v811_v31, %v810_v19 }
  0xd3   :  { %v825_v30 = vadd.f32 %v824_v60, %v823_v59  ;;  %v863_v51 = vrot.slane %v862_v13, 4  ;;  %v875_v9 = vadd.f32 %v874_v38, %v873_v6  ;;  %v838_v16 = vadd.f32 %v837_v43, %v836_v32 }
  0xd4   :  { %v800_v23 = vrot.slane %v799_v37, 2  ;;  %v851_v15 = vadd.f32 %v850_v14, %v849_v28  ;;  %v886_v61 = vadd.f32 %v885_v46, %v11897_v58  ;;  %v813_v42 = vrot.slane %v812_v36, 2 }
  0xd5   :  { %v826_v35 = vrot.slane %v825_v30, 2  ;;  %v864_v40 = vadd.f32 %v863_v51, %v862_v13  ;;  %v876_v10 = vrot.slane %v875_v9, 4  ;;  %v839_v45 = vrot.slane %v838_v16, 2 }
  0xd6   :  { %v801_v29 = vadd.f32 %v800_v23, %v799_v37  ;;  %v852_v26 = vrot.slane %v851_v15, 2  ;;  %v887_v20 = vsel %vm347_vm0, %v9439_v8, 0.0  ;;  %v814_v44 = vadd.f32 %v813_v42, %v812_v36 }
  0xd7   :  { %v827_v52 = vadd.f32 %v826_v35, %v825_v30  ;;  %v865_v21 = vrot.slane %v864_v40, 2  ;;  %v877_v33 = vadd.f32 %v876_v10, %v875_v9  ;;  %v840_v49 = vadd.f32 %v839_v45, %v838_v16 }
  0xd8   :  { %v802_v41 = vrot.slane %v801_v29, 1  ;;  %v853_v24 = vadd.f32 %v852_v26, %v851_v15  ;;  %v888_v2 = vadd.f32 %v887_v20, %v886_v61  ;;  %v815_v38 = vrot.slane %v814_v44, 1 }
  0xd9   :  { %v828_v54 = vrot.slane %v827_v52, 1  ;;  %v866_v4 = vadd.f32 %v865_v21, %v864_v40  ;;  %v878_v27 = vrot.slane %v877_v33, 2  ;;  %v841_v48 = vrot.slane %v840_v49, 1 }
  0xda   :  { %v803_v5 = vadd.f32 %v802_v41, %v801_v29  ;;  %v854_v55 = vrot.slane %v853_v24, 1  ;;  %v889_v63 = vrot.slane %v888_v2, 4  ;;  %v816_v11 = vadd.f32 %v815_v38, %v814_v44 }
  0xdb   :  { %v829_v53 = vadd.f32 %v828_v54, %v827_v52  ;;  %v867_v12 = vrot.slane %v866_v4, 1  ;;  %v879_v8 = vadd.f32 %v878_v27, %v877_v33  ;;  %v842_v7 = vadd.f32 %v841_v48, %v840_v49 }
  0xdc   :  { %v855_v62 = vadd.f32 %v854_v55, %v853_v24  ;;  %v890_v56 = vadd.f32 %v889_v63, %v888_v2  ;;  %v999_v57 = vmul.f32 0.020408163, %v803_v5  ;;  %v1000_v18 = vmul.f32 0.020408163, %v816_v11  ;;  %v1361_v2 = vld [vmem:[#allocation9] sm:$0xff] }
  0xdd   :  { %v868_v17 = vadd.f32 %v867_v12, %v866_v4  ;;  %v880_v22 = vrot.slane %v879_v8, 1  ;;  %v1001_v19 = vmul.f32 0.020408163, %v829_v53  ;;  %v1002_v47 = vmul.f32 0.020408163, %v842_v7  ;;  %v1015_v4 = vld [vmem:[#allocation8] sm:$0xff] }
  0xde   :  { %v891_v59 = vrot.slane %v890_v56, 2  ;;  %v1003_v0 = vmul.f32 0.020408163, %v855_v62  ;;  %v1017_v32 = vadd.f32 1e-05, %v999_v57  ;;  %v1072_v30 = vlaneseq }
  0xdf   :  { %v881_v3 = vadd.f32 %v880_v22, %v879_v8  ;;  %v1004_v25 = vmul.f32 0.020408163, %v868_v17  ;;  %v1018_v28 = vadd.f32 1e-05, %v1000_v18  ;;  %v1019_v1 = vadd.f32 1e-05, %v1001_v19 }
  0xe0   :  { %v892_v34 = vadd.f32 %v891_v59, %v890_v56  ;;  %v1020_v31 = vadd.f32 1e-05, %v1002_v47  ;;  %v1021_v13 = vadd.f32 1e-05, %v1003_v0  ;;  %8614 = vrsqrt.f32 %v1017_v32  ;;  %v231_v32 = vld [vmem:[#allocation6 + $0x8] sm:$0xff] }
  0xe1   :  { %v1005_v60 = vmul.f32 0.020408163, %v881_v3  ;;  %v1022_v6 = vadd.f32 1e-05, %v1004_v25  ;;  %8616 = vrsqrt.f32 %v1018_v28  ;;  %v8886_v46 = vmov 1966171168  }
  0xe2   :  { %v893_v39 = vrot.slane %v892_v34, 1  ;;  %8618 = vrsqrt.f32 %v1019_v1  ;;  %v1070_v36 = vunpack.c.l.s4 %v8886_v46  ;;  %v1073_v9 = vshrl.u32 %v1072_v30, 7  ;;  %v230_v25 = vld [vmem:[#allocation6] sm:$0xff]  ;;  %v11910_v46 = vld [vmem:[#allocation54_spill] sm:$0xff] }
  0xe3   :  { %v1023_v43 = vadd.f32 1e-05, %v1005_v60  ;;  %8620 = vrsqrt.f32 %v1020_v31  ;;  %v246_v28 = vld [vmem:[#allocation6 + $0x80] sm:$0xff]  ;;  %v232_v30 = vld [vmem:[#allocation6 + $0x10] sm:$0xff] }
  0xe4   :  { %v894_v37 = vadd.f32 %v893_v39, %v892_v34  ;;  %8622 = vrsqrt.f32 %v1021_v13  ;;  %v1071_v51 = vunpack.c.0.s8 %v1070_v36  ;;  %v9471_v54 = vsub.s32 0, %v1073_v9  ;;  %v247_v34 = vld [vmem:[#allocation6 + $0x88] sm:$0xff]  ;;  %v11907_v39 = vld [vmem:[#allocation47_spill] sm:$0xff] }
  0xe5   :  { %8624 = vrsqrt.f32 %v1022_v6  ;;  %v9473_v27 = vsub.s32 1, %v1073_v9  ;;  %v9478_v55 = vsub.s32 2, %v1073_v9  ;;  %v9480_v63 = vsub.s32 3, %v1073_v9 }
  0xe6   :  { %v1006_v14 = vmul.f32 0.020408163, %v894_v37  ;;  %8626 = vrsqrt.f32 %v1023_v43  ;;  %v9463_v61 = vsub.s32 %v1071_v51, %v1073_v9  ;;  %11899 = vst [vmem:[#allocation79_spill] sm:$0xff] %v9471_v54  ;;  %v9476_v48 = vrot.slane %v1361_v2, %v9471_v54  ;;  %v11908_v37 = vld [vmem:[#allocation48_spill] sm:$0xff]  ;;  %v233_v51 = vld [vmem:[#allocation6 + $0x18] sm:$0xff] }
  0xe7   :  { %11900 = vst [vmem:[#allocation78_spill] sm:$0xff] %v9473_v27  ;;  %11901 = vst [vmem:[#allocation81_spill] sm:$0xff] %v9478_v55  ;;  %v9482_v11 = vsub.s32 4, %v1073_v9  ;;  %v9484_v53 = vsub.s32 5, %v1073_v9  ;;  %v9486_v12 = vsub.s32 6, %v1073_v9  ;;  %v9488_v8 = vsub.s32 7, %v1073_v9 }
  0xe8   :  { %v1024_v50 = vadd.f32 1e-05, %v1006_v14  ;;  %11898 = vst [vmem:[#allocation77_spill] sm:$0xff] %v9463_v61  ;;  %11902 = vst [vmem:[#allocation80_spill] sm:$0xff] %v9480_v63  ;;  %v9491_v62 = vrot.slane %v1361_v2, %v9473_v27  ;;  %v9494_v56 = vrot.slane %v1361_v2, %v9478_v55  ;;  %v9497_v57 = vrot.slane %v1361_v2, %v9480_v63  ;;  %v11909_v14 = vld [vmem:[#allocation53_spill] sm:$0xff]  ;;  %v248_v9 = vld [vmem:[#allocation6 + $0x90] sm:$0xff] }
  0xe9   :  { %11903 = vst [vmem:[#allocation82_spill] sm:$0xff] %v9482_v11  ;;  %11904 = vst [vmem:[#allocation83_spill] sm:$0xff] %v9484_v53  ;;  %v9500_v17 = vrot.slane %v1361_v2, %v9482_v11  ;;  %v9503_v22 = vrot.slane %v1361_v2, %v9484_v53  ;;  %v9506_v18 = vrot.slane %v1361_v2, %v9486_v12 }
  0xea   :  { %8628 = vrsqrt.f32 %v1024_v50  ;;  %11905 = vst [vmem:[#allocation84_spill] sm:$0xff] %v9486_v12  ;;  %11906 = vst [vmem:[#allocation85_spill] sm:$0xff] %v9488_v8  ;;  %v9509_v19 = vrot.slane %v1361_v2, %v9488_v8 }
  0xed   :  { %v8615_v23 = vpop.eup %8614 }
  0xee   :  { %v8617_v16 = vpop.eup %8616 }
  0xef   :  { %v8619_v15 = vpop.eup %8618  ;;  %v1065_v58 = vcombine.low %v8615_v23, %v8617_v16  ;;  %v11911_v23 = vld [vmem:[#allocation49_spill] sm:$0xff] }
  0xf0   :  { %v8621_v42 = vpop.eup %8620 }
  0xf1   :  { %v8623_v35 = vpop.eup %8622  ;;  %v1066_v40 = vcombine.low %v8619_v15, %v8621_v42  ;;  %v1075_v45 = vrot.slane %v1065_v58, %v9463_v61  ;;  %v11912_v15 = vld [vmem:[#allocation50_spill] sm:$0xff]  ;;  %v11913_v42 = vld [vmem:[#allocation55_spill] sm:$0xff] }
  0xf2   :  { %v8625_v10 = vpop.eup %8624 }
  0xf3   :  { %v1067_v29 = vcombine.low %v8623_v35, %v8625_v10  ;;  %v1082_v26 = vrot.slane %v1066_v40, %v9463_v61  ;;  %v8627_v20 = vpop.eup %8626  ;;  %v11914_v40 = vld [vmem:[#allocation56_spill] sm:$0xff] }
  0xf5   :  { %v1089_v21 = vrot.slane %v1067_v29, %v9463_v61  ;;  %v1097_v33 = vcombine.low %v1075_v45, %v1082_v26 }
  0xf7   :  { %v8629_v44 = vpop.eup %8628  ;;  %v1105_v24 = vrot.slane %v1097_v33, %v9463_v61 }
  0xf8   :  { %v1068_v52 = vcombine.low %v8627_v20, %v8629_v44  ;;  %v249_v44 = vld [vmem:[#allocation6 + $0x98] sm:$0xff] }
  0xfa   :  { %v1096_v41 = vrot.slane %v1068_v52, %v9463_v61 }
  0xfc   :  { %v1098_v49 = vcombine.low %v1089_v21, %v1096_v41 }
  0xfe   :  { %v1112_v38 = vrot.slane %v1098_v49, %v9463_v61 }
 0x100   :  { %v1113_v5 = vcombine.low %v1105_v24, %v1112_v38 }
 0x102   :  { %v1165_v7 = vmul.f32 %v1113_v5, %v1015_v4 }
 0x104   :  { %v9512_v59 = vrot.slane %v1165_v7, %v9471_v54  ;;  %v9515_v47 = vrot.slane %v1165_v7, %v9473_v27  ;;  %v9518_v0 = vrot.slane %v1165_v7, %v9478_v55  ;;  %v9521_v3 = vrot.slane %v1165_v7, %v9480_v63  ;;  %v9869_v54 = vld [vmem:[#allocation3 + $0x2c8] sm:$0xff] }
 0x105   :  { %v9524_v1 = vrot.slane %v1165_v7, %v9482_v11  ;;  %v9527_v31 = vrot.slane %v1165_v7, %v9484_v53  ;;  %v9530_v60 = vrot.slane %v1165_v7, %v9486_v12  ;;  %v9533_v13 = vrot.slane %v1165_v7, %v9488_v8  ;;  %v9851_v8 = vld [vmem:[#allocation3 + $0x248] sm:$0xff]  ;;  %v8026_v12 = vld [vmem:[#allocation11 + $0x8e0] ss:$16 sps:$4 sm:$0xff]  }
 0x106   :  { %v1249_v6 = vmul.f32 %v9512_v59, %v11907_v39  ;;  %v1250_v43 = vmul.f32 %v9515_v47, %v11908_v37  ;;  %v1265_v50 = vmul.f32 %v9512_v59, %v11909_v14  ;;  %v1266_v36 = vmul.f32 %v9515_v47, %v11910_v46  ;;  %v2194_v53 = vld [vmem:[#allocation2 + $0x88] sm:$0x11] }
 0x107   :  { %v1251_v16 = vmul.f32 %v9518_v0, %v11911_v23  ;;  %v1252_v58 = vmul.f32 %v9521_v3, %v11912_v15  ;;  %v1267_v35 = vmul.f32 %v9518_v0, %v11913_v42  ;;  %v1268_v10 = vmul.f32 %v9521_v3, %v11914_v40  ;;  %v7926_v40 = vld [vmem:[#allocation11 + $0x4e0] ss:$16 sps:$4 sm:$0xff]  }
 0x108   :  { %v1445_v29 = vadd.f32 %v9476_v48, %v1249_v6  ;;  %v1446_v45 = vadd.f32 %v9491_v62, %v1250_v43  ;;  %v1461_v26 = vadd.f32 %v9476_v48, %v1265_v50  ;;  %v1462_v20 = vadd.f32 %v9491_v62, %v1266_v36 }
 0x109   :  { %v1447_v52 = vadd.f32 %v9494_v56, %v1251_v16  ;;  %v1448_v21 = vadd.f32 %v9497_v57, %v1252_v58  ;;  %v1463_v33 = vadd.f32 %v9494_v56, %v1267_v35  ;;  %v1464_v41 = vadd.f32 %v9497_v57, %v1268_v10  ;;  %v11915_v16 = vld [vmem:[#allocation59_spill] sm:$0xff]  ;;  %v11916_v58 = vld [vmem:[#allocation60_spill] sm:$0xff] }
 0x10a   :  { %v1557_v49 = vadd.f32 %v1445_v29, %v230_v25  ;;  %v1558_v24 = vadd.f32 %v1446_v45, %v231_v32  ;;  %v1573_v2 = vadd.f32 %v1461_v26, %v246_v28  ;;  %v1574_v38 = vadd.f32 %v1462_v20, %v247_v34  ;;  %v262_v32 = vld [vmem:[#allocation6 + $0x100] sm:$0xff]  ;;  %v263_v28 = vld [vmem:[#allocation6 + $0x108] sm:$0xff]  ;;  %v11917_v34 = vld [vmem:[#allocation71_spill] sm:$0xff] }
 0x10b   :  { %v1559_v4 = vadd.f32 %v1447_v52, %v232_v30  ;;  %v1560_v5 = vadd.f32 %v1448_v21, %v233_v51  ;;  %v1575_v7 = vadd.f32 %v1463_v33, %v248_v9  ;;  %v1576_v39 = vadd.f32 %v1464_v41, %v249_v44  ;;  %v11918_v51 = vld [vmem:[#allocation72_spill] sm:$0xff]  ;;  %v279_v29 = vld [vmem:[#allocation6 + $0x188] sm:$0xff] }
 0x10c   :  { %v1669_v6 = vmax.f32 %v1557_v49, 0.0  ;;  %v1670_v37 = vmax.f32 %v1558_v24, 0.0  ;;  %v1685_v43 = vmax.f32 %v1573_v2, 0.0  ;;  %v1686_v14 = vmax.f32 %v1574_v38, 0.0  ;;  %v278_v10 = vld [vmem:[#allocation6 + $0x180] sm:$0xff]  ;;  %v11923_v38 = vld [vmem:[#allocation65_spill] sm:$0xff] }
 0x10d   :  { %v1671_v50 = vmax.f32 %v1559_v4, 0.0  ;;  %v1672_v46 = vmax.f32 %v1560_v5, 0.0  ;;  %v1687_v36 = vmax.f32 %v1575_v7, 0.0  ;;  %v1688_v23 = vmax.f32 %v1576_v39, 0.0  ;;  %v7929_v52 = vld [vmem:[#allocation11 + $0x6e0] ss:$16 sps:$4 sm:$0xff]  }
 0x10e   :  { %v1281_v15 = vmul.f32 %v9512_v59, %v11915_v16  ;;  %v1282_v25 = vmul.f32 %v9515_v47, %v11916_v58  ;;  %v1297_v30 = vmul.f32 %v9512_v59, %v11917_v34  ;;  %v1298_v9 = vmul.f32 %v9515_v47, %v11918_v51  ;;  %v7934_v21 = vld [vmem:[#allocation11 + $0x4c4] ss:$16 sps:$4 sm:$0xff]   ;;  %v7932_v39 = vld [vmem:[#allocation11 + $0x4c0] ss:$16 sps:$4 sm:$0xff]   ;;  %v265_v16 = vld [vmem:[#allocation6 + $0x118] sm:$0xff] }
 0x10f   :  { %v9567_v42 = vpack.c.bf16 %v1685_v43, %v1669_v6  ;;  %v9569_v35 = vpack.c.bf16 %v1686_v14, %v1670_v37  ;;  %v9573_v20 = vpack.c.bf16 %v1687_v36, %v1671_v50  ;;  %v9575_v44 = vpack.c.bf16 %v1688_v23, %v1672_v46  ;;  %v7937_v49 = vld [vmem:[#allocation11 + $0x6c4] ss:$16 sps:$4 sm:$0xff]   ;;  %v11925_v14 = vld [vmem:[#allocation73_spill] sm:$0xff]  ;;  %v7935_v46 = vld [vmem:[#allocation11 + $0x6c0] ss:$16 sps:$4 sm:$0xff]  }
 0x110   :  { %v1477_v45 = vadd.f32 %v9476_v48, %v1281_v15  ;;  %v1478_v26 = vadd.f32 %v9491_v62, %v1282_v25  ;;  %v1493_v33 = vadd.f32 %v9476_v48, %v1297_v30  ;;  %v1494_v41 = vadd.f32 %v9491_v62, %v1298_v9  ;;  %v11924_v5 = vld [vmem:[#allocation66_spill] sm:$0xff]  ;;  %v281_v51 = vld [vmem:[#allocation6 + $0x198] sm:$0xff] }
 0x111   :  { %11919 = vst [vmem:[#allocation47_spill] sm:$0xff] %v9567_v42  ;;  %11920 = vst [vmem:[#allocation48_spill] sm:$0xff] %v9569_v35  ;;  %5668 = vmatprep.mubr.bf16.mxu0 %v9569_v35  ;;  %v1283_v4 = vmul.f32 %v9518_v0, %v11923_v38  ;;  %v1284_v7 = vmul.f32 %v9521_v3, %v11924_v5  ;;  %5739 = vmatprep.mubr.bf16.mxu1 %v9575_v44  ;;  %v264_v43 = vld [vmem:[#allocation6 + $0x110] sm:$0xff] }
 0x112   :  { %11921 = vst [vmem:[#allocation53_spill] sm:$0xff] %v9573_v20  ;;  %11922 = vst [vmem:[#allocation54_spill] sm:$0xff] %v9575_v44  ;;  %v1589_v24 = vadd.f32 %v1477_v45, %v262_v32  ;;  %v1590_v2 = vadd.f32 %v1478_v26, %v263_v28  ;;  %5669 = vmatmul.mubr.bf16.vlgmr.msra.gmra.mxu0 %v9567_v42  ;;  %v1605_v6 = vadd.f32 %v1493_v33, %v278_v10  ;;  %v280_v15 = vld [vmem:[#allocation6 + $0x190] sm:$0xff]  ;;  %v11927_v26 = vld [vmem:[#allocation23_spill] sm:$0xff] }
 0x113   :  { %v1606_v37 = vadd.f32 %v1494_v41, %v279_v29  ;;  %v1299_v50 = vmul.f32 %v9518_v0, %v11925_v14  ;;  %5740 = vmatmul.mubr.bf16.vlgmr.msra.gmra.mxu1 %v9573_v20  ;;  %5779 = vmatpush1.bf16.msra.mxu0 %v7926_v40  ;;  %v11926_v58 = vld [vmem:[#allocation74_spill] sm:$0xff]  ;;  %v1479_v32 = vadd.f32 %v9494_v56, %v1283_v4 }
 0x114   :  { %v1701_v36 = vmax.f32 %v1589_v24, 0.0  ;;  %v1702_v23 = vmax.f32 %v1590_v2, 0.0  ;;  %v1300_v25 = vmul.f32 %v9521_v3, %v11926_v58  ;;  %5850 = vmatpush1.bf16.msra.mxu1 %v7929_v52  ;;  %5780 = vmatprep.subr.bf16.mxu0 %v7934_v21  ;;  %v7940_v28 = vld [vmem:[#allocation11 + $0x4a4] ss:$16 sps:$4 sm:$0xff]   ;;  %v1717_v34 = vmax.f32 %v1605_v6, 0.0  ;;  %v11929_v6 = vld [vmem:[#allocation31_spill] sm:$0xff] }
 0x115   :  { %v1718_v30 = vmax.f32 %v1606_v37, 0.0  ;;  %v1480_v9 = vadd.f32 %v9497_v57, %v1284_v7  ;;  %v1495_v40 = vadd.f32 %v9494_v56, %v1299_v50  ;;  %5851 = vmatprep.subr.bf16.mxu1 %v7937_v49  ;;  %v7943_v10 = vld [vmem:[#allocation11 + $0x6a4] ss:$16 sps:$4 sm:$0xff]   ;;  %v1591_v45 = vadd.f32 %v1479_v32, %v264_v43  ;;  %v7938_v41 = vld [vmem:[#allocation11 + $0x4a0] ss:$16 sps:$4 sm:$0xff]  }
 0x116   :  { %v1496_v29 = vadd.f32 %v9497_v57, %v1300_v25  ;;  %v1313_v33 = vmul.f32 %v9512_v59, %v11927_v26  ;;  %v11928_v24 = vld [vmem:[#allocation24_spill] sm:$0xff]  ;;  %v1329_v49 = vmul.f32 %v9512_v59, %v11929_v6  ;;  %v11936_v6 = vld [vmem:[#allocation34_spill] sm:$0xff] }
 0x117   :  { %v1592_v52 = vadd.f32 %v1480_v9, %v265_v16  ;;  %v1607_v21 = vadd.f32 %v1495_v40, %v280_v15  ;;  %v1314_v2 = vmul.f32 %v9515_v47, %v11928_v24  ;;  %5781 = vmatpush1.bf16.msra.mxu0 %v7932_v39  ;;  %v7941_v38 = vld [vmem:[#allocation11 + $0x6a0] ss:$16 sps:$4 sm:$0xff]   ;;  %v7946_v4 = vld [vmem:[#allocation11 + $0x484] ss:$16 sps:$4 sm:$0xff]   ;;  %v1703_v7 = vmax.f32 %v1591_v45, 0.0  ;;  %v295_v39 = vld [vmem:[#allocation6 + $0x208] sm:$0xff] }
 0x118   :  { %v1608_v5 = vadd.f32 %v1496_v29, %v281_v51  ;;  %v11930_v37 = vld [vmem:[#allocation32_spill] sm:$0xff]  ;;  %5852 = vmatpush1.bf16.msra.mxu1 %v7935_v46  ;;  %5782 = vmatprep.subr.bf16.mxu0 %v7940_v28  ;;  %v9603_v14 = vpack.c.bf16 %v1718_v30, %v1702_v23  ;;  %v9605_v15 = vpack.c.bf16 %v1717_v34, %v1701_v36  ;;  %v311_v9 = vld [vmem:[#allocation6 + $0x288] sm:$0xff]  ;;  %v11934_v34 = vld [vmem:[#allocation26_spill] sm:$0xff] }
 0x119   :  { %v1330_v43 = vmul.f32 %v9515_v47, %v11930_v37  ;;  %v1704_v50 = vmax.f32 %v1592_v52, 0.0  ;;  %v1719_v16 = vmax.f32 %v1607_v21, 0.0  ;;  %v294_v58 = vld [vmem:[#allocation6 + $0x200] sm:$0xff]  ;;  %5853 = vmatprep.subr.bf16.mxu1 %v7943_v10  ;;  %v1509_v40 = vadd.f32 %v9476_v48, %v1313_v33  ;;  %v11933_v28 = vld [vmem:[#allocation25_spill] sm:$0xff]  ;;  %v9808_v44 = vld [vmem:[#allocation3 + $0x50] sm:$0xff] }
 0x11a   :  { %11931 = vst [vmem:[#allocation49_spill] sm:$0xff] %v9603_v14  ;;  %11932 = vst [vmem:[#allocation50_spill] sm:$0xff] %v9605_v15  ;;  %v310_v25 = vld [vmem:[#allocation6 + $0x280] sm:$0xff]  ;;  %v1720_v51 = vmax.f32 %v1608_v5, 0.0  ;;  %v1510_v29 = vadd.f32 %v9491_v62, %v1314_v2  ;;  %v1525_v46 = vadd.f32 %v9476_v48, %v1329_v49  ;;  %5678 = vmatprep.mubr.bf16.mxu0 %v9603_v14  ;;  %v11935_v2 = vld [vmem:[#allocation33_spill] sm:$0xff] }
 0x11b   :  { %v7949_v32 = vld [vmem:[#allocation11 + $0x684] ss:$16 sps:$4 sm:$0xff]   ;;  %v1526_v23 = vadd.f32 %v9491_v62, %v1330_v43  ;;  %v1315_v36 = vmul.f32 %v9518_v0, %v11933_v28  ;;  %v1316_v30 = vmul.f32 %v9521_v3, %v11934_v34  ;;  %5783 = vmatpush1.bf16.msra.mxu0 %v7938_v41  ;;  %v7944_v10 = vld [vmem:[#allocation11 + $0x480] ss:$16 sps:$4 sm:$0xff]   ;;  %v1621_v45 = vadd.f32 %v1509_v40, %v294_v58  ;;  %v313_v28 = vld [vmem:[#allocation6 + $0x298] sm:$0xff] }
 0x11c   :  { %v1622_v26 = vadd.f32 %v1510_v29, %v295_v39  ;;  %v1637_v52 = vadd.f32 %v1525_v46, %v310_v25  ;;  %5854 = vmatpush1.bf16.msra.mxu1 %v7941_v38  ;;  %5784 = vmatprep.subr.bf16.mxu0 %v7946_v4  ;;  %v7947_v33 = vld [vmem:[#allocation11 + $0x680] ss:$16 sps:$4 sm:$0xff]   ;;  %v7952_v21 = vld [vmem:[#allocation11 + $0x464] ss:$16 sps:$4 sm:$0xff]   ;;  %v1331_v5 = vmul.f32 %v9518_v0, %v11935_v2  ;;  %v297_v25 = vld [vmem:[#allocation6 + $0x218] sm:$0xff] }
 0x11d   :  { %v1638_v24 = vadd.f32 %v1526_v23, %v311_v9  ;;  %v1332_v49 = vmul.f32 %v9521_v3, %v11936_v6  ;;  %5855 = vmatprep.subr.bf16.mxu1 %v7949_v32  ;;  %v7950_v37 = vld [vmem:[#allocation11 + $0x460] ss:$16 sps:$4 sm:$0xff]   ;;  %v7955_v43 = vld [vmem:[#allocation11 + $0x664] ss:$16 sps:$4 sm:$0xff]   ;;  %v9620_v41 = vpack.c.bf16 %v1720_v51, %v1704_v50  ;;  %5679 = vmatmul.mubr.bf16.gmra.mxu0 %v9605_v15  ;;  %v1733_v38 = vmax.f32 %v1621_v45, 0.0  ;;  %v11943_v2 = vld [vmem:[#allocation39_spill] sm:$0xff] }
 0x11e   :  { %v9623_v58 = vpack.c.bf16 %v1719_v16, %v1703_v7  ;;  %v1734_v4 = vmax.f32 %v1622_v26, 0.0  ;;  %v296_v39 = vld [vmem:[#allocation6 + $0x210] sm:$0xff]  ;;  %v1749_v29 = vmax.f32 %v1637_v52, 0.0  ;;  %v1511_v32 = vadd.f32 %v9494_v56, %v1315_v36  ;;  %v326_v26 = vld [vmem:[#allocation6 + $0x300] sm:$0x1] }
 0x11f   :  { %11937 = vst [vmem:[#allocation55_spill] sm:$0xff] %v9620_v41  ;;  %v7953_v9 = vld [vmem:[#allocation11 + $0x660] ss:$16 sps:$4 sm:$0xff]   ;;  %v7958_v40 = vld [vmem:[#allocation11 + $0x444] ss:$16 sps:$4 sm:$0xff]   ;;  %v1750_v46 = vmax.f32 %v1638_v24, 0.0  ;;  %v1512_v34 = vadd.f32 %v9497_v57, %v1316_v30  ;;  %5785 = vmatpush1.bf16.msra.mxu0 %v7944_v10  ;;  %5749 = vmatprep.mubr.bf16.mxu1 %v9620_v41  ;;  %v1527_v16 = vadd.f32 %v9494_v56, %v1331_v5 }
 0x120   :  { %11938 = vst [vmem:[#allocation56_spill] sm:$0xff] %v9623_v58  ;;  %v312_v23 = vld [vmem:[#allocation6 + $0x290] sm:$0xff]  ;;  %v1528_v51 = vadd.f32 %v9497_v57, %v1332_v49  ;;  %5856 = vmatpush1.bf16.msra.mxu1 %v7947_v33  ;;  %5786 = vmatprep.subr.bf16.mxu0 %v7952_v21  ;;  %v1623_v30 = vadd.f32 %v1511_v32, %v296_v39  ;;  %v327_v21 = vld [vmem:[#allocation6 + $0x308] sm:$0x1] }
 0x121   :  { %v7961_v7 = vld [vmem:[#allocation11 + $0x644] ss:$16 sps:$4 sm:$0xff]   ;;  %v1624_v45 = vadd.f32 %v1512_v34, %v297_v25  ;;  %5857 = vmatprep.subr.bf16.mxu1 %v7955_v43  ;;  %v7956_v10 = vld [vmem:[#allocation11 + $0x440] ss:$16 sps:$4 sm:$0xff]   ;;  %5750 = vmatmul.mubr.bf16.gmra.mxu1 %v9623_v58  ;;  %v1639_v52 = vadd.f32 %v1527_v16, %v312_v23  ;;  %v1345_v5 = vmul.f32 %v9512_v59, %v11943_v2  ;;  %v11946_v43 = vmov 0 }
 0x122   :  { %v1640_v24 = vadd.f32 %v1528_v51, %v313_v28  ;;  %v7959_v6 = vld [vmem:[#allocation11 + $0x640] ss:$16 sps:$4 sm:$0xff]   ;;  %v7964_v49 = vld [vmem:[#allocation11 + $0x424] ss:$16 sps:$4 sm:$0xff]   ;;  %v9645_v15 = vpack.c.bf16 %v1750_v46, %v1734_v4  ;;  %v1735_v41 = vmax.f32 %v1623_v30, 0.0  ;;  %v9647_v33 = vpack.c.bf16 %v1749_v29, %v1733_v38  ;;  %v11950_v28 = vld [vmem:[#allocation41_spill] sm:$0xff] }
 0x123   :  { %v1736_v14 = vmax.f32 %v1624_v45, 0.0  ;;  %v11947_v43 = vsel %vm9653_vm6, 4294967295, %v11946_v43  ;;  %5787 = vmatpush1.bf16.msra.mxu0 %v7950_v37  ;;  %v7967_v39 = vld [vmem:[#allocation11 + $0x624] ss:$16 sps:$4 sm:$0xff]   ;;  %v1751_v59 = vmax.f32 %v1639_v52, 0.0  ;;  %v1541_v46 = vadd.f32 %v9476_v48, %v1345_v5  ;;  %v11952_v30 = vld [vmem:[#allocation51_spill] sm:$0xff] }
 0x124   :  { %11944 = vst [vmem:[#allocation59_spill] sm:$0xff] %v9645_v15  ;;  %11945 = vst [vmem:[#allocation60_spill] sm:$0xff] %v9647_v33  ;;  %v1752_v25 = vmax.f32 %v1640_v24, 0.0  ;;  %v11949_v23 = vld [vmem:[#allocation40_spill] sm:$0xff]  ;;  %v328_v38 = vld [vmem:[#allocation6 + $0x310] sm:$0x1]  ;;  %5858 = vmatpush1.bf16.msra.mxu1 %v7953_v9  ;;  %5788 = vmatprep.subr.bf16.mxu0 %v7958_v40  ;;  %v1347_v32 = vmul.f32 %v9518_v0, %v11950_v28 }
 0x125   :  { %11948 = vst [vmem:[#allocation71_spill] sm:$0xff] %v11947_v43  ;;  %v1346_v4 = vmul.f32 %v9515_v47, %v11949_v23  ;;  %v329_v29 = vld [vmem:[#allocation6 + $0x318] sm:$0x1]  ;;  %v11951_v34 = vld [vmem:[#allocation42_spill] sm:$0xff]  ;;  %5859 = vmatprep.subr.bf16.mxu1 %v7961_v7  ;;  %5688 = vmatprep.mubr.bf16.mxu0 %v9645_v15  ;;  %v1653_v51 = vadd.f32 %v1541_v46, %v326_v26  ;;  %v234_v40 = vld [vmem:[#allocation6 + $0x20] sm:$0xff] }
 0x126   :  { %v1348_v50 = vmul.f32 %v9521_v3, %v11951_v34  ;;  %v7962_v37 = vld [vmem:[#allocation11 + $0x420] ss:$16 sps:$4 sm:$0xff]   ;;  %v7970_v36 = vld [vmem:[#allocation11 + $0x404] ss:$16 sps:$4 sm:$0xff]   ;;  %5689 = vmatmul.mubr.bf16.gmra.mxu0 %v9647_v33  ;;  %v1543_v48 = vadd.f32 %v9494_v56, %v1347_v32  ;;  %v235_v0 = vld [vmem:[#allocation6 + $0x28] sm:$0xff]  ;;  %v1253_v3 = vmul.f32 %v9524_v1, %v11952_v30  ;;  %v9675_v26 = vpack.c.bf16 %v1751_v59, %v1735_v41 }
 0x127   :  { %v1542_v16 = vadd.f32 %v9491_v62, %v1346_v4  ;;  %v7965_v47 = vld [vmem:[#allocation11 + $0x620] ss:$16 sps:$4 sm:$0xff]   ;;  %5789 = vmatpush1.bf16.msra.mxu0 %v7956_v10  ;;  %v7973_v52 = vld [vmem:[#allocation11 + $0x604] ss:$16 sps:$4 sm:$0xff]   ;;  %v9673_v62 = vpack.c.bf16 %v1752_v25, %v1736_v14  ;;  %v1765_v2 = vmax.f32 %v1653_v51, 0.0  ;;  %v251_v4 = vld [vmem:[#allocation6 + $0xa8] sm:$0xff] }
 0x128   :  { %v1544_v9 = vadd.f32 %v9497_v57, %v1348_v50  ;;  %v11953_v7 = vld [vmem:[#allocation52_spill] sm:$0xff]  ;;  %11955 = vst [vmem:[#allocation65_spill] sm:$0xff] %v9675_v26  ;;  %5860 = vmatpush1.bf16.msra.mxu1 %v7959_v6  ;;  %5790 = vmatprep.subr.bf16.mxu0 %v7964_v49  ;;  %v2188_v56 = vld [vmem:[#allocation2 + $0x128] sm:$0x11]  ;;  %v1655_v57 = vadd.f32 %v1543_v48, %v328_v38  ;;  %v11957_v10 = vld [vmem:[#allocation58_spill] sm:$0xff] }
 0x129   :  { %v1254_v45 = vmul.f32 %v9527_v31, %v11953_v7  ;;  %11954 = vst [vmem:[#allocation72_spill] sm:$0xff] %v9673_v62  ;;  %v1654_v24 = vadd.f32 %v1542_v16, %v327_v21  ;;  %v250_v5 = vld [vmem:[#allocation6 + $0xa0] sm:$0xff]  ;;  %v11956_v46 = vld [vmem:[#allocation57_spill] sm:$0xff]  ;;  %5861 = vmatprep.subr.bf16.mxu1 %v7967_v39  ;;  %5759 = vmatprep.mubr.bf16.mxu1 %v9673_v62  ;;  %v2191_v51 = vld [vmem:[#allocation2 + $0x38] sm:$0x11] }
 0x12a   :  { %v1656_v23 = vadd.f32 %v1544_v9, %v329_v29  ;;  %v1269_v28 = vmul.f32 %v9524_v1, %v11956_v46  ;;  %v7968_v32 = vld [vmem:[#allocation11 + $0x400] ss:$16 sps:$4 sm:$0xff]   ;;  %v1270_v41 = vmul.f32 %v9527_v31, %v11957_v10  ;;  %v1449_v21 = vadd.f32 %v9500_v17, %v1253_v3  ;;  %v7976_v59 = vld [vmem:[#allocation11 + $0x5e4] ss:$16 sps:$4 sm:$0xff]   ;;  %5760 = vmatmul.mubr.bf16.gmra.mxu1 %v9675_v26  ;;  %v11958_v39 = vld [vmem:[#allocation61_spill] sm:$0xff] }
 0x12b   :  { %v1766_v14 = vmax.f32 %v1654_v24, 0.0  ;;  %v1450_v6 = vadd.f32 %v9503_v22, %v1254_v45  ;;  %v7971_v49 = vld [vmem:[#allocation11 + $0x600] ss:$16 sps:$4 sm:$0xff]   ;;  %v1767_v25 = vmax.f32 %v1655_v57, 0.0  ;;  %v1255_v34 = vmul.f32 %v9530_v60, %v11958_v39  ;;  %5791 = vmatpush1.bf16.msra.mxu0 %v7962_v37  ;;  %v7979_v50 = vld [vmem:[#allocation11 + $0x7e4] ss:$16 sps:$4 sm:$0xff]  }
 0x12c   :  { %v1768_v38 = vmax.f32 %v1656_v23, 0.0  ;;  %v1465_v29 = vadd.f32 %v9500_v17, %v1269_v28  ;;  %v1466_v48 = vadd.f32 %v9503_v22, %v1270_v41  ;;  %v1561_v9 = vadd.f32 %v1449_v21, %v234_v40  ;;  %5862 = vmatpush1.bf16.msra.mxu1 %v7965_v47  ;;  %5792 = vmatprep.subr.bf16.mxu0 %v7970_v36  ;;  %v236_v45 = vld [vmem:[#allocation6 + $0x30] sm:$0xff]  ;;  %v237_v24 = vld [vmem:[#allocation6 + $0x38] sm:$0xff] }
 0x12d   :  { %v7807_v16 = vpack.c.bf16 %v1766_v14, %v1765_v2  ;;  %v1562_v30 = vadd.f32 %v1450_v6, %v235_v0  ;;  %v11959_v57 = vld [vmem:[#allocation62_spill] sm:$0xff]  ;;  %5863 = vmatprep.subr.bf16.mxu1 %v7973_v52  ;;  %v253_v40 = vld [vmem:[#allocation6 + $0xb8] sm:$0xff]  ;;  %v11961_v52 = vld [vmem:[#allocation64_spill] sm:$0xff] }
 0x12e   :  { %v7808_v3 = vpack.c.bf16 %v1768_v38, %v1767_v25  ;;  %v1577_v7 = vadd.f32 %v1465_v29, %v250_v5  ;;  %v1256_v23 = vmul.f32 %v9533_v13, %v11959_v57  ;;  %v7974_v46 = vld [vmem:[#allocation11 + $0x5e0] ss:$16 sps:$4 sm:$0xff]   ;;  %v1578_v2 = vadd.f32 %v1466_v48, %v251_v4  ;;  %v7982_v47 = vld [vmem:[#allocation11 + $0x5c4] ss:$16 sps:$4 sm:$0xff]   ;;  %v11960_v41 = vld [vmem:[#allocation63_spill] sm:$0xff] }
 0x12f   :  { %v2189_v37 = vsel %vm9653_vm6, %v7807_v16, %v2188_v56  ;;  %v1673_v28 = vmax.f32 %v1561_v9, 0.0  ;;  %v1674_v14 = vmax.f32 %v1562_v30, 0.0  ;;  %v252_v10 = vld [vmem:[#allocation6 + $0xb0] sm:$0xff]  ;;  %v1271_v21 = vmul.f32 %v9530_v60, %v11960_v41  ;;  %5793 = vmatpush1.bf16.msra.mxu0 %v7968_v32  ;;  %v11962_v16 = vld [vmem:[#allocation67_spill] sm:$0xff]  ;;  %v266_v30 = vld [vmem:[#allocation6 + $0x120] sm:$0xff] }
 0x130   :  { %v7977_v0 = vld [vmem:[#allocation11 + $0x7e0] ss:$16 sps:$4 sm:$0xff]   ;;  %2190 = vst [vmem:[#allocation2 + $0x128] sm:$0x11] %v2189_v37  ;;  %v2192_v36 = vsel %vm9653_vm6, %v7808_v3, %v2191_v51  ;;  %v1689_v5 = vmax.f32 %v1577_v7, 0.0  ;;  %v1272_v6 = vmul.f32 %v9533_v13, %v11961_v52  ;;  %v1690_v4 = vmax.f32 %v1578_v2, 0.0  ;;  %5864 = vmatpush1.bf16.msra.mxu1 %v7971_v49  ;;  %5794 = vmatprep.subr.bf16.mxu0 %v7976_v59 }
 0x131   :  { %v7985_v56 = vld [vmem:[#allocation11 + $0x7c4] ss:$16 sps:$4 sm:$0xff]   ;;  %2193 = vst [vmem:[#allocation2 + $0x38] sm:$0x11] %v2192_v36  ;;  %v1451_v25 = vadd.f32 %v9506_v18, %v1255_v34  ;;  %v1452_v38 = vadd.f32 %v9509_v19, %v1256_v23  ;;  %v1467_v29 = vadd.f32 %v9506_v18, %v1271_v21  ;;  %v1285_v51 = vmul.f32 %v9524_v1, %v11962_v16  ;;  %v7980_v48 = vld [vmem:[#allocation11 + $0x5c0] ss:$16 sps:$4 sm:$0xff]  }
 0x132   :  { %v1468_v39 = vadd.f32 %v9509_v19, %v1272_v6  ;;  %5865 = vmatprep.subr.bf16.mxu1 %v7979_v50  ;;  %v11963_v3 = vld [vmem:[#allocation68_spill] sm:$0xff]  ;;  %v267_v59 = vld [vmem:[#allocation6 + $0x128] sm:$0xff]  ;;  %v11964_v2 = vld [vmem:[#allocation75_spill] sm:$0xff] }
 0x133   :  { %v1563_v9 = vadd.f32 %v1451_v25, %v236_v45  ;;  %v1564_v32 = vadd.f32 %v1452_v38, %v237_v24  ;;  %v1286_v7 = vmul.f32 %v9527_v31, %v11963_v3  ;;  %v7983_v34 = vld [vmem:[#allocation11 + $0x7c0] ss:$16 sps:$4 sm:$0xff]   ;;  %v7988_v57 = vld [vmem:[#allocation11 + $0x5a4] ss:$16 sps:$4 sm:$0xff]   ;;  %v1579_v23 = vadd.f32 %v1467_v29, %v252_v10  ;;  %5795 = vmatpush2.bf16.msra.mxu0 %v7974_v46  ;;  %v283_v25 = vld [vmem:[#allocation6 + $0x1a8] sm:$0xff] }
 0x134   :  { %v1580_v49 = vadd.f32 %v1468_v39, %v253_v40  ;;  %v282_v37 = vld [vmem:[#allocation6 + $0x1a0] sm:$0xff]  ;;  %v1301_v36 = vmul.f32 %v9524_v1, %v11964_v2  ;;  %v9711_v45 = vpack.c.bf16 %v1689_v5, %v1673_v28  ;;  %v9713_v24 = vpack.c.bf16 %v1690_v4, %v1674_v14  ;;  %5866 = vmatpush2.bf16.msra.mxu1 %v7977_v0  ;;  %v11968_v14 = vld [vmem:[#allocation69_spill] sm:$0xff]  ;;  %v11987_v58 = vld [vmem:[#allocation38_spill] sm:$0xff] }
 0x135   :  { %v11965_v41 = vld [vmem:[#allocation76_spill] sm:$0xff]  ;;  %v1675_v52 = vmax.f32 %v1563_v9, 0.0  ;;  %v1676_v6 = vmax.f32 %v1564_v32, 0.0  ;;  %5796 = vmatprep.subr.bf16.mxu0 %v7982_v47  ;;  %v1691_v10 = vmax.f32 %v1579_v23, 0.0  ;;  %v1481_v38 = vadd.f32 %v9500_v17, %v1285_v51  ;;  %5867 = vmatprep.subr.bf16.mxu1 %v7985_v56  ;;  %v9823_v35 = vld [vmem:[#allocation3 + $0x150] sm:$0xff] }
 0x136   :  { %v1302_v21 = vmul.f32 %v9527_v31, %v11965_v41  ;;  %v7991_v50 = vld [vmem:[#allocation11 + $0x7a4] ss:$16 sps:$4 sm:$0xff]   ;;  %11966 = vst [vmem:[#allocation66_spill] sm:$0xff] %v9711_v45  ;;  %11967 = vst [vmem:[#allocation73_spill] sm:$0xff] %v9713_v24  ;;  %v1692_v40 = vmax.f32 %v1580_v49, 0.0  ;;  %v1482_v29 = vadd.f32 %v9503_v22, %v1286_v7  ;;  %v1497_v46 = vadd.f32 %v9500_v17, %v1301_v36 }
 0x137   :  { %v7986_v39 = vld [vmem:[#allocation11 + $0x5a0] ss:$16 sps:$4 sm:$0xff]   ;;  %v2260_v16 = vld [vmem:[#allocation2 + $0x128] sm:$0x11]  ;;  %v1287_v5 = vmul.f32 %v9530_v60, %v11968_v14  ;;  %v7994_v9 = vld [vmem:[#allocation11 + $0x584] ss:$16 sps:$4 sm:$0xff]   ;;  %v1593_v51 = vadd.f32 %v1481_v38, %v266_v30  ;;  %5797 = vmatpush2.bf16.msra.mxu0 %v7980_v48 }
 0x138   :  { %v1498_v28 = vadd.f32 %v9503_v22, %v1302_v21  ;;  %v7989_v4 = vld [vmem:[#allocation11 + $0x7a0] ss:$16 sps:$4 sm:$0xff]   ;;  %v9721_v0 = vcombine.high %v2260_v16, %v2260_v16  ;;  %v9723_v47 = vcombine.low %v2260_v16, %v2260_v16  ;;  %v2261_v32 = vld [vmem:[#allocation2 + $0x38] sm:$0x11]  ;;  %v7997_v56 = vld [vmem:[#allocation11 + $0x784] ss:$16 sps:$4 sm:$0xff]   ;;  %v1594_v49 = vadd.f32 %v1482_v29, %v267_v59  ;;  %5868 = vmatpush2.bf16.msra.mxu1 %v7983_v34 }
 0x139   :  { %v222_v3 = vld [vmem:[#allocation3 + $0x340] sm:$0x1]  ;;  %v9725_v7 = vcombine.high %v2261_v32, %v2261_v32  ;;  %v9727_v23 = vcombine.low %v2261_v32, %v2261_v32  ;;  %v1609_v2 = vadd.f32 %v1497_v46, %v282_v37  ;;  %v268_v36 = vld [vmem:[#allocation6 + $0x130] sm:$0xff]  ;;  %v223_v41 = vld [vmem:[#allocation3 + $0x348] sm:$0x1]  ;;  %5798 = vmatprep.subr.bf16.mxu0 %v7988_v57  ;;  %v9729_v21 = vpack.c.bf16 %v1691_v10, %v1675_v52 }
 0x13a   :  { %11969 = vst [vmem:[#allocation74_spill] sm:$0xff] %v9721_v0  ;;  %11970 = vst [vmem:[#allocation23_spill] sm:$0xff] %v9723_v47  ;;  %v9731_v14 = vpack.c.bf16 %v1692_v40, %v1676_v6  ;;  %v1610_v16 = vadd.f32 %v1498_v28, %v283_v25  ;;  %v1705_v26 = vmax.f32 %v1593_v51, 0.0  ;;  %v269_v30 = vld [vmem:[#allocation6 + $0x138] sm:$0xff]  ;;  %v284_v38 = vld [vmem:[#allocation6 + $0x1b0] sm:$0xff]  ;;  %5869 = vmatprep.subr.bf16.mxu1 %v7991_v50  ;;  %5698 = vmatprep.mubr.bf16.mxu0 %v9721_v0 }
 0x13b   :  { %11971 = vst [vmem:[#allocation24_spill] sm:$0xff] %v9725_v7  ;;  %11972 = vst [vmem:[#allocation31_spill] sm:$0xff] %v9727_v23  ;;  %v224_v48 = vld [vmem:[#allocation3 + $0x350] sm:$0x1]  ;;  %v1706_v32 = vmax.f32 %v1594_v49, 0.0  ;;  %v1721_v59 = vmax.f32 %v1609_v2, 0.0  ;;  %5699 = vmatmul.mubr.bf16.gmra.mxu0 %v9723_v47  ;;  %5769 = vmatprep.mubr.bf16.mxu1 %v9725_v7  ;;  %v1483_v46 = vadd.f32 %v9506_v18, %v1287_v5 }
 0x13c   :  { %11973 = vst [vmem:[#allocation32_spill] sm:$0xff] %v9729_v21  ;;  %11974 = vst [vmem:[#allocation25_spill] sm:$0xff] %v9731_v14  ;;  %v7992_v33 = vld [vmem:[#allocation11 + $0x580] ss:$16 sps:$4 sm:$0xff]   ;;  %v285_v37 = vld [vmem:[#allocation6 + $0x1b8] sm:$0xff]  ;;  %v1722_v25 = vmax.f32 %v1610_v16, 0.0  ;;  %5799 = vmatpush2.bf16.msra.mxu0 %v7986_v39  ;;  %5770 = vmatmul.mubr.bf16.gmra.mxu1 %v9727_v23 }
 0x13d   :  { %v11975_v29 = vld [vmem:[#allocation70_spill] sm:$0xff]  ;;  %v11976_v57 = vld [vmem:[#allocation21_spill] sm:$0xff]  ;;  %v11978_v28 = vld [vmem:[#allocation27_spill] sm:$0xff]  ;;  %5870 = vmatpush2.bf16.msra.mxu1 %v7989_v4  ;;  %5800 = vmatprep.subr.bf16.mxu0 %v7994_v9  ;;  %v9753_v5 = vsel %vm347_vm0, %v223_v41, 0.0  ;;  %v9759_v4 = vsel %vm347_vm0, %v224_v48, 0.0  ;;  %12000 = vst [vmem:[#allocation58_spill] sm:$0xff] %v9823_v35 }
 0x13e   :  { %v1288_v34 = vmul.f32 %v9533_v13, %v11975_v29  ;;  %v1303_v52 = vmul.f32 %v9530_v60, %v11976_v57  ;;  %v7995_v6 = vld [vmem:[#allocation11 + $0x780] ss:$16 sps:$4 sm:$0xff]   ;;  %v8000_v10 = vld [vmem:[#allocation11 + $0x564] ss:$16 sps:$4 sm:$0xff]   ;;  %v1317_v51 = vmul.f32 %v9524_v1, %v11978_v28  ;;  %v9749_v57 = vsel %vm347_vm0, %v222_v3, 0.0  ;;  %5871 = vmatprep.subr.bf16.mxu1 %v7997_v56  ;;  %5810 = vmatprep.mubr.bf16.mxu0 %v9713_v24  ;;  %v299_v47 = vld [vmem:[#allocation6 + $0x228] sm:$0xff] }
 0x13f   :  { %v11977_v50 = vld [vmem:[#allocation22_spill] sm:$0xff]  ;;  %5881 = vmatprep.mubr.bf16.mxu1 %v9731_v14  ;;  %v9764_v56 = vpack.c.bf16 %v1721_v59, %v1705_v26  ;;  %v11983_v7 = vld [vmem:[#allocation36_spill] sm:$0xff]  ;;  %12008 = vst [vmem:[#allocation76_spill] sm:$0xff] %v9851_v8 }
 0x140   :  { %v1304_v40 = vmul.f32 %v9533_v13, %v11977_v50  ;;  %v8003_v49 = vld [vmem:[#allocation11 + $0x764] ss:$16 sps:$4 sm:$0xff]   ;;  %v1484_v2 = vadd.f32 %v9509_v19, %v1288_v34  ;;  %v1499_v29 = vadd.f32 %v9506_v18, %v1303_v52  ;;  %v1595_v50 = vadd.f32 %v1483_v46, %v268_v36  ;;  %v7998_v39 = vld [vmem:[#allocation11 + $0x560] ss:$16 sps:$4 sm:$0xff]   ;;  %5801 = vmatpush2.bf16.msra.mxu0 %v7992_v33 }
 0x141   :  { %v298_v34 = vld [vmem:[#allocation6 + $0x220] sm:$0xff]  ;;  %v9762_v36 = vpack.c.bf16 %v1722_v25, %v1706_v32  ;;  %11981 = vst [vmem:[#allocation33_spill] sm:$0xff] %v9764_v56  ;;  %v1334_v0 = vmul.f32 %v9527_v31, %v11983_v7  ;;  %5872 = vmatpush2.bf16.msra.mxu1 %v7995_v6  ;;  %5802 = vmatprep.subr.bf16.mxu0 %v8000_v10  ;;  %v316_v14 = vld [vmem:[#allocation6 + $0x2b0] sm:$0xff] }
 0x142   :  { %v1500_v16 = vadd.f32 %v9509_v19, %v1304_v40  ;;  %v1596_v28 = vadd.f32 %v1484_v2, %v269_v30  ;;  %v1611_v23 = vadd.f32 %v1499_v29, %v284_v38  ;;  %v11979_v52 = vld [vmem:[#allocation28_spill] sm:$0xff]  ;;  %v1707_v46 = vmax.f32 %v1595_v50, 0.0  ;;  %v315_v38 = vld [vmem:[#allocation6 + $0x2a8] sm:$0xff]  ;;  %5873 = vmatprep.subr.bf16.mxu1 %v8003_v49  ;;  %v300_v50 = vld [vmem:[#allocation6 + $0x230] sm:$0xff] }
 0x143   :  { %v1318_v3 = vmul.f32 %v9527_v31, %v11979_v52  ;;  %v8001_v9 = vld [vmem:[#allocation11 + $0x760] ss:$16 sps:$4 sm:$0xff]   ;;  %v8009_v40 = vld [vmem:[#allocation11 + $0x544] ss:$16 sps:$4 sm:$0xff]   ;;  %11980 = vst [vmem:[#allocation26_spill] sm:$0xff] %v9762_v36  ;;  %v11982_v52 = vld [vmem:[#allocation35_spill] sm:$0xff]  ;;  %v1513_v26 = vadd.f32 %v9500_v17, %v1317_v51 }
 0x144   :  { %v1612_v41 = vadd.f32 %v1500_v16, %v285_v37  ;;  %v314_v30 = vld [vmem:[#allocation6 + $0x2a0] sm:$0xff]  ;;  %v1708_v29 = vmax.f32 %v1596_v28, 0.0  ;;  %v1723_v24 = vmax.f32 %v1611_v23, 0.0  ;;  %v1333_v48 = vmul.f32 %v9524_v1, %v11982_v52  ;;  %v11984_v37 = vld [vmem:[#allocation29_spill] sm:$0xff]  ;;  %v11985_v28 = vld [vmem:[#allocation30_spill] sm:$0xff]  ;;  %5803 = vmatpush2.bf16.msra.mxu0 %v7998_v39 }
 0x145   :  { %v8012_v2 = vld [vmem:[#allocation11 + $0x744] ss:$16 sps:$4 sm:$0xff]   ;;  %v1514_v59 = vadd.f32 %v9503_v22, %v1318_v3  ;;  %v1319_v25 = vmul.f32 %v9530_v60, %v11984_v37  ;;  %v8007_v33 = vld [vmem:[#allocation11 + $0x540] ss:$16 sps:$4 sm:$0xff]   ;;  %v1530_v16 = vadd.f32 %v9503_v22, %v1334_v0  ;;  %v1320_v7 = vmul.f32 %v9533_v13, %v11985_v28  ;;  %v301_v51 = vld [vmem:[#allocation6 + $0x238] sm:$0xff]  ;;  %5874 = vmatpush2.bf16.msra.mxu1 %v8001_v9 }
 0x146   :  { %v1724_v32 = vmax.f32 %v1612_v41, 0.0  ;;  %v1529_v23 = vadd.f32 %v9500_v17, %v1333_v48  ;;  %v8010_v6 = vld [vmem:[#allocation11 + $0x740] ss:$16 sps:$4 sm:$0xff]   ;;  %v8016_v10 = vld [vmem:[#allocation11 + $0x524] ss:$16 sps:$4 sm:$0xff]   ;;  %v1625_v41 = vadd.f32 %v1513_v26, %v298_v34  ;;  %v11986_v3 = vld [vmem:[#allocation37_spill] sm:$0xff]  ;;  %v1336_v0 = vmul.f32 %v9533_v13, %v11987_v58  ;;  %5804 = vmatprep.subr.bf16.mxu0 %v8009_v40  ;;  %5875 = vmatprep.subr.bf16.mxu1 %v8012_v2 }
 0x147   :  { %v1626_v52 = vadd.f32 %v1514_v59, %v299_v47  ;;  %v1335_v62 = vmul.f32 %v9530_v60, %v11986_v3  ;;  %v8019_v49 = vld [vmem:[#allocation11 + $0x724] ss:$16 sps:$4 sm:$0xff]   ;;  %v1642_v15 = vadd.f32 %v1530_v16, %v315_v38  ;;  %v317_v48 = vld [vmem:[#allocation6 + $0x2b8] sm:$0xff]  ;;  %v1515_v20 = vadd.f32 %v9506_v18, %v1319_v25  ;;  %v8014_v59 = vld [vmem:[#allocation11 + $0x520] ss:$16 sps:$4 sm:$0xff]  }
 0x148   :  { %v1641_v37 = vadd.f32 %v1529_v23, %v314_v30  ;;  %v9783_v28 = vpack.c.bf16 %v1724_v32, %v1708_v29  ;;  %v9785_v47 = vpack.c.bf16 %v1723_v24, %v1707_v46  ;;  %v1737_v34 = vmax.f32 %v1625_v41, 0.0  ;;  %v330_v23 = vld [vmem:[#allocation6 + $0x320] sm:$0x1]  ;;  %v8022_v16 = vld [vmem:[#allocation11 + $0x504] ss:$16 sps:$4 sm:$0xff]   ;;  %v11990_v29 = vld [vmem:[#allocation43_spill] sm:$0xff]  ;;  %5805 = vmatpush2.bf16.msra.mxu0 %v8007_v33 }
 0x149   :  { %v1738_v26 = vmax.f32 %v1626_v52, 0.0  ;;  %v1754_v3 = vmax.f32 %v1642_v15, 0.0  ;;  %v1516_v30 = vadd.f32 %v9509_v19, %v1320_v7  ;;  %v1531_v38 = vadd.f32 %v9506_v18, %v1335_v62  ;;  %v8017_v58 = vld [vmem:[#allocation11 + $0x720] ss:$16 sps:$4 sm:$0xff]   ;;  %v9796_v2 = vld [vmem:[#allocation3 + $0x48] sm:$0xff]  ;;  %5876 = vmatpush2.bf16.msra.mxu1 %v8010_v6  ;;  %5806 = vmatprep.subr.bf16.mxu0 %v8016_v10 }
 0x14a   :  { %11988 = vst [vmem:[#allocation34_spill] sm:$0xff] %v9783_v28  ;;  %11989 = vst [vmem:[#allocation39_spill] sm:$0xff] %v9785_v47  ;;  %v1753_v39 = vmax.f32 %v1641_v37, 0.0  ;;  %v1532_v9 = vadd.f32 %v9509_v19, %v1336_v0  ;;  %v9790_v40 = vadd.f32 %v1515_v20, %v300_v50  ;;  %v1349_v24 = vmul.f32 %v9524_v1, %v11990_v29  ;;  %v9794_v46 = vld [vmem:[#allocation3 + $0x40] sm:$0xff]  ;;  %v9800_v15 = vld [vmem:[#allocation3 + $0xc8] sm:$0xff] }
 0x14b   :  { %v9798_v32 = vld [vmem:[#allocation3 + $0xc0] sm:$0xff]  ;;  %11991 = vst [vmem:[#allocation40_spill] sm:$0xff] %v9800_v15  ;;  %v1628_v25 = vadd.f32 %v1516_v30, %v301_v51  ;;  %v1643_v7 = vadd.f32 %v1531_v38, %v316_v14  ;;  %v331_v41 = vld [vmem:[#allocation6 + $0x328] sm:$0x1]  ;;  %v332_v0 = vld [vmem:[#allocation6 + $0x330] sm:$0x1]  ;;  %5877 = vmatprep.subr.bf16.mxu1 %v8019_v49  ;;  %v9816_v6 = vpack.c.bf16 %v1754_v3, %v1738_v26 }
 0x14c   :  { %v8025_v62 = vld [vmem:[#allocation11 + $0x704] ss:$16 sps:$4 sm:$0xff]   ;;  %v1644_v50 = vadd.f32 %v1532_v9, %v317_v48  ;;  %v1739_v1 = vmax.f32 %v9790_v40, 0.0  ;;  %v1545_v37 = vadd.f32 %v9500_v17, %v1349_v24  ;;  %v11993_v29 = vld [vmem:[#allocation45_spill] sm:$0xff]  ;;  %v9818_v10 = vpack.c.bf16 %v1753_v39, %v1737_v34  ;;  %v333_v30 = vld [vmem:[#allocation6 + $0x338] sm:$0x1]  ;;  %5807 = vmatpush2.bf16.msra.mxu0 %v8014_v59 }
 0x14d   :  { %v11992_v52 = vld [vmem:[#allocation44_spill] sm:$0xff]  ;;  %v1351_v42 = vmul.f32 %v9530_v60, %v11993_v29  ;;  %v9810_v33 = vld [vmem:[#allocation3 + $0xd0] sm:$0xff]  ;;  %v9814_v51 = vld [vmem:[#allocation3 + $0x148] sm:$0xff]  ;;  %11997 = vst [vmem:[#allocation52_spill] sm:$0xff] %v9816_v6  ;;  %v1740_v48 = vmax.f32 %v1628_v25, 0.0  ;;  %v1755_v17 = vmax.f32 %v1643_v7, 0.0  ;;  %5878 = vmatpush2.bf16.msra.mxu1 %v8017_v58  ;;  %5808 = vmatprep.subr.bf16.mxu0 %v8022_v16 }
 0x14e   :  { %v1350_v20 = vmul.f32 %v9527_v31, %v11992_v52  ;;  %11994 = vst [vmem:[#allocation41_spill] sm:$0xff] %v9810_v33  ;;  %v9812_v14 = vld [vmem:[#allocation3 + $0x140] sm:$0xff]  ;;  %11996 = vst [vmem:[#allocation51_spill] sm:$0xff] %v9814_v51  ;;  %v1756_v60 = vmax.f32 %v1644_v50, 0.0  ;;  %v1657_v24 = vadd.f32 %v1545_v37, %v330_v23  ;;  %v11999_v52 = vld [vmem:[#allocation46_spill] sm:$0xff]  ;;  %v460_v23 = vadd.f32 %v9800_v15, %v9796_v2 }
 0x14f   :  { %11995 = vst [vmem:[#allocation42_spill] sm:$0xff] %v9812_v14  ;;  %v8020_v31 = vld [vmem:[#allocation11 + $0x500] ss:$16 sps:$4 sm:$0xff]   ;;  %11998 = vst [vmem:[#allocation57_spill] sm:$0xff] %v9818_v10  ;;  %v8028_v9 = vld [vmem:[#allocation11 + $0x8e4] ss:$16 sps:$4 sm:$0xff]   ;;  %v1352_v29 = vmul.f32 %v9533_v13, %v11999_v52  ;;  %v1547_v39 = vadd.f32 %v9506_v18, %v1351_v42  ;;  %v447_v13 = vadd.f32 %v9798_v32, %v9794_v46  ;;  %5879 = vmatprep.subr.bf16.mxu1 %v8025_v62 }
 0x150   :  { %v8023_v38 = vld [vmem:[#allocation11 + $0x700] ss:$16 sps:$4 sm:$0xff]   ;;  %v1546_v40 = vadd.f32 %v9503_v22, %v1350_v20  ;;  %v9827_v26 = vld [vmem:[#allocation3 + $0x1c8] sm:$0xff]  ;;  %v8031_v34 = vld [vmem:[#allocation11 + $0xae4] ss:$16 sps:$4 sm:$0xff]   ;;  %v1769_v20 = vmax.f32 %v1657_v24, 0.0  ;;  %v9861_v63 = vpack.c.bf16 %v1756_v60, %v1740_v48  ;;  %v9863_v55 = vpack.c.bf16 %v1755_v17, %v1739_v1  ;;  %5809 = vmatpush2.bf16.msra.mxu0 %v8020_v31 }
 0x151   :  { %v9825_v49 = vld [vmem:[#allocation3 + $0x1c0] sm:$0xff]  ;;  %12002 = vst [vmem:[#allocation62_spill] sm:$0xff] %v9827_v26  ;;  %v9830_v3 = vld [vmem:[#allocation3 + $0x58] sm:$0xff]  ;;  %v1548_v18 = vadd.f32 %v9509_v19, %v1352_v29  ;;  %v9843_v42 = vld [vmem:[#allocation3 + $0x68] sm:$0xff]  ;;  %v1659_v11 = vadd.f32 %v1547_v39, %v332_v0  ;;  %v448_v19 = vadd.f32 %v447_v13, %v9812_v14  ;;  %5880 = vmatpush2.bf16.msra.mxu1 %v8023_v38 }
 0x152   :  { %12001 = vst [vmem:[#allocation61_spill] sm:$0xff] %v9825_v49  ;;  %12003 = vst [vmem:[#allocation63_spill] sm:$0xff] %v9830_v3  ;;  %v9832_v25 = vld [vmem:[#allocation3 + $0x60] sm:$0xff]  ;;  %v9834_v7 = vld [vmem:[#allocation3 + $0xd8] sm:$0xff]  ;;  %v1658_v59 = vadd.f32 %v1546_v40, %v331_v41  ;;  %v461_v41 = vadd.f32 %v460_v23, %v9814_v51  ;;  %v473_v40 = vadd.f32 %v9810_v33, %v9808_v44  ;;  %5920 = vmatprep.subr.bf16.mxu0 %v8028_v9 }
 0x153   :  { %12004 = vst [vmem:[#allocation64_spill] sm:$0xff] %v9832_v25  ;;  %12005 = vst [vmem:[#allocation67_spill] sm:$0xff] %v9834_v7  ;;  %v9836_v22 = vld [vmem:[#allocation3 + $0xe0] sm:$0xff]  ;;  %v9845_v50 = vld [vmem:[#allocation3 + $0xe8] sm:$0xff]  ;;  %v1660_v27 = vadd.f32 %v1548_v18, %v333_v30  ;;  %v1771_v61 = vmax.f32 %v1659_v11, 0.0  ;;  %v449_v17 = vadd.f32 %v448_v19, %v9825_v49  ;;  %v486_v33 = vadd.f32 %v9834_v7, %v9830_v3 }
 0x154   :  { %12006 = vst [vmem:[#allocation68_spill] sm:$0xff] %v9836_v22  ;;  %v9847_v37 = vld [vmem:[#allocation3 + $0x1d0] sm:$0xff]  ;;  %v9849_v52 = vld [vmem:[#allocation3 + $0x240] sm:$0xff]  ;;  %v9853_v58 = vld [vmem:[#allocation3 + $0x158] sm:$0xff]  ;;  %v1770_v62 = vmax.f32 %v1658_v59, 0.0  ;;  %v462_v30 = vadd.f32 %v461_v41, %v9827_v26  ;;  %v474_v60 = vadd.f32 %v473_v40, %v9823_v35  ;;  %v499_v15 = vadd.f32 %v9836_v22, %v9832_v25  ;;  %5991 = vmatprep.subr.bf16.mxu1 %v8031_v34 }
 0x155   :  { %12007 = vst [vmem:[#allocation75_spill] sm:$0xff] %v9849_v52  ;;  %v9855_v16 = vld [vmem:[#allocation3 + $0x160] sm:$0xff]  ;;  %12009 = vst [vmem:[#allocation69_spill] sm:$0xff] %v9861_v63  ;;  %v9865_v0 = vld [vmem:[#allocation3 + $0x250] sm:$0xff]  ;;  %v1772_v18 = vmax.f32 %v1660_v27, 0.0  ;;  %v512_v34 = vadd.f32 %v9845_v50, %v9843_v42  ;;  %5811 = vmatmul.mubr.bf16.vlgmr.msra.gmra.mxu0 %v9711_v45  ;;  %5882 = vmatmul.mubr.bf16.vlgmr.msra.gmra.mxu1 %v9729_v21 }
 0x156   :  { %v8029_v24 = vld [vmem:[#allocation11 + $0xae0] ss:$16 sps:$4 sm:$0xff]   ;;  %v8034_v29 = vld [vmem:[#allocation11 + $0x8c4] ss:$16 sps:$4 sm:$0xff]   ;;  %12010 = vst [vmem:[#allocation70_spill] sm:$0xff] %v9863_v55  ;;  %v9873_v14 = vld [vmem:[#allocation3 + $0x1d8] sm:$0xff]  ;;  %v7809_v59 = vpack.c.bf16 %v1770_v62, %v1769_v20  ;;  %v450_v20 = vadd.f32 %v449_v17, %v9849_v52  ;;  %v463_v40 = vadd.f32 %v462_v30, %v9851_v8  ;;  %v475_v62 = vadd.f32 %v474_v60, %v9847_v37 }
 0x157   :  { %v9867_v39 = vld [vmem:[#allocation3 + $0x2c0] sm:$0xff]  ;;  %v9871_v13 = vld [vmem:[#allocation3 + $0x358] sm:$0x1]  ;;  %v2197_v51 = vld [vmem:[#allocation2 + $0x170] sm:$0x11]  ;;  %v7810_v7 = vpack.c.bf16 %v1772_v18, %v1771_v61  ;;  %v487_v17 = vadd.f32 %v486_v33, %v9853_v58  ;;  %v500_v30 = vadd.f32 %v499_v15, %v9855_v16  ;;  %5921 = vmatpush1.bf16.msra.mxu0 %v8026_v12  ;;  %5992 = vmatpush1.bf16.msra.mxu1 %v8029_v24 }
 0x158   :  { %12011 = vst [vmem:[#allocation21_spill] sm:$0xff] %v9871_v13  ;;  %v8037_v23 = vld [vmem:[#allocation11 + $0xac4] ss:$16 sps:$4 sm:$0xff]   ;;  %v9877_v1 = vld [vmem:[#allocation3 + $0x360] sm:$0x1]  ;;  %v9894_v38 = vld [vmem:[#allocation3 + $0x168] sm:$0xff]  ;;  %v2195_v22 = vsel %vm9653_vm6, %v7809_v59, %v2194_v53  ;;  %v451_v53 = vadd.f32 %v450_v20, %v9867_v39  ;;  %v464_v59 = vadd.f32 %v463_v40, %v9869_v54  ;;  %v476_v33 = vadd.f32 %v475_v62, %v9865_v0 }
 0x159   :  { %v9875_v48 = vld [vmem:[#allocation3 + $0x1e0] sm:$0xff]  ;;  %12012 = vst [vmem:[#allocation22_spill] sm:$0xff] %v9877_v1  ;;  %v9882_v31 = vld [vmem:[#allocation3 + $0x2d0] sm:$0xff]  ;;  %v9884_v11 = vld [vmem:[#allocation3 + $0x368] sm:$0x1]  ;;  %v491_v15 = vsel %vm347_vm0, %v9871_v13, 0.0  ;;  %5922 = vmatprep.subr.bf16.mxu0 %v8034_v29  ;;  %v2198_v12 = vsel %vm9653_vm6, %v7810_v7, %v2197_v51  ;;  %v488_v18 = vadd.f32 %v487_v17, %v9873_v14  ;;  %5993 = vmatprep.subr.bf16.mxu1 %v8037_v23 }
 0x15a   :  { %12013 = vst [vmem:[#allocation27_spill] sm:$0xff] %v9884_v11  ;;  %v8032_v19 = vld [vmem:[#allocation11 + $0x8c0] ss:$16 sps:$4 sm:$0xff]   ;;  %v9896_v9 = vld [vmem:[#allocation3 + $0x258] sm:$0xff]  ;;  %v8040_v35 = vld [vmem:[#allocation11 + $0x8a4] ss:$16 sps:$4 sm:$0xff]   ;;  %v501_v21 = vadd.f32 %v500_v30, %v9875_v48  ;;  %5820 = vmatprep.mubr.bf16.mxu0 %v9762_v36  ;;  %v453_v40 = vadd.f32 %v9749_v57, %v451_v53  ;;  %v466_v24 = vadd.f32 %v9753_v5, %v464_v59 }
 0x15b   :  { %v9890_v49 = vld [vmem:[#allocation3 + $0x70] sm:$0xff]  ;;  %v9898_v27 = vld [vmem:[#allocation3 + $0x260] sm:$0xff]  ;;  %v9908_v25 = vld [vmem:[#allocation3 + $0x78] sm:$0xff]  ;;  %2196 = vst [vmem:[#allocation2 + $0x88] sm:$0x11] %v2195_v22  ;;  %v504_v20 = vsel %vm347_vm0, %v9877_v1, 0.0  ;;  %v477_v29 = vadd.f32 %v476_v33, %v9882_v31  ;;  %5891 = vmatprep.mubr.bf16.mxu1 %v9783_v28  ;;  %v489_v7 = vadd.f32 %v488_v18, %v9896_v9  ;;  %v513_v23 = vadd.f32 %v512_v34, %v9894_v38 }
 0x15c   :  { %12014 = vst [vmem:[#allocation28_spill] sm:$0xff] %v9890_v49  ;;  %v9892_v41 = vld [vmem:[#allocation3 + $0xf0] sm:$0xff]  ;;  %12016 = vst [vmem:[#allocation36_spill] sm:$0xff] %v9908_v25  ;;  %v9910_v3 = vld [vmem:[#allocation3 + $0xf8] sm:$0xff]  ;;  %v9942_v51 = vsel %vm347_vm0, %v9884_v11, 0.0  ;;  %v502_v62 = vadd.f32 %v501_v21, %v9898_v27  ;;  %5923 = vmatpush1.bf16.msra.mxu0 %v8032_v19  ;;  %v454_v53 = vrot.slane %v453_v40, 4 }
 0x15d   :  { %12015 = vst [vmem:[#allocation35_spill] sm:$0xff] %v9892_v41  ;;  %v8035_v26 = vld [vmem:[#allocation11 + $0xac0] ss:$16 sps:$4 sm:$0xff]   ;;  %12017 = vst [vmem:[#allocation29_spill] sm:$0xff] %v9910_v3  ;;  %v8043_v60 = vld [vmem:[#allocation11 + $0xaa4] ss:$16 sps:$4 sm:$0xff]   ;;  %v525_v17 = vadd.f32 %v9892_v41, %v9890_v49  ;;  %v479_v33 = vadd.f32 %v9759_v4, %v477_v29  ;;  %5924 = vmatprep.subr.bf16.mxu0 %v8040_v35  ;;  %5821 = vmatmul.mubr.bf16.gmra.mxu0 %v9764_v56 }
 0x15e   :  { %v9915_v45 = vld [vmem:[#allocation3 + $0x1e8] sm:$0xff]  ;;  %v9917_v8 = vld [vmem:[#allocation3 + $0x2d8] sm:$0xff]  ;;  %v9919_v52 = vld [vmem:[#allocation3 + $0x2e0] sm:$0xff]  ;;  %2199 = vst [vmem:[#allocation2 + $0x170] sm:$0x11] %v2198_v12  ;;  %v467_v59 = vrot.slane %v466_v24, 4  ;;  %v538_v12 = vadd.f32 %v9910_v3, %v9908_v25  ;;  %5994 = vmatpush1.bf16.msra.mxu1 %v8035_v26  ;;  %v455_v11 = vadd.f32 %v454_v53, %v453_v40  ;;  %5830 = vmatprep.mubr.bf16.mxu0 %v9816_v6 }
 0x15f   :  { %12018 = vst [vmem:[#allocation30_spill] sm:$0xff] %v9919_v52  ;;  %v9921_v61 = vld [vmem:[#allocation3 + $0x370] sm:$0x1]  ;;  %v9950_v5 = vld [vmem:[#allocation3 + $0x178] sm:$0xff]  ;;  %v9952_v30 = vld [vmem:[#allocation3 + $0x268] sm:$0xff]  ;;  %v490_v18 = vadd.f32 %v489_v7, %v9917_v8  ;;  %v503_v19 = vadd.f32 %v502_v62, %v9919_v52  ;;  %v514_v28 = vadd.f32 %v513_v23, %v9915_v45  ;;  %5995 = vmatprep.subr.bf16.mxu1 %v8043_v60  ;;  %v480_v35 = vrot.slane %v479_v33, 4 }
 0x160   :  { %12019 = vst [vmem:[#allocation37_spill] sm:$0xff] %v9921_v61  ;;  %v9930_v22 = vld [vmem:[#allocation3 + $0x170] sm:$0xff]  ;;  %12021 = vst [vmem:[#allocation43_spill] sm:$0xff] %v9950_v5  ;;  %v9962_v36 = vsel %vm347_vm0, %v9921_v61, 0.0  ;;  %v9964_v29 = vld [vmem:[#allocation3 + $0x2e8] sm:$0xff]  ;;  %v468_v26 = vadd.f32 %v467_v59, %v466_v24  ;;  %v539_v60 = vadd.f32 %v538_v12, %v9950_v5  ;;  %5892 = vmatmul.mubr.bf16.gmra.mxu1 %v9785_v47  ;;  %v456_v59 = vrot.slane %v455_v11, 2 }
 0x161   :  { %12020 = vst [vmem:[#allocation38_spill] sm:$0xff] %v9930_v22  ;;  %v8038_v57 = vld [vmem:[#allocation11 + $0x8a0] ss:$16 sps:$4 sm:$0xff]   ;;  %v8046_v34 = vld [vmem:[#allocation11 + $0x884] ss:$16 sps:$4 sm:$0xff]   ;;  %12022 = vst [vmem:[#allocation44_spill] sm:$0xff] %v9964_v29  ;;  %v526_v1 = vadd.f32 %v525_v17, %v9930_v22  ;;  %v492_v23 = vadd.f32 %v491_v15, %v490_v18  ;;  %v505_v3 = vadd.f32 %v504_v20, %v503_v19  ;;  %5901 = vmatprep.mubr.bf16.mxu1 %v9861_v63 }
 0x162   :  { %v8041_v21 = vld [vmem:[#allocation11 + $0xaa0] ss:$16 sps:$4 sm:$0xff]   ;;  %v8049_v4 = vld [vmem:[#allocation11 + $0xa84] ss:$16 sps:$4 sm:$0xff]   ;;  %v2262_v62 = vld [vmem:[#allocation2 + $0x88] sm:$0x11]  ;;  %v515_v61 = vadd.f32 %v514_v28, %v9952_v30  ;;  %5925 = vmatpush1.bf16.msra.mxu0 %v8038_v57  ;;  %v481_v28 = vadd.f32 %v480_v35, %v479_v33  ;;  %v457_v5 = vadd.f32 %v456_v59, %v455_v11 }
 0x163   :  { %v8044_v43 = vld [vmem:[#allocation11 + $0x880] ss:$16 sps:$4 sm:$0xff]   ;;  %v9968_v13 = vld [vmem:[#allocation3 + $0x378] sm:$0x1]  ;;  %v8052_v40 = vld [vmem:[#allocation11 + $0x864] ss:$16 sps:$4 sm:$0xff]   ;;  %v9973_v53 = vcombine.high %v2262_v62, %v2262_v62  ;;  %v9975_v17 = vcombine.low %v2262_v62, %v2262_v62  ;;  %5996 = vmatpush1.bf16.msra.mxu1 %v8041_v21  ;;  %5926 = vmatprep.subr.bf16.mxu0 %v8046_v34 }
 0x164   :  { %v8047_v7 = vld [vmem:[#allocation11 + $0xa80] ss:$16 sps:$4 sm:$0xff]   ;;  %v8055_v24 = vld [vmem:[#allocation11 + $0xa64] ss:$16 sps:$4 sm:$0xff]   ;;  %v469_v56 = vrot.slane %v468_v26, 2  ;;  %v9979_v20 = vld [vmem:[#allocation3 + $0x1f8] sm:$0xff]  ;;  %v516_v18 = vadd.f32 %v515_v61, %v9964_v29  ;;  %5997 = vmatprep.subr.bf16.mxu1 %v8049_v4 }
 0x165   :  { %12023 = vst [vmem:[#allocation45_spill] sm:$0xff] %v9973_v53  ;;  %12024 = vst [vmem:[#allocation46_spill] sm:$0xff] %v9975_v17  ;;  %v2263_v22 = vld [vmem:[#allocation2 + $0x170] sm:$0x11]  ;;  %v493_v12 = vrot.slane %v492_v23, 4  ;;  %v506_v57 = vrot.slane %v505_v3, 4  ;;  %v540_v52 = vadd.f32 %v539_v60, %v9979_v20  ;;  %5831 = vmatmul.mubr.bf16.gmra.mxu0 %v9818_v10 }
 0x166   :  { %v9977_v15 = vld [vmem:[#allocation3 + $0x1f0] sm:$0xff]  ;;  %v9983_v62 = vcombine.high %v2263_v22, %v2263_v22  ;;  %v9985_v47 = vcombine.low %v2263_v22, %v2263_v22  ;;  %v9989_v34 = vld [vmem:[#allocation3 + $0x278] sm:$0xff]  ;;  %v543_v33 = vsel %vm347_vm0, %v9968_v13, 0.0  ;;  %v470_v35 = vadd.f32 %v469_v56, %v468_v26  ;;  %5927 = vmatpush1.bf16.msra.mxu0 %v8044_v43  ;;  %5840 = vmatprep.mubr.bf16.mxu0 %v9973_v53 }
 0x167   :  { %v8050_v19 = vld [vmem:[#allocation11 + $0x860] ss:$16 sps:$4 sm:$0xff]   ;;  %v482_v61 = vrot.slane %v481_v28, 2  ;;  %v494_v4 = vadd.f32 %v493_v12, %v492_v23  ;;  %v507_v29 = vadd.f32 %v506_v57, %v505_v3  ;;  %v8058_v41 = vld [vmem:[#allocation11 + $0x844] ss:$16 sps:$4 sm:$0xff]   ;;  %v458_v25 = vrot.slane %v457_v5, 1  ;;  %5998 = vmatpush1.bf16.msra.mxu1 %v8047_v7  ;;  %5928 = vmatprep.subr.bf16.mxu0 %v8052_v40 }
 0x168   :  { %12025 = vst [vmem:[#allocation86_spill] sm:$0xff] %v9983_v62  ;;  %12026 = vst [vmem:[#allocation87_spill] sm:$0xff] %v9985_v47  ;;  %v9987_v21 = vld [vmem:[#allocation3 + $0x270] sm:$0xff]  ;;  %v518_v22 = vadd.f32 %v9942_v51, %v516_v18  ;;  %v527_v49 = vadd.f32 %v526_v1, %v9977_v15  ;;  %v9999_v59 = vld [vmem:[#allocation3 + $0x2f8] sm:$0xff]  ;;  %v471_v56 = vrot.slane %v470_v35, 1  ;;  %5999 = vmatprep.subr.bf16.mxu1 %v8055_v24  ;;  %5902 = vmatmul.mubr.bf16.gmra.mxu1 %v9863_v55 }
 0x169   :  { %v8053_v6 = vld [vmem:[#allocation11 + $0xa60] ss:$16 sps:$4 sm:$0xff]   ;;  %v483_v26 = vadd.f32 %v482_v61, %v481_v28  ;;  %v495_v23 = vrot.slane %v494_v4, 2  ;;  %v508_v3 = vrot.slane %v507_v29, 2  ;;  %v8061_v43 = vld [vmem:[#allocation11 + $0xa44] ss:$16 sps:$4 sm:$0xff]   ;;  %v459_v12 = vadd.f32 %v458_v25, %v457_v5  ;;  %5911 = vmatprep.mubr.bf16.mxu1 %v9983_v62 }
 0x16a   :  { %v9997_v11 = vld [vmem:[#allocation3 + $0x2f0] sm:$0xff]  ;;  %v519_v57 = vrot.slane %v518_v22, 4  ;;  %v528_v51 = vadd.f32 %v527_v49, %v9987_v21  ;;  %v541_v1 = vadd.f32 %v540_v52, %v9989_v34  ;;  %v472_v60 = vadd.f32 %v471_v56, %v470_v35  ;;  %5929 = vmatpush1.bf16.msra.mxu0 %v8050_v19 }
 0x16b   :  { %v8056_v7 = vld [vmem:[#allocation11 + $0x840] ss:$16 sps:$4 sm:$0xff]   ;;  %v484_v40 = vrot.slane %v483_v26, 1  ;;  %v496_v18 = vadd.f32 %v495_v23, %v494_v4  ;;  %v509_v63 = vadd.f32 %v508_v3, %v507_v29  ;;  %v10007_v5 = vmul.f32 0.020408163, %v459_v12  ;;  %6000 = vmatpush1.bf16.msra.mxu1 %v8053_v6  ;;  %5930 = vmatprep.subr.bf16.mxu0 %v8058_v41 }
 0x16c   :  { %v8059_v28 = vld [vmem:[#allocation11 + $0xa40] ss:$16 sps:$4 sm:$0xff]   ;;  %v520_v61 = vadd.f32 %v519_v57, %v518_v22  ;;  %v529_v24 = vadd.f32 %v528_v51, %v9997_v11  ;;  %v542_v25 = vadd.f32 %v541_v1, %v9999_v59  ;;  %v8066_v49 = vld [vmem:[#allocation11 + $0x824] ss:$16 sps:$4 sm:$0xff]   ;;  %v10009_v56 = vmul.f32 0.020408163, %v472_v60  ;;  %6001 = vmatprep.subr.bf16.mxu1 %v8061_v43 }
 0x16d   :  { %v485_v52 = vadd.f32 %v484_v40, %v483_v26  ;;  %v497_v10 = vrot.slane %v496_v18, 1  ;;  %v510_v35 = vrot.slane %v509_v63, 1  ;;  %v8069_v29 = vld [vmem:[#allocation11 + $0xa24] ss:$16 sps:$4 sm:$0xff]   ;;  %v10015_v23 = vsub.f32 %v9794_v46, %v10007_v5  ;;  %v8064_v6 = vld [vmem:[#allocation11 + $0x820] ss:$16 sps:$4 sm:$0xff]   ;;  %5841 = vmatmul.mubr.bf16.gmra.mxu0 %v9975_v17 }
 0x16e   :  { %v521_v19 = vrot.slane %v520_v61, 2  ;;  %v531_v4 = vadd.f32 %v9962_v36, %v529_v24  ;;  %v544_v22 = vadd.f32 %v543_v33, %v542_v25  ;;  %v8067_v41 = vld [vmem:[#allocation11 + $0xa20] ss:$16 sps:$4 sm:$0xff]   ;;  %v10022_v43 = vsub.f32 %v9796_v2, %v10009_v56  ;;  %5931 = vmatpush1.bf16.msra.mxu0 %v8056_v7  ;;  %v8074_v57 = vld [vmem:[#allocation11 + $0x804] ss:$16 sps:$4 sm:$0xff]   ;;  %v12035_v24 = vld [vmem:[#allocation63_spill] sm:$0xff] }
 0x16f   :  { %12027 = vst [vmem:[#allocation88_spill] sm:$0xff] %v10015_v23  ;;  %v498_v26 = vadd.f32 %v497_v10, %v496_v18  ;;  %v511_v3 = vadd.f32 %v510_v35, %v509_v63  ;;  %v10018_v12 = vmul.f32 0.020408163, %v485_v52  ;;  %v8077_v36 = vld [vmem:[#allocation11 + $0xa04] ss:$16 sps:$4 sm:$0xff]   ;;  %v10026_v46 = vsub.f32 %v9798_v32, %v10007_v5  ;;  %6002 = vmatpush1.bf16.msra.mxu1 %v8059_v28  ;;  %v12033_v32 = vld [vmem:[#allocation41_spill] sm:$0xff] }
 0x170   :  { %12028 = vst [vmem:[#allocation89_spill] sm:$0xff] %v10022_v43  ;;  %v522_v33 = vadd.f32 %v521_v19, %v520_v61  ;;  %v532_v51 = vrot.slane %v531_v4, 4  ;;  %v545_v1 = vrot.slane %v544_v22, 4  ;;  %5932 = vmatprep.subr.bf16.mxu0 %v8066_v49  ;;  %v12031_v7 = vld [vmem:[#allocation40_spill] sm:$0xff]  ;;  %6003 = vmatprep.subr.bf16.mxu1 %v8069_v29  ;;  %v12039_v52 = vld [vmem:[#allocation67_spill] sm:$0xff] }
 0x171   :  { %12029 = vst [vmem:[#allocation90_spill] sm:$0xff] %v10026_v46  ;;  %v10028_v10 = vmul.f32 0.020408163, %v498_v26  ;;  %v10030_v63 = vmul.f32 0.020408163, %v511_v3  ;;  %v10034_v2 = vsub.f32 %v9808_v44, %v10018_v12  ;;  %v10038_v60 = vsub.f32 %v12031_v7, %v10009_v56  ;;  %v12037_v44 = vld [vmem:[#allocation64_spill] sm:$0xff]  ;;  %5912 = vmatmul.mubr.bf16.gmra.mxu1 %v9985_v47 }
 0x172   :  { %v523_v40 = vrot.slane %v522_v33, 1  ;;  %v533_v18 = vadd.f32 %v532_v51, %v531_v4  ;;  %v546_v61 = vadd.f32 %v545_v1, %v544_v22  ;;  %v10042_v28 = vsub.f32 %v12033_v32, %v10018_v12  ;;  %v12041_v29 = vld [vmem:[#allocation68_spill] sm:$0xff]  ;;  %5933 = vmatpush1.bf16.msra.mxu0 %v8064_v6  ;;  %v12043_v1 = vld [vmem:[#allocation42_spill] sm:$0xff] }
 0x173   :  { %12030 = vst [vmem:[#allocation91_spill] sm:$0xff] %v10034_v2  ;;  %12032 = vst [vmem:[#allocation40_spill] sm:$0xff] %v10038_v60  ;;  %v10047_v25 = vsub.f32 %v12035_v24, %v10028_v10  ;;  %v10051_v49 = vsub.f32 %v12037_v44, %v10030_v63  ;;  %v10055_v35 = vsub.f32 %v12039_v52, %v10028_v10  ;;  %v8072_v4 = vld [vmem:[#allocation11 + $0x800] ss:$16 sps:$4 sm:$0xff]   ;;  %6004 = vmatpush1.bf16.msra.mxu1 %v8067_v41  ;;  %v8080_v32 = vld [vmem:[#allocation11 + $0x9e4] ss:$16 sps:$4 sm:$0xff]  }
 0x174   :  { %12034 = vst [vmem:[#allocation41_spill] sm:$0xff] %v10042_v28  ;;  %v10059_v19 = vsub.f32 %v12041_v29, %v10030_v63  ;;  %v8075_v22 = vld [vmem:[#allocation11 + $0xa00] ss:$16 sps:$4 sm:$0xff]   ;;  %v524_v26 = vadd.f32 %v523_v40, %v522_v33  ;;  %v534_v3 = vrot.slane %v533_v18, 2  ;;  %v547_v51 = vrot.slane %v546_v61, 2  ;;  %5934 = vmatprep.subr.bf16.mxu0 %v8074_v57  ;;  %v12045_v44 = vld [vmem:[#allocation51_spill] sm:$0xff]  ;;  %6005 = vmatprep.subr.bf16.mxu1 %v8077_v36 }
 0x175   :  { %12036 = vst [vmem:[#allocation63_spill] sm:$0xff] %v10047_v25  ;;  %12038 = vst [vmem:[#allocation64_spill] sm:$0xff] %v10051_v49  ;;  %v10064_v7 = vsub.f32 %v12043_v1, %v10007_v5  ;;  %v8083_v24 = vld [vmem:[#allocation11 + $0xbe4] ss:$16 sps:$4 sm:$0xff]   ;;  %v10068_v52 = vsub.f32 %v12045_v44, %v10009_v56  ;;  %v10076_v33 = vsub.f32 %v9853_v58, %v10028_v10  ;;  %v8078_v40 = vld [vmem:[#allocation11 + $0x9e0] ss:$16 sps:$4 sm:$0xff]  }
 0x176   :  { %12040 = vst [vmem:[#allocation67_spill] sm:$0xff] %v10055_v35  ;;  %12042 = vst [vmem:[#allocation68_spill] sm:$0xff] %v10059_v19  ;;  %v12047_v6 = vld [vmem:[#allocation58_spill] sm:$0xff]  ;;  %v535_v1 = vadd.f32 %v534_v3, %v533_v18  ;;  %v548_v47 = vadd.f32 %v547_v51, %v546_v61  ;;  %v10078_v41 = vmul.f32 0.020408163, %v524_v26  ;;  %v10082_v57 = vsub.f32 %v9855_v16, %v10030_v63  ;;  %v12051_v44 = vld [vmem:[#allocation61_spill] sm:$0xff] }
 0x177   :  { %12044 = vst [vmem:[#allocation42_spill] sm:$0xff] %v10064_v7  ;;  %12046 = vst [vmem:[#allocation51_spill] sm:$0xff] %v10068_v52  ;;  %v10072_v29 = vsub.f32 %v12047_v6, %v10018_v12  ;;  %v10086_v17 = vsub.f32 %v12051_v44, %v10007_v5  ;;  %v12053_v6 = vld [vmem:[#allocation62_spill] sm:$0xff]  ;;  %v10094_v58 = vsub.f32 %v9847_v37, %v10018_v12  ;;  %5935 = vmatpush1.bf16.msra.mxu0 %v8072_v4 }
 0x178   :  { %12049 = vst [vmem:[#allocation92_spill] sm:$0xff] %v10076_v33  ;;  %12050 = vst [vmem:[#allocation93_spill] sm:$0xff] %v10082_v57  ;;  %v10090_v62 = vsub.f32 %v12053_v6, %v10009_v56  ;;  %v10098_v36 = vsub.f32 %v9873_v14, %v10028_v10  ;;  %v536_v18 = vrot.slane %v535_v1, 1  ;;  %v549_v16 = vrot.slane %v548_v47, 1  ;;  %6006 = vmatpush1.bf16.msra.mxu1 %v8075_v22  ;;  %v8081_v3 = vld [vmem:[#allocation11 + $0xbe0] ss:$16 sps:$4 sm:$0xff]  }
 0x179   :  { %12048 = vst [vmem:[#allocation58_spill] sm:$0xff] %v10072_v29  ;;  %12052 = vst [vmem:[#allocation61_spill] sm:$0xff] %v10086_v17  ;;  %v10102_v61 = vsub.f32 %v9843_v42, %v10078_v41  ;;  %v10106_v26 = vsub.f32 %v9845_v50, %v10078_v41  ;;  %5936 = vmatprep.subr.bf16.mxu0 %v8080_v32  ;;  %v8086_v37 = vld [vmem:[#allocation11 + $0x9c4] ss:$16 sps:$4 sm:$0xff]   ;;  %v10110_v51 = vsub.f32 %v9894_v38, %v10078_v41  ;;  %v8084_v4 = vld [vmem:[#allocation11 + $0x9c0] ss:$16 sps:$4 sm:$0xff]  }
 0x17a   :  { %12054 = vst [vmem:[#allocation62_spill] sm:$0xff] %v10090_v62  ;;  %12055 = vst [vmem:[#allocation94_spill] sm:$0xff] %v10094_v58  ;;  %v10114_v14 = vsub.f32 %v9875_v48, %v10030_v63  ;;  %v10118_v42 = vsub.f32 %v9915_v45, %v10078_v41  ;;  %6007 = vmatprep.subr.bf16.mxu1 %v8083_v24  ;;  %v8089_v50 = vld [vmem:[#allocation11 + $0xbc4] ss:$16 sps:$4 sm:$0xff]   ;;  %v537_v44 = vadd.f32 %v536_v18, %v535_v1  ;;  %v12062_v32 = vld [vmem:[#allocation75_spill] sm:$0xff] }
 0x17b   :  { %12056 = vst [vmem:[#allocation95_spill] sm:$0xff] %v10098_v36  ;;  %12057 = vst [vmem:[#allocation96_spill] sm:$0xff] %v10102_v61  ;;  %v550_v22 = vadd.f32 %v549_v16, %v548_v47  ;;  %v10122_v6 = vsub.f32 %v12062_v32, %v10007_v5  ;;  %v12064_v38 = vld [vmem:[#allocation76_spill] sm:$0xff]  ;;  %v10134_v45 = vsub.f32 %v9896_v9, %v10028_v10  ;;  %5937 = vmatpush2.bf16.msra.mxu0 %v8078_v40  ;;  %v12074_v40 = vld [vmem:[#allocation30_spill] sm:$0xff] }
 0x17c   :  { %12058 = vst [vmem:[#allocation97_spill] sm:$0xff] %v10106_v26  ;;  %12059 = vst [vmem:[#allocation98_spill] sm:$0xff] %v10110_v51  ;;  %v10126_v53 = vsub.f32 %v12064_v38, %v10009_v56  ;;  %v8087_v55 = vld [vmem:[#allocation11 + $0xbc0] ss:$16 sps:$4 sm:$0xff]   ;;  %v8092_v48 = vld [vmem:[#allocation11 + $0x9a4] ss:$16 sps:$4 sm:$0xff]   ;;  %v10138_v47 = vsub.f32 %v9898_v27, %v10030_v63  ;;  %v10142_v24 = vsub.f32 %v9952_v30, %v10078_v41  ;;  %6008 = vmatpush2.bf16.msra.mxu1 %v8081_v3 }
 0x17d   :  { %12060 = vst [vmem:[#allocation99_spill] sm:$0xff] %v10114_v14  ;;  %12061 = vst [vmem:[#allocation100_spill] sm:$0xff] %v10118_v42  ;;  %v10130_v14 = vsub.f32 %v9865_v0, %v10018_v12  ;;  %v8095_v1 = vld [vmem:[#allocation11 + $0xba4] ss:$16 sps:$4 sm:$0xff]   ;;  %v565_v18 = vmul.f32 0.020408163, %v537_v44  ;;  %v10146_v0 = vsub.f32 %v9867_v39, %v10007_v5  ;;  %v10150_v9 = vsub.f32 %v9869_v54, %v10009_v56 }
 0x17e   :  { %12063 = vst [vmem:[#allocation75_spill] sm:$0xff] %v10122_v6  ;;  %12065 = vst [vmem:[#allocation76_spill] sm:$0xff] %v10126_v53  ;;  %v566_v16 = vmul.f32 0.020408163, %v550_v22  ;;  %5938 = vmatprep.subr.bf16.mxu0 %v8086_v37  ;;  %v10154_v27 = vsub.f32 %v9882_v31, %v10018_v12  ;;  %v10158_v30 = vsub.f32 %v9917_v8, %v10028_v10  ;;  %6009 = vmatprep.subr.bf16.mxu1 %v8089_v50  ;;  %v8090_v39 = vld [vmem:[#allocation11 + $0x9a0] ss:$16 sps:$4 sm:$0xff]  }
 0x17f   :  { %12066 = vst [vmem:[#allocation101_spill] sm:$0xff] %v10130_v14  ;;  %12067 = vst [vmem:[#allocation102_spill] sm:$0xff] %v10134_v45  ;;  %v10162_v44 = vsub.f32 %v12074_v40, %v10030_v63  ;;  %v12076_v22 = vld [vmem:[#allocation28_spill] sm:$0xff]  ;;  %v12080_v37 = vld [vmem:[#allocation35_spill] sm:$0xff]  ;;  %5939 = vmatpush2.bf16.msra.mxu0 %v8084_v4 }
 0x180   :  { %12068 = vst [vmem:[#allocation103_spill] sm:$0xff] %v10138_v47  ;;  %12069 = vst [vmem:[#allocation104_spill] sm:$0xff] %v10142_v24  ;;  %v10165_v32 = vsub.f32 %v12076_v22, %v565_v18  ;;  %v12078_v54 = vld [vmem:[#allocation36_spill] sm:$0xff]  ;;  %v10171_v38 = vsub.f32 %v12080_v37, %v565_v18  ;;  %v12082_v31 = vld [vmem:[#allocation29_spill] sm:$0xff]  ;;  %v10183_v22 = vsub.f32 %v9977_v15, %v565_v18  ;;  %6010 = vmatpush2.bf16.msra.mxu1 %v8087_v55 }
 0x181   :  { %12070 = vst [vmem:[#allocation105_spill] sm:$0xff] %v10146_v0  ;;  %12071 = vst [vmem:[#allocation106_spill] sm:$0xff] %v10150_v9  ;;  %v10168_v3 = vsub.f32 %v12078_v54, %v566_v16  ;;  %v8093_v8 = vld [vmem:[#allocation11 + $0xba0] ss:$16 sps:$4 sm:$0xff]   ;;  %v12086_v40 = vld [vmem:[#allocation43_spill] sm:$0xff]  ;;  %v10186_v54 = vsub.f32 %v9979_v20, %v566_v16  ;;  %5940 = vmatprep.subr.bf16.mxu0 %v8092_v48  ;;  %v10202_v15 = vsub.f32 %v9999_v59, %v566_v16 }
 0x182   :  { %12072 = vst [vmem:[#allocation107_spill] sm:$0xff] %v10154_v27  ;;  %12073 = vst [vmem:[#allocation108_spill] sm:$0xff] %v10158_v30  ;;  %v10174_v27 = vsub.f32 %v12082_v31, %v566_v16  ;;  %v8098_v30 = vld [vmem:[#allocation11 + $0x984] ss:$16 sps:$4 sm:$0xff]   ;;  %v10180_v50 = vsub.f32 %v12086_v40, %v566_v16  ;;  %v10192_v31 = vsub.f32 %v9989_v34, %v566_v16  ;;  %v8654_v20 = vld [vmem:[#allocation3 + $0x340] sm:$0x1]  ;;  %6011 = vmatprep.subr.bf16.mxu1 %v8095_v1 }
 0x183   :  { %12075 = vst [vmem:[#allocation30_spill] sm:$0xff] %v10162_v44  ;;  %12077 = vst [vmem:[#allocation28_spill] sm:$0xff] %v10165_v32  ;;  %v12084_v9 = vld [vmem:[#allocation38_spill] sm:$0xff]  ;;  %v10189_v44 = vsub.f32 %v9987_v21, %v565_v18  ;;  %v10199_v40 = vsub.f32 %v9997_v11, %v565_v18  ;;  %v10205_v4 = vsub.f32 %v8654_v20, %v10007_v5  ;;  %v8655_v21 = vld [vmem:[#allocation3 + $0x348] sm:$0x1]  ;;  %5941 = vmatpush2.bf16.msra.mxu0 %v8090_v39 }
 0x184   :  { %12079 = vst [vmem:[#allocation36_spill] sm:$0xff] %v10168_v3  ;;  %12081 = vst [vmem:[#allocation35_spill] sm:$0xff] %v10171_v38  ;;  %v10177_v0 = vsub.f32 %v12084_v9, %v565_v18  ;;  %v8101_v37 = vld [vmem:[#allocation11 + $0xb84] ss:$16 sps:$4 sm:$0xff]   ;;  %v10208_v34 = vsub.f32 %v8655_v21, %v10009_v56  ;;  %v12099_v11 = vld [vmem:[#allocation21_spill] sm:$0xff]  ;;  %v10229_v1 = vsub.f32 %v9968_v13, %v566_v16  ;;  %6012 = vmatpush2.bf16.msra.mxu1 %v8093_v8 }
 0x185   :  { %12083 = vst [vmem:[#allocation29_spill] sm:$0xff] %v10174_v27  ;;  %12087 = vst [vmem:[#allocation43_spill] sm:$0xff] %v10180_v50  ;;  %v12092_v9 = vld [vmem:[#allocation44_spill] sm:$0xff]  ;;  %v10215_v55 = vsub.f32 %v12099_v11, %v10028_v10  ;;  %v12101_v59 = vld [vmem:[#allocation22_spill] sm:$0xff]  ;;  %v10237_v10 = vmul.f32 %v10022_v43, %v10022_v43  ;;  %v10249_v13 = vmul.f32 %v10051_v49, %v10051_v49  ;;  %5942 = vmatprep.subr.bf16.mxu0 %v8098_v30 }
 0x186   :  { %12085 = vst [vmem:[#allocation38_spill] sm:$0xff] %v10177_v0  ;;  %12088 = vst [vmem:[#allocation109_spill] sm:$0xff] %v10183_v22  ;;  %v10196_v24 = vsub.f32 %v12092_v9, %v10078_v41  ;;  %v10219_v48 = vsub.f32 %v12101_v59, %v10030_v63  ;;  %v12103_v5 = vld [vmem:[#allocation27_spill] sm:$0xff]  ;;  %v8096_v63 = vld [vmem:[#allocation11 + $0x980] ss:$16 sps:$4 sm:$0xff]   ;;  %v10253_v16 = vmul.f32 %v10102_v61, %v10102_v61  ;;  %6013 = vmatprep.subr.bf16.mxu1 %v8101_v37 }
 0x187   :  { %12089 = vst [vmem:[#allocation110_spill] sm:$0xff] %v10186_v54  ;;  %12090 = vst [vmem:[#allocation111_spill] sm:$0xff] %v10189_v44  ;;  %v10223_v20 = vsub.f32 %v12103_v5, %v10078_v41  ;;  %v10241_v41 = vmul.f32 %v10034_v2, %v10034_v2  ;;  %v8104_v39 = vld [vmem:[#allocation11 + $0x964] ss:$16 sps:$4 sm:$0xff]   ;;  %v10257_v21 = vmul.f32 %v10165_v32, %v10165_v32  ;;  %v8102_v5 = vld [vmem:[#allocation11 + $0x960] ss:$16 sps:$4 sm:$0xff]   ;;  %5943 = vmatpush2.bf16.msra.mxu0 %v8096_v63 }
 0x188   :  { %12091 = vst [vmem:[#allocation112_spill] sm:$0xff] %v10192_v31  ;;  %12093 = vst [vmem:[#allocation44_spill] sm:$0xff] %v10196_v24  ;;  %v8656_v31 = vld [vmem:[#allocation3 + $0x350] sm:$0x1]  ;;  %v10261_v11 = vmul.f32 %v10168_v3, %v10168_v3  ;;  %v10265_v59 = vmul.f32 %v10026_v46, %v10026_v46  ;;  %v10269_v8 = vmul.f32 %v10038_v60, %v10038_v60  ;;  %5944 = vmatprep.subr.bf16.mxu0 %v8104_v39  ;;  %v8110_v63 = vld [vmem:[#allocation11 + $0x944] ss:$16 sps:$4 sm:$0xff]  }
 0x189   :  { %12094 = vst [vmem:[#allocation113_spill] sm:$0xff] %v10199_v40  ;;  %12095 = vst [vmem:[#allocation114_spill] sm:$0xff] %v10202_v15  ;;  %v10211_v9 = vsub.f32 %v8656_v31, %v10018_v12  ;;  %v10233_v12 = vmul.f32 %v10015_v23, %v10015_v23  ;;  %v8099_v31 = vld [vmem:[#allocation11 + $0xb80] ss:$16 sps:$4 sm:$0xff]   ;;  %v10273_v30 = vmul.f32 %v10042_v28, %v10042_v28  ;;  %v8113_v28 = vld [vmem:[#allocation11 + $0xb44] ss:$16 sps:$4 sm:$0xff]  }
 0x18a   :  { %12096 = vst [vmem:[#allocation115_spill] sm:$0xff] %v10205_v4  ;;  %12097 = vst [vmem:[#allocation116_spill] sm:$0xff] %v10208_v34  ;;  %v12105_v4 = vld [vmem:[#allocation37_spill] sm:$0xff]  ;;  %v10277_v32 = vmul.f32 %v10055_v35, %v10055_v35  ;;  %v10281_v3 = vmul.f32 %v10059_v19, %v10059_v19  ;;  %v10285_v37 = vmul.f32 %v10106_v26, %v10106_v26  ;;  %6014 = vmatpush2.bf16.msra.mxu1 %v8099_v31  ;;  %v8119_v2 = vld [vmem:[#allocation11 + $0xb24] ss:$16 sps:$4 sm:$0xff]  }
 0x18b   :  { %12098 = vst [vmem:[#allocation117_spill] sm:$0xff] %v10211_v9  ;;  %12100 = vst [vmem:[#allocation21_spill] sm:$0xff] %v10215_v55  ;;  %v10226_v56 = vsub.f32 %v12105_v4, %v565_v18  ;;  %v10245_v18 = vmul.f32 %v10047_v25, %v10047_v25  ;;  %v8107_v4 = vld [vmem:[#allocation11 + $0xb64] ss:$16 sps:$4 sm:$0xff]   ;;  %v10289_v61 = vmul.f32 %v10171_v38, %v10171_v38  ;;  %5945 = vmatpush2.bf16.msra.mxu0 %v8102_v5  ;;  %v8111_v5 = vld [vmem:[#allocation11 + $0xb40] ss:$16 sps:$4 sm:$0xff]  }
 0x18c   :  { %12102 = vst [vmem:[#allocation22_spill] sm:$0xff] %v10219_v48  ;;  %12104 = vst [vmem:[#allocation27_spill] sm:$0xff] %v10223_v20  ;;  %v10293_v49 = vmul.f32 %v10174_v27, %v10174_v27  ;;  %v10297_v35 = vmul.f32 %v10064_v7, %v10064_v7  ;;  %v10301_v19 = vmul.f32 %v10068_v52, %v10068_v52  ;;  %v8105_v7 = vld [vmem:[#allocation11 + $0xb60] ss:$16 sps:$4 sm:$0xff]   ;;  %6015 = vmatprep.subr.bf16.mxu1 %v8107_v4 }
 0x18d   :  { %12106 = vst [vmem:[#allocation37_spill] sm:$0xff] %v10226_v56  ;;  %12107 = vst [vmem:[#allocation118_spill] sm:$0xff] %v10229_v1  ;;  %v10305_v26 = vmul.f32 %v10072_v29, %v10072_v29  ;;  %v10309_v38 = vmul.f32 %v10076_v33, %v10076_v33  ;;  %v10313_v27 = vmul.f32 %v10082_v57, %v10082_v57  ;;  %5946 = vmatprep.subr.bf16.mxu0 %v8110_v63  ;;  %v12111_v25 = vld [vmem:[#allocation104_spill] sm:$0xff]  ;;  %v12115_v63 = vld [vmem:[#allocation105_spill] sm:$0xff] }
 0x18e   :  { %v10317_v52 = vmul.f32 %v10110_v51, %v10110_v51  ;;  %v10321_v29 = vmul.f32 %v10177_v0, %v10177_v0  ;;  %v10325_v33 = vmul.f32 %v10180_v50, %v10180_v50  ;;  %v10329_v31 = vmul.f32 %v10086_v17, %v10086_v17  ;;  %v12109_v50 = vld [vmem:[#allocation99_spill] sm:$0xff]  ;;  %v8108_v17 = vld [vmem:[#allocation11 + $0x940] ss:$16 sps:$4 sm:$0xff]   ;;  %6016 = vmatpush2.bf16.msra.mxu1 %v8105_v7 }
 0x18f   :  { %v10333_v39 = vmul.f32 %v10090_v62, %v10090_v62  ;;  %v10337_v51 = vmul.f32 %v10094_v58, %v10094_v58  ;;  %v10341_v0 = vmul.f32 %v10098_v36, %v10098_v36  ;;  %v10345_v4 = vmul.f32 %v12109_v50, %v12109_v50  ;;  %6017 = vmatprep.subr.bf16.mxu1 %v8113_v28  ;;  %v12119_v23 = vld [vmem:[#allocation30_spill] sm:$0xff] }
 0x190   :  { %12108 = vst [vmem:[#allocation119_spill] sm:$0xff] %v10325_v33  ;;  %v10349_v57 = vmul.f32 %v10118_v42, %v10118_v42  ;;  %v10353_v62 = vmul.f32 %v10183_v22, %v10183_v22  ;;  %v10357_v58 = vmul.f32 %v10186_v54, %v10186_v54  ;;  %v10361_v36 = vmul.f32 %v10122_v6, %v10122_v6  ;;  %v8116_v54 = vld [vmem:[#allocation11 + $0x924] ss:$16 sps:$4 sm:$0xff]  }
 0x191   :  { %v10365_v50 = vmul.f32 %v10126_v53, %v10126_v53  ;;  %v10369_v42 = vmul.f32 %v10130_v14, %v10130_v14  ;;  %v10373_v22 = vmul.f32 %v10134_v45, %v10134_v45  ;;  %v10377_v6 = vmul.f32 %v10138_v47, %v10138_v47  ;;  %v12113_v45 = vld [vmem:[#allocation112_spill] sm:$0xff]  ;;  %v12116_v47 = vld [vmem:[#allocation106_spill] sm:$0xff]  ;;  %5947 = vmatpush2.bf16.msra.mxu0 %v8108_v17 }
 0x192   :  { %12110 = vst [vmem:[#allocation120_spill] sm:$0xff] %v10357_v58  ;;  %v10381_v53 = vmul.f32 %v12111_v25, %v12111_v25  ;;  %v10385_v14 = vmul.f32 %v10189_v44, %v10189_v44  ;;  %v10389_v7 = vmul.f32 %v12113_v45, %v12113_v45  ;;  %v10393_v60 = vmul.f32 %v12115_v63, %v12115_v63  ;;  %v12117_v25 = vld [vmem:[#allocation107_spill] sm:$0xff]  ;;  %v12118_v44 = vld [vmem:[#allocation108_spill] sm:$0xff] }
 0x193   :  { %v10397_v46 = vmul.f32 %v12116_v47, %v12116_v47  ;;  %v10401_v43 = vmul.f32 %v12117_v25, %v12117_v25  ;;  %v10405_v28 = vmul.f32 %v12118_v44, %v12118_v44  ;;  %v10409_v45 = vmul.f32 %v12119_v23, %v12119_v23  ;;  %v8117_v25 = vld [vmem:[#allocation11 + $0xb20] ss:$16 sps:$4 sm:$0xff]   ;;  %v8122_v58 = vld [vmem:[#allocation11 + $0x904] ss:$16 sps:$4 sm:$0xff]   ;;  %6018 = vmatpush2.bf16.msra.mxu1 %v8111_v5 }
 0x194   :  { %12112 = vst [vmem:[#allocation121_spill] sm:$0xff] %v10385_v14  ;;  %12114 = vst [vmem:[#allocation122_spill] sm:$0xff] %v10389_v7  ;;  %v10413_v63 = vmul.f32 %v10196_v24, %v10196_v24  ;;  %v10417_v47 = vmul.f32 %v10199_v40, %v10199_v40  ;;  %v8114_v7 = vld [vmem:[#allocation11 + $0x920] ss:$16 sps:$4 sm:$0xff]   ;;  %v10421_v44 = vmul.f32 %v10202_v15, %v10202_v15  ;;  %v12121_v14 = vld [vmem:[#allocation115_spill] sm:$0xff]  ;;  %5948 = vmatprep.subr.bf16.mxu0 %v8116_v54 }
 0x195   :  { %v783_v23 = vmul.f32 %v12121_v14, %v12121_v14  ;;  %v784_v33 = vmul.f32 %v10208_v34, %v10208_v34  ;;  %v785_v24 = vmul.f32 %v10211_v9, %v10211_v9  ;;  %v8125_v40 = vld [vmem:[#allocation11 + $0xb04] ss:$16 sps:$4 sm:$0xff]   ;;  %v786_v17 = vmul.f32 %v10215_v55, %v10215_v55  ;;  %6019 = vmatprep.subr.bf16.mxu1 %v8119_v2  ;;  %v8123_v9 = vld [vmem:[#allocation11 + $0xb00] ss:$16 sps:$4 sm:$0xff]  }
 0x196   :  { %12120 = vst [vmem:[#allocation123_spill] sm:$0xff] %v10417_v47  ;;  %v787_v47 = vmul.f32 %v10219_v48, %v10219_v48  ;;  %v788_v15 = vmul.f32 %v10223_v20, %v10223_v20  ;;  %v789_v14 = vmul.f32 %v10226_v56, %v10226_v56  ;;  %v10439_v34 = vmul.f32 %v10229_v1, %v10229_v1  ;;  %v8120_v56 = vld [vmem:[#allocation11 + $0x900] ss:$16 sps:$4 sm:$0xff]  }
 0x197   :  { %v895_v54 = vadd.f32 %v10265_v59, %v10233_v12  ;;  %v900_v5 = vsel %vm347_vm0, %v783_v23, 0.0  ;;  %v908_v55 = vadd.f32 %v10269_v8, %v10237_v10  ;;  %v913_v48 = vsel %vm347_vm0, %v784_v33, 0.0  ;;  %5949 = vmatpush2.bf16.msra.mxu0 %v8114_v7  ;;  %6020 = vmatpush2.bf16.msra.mxu1 %v8117_v25  ;;  %v8131_v8 = vld [vmem:[#allocation11 + $0xee4] ss:$16 sps:$4 sm:$0xff]  }
 0x198   :  { %v921_v2 = vadd.f32 %v10273_v30, %v10241_v41  ;;  %v926_v20 = vsel %vm347_vm0, %v785_v24, 0.0  ;;  %v934_v12 = vadd.f32 %v10277_v32, %v10245_v18  ;;  %v939_v23 = vsel %vm347_vm0, %v786_v17, 0.0  ;;  %5950 = vmatprep.subr.bf16.mxu0 %v8122_v58  ;;  %6021 = vmatprep.subr.bf16.mxu1 %v8125_v40 }
 0x199   :  { %v896_v1 = vadd.f32 %v895_v54, %v10297_v35  ;;  %v947_v10 = vadd.f32 %v10281_v3, %v10249_v13  ;;  %v909_v33 = vadd.f32 %v908_v55, %v10301_v19  ;;  %v952_v24 = vsel %vm347_vm0, %v787_v47, 0.0  ;;  %v8128_v35 = vld [vmem:[#allocation11 + $0xce4] ss:$16 sps:$4 sm:$0xff]  }
 0x19a   :  { %v922_v41 = vadd.f32 %v921_v2, %v10305_v26  ;;  %v960_v59 = vadd.f32 %v10285_v37, %v10253_v16  ;;  %v935_v18 = vadd.f32 %v934_v12, %v10309_v38  ;;  %v965_v25 = vsel %vm347_vm0, %v788_v15, 0.0 }
 0x19b   :  { %v897_v32 = vadd.f32 %v896_v1, %v10329_v31  ;;  %v948_v3 = vadd.f32 %v947_v10, %v10313_v27  ;;  %v910_v19 = vadd.f32 %v909_v33, %v10333_v39  ;;  %v973_v47 = vadd.f32 %v10289_v61, %v10257_v21  ;;  %5951 = vmatpush2.bf16.msra.mxu0 %v8120_v56  ;;  %v12123_v21 = vld [vmem:[#allocation121_spill] sm:$0xff]  ;;  %v12126_v54 = vld [vmem:[#allocation122_spill] sm:$0xff] }
 0x19c   :  { %v923_v58 = vadd.f32 %v922_v41, %v10337_v51  ;;  %v961_v26 = vadd.f32 %v960_v59, %v10317_v52  ;;  %v936_v55 = vadd.f32 %v935_v18, %v10341_v0  ;;  %v978_v27 = vsel %vm347_vm0, %v789_v14, 0.0  ;;  %6022 = vmatpush2.bf16.msra.mxu1 %v8123_v9  ;;  %6062 = vmatprep.subr.bf16.mxu0 %v8128_v35  ;;  %v12122_v9 = vld [vmem:[#allocation119_spill] sm:$0xff] }
 0x19d   :  { %v898_v40 = vadd.f32 %v897_v32, %v10361_v36  ;;  %v949_v38 = vadd.f32 %v948_v3, %v10345_v4  ;;  %v911_v15 = vadd.f32 %v910_v19, %v10365_v50  ;;  %v974_v52 = vadd.f32 %v973_v47, %v10321_v29  ;;  %6133 = vmatprep.subr.bf16.mxu1 %v8131_v8  ;;  %v12125_v4 = vld [vmem:[#allocation123_spill] sm:$0xff] }
 0x19e   :  { %v924_v1 = vadd.f32 %v923_v58, %v10369_v42  ;;  %v962_v51 = vadd.f32 %v961_v26, %v10349_v57  ;;  %v937_v56 = vadd.f32 %v936_v55, %v10373_v22  ;;  %v986_v0 = vadd.f32 %v10293_v49, %v10261_v11 }
 0x19f   :  { %v899_v61 = vadd.f32 %v898_v40, %v10393_v60  ;;  %v950_v36 = vadd.f32 %v949_v38, %v10377_v6  ;;  %v912_v14 = vadd.f32 %v911_v15, %v10397_v46  ;;  %v975_v57 = vadd.f32 %v974_v52, %v10353_v62 }
 0x1a0   :  { %v925_v50 = vadd.f32 %v924_v1, %v10401_v43  ;;  %v963_v42 = vadd.f32 %v962_v51, %v10381_v53  ;;  %v938_v60 = vadd.f32 %v937_v56, %v10405_v28  ;;  %v987_v6 = vadd.f32 %v986_v0, %v12122_v9  ;;  %v12124_v53 = vld [vmem:[#allocation120_spill] sm:$0xff] }
 0x1a1   :  { %v901_v29 = vadd.f32 %v900_v5, %v899_v61  ;;  %v951_v22 = vadd.f32 %v950_v36, %v10409_v45  ;;  %v914_v13 = vadd.f32 %v913_v48, %v912_v14  ;;  %v976_v46 = vadd.f32 %v975_v57, %v12123_v21 }
 0x1a2   :  { %v927_v16 = vadd.f32 %v926_v20, %v925_v50  ;;  %v964_v49 = vadd.f32 %v963_v42, %v10413_v63  ;;  %v940_v43 = vadd.f32 %v939_v23, %v938_v60  ;;  %v988_v37 = vadd.f32 %v987_v6, %v12124_v53 }
 0x1a3   :  { %v902_v11 = vrot.slane %v901_v29, 4  ;;  %v953_v30 = vadd.f32 %v952_v24, %v951_v22  ;;  %v915_v62 = vrot.slane %v914_v13, 4  ;;  %v977_v7 = vadd.f32 %v976_v46, %v12125_v4 }
 0x1a4   :  { %v928_v31 = vrot.slane %v927_v16, 4  ;;  %v966_v39 = vadd.f32 %v965_v25, %v964_v49  ;;  %v941_v45 = vrot.slane %v940_v43, 4  ;;  %v989_v48 = vadd.f32 %v988_v37, %v12126_v54 }
 0x1a5   :  { %v903_v28 = vadd.f32 %v902_v11, %v901_v29  ;;  %v954_v17 = vrot.slane %v953_v30, 4  ;;  %v916_v20 = vadd.f32 %v915_v62, %v914_v13  ;;  %v979_v2 = vadd.f32 %v978_v27, %v977_v7 }
 0x1a6   :  { %v929_v5 = vadd.f32 %v928_v31, %v927_v16  ;;  %v967_v63 = vrot.slane %v966_v39, 4  ;;  %v942_v10 = vadd.f32 %v941_v45, %v940_v43  ;;  %v990_v33 = vadd.f32 %v989_v48, %v10421_v44 }
 0x1a7   :  { %v904_v12 = vrot.slane %v903_v28, 2  ;;  %v955_v23 = vadd.f32 %v954_v17, %v953_v30  ;;  %v917_v41 = vrot.slane %v916_v20, 2  ;;  %v980_v35 = vrot.slane %v979_v2, 4 }
 0x1a8   :  { %v930_v24 = vrot.slane %v929_v5, 2  ;;  %v968_v59 = vadd.f32 %v967_v63, %v966_v39  ;;  %v943_v32 = vrot.slane %v942_v10, 2  ;;  %v991_v3 = vsel %vm347_vm0, %v10439_v34, 0.0 }
 0x1a9   :  { %v905_v8 = vadd.f32 %v904_v12, %v903_v28  ;;  %v956_v18 = vrot.slane %v955_v23, 2  ;;  %v918_v25 = vadd.f32 %v917_v41, %v916_v20  ;;  %v981_v26 = vadd.f32 %v980_v35, %v979_v2 }
 0x1aa   :  { %v931_v19 = vadd.f32 %v930_v24, %v929_v5  ;;  %v969_v58 = vrot.slane %v968_v59, 2  ;;  %v944_v40 = vadd.f32 %v943_v32, %v942_v10  ;;  %v992_v38 = vadd.f32 %v991_v3, %v990_v33  ;;  %v12127_v33 = vld [vmem:[#allocation77_spill] sm:$0xff] }
 0x1ab   :  { %v906_v47 = vrot.slane %v905_v8, 1  ;;  %v957_v55 = vadd.f32 %v956_v18, %v955_v23  ;;  %v919_v27 = vrot.slane %v918_v25, 1  ;;  %v982_v1 = vrot.slane %v981_v26, 2 }
 0x1ac   :  { %v932_v44 = vrot.slane %v931_v19, 1  ;;  %v970_v15 = vadd.f32 %v969_v58, %v968_v59  ;;  %v945_v52 = vrot.slane %v944_v40, 1  ;;  %v993_v56 = vrot.slane %v992_v38, 4 }
 0x1ad   :  { %v907_v51 = vadd.f32 %v906_v47, %v905_v8  ;;  %v958_v61 = vrot.slane %v957_v55, 1  ;;  %v920_v36 = vadd.f32 %v919_v27, %v918_v25  ;;  %v983_v34 = vadd.f32 %v982_v1, %v981_v26  ;;  %v1362_v26 = vld [vmem:[#allocation9 + $0x8] sm:$0xff]  ;;  %v1016_v47 = vld [vmem:[#allocation8 + $0x8] sm:$0xff] }
 0x1ae   :  { %v933_v0 = vadd.f32 %v932_v44, %v931_v19  ;;  %v971_v14 = vrot.slane %v970_v15, 1  ;;  %v946_v50 = vadd.f32 %v945_v52, %v944_v40  ;;  %v994_v57 = vadd.f32 %v993_v56, %v992_v38  ;;  %v12129_v44 = vld [vmem:[#allocation78_spill] sm:$0xff]  ;;  %v12130_v1 = vld [vmem:[#allocation81_spill] sm:$0xff]  ;;  %v12131_v52 = vld [vmem:[#allocation80_spill] sm:$0xff] }
 0x1af   :  { %v959_v42 = vadd.f32 %v958_v61, %v957_v55  ;;  %v1007_v29 = vmul.f32 0.020408163, %v907_v51  ;;  %v984_v22 = vrot.slane %v983_v34, 1  ;;  %v1008_v9 = vmul.f32 0.020408163, %v920_v36  ;;  %v12128_v55 = vld [vmem:[#allocation79_spill] sm:$0xff] }
 0x1b0   :  { %v972_v60 = vadd.f32 %v971_v14, %v970_v15  ;;  %v1009_v6 = vmul.f32 0.020408163, %v933_v0  ;;  %v995_v13 = vrot.slane %v994_v57, 2  ;;  %v1010_v16 = vmul.f32 0.020408163, %v946_v50  ;;  %v12132_v56 = vld [vmem:[#allocation82_spill] sm:$0xff] }
 0x1b1   :  { %v1011_v49 = vmul.f32 0.020408163, %v959_v42  ;;  %v985_v21 = vadd.f32 %v984_v22, %v983_v34  ;;  %v1025_v11 = vadd.f32 1e-05, %v1007_v29  ;;  %v1026_v43 = vadd.f32 1e-05, %v1008_v9 }
 0x1b2   :  { %v1012_v46 = vmul.f32 0.020408163, %v972_v60  ;;  %v996_v30 = vadd.f32 %v995_v13, %v994_v57  ;;  %v1027_v53 = vadd.f32 1e-05, %v1009_v6  ;;  %v1028_v37 = vadd.f32 1e-05, %v1010_v16 }
 0x1b3   :  { %v1013_v62 = vmul.f32 0.020408163, %v985_v21  ;;  %v1029_v31 = vadd.f32 1e-05, %v1011_v49  ;;  %8630 = vrsqrt.f32 %v1025_v11  ;;  %v10505_v38 = vrot.slane %v1362_v26, %v12128_v55  ;;  %v12133_v0 = vld [vmem:[#allocation83_spill] sm:$0xff]  ;;  %v12134_v34 = vld [vmem:[#allocation84_spill] sm:$0xff] }
 0x1b4   :  { %v997_v39 = vrot.slane %v996_v30, 1  ;;  %v1030_v4 = vadd.f32 1e-05, %v1012_v46  ;;  %8632 = vrsqrt.f32 %v1026_v43  ;;  %v10508_v15 = vrot.slane %v1362_v26, %v12129_v44  ;;  %v12135_v42 = vld [vmem:[#allocation85_spill] sm:$0xff]  ;;  %v238_v6 = vld [vmem:[#allocation6 + $0x40] sm:$0xff] }
 0x1b5   :  { %8634 = vrsqrt.f32 %v1027_v53  ;;  %v1031_v28 = vadd.f32 1e-05, %v1013_v62  ;;  %v10511_v51 = vrot.slane %v1362_v26, %v12130_v1  ;;  %v10514_v61 = vrot.slane %v1362_v26, %v12131_v52  ;;  %v239_v13 = vld [vmem:[#allocation6 + $0x48] sm:$0xff]  ;;  %v254_v16 = vld [vmem:[#allocation6 + $0xc0] sm:$0xff] }
 0x1b6   :  { %v998_v7 = vadd.f32 %v997_v39, %v996_v30  ;;  %8636 = vrsqrt.f32 %v1028_v37  ;;  %v10517_v36 = vrot.slane %v1362_v26, %v12132_v56  ;;  %v10520_v14 = vrot.slane %v1362_v26, %v12133_v0  ;;  %v255_v49 = vld [vmem:[#allocation6 + $0xc8] sm:$0xff]  ;;  %v12136_v30 = vld [vmem:[#allocation88_spill] sm:$0xff] }
 0x1b7   :  { %8638 = vrsqrt.f32 %v1029_v31  ;;  %v10523_v50 = vrot.slane %v1362_v26, %v12134_v34  ;;  %v10526_v57 = vrot.slane %v1362_v26, %v12135_v42  ;;  %v12137_v37 = vld [vmem:[#allocation89_spill] sm:$0xff]  ;;  %v12138_v31 = vld [vmem:[#allocation90_spill] sm:$0xff] }
 0x1b8   :  { %v1014_v45 = vmul.f32 0.020408163, %v998_v7  ;;  %8640 = vrsqrt.f32 %v1030_v4  ;;  %v12139_v4 = vld [vmem:[#allocation40_spill] sm:$0xff] }
 0x1b9   :  { %8642 = vrsqrt.f32 %v1031_v28  ;;  %v240_v28 = vld [vmem:[#allocation6 + $0x50] sm:$0xff] }
 0x1ba   :  { %v1032_v17 = vadd.f32 1e-05, %v1014_v45  ;;  %v241_v45 = vld [vmem:[#allocation6 + $0x58] sm:$0xff] }
 0x1bc   :  { %8644 = vrsqrt.f32 %v1032_v17  ;;  %v256_v17 = vld [vmem:[#allocation6 + $0xd0] sm:$0xff] }
 0x1c0   :  { %v8631_v54 = vpop.eup %8630 }
 0x1c1   :  { %v8633_v48 = vpop.eup %8632 }
 0x1c2   :  { %v8635_v20 = vpop.eup %8634  ;;  %v1114_v5 = vcombine.low %v8631_v54, %v8633_v48  ;;  %v257_v54 = vld [vmem:[#allocation6 + $0xd8] sm:$0xff] }
 0x1c3   :  { %v8637_v63 = vpop.eup %8636  ;;  %v12140_v48 = vld [vmem:[#allocation91_spill] sm:$0xff] }
 0x1c4   :  { %v8639_v2 = vpop.eup %8638  ;;  %v1115_v12 = vcombine.low %v8635_v20, %v8637_v63  ;;  %v1124_v41 = vrot.slane %v1114_v5, %v12127_v33  ;;  %v12141_v5 = vld [vmem:[#allocation63_spill] sm:$0xff] }
 0x1c5   :  { %v8641_v10 = vpop.eup %8640 }
 0x1c6   :  { %v1116_v23 = vcombine.low %v8639_v2, %v8641_v10  ;;  %v1131_v24 = vrot.slane %v1115_v12, %v12127_v33  ;;  %v8643_v59 = vpop.eup %8642  ;;  %v12142_v2 = vld [vmem:[#allocation41_spill] sm:$0xff]  ;;  %v12143_v10 = vld [vmem:[#allocation67_spill] sm:$0xff] }
 0x1c8   :  { %v1138_v32 = vrot.slane %v1116_v23, %v12127_v33  ;;  %v1146_v18 = vcombine.low %v1124_v41, %v1131_v24 }
 0x1c9   :  { %v8645_v35 = vpop.eup %8644 }
 0x1ca   :  { %v1117_v8 = vcombine.low %v8643_v59, %v8645_v35  ;;  %v1154_v19 = vrot.slane %v1146_v18, %v12127_v33 }
 0x1cc   :  { %v1145_v3 = vrot.slane %v1117_v8, %v12127_v33 }
 0x1ce   :  { %v1147_v25 = vcombine.low %v1138_v32, %v1145_v3 }
 0x1d0   :  { %v1161_v58 = vrot.slane %v1147_v25, %v12127_v33 }
 0x1d2   :  { %v1162_v40 = vcombine.low %v1154_v19, %v1161_v58 }
 0x1d4   :  { %v1166_v27 = vmul.f32 %v1162_v40, %v1016_v47 }
 0x1d6   :  { %v10529_v29 = vrot.slane %v1166_v27, %v12128_v55  ;;  %v10532_v60 = vrot.slane %v1166_v27, %v12129_v44  ;;  %v10535_v22 = vrot.slane %v1166_v27, %v12130_v1  ;;  %v10538_v9 = vrot.slane %v1166_v27, %v12131_v52  ;;  %v304_v52 = vld [vmem:[#allocation6 + $0x250] sm:$0xff]  ;;  %v305_v1 = vld [vmem:[#allocation6 + $0x258] sm:$0xff] }
 0x1d7   :  { %v10541_v21 = vrot.slane %v1166_v27, %v12132_v56  ;;  %v10544_v46 = vrot.slane %v1166_v27, %v12133_v0  ;;  %v10547_v11 = vrot.slane %v1166_v27, %v12134_v34  ;;  %v10550_v43 = vrot.slane %v1166_v27, %v12135_v42 }
 0x1d8   :  { %v1257_v53 = vmul.f32 %v10529_v29, %v12136_v30  ;;  %v1258_v62 = vmul.f32 %v10532_v60, %v12137_v37  ;;  %v1273_v39 = vmul.f32 %v10529_v29, %v12138_v31  ;;  %v1274_v7 = vmul.f32 %v10532_v60, %v12139_v4  ;;  %v12144_v4 = vld [vmem:[#allocation42_spill] sm:$0xff] }
 0x1d9   :  { %v1259_v20 = vmul.f32 %v10535_v22, %v12140_v48  ;;  %v1260_v63 = vmul.f32 %v10538_v9, %v12141_v5  ;;  %v1275_v12 = vmul.f32 %v10535_v22, %v12142_v2  ;;  %v1276_v23 = vmul.f32 %v10538_v9, %v12143_v10  ;;  %v8126_v2 = vld [vmem:[#allocation11 + $0xce0] ss:$16 sps:$4 sm:$0xff]   ;;  %v287_v10 = vld [vmem:[#allocation6 + $0x1c8] sm:$0xff] }
 0x1da   :  { %v1453_v41 = vadd.f32 %v10505_v38, %v1257_v53  ;;  %v1454_v24 = vadd.f32 %v10508_v15, %v1258_v62  ;;  %v1469_v59 = vadd.f32 %v10505_v38, %v1273_v39  ;;  %v1470_v35 = vadd.f32 %v10508_v15, %v1274_v7  ;;  %v10576_v39 = vpop.f32.mrf.mxu0  ;;  %v270_v7 = vld [vmem:[#allocation6 + $0x140] sm:$0xff] }
 0x1db   :  { %v1455_v8 = vadd.f32 %v10511_v51, %v1259_v20  ;;  %v1456_v32 = vadd.f32 %v10514_v61, %v1260_v63  ;;  %v1471_v18 = vadd.f32 %v10511_v51, %v1275_v12  ;;  %v1472_v3 = vadd.f32 %v10514_v61, %v1276_v23  ;;  %v286_v12 = vld [vmem:[#allocation6 + $0x1c0] sm:$0xff] }
 0x1dc   :  { %v1565_v25 = vadd.f32 %v1453_v41, %v238_v6  ;;  %v1566_v19 = vadd.f32 %v1454_v24, %v239_v13  ;;  %v1581_v58 = vadd.f32 %v1469_v59, %v254_v16  ;;  %v1582_v26 = vadd.f32 %v1470_v35, %v255_v49  ;;  %v12145_v13 = vld [vmem:[#allocation51_spill] sm:$0xff]  ;;  %v10582_v49 = vpop.f32.mrf.mxu1  ;;  %v10588_v20 = vpop.f32.mrf.mxu0  ;;  %v8129_v35 = vld [vmem:[#allocation11 + $0xee0] ss:$16 sps:$4 sm:$0xff]  }
 0x1dd   :  { %v1567_v47 = vadd.f32 %v1455_v8, %v240_v28  ;;  %v1568_v40 = vadd.f32 %v1456_v32, %v241_v45  ;;  %v1583_v27 = vadd.f32 %v1471_v18, %v256_v17  ;;  %v1584_v56 = vadd.f32 %v1472_v3, %v257_v54  ;;  %v271_v28 = vld [vmem:[#allocation6 + $0x148] sm:$0xff]  ;;  %v12147_v54 = vld [vmem:[#allocation62_spill] sm:$0xff] }
 0x1de   :  { %v1677_v0 = vmax.f32 %v1565_v25, 0.0  ;;  %v1678_v34 = vmax.f32 %v1566_v19, 0.0  ;;  %v1693_v42 = vmax.f32 %v1581_v58, 0.0  ;;  %v1694_v30 = vmax.f32 %v1582_v26, 0.0  ;;  %v12146_v45 = vld [vmem:[#allocation61_spill] sm:$0xff]  ;;  %v12152_v58 = vld [vmem:[#allocation58_spill] sm:$0xff] }
 0x1df   :  { %v1679_v53 = vmax.f32 %v1567_v47, 0.0  ;;  %v1680_v37 = vmax.f32 %v1568_v40, 0.0  ;;  %v1695_v62 = vmax.f32 %v1583_v27, 0.0  ;;  %v1696_v31 = vmax.f32 %v1584_v56, 0.0  ;;  %v8134_v8 = vld [vmem:[#allocation11 + $0xcc4] ss:$16 sps:$4 sm:$0xff]   ;;  %v10607_v27 = vpop.f32.mrf.mxu1  ;;  %v10609_v56 = vpop.f32.mrf.mxu0 }
 0x1e0   :  { %v1289_v6 = vmul.f32 %v10529_v29, %v12144_v4  ;;  %v1290_v16 = vmul.f32 %v10532_v60, %v12145_v13  ;;  %v1305_v17 = vmul.f32 %v10529_v29, %v12146_v45  ;;  %v1306_v48 = vmul.f32 %v10532_v60, %v12147_v54  ;;  %v8137_v3 = vld [vmem:[#allocation11 + $0xec4] ss:$16 sps:$4 sm:$0xff]  }
 0x1e1   :  { %v10590_v5 = vpack.c.bf16 %v1693_v42, %v1677_v0  ;;  %v10592_v63 = vpack.c.bf16 %v1694_v30, %v1678_v34  ;;  %v10596_v24 = vpack.c.bf16 %v1695_v62, %v1679_v53  ;;  %v10598_v59 = vpack.c.bf16 %v1696_v31, %v1680_v37  ;;  %v12153_v47 = vld [vmem:[#allocation92_spill] sm:$0xff]  ;;  %v272_v30 = vld [vmem:[#allocation6 + $0x150] sm:$0xff] }
 0x1e2   :  { %v1485_v23 = vadd.f32 %v10505_v38, %v1289_v6  ;;  %v1486_v41 = vadd.f32 %v10508_v15, %v1290_v16  ;;  %v1501_v32 = vadd.f32 %v10505_v38, %v1305_v17  ;;  %v1502_v18 = vadd.f32 %v10508_v15, %v1306_v48  ;;  %v8132_v0 = vld [vmem:[#allocation11 + $0xcc0] ss:$16 sps:$4 sm:$0xff]   ;;  %v273_v6 = vld [vmem:[#allocation6 + $0x158] sm:$0xff]  ;;  %v8140_v54 = vld [vmem:[#allocation11 + $0xca4] ss:$16 sps:$4 sm:$0xff]  }
 0x1e3   :  { %12148 = vst [vmem:[#allocation119_spill] sm:$0xff] %v10590_v5  ;;  %12149 = vst [vmem:[#allocation121_spill] sm:$0xff] %v10592_v63  ;;  %5952 = vmatprep.mubr.bf16.mxu0 %v10592_v63  ;;  %v1291_v26 = vmul.f32 %v10535_v22, %v12152_v58  ;;  %v1292_v40 = vmul.f32 %v10538_v9, %v12153_v47  ;;  %6023 = vmatprep.mubr.bf16.mxu1 %v10598_v59  ;;  %v12154_v53 = vld [vmem:[#allocation94_spill] sm:$0xff]  ;;  %v12155_v16 = vld [vmem:[#allocation95_spill] sm:$0xff] }
 0x1e4   :  { %12150 = vst [vmem:[#allocation120_spill] sm:$0xff] %v10596_v24  ;;  %12151 = vst [vmem:[#allocation123_spill] sm:$0xff] %v10598_v59  ;;  %v1597_v25 = vadd.f32 %v1485_v23, %v270_v7  ;;  %v1598_v19 = vadd.f32 %v1486_v41, %v271_v28  ;;  %5953 = vmatmul.mubr.bf16.vlgmr.msra.gmra.mxu0 %v10590_v5  ;;  %v1613_v34 = vadd.f32 %v1501_v32, %v286_v12  ;;  %v8135_v62 = vld [vmem:[#allocation11 + $0xec0] ss:$16 sps:$4 sm:$0xff]   ;;  %v289_v48 = vld [vmem:[#allocation6 + $0x1d8] sm:$0xff] }
 0x1e5   :  { %v1614_v42 = vadd.f32 %v1502_v18, %v287_v10  ;;  %v1307_v37 = vmul.f32 %v10535_v22, %v12154_v53  ;;  %6024 = vmatmul.mubr.bf16.vlgmr.msra.gmra.mxu1 %v10596_v24  ;;  %6063 = vmatpush1.bf16.msra.mxu0 %v8126_v2  ;;  %v288_v13 = vld [vmem:[#allocation6 + $0x1d0] sm:$0xff]  ;;  %v1308_v7 = vmul.f32 %v10538_v9, %v12155_v16  ;;  %v12156_v32 = vld [vmem:[#allocation75_spill] sm:$0xff]  ;;  %v12157_v58 = vld [vmem:[#allocation76_spill] sm:$0xff] }
 0x1e6   :  { %v1709_v31 = vmax.f32 %v1597_v25, 0.0  ;;  %v1710_v4 = vmax.f32 %v1598_v19, 0.0  ;;  %v1487_v28 = vadd.f32 %v10511_v51, %v1291_v26  ;;  %6134 = vmatpush1.bf16.msra.mxu1 %v8129_v35  ;;  %6064 = vmatprep.subr.bf16.mxu0 %v8134_v8  ;;  %v1725_v45 = vmax.f32 %v1613_v34, 0.0  ;;  %v8143_v10 = vld [vmem:[#allocation11 + $0xea4] ss:$16 sps:$4 sm:$0xff]   ;;  %v10624_v25 = vpop.f32.mrf.mxu1  ;;  %v10626_v35 = vpop.f32.mrf.mxu0 }
 0x1e7   :  { %v1726_v17 = vmax.f32 %v1614_v42, 0.0  ;;  %v1488_v12 = vadd.f32 %v10514_v61, %v1292_v40  ;;  %v1503_v2 = vadd.f32 %v10511_v51, %v1307_v37  ;;  %6135 = vmatprep.subr.bf16.mxu1 %v8137_v3  ;;  %v1504_v23 = vadd.f32 %v10514_v61, %v1308_v7  ;;  %v8138_v47 = vld [vmem:[#allocation11 + $0xca0] ss:$16 sps:$4 sm:$0xff]   ;;  %v12158_v42 = vld [vmem:[#allocation105_spill] sm:$0xff]  ;;  %v8198_v59 = vld [vmem:[#allocation11 + $0xd84] ss:$16 sps:$4 sm:$0xff]  }
 0x1e8   :  { %v1599_v41 = vadd.f32 %v1487_v28, %v272_v30  ;;  %v1321_v18 = vmul.f32 %v10529_v29, %v12156_v32  ;;  %v1322_v26 = vmul.f32 %v10532_v60, %v12157_v58  ;;  %v8141_v40 = vld [vmem:[#allocation11 + $0xea0] ss:$16 sps:$4 sm:$0xff]   ;;  %v1337_v30 = vmul.f32 %v10529_v29, %v12158_v42  ;;  %v10634_v16 = vpop.f32.mrf.mxu0  ;;  %v319_v32 = vld [vmem:[#allocation6 + $0x2c8] sm:$0xff] }
 0x1e9   :  { %v1600_v8 = vadd.f32 %v1488_v12, %v273_v6  ;;  %v1615_v19 = vadd.f32 %v1503_v2, %v288_v13  ;;  %6065 = vmatpush1.bf16.msra.mxu0 %v8132_v0  ;;  %v1616_v3 = vadd.f32 %v1504_v23, %v289_v48  ;;  %v12159_v53 = vld [vmem:[#allocation106_spill] sm:$0xff]  ;;  %v10636_v7 = vpack.c.bf16 %v1726_v17, %v1710_v4  ;;  %v302_v28 = vld [vmem:[#allocation6 + $0x240] sm:$0xff]  ;;  %v303_v12 = vld [vmem:[#allocation6 + $0x248] sm:$0xff]  ;;  %v10643_v4 = vpop.f32.mrf.mxu1 }
 0x1ea   :  { %v1711_v34 = vmax.f32 %v1599_v41, 0.0  ;;  %v1338_v37 = vmul.f32 %v10532_v60, %v12159_v53  ;;  %6136 = vmatpush1.bf16.msra.mxu1 %v8135_v62  ;;  %v10638_v6 = vpack.c.bf16 %v1725_v45, %v1709_v31  ;;  %6066 = vmatprep.subr.bf16.mxu0 %v8140_v54  ;;  %v318_v48 = vld [vmem:[#allocation6 + $0x2c0] sm:$0xff]  ;;  %v1517_v58 = vadd.f32 %v10505_v38, %v1321_v18  ;;  %v10645_v31 = vpop.f32.mrf.mxu0  ;;  %v12162_v17 = vld [vmem:[#allocation101_spill] sm:$0xff] }
 0x1eb   :  { %12160 = vst [vmem:[#allocation122_spill] sm:$0xff] %v10636_v7  ;;  %v1712_v13 = vmax.f32 %v1600_v8, 0.0  ;;  %v1727_v0 = vmax.f32 %v1615_v19, 0.0  ;;  %6137 = vmatprep.subr.bf16.mxu1 %v8143_v10  ;;  %v1728_v2 = vmax.f32 %v1616_v3, 0.0  ;;  %v8146_v23 = vld [vmem:[#allocation11 + $0xc84] ss:$16 sps:$4 sm:$0xff]   ;;  %v1518_v42 = vadd.f32 %v10508_v15, %v1322_v26  ;;  %5962 = vmatprep.mubr.bf16.mxu0 %v10636_v7  ;;  %v10654_v3 = vpop.f32.mrf.mxu1 }
 0x1ec   :  { %12161 = vst [vmem:[#allocation82_spill] sm:$0xff] %v10638_v6  ;;  %v8149_v41 = vld [vmem:[#allocation11 + $0xe84] ss:$16 sps:$4 sm:$0xff]   ;;  %v1533_v62 = vadd.f32 %v10505_v38, %v1337_v30  ;;  %v1534_v45 = vadd.f32 %v10508_v15, %v1338_v37  ;;  %v1323_v54 = vmul.f32 %v10535_v22, %v12162_v17  ;;  %5963 = vmatmul.mubr.bf16.gmra.mxu0 %v10638_v6  ;;  %v8144_v30 = vld [vmem:[#allocation11 + $0xc80] ss:$16 sps:$4 sm:$0xff]   ;;  %v12164_v37 = vld [vmem:[#allocation107_spill] sm:$0xff] }
 0x1ed   :  { %v12163_v10 = vld [vmem:[#allocation102_spill] sm:$0xff]  ;;  %v1629_v18 = vadd.f32 %v1517_v58, %v302_v28  ;;  %v1630_v19 = vadd.f32 %v1518_v42, %v303_v12  ;;  %6067 = vmatpush1.bf16.msra.mxu0 %v8138_v47  ;;  %v1339_v44 = vmul.f32 %v10535_v22, %v12164_v37  ;;  %v12165_v17 = vld [vmem:[#allocation108_spill] sm:$0xff]  ;;  %v10662_v33 = vpack.c.bf16 %v1728_v2, %v1712_v13  ;;  %v321_v37 = vld [vmem:[#allocation6 + $0x2d8] sm:$0xff] }
 0x1ee   :  { %v1324_v8 = vmul.f32 %v10538_v9, %v12163_v10  ;;  %v1645_v26 = vadd.f32 %v1533_v62, %v318_v48  ;;  %6138 = vmatpush1.bf16.msra.mxu1 %v8141_v40  ;;  %v1646_v53 = vadd.f32 %v1534_v45, %v319_v32  ;;  %v1340_v55 = vmul.f32 %v10538_v9, %v12165_v17  ;;  %v10660_v10 = vpop.f32.mrf.mxu0  ;;  %v8147_v12 = vld [vmem:[#allocation11 + $0xe80] ss:$16 sps:$4 sm:$0xff]   ;;  %v8152_v48 = vld [vmem:[#allocation11 + $0xc64] ss:$16 sps:$4 sm:$0xff]   ;;  %v10666_v32 = vpop.f32.mrf.mxu1  ;;  %v12168_v2 = vld [vmem:[#allocation115_spill] sm:$0xff] }
 0x1ef   :  { %12166 = vst [vmem:[#allocation83_spill] sm:$0xff] %v10662_v33  ;;  %v10664_v28 = vpack.c.bf16 %v1727_v0, %v1711_v34  ;;  %6068 = vmatprep.subr.bf16.mxu0 %v8146_v23  ;;  %6139 = vmatprep.subr.bf16.mxu1 %v8149_v41  ;;  %v1741_v47 = vmax.f32 %v1629_v18, 0.0  ;;  %v1742_v40 = vmax.f32 %v1630_v19, 0.0  ;;  %v8155_v62 = vld [vmem:[#allocation11 + $0xe64] ss:$16 sps:$4 sm:$0xff]   ;;  %v1519_v17 = vadd.f32 %v10511_v51, %v1323_v54 }
 0x1f0   :  { %v1757_v58 = vmax.f32 %v1645_v26, 0.0  ;;  %v1758_v42 = vmax.f32 %v1646_v53, 0.0  ;;  %v320_v45 = vld [vmem:[#allocation6 + $0x2d0] sm:$0xff]  ;;  %v1520_v13 = vadd.f32 %v10514_v61, %v1324_v8  ;;  %6033 = vmatprep.mubr.bf16.mxu1 %v10662_v33  ;;  %v1535_v34 = vadd.f32 %v10511_v51, %v1339_v44  ;;  %v10675_v41 = vpop.f32.mrf.mxu1  ;;  %v10678_v54 = vpop.f32.mrf.mxu0  ;;  %v334_v6 = vld [vmem:[#allocation6 + $0x340] sm:$0x1] }
 0x1f1   :  { %12167 = vst [vmem:[#allocation84_spill] sm:$0xff] %v10664_v28  ;;  %v1536_v0 = vadd.f32 %v10514_v61, %v1340_v55  ;;  %v1353_v23 = vmul.f32 %v10529_v29, %v12168_v2  ;;  %6034 = vmatmul.mubr.bf16.gmra.mxu1 %v10664_v28  ;;  %6069 = vmatpush1.bf16.msra.mxu0 %v8144_v30  ;;  %v8150_v18 = vld [vmem:[#allocation11 + $0xc60] ss:$16 sps:$4 sm:$0xff]   ;;  %12169 = vst [vmem:[#allocation85_spill] sm:$0xff] %v10678_v54  ;;  %v335_v55 = vld [vmem:[#allocation6 + $0x348] sm:$0x1] }
 0x1f2   :  { %v1631_v19 = vadd.f32 %v1519_v17, %v304_v52  ;;  %v1632_v26 = vadd.f32 %v1520_v13, %v305_v1  ;;  %6140 = vmatpush1.bf16.msra.mxu1 %v8147_v12  ;;  %6070 = vmatprep.subr.bf16.mxu0 %v8152_v48  ;;  %v8153_v8 = vld [vmem:[#allocation11 + $0xe60] ss:$16 sps:$4 sm:$0xff]   ;;  %v1647_v53 = vadd.f32 %v1535_v34, %v320_v45  ;;  %v8158_v1 = vld [vmem:[#allocation11 + $0xc44] ss:$16 sps:$4 sm:$0xff]   ;;  %v291_v28 = vld [vmem:[#allocation6 + $0x1e8] sm:$0xff] }
 0x1f3   :  { %v1648_v44 = vadd.f32 %v1536_v0, %v321_v37  ;;  %v12170_v33 = vld [vmem:[#allocation116_spill] sm:$0xff]  ;;  %v10682_v2 = vpack.c.bf16 %v1758_v42, %v1742_v40  ;;  %v10684_v7 = vpack.c.bf16 %v1757_v58, %v1741_v47  ;;  %6141 = vmatprep.subr.bf16.mxu1 %v8155_v62  ;;  %v1549_v48 = vadd.f32 %v10505_v38, %v1353_v23  ;;  %v10688_v37 = vpop.f32.mrf.mxu1  ;;  %v12175_v40 = vld [vmem:[#allocation21_spill] sm:$0xff]  ;;  %v10695_v42 = vpop.f32.mrf.mxu0  ;;  %v336_v34 = vld [vmem:[#allocation6 + $0x350] sm:$0x1] }
 0x1f4   :  { %v1354_v29 = vmul.f32 %v10532_v60, %v12170_v33  ;;  %v1743_v30 = vmax.f32 %v1631_v19, 0.0  ;;  %v1744_v52 = vmax.f32 %v1632_v26, 0.0  ;;  %v8161_v17 = vld [vmem:[#allocation11 + $0xe44] ss:$16 sps:$4 sm:$0xff]   ;;  %v1759_v13 = vmax.f32 %v1647_v53, 0.0  ;;  %12173 = vst [vmem:[#allocation90_spill] sm:$0xff] %v10688_v37 }
 0x1f5   :  { %12171 = vst [vmem:[#allocation88_spill] sm:$0xff] %v10682_v2  ;;  %12172 = vst [vmem:[#allocation89_spill] sm:$0xff] %v10684_v7  ;;  %v1760_v12 = vmax.f32 %v1648_v44, 0.0  ;;  %5972 = vmatprep.mubr.bf16.mxu0 %v10682_v2  ;;  %6071 = vmatpush1.bf16.msra.mxu0 %v8150_v18  ;;  %v8156_v33 = vld [vmem:[#allocation11 + $0xc40] ss:$16 sps:$4 sm:$0xff]   ;;  %v12174_v60 = vld [vmem:[#allocation117_spill] sm:$0xff]  ;;  %v1356_v58 = vmul.f32 %v10538_v9, %v12175_v40  ;;  %v1661_v62 = vadd.f32 %v1549_v48, %v334_v6 }
 0x1f6   :  { %v1550_v45 = vadd.f32 %v10508_v15, %v1354_v29  ;;  %v1355_v47 = vmul.f32 %v10535_v22, %v12174_v60  ;;  %5973 = vmatmul.mubr.bf16.gmra.mxu0 %v10684_v7  ;;  %6142 = vmatpush1.bf16.msra.mxu1 %v8153_v8  ;;  %v8159_v38 = vld [vmem:[#allocation11 + $0xe40] ss:$16 sps:$4 sm:$0xff]   ;;  %v337_v0 = vld [vmem:[#allocation6 + $0x358] sm:$0x1]  ;;  %v8166_v23 = vld [vmem:[#allocation11 + $0xc24] ss:$16 sps:$4 sm:$0xff]   ;;  %v10704_v53 = vpack.c.bf16 %v1759_v13, %v1743_v30  ;;  %v10706_v29 = vpop.f32.mrf.mxu1  ;;  %v10712_v30 = vpop.f32.mrf.mxu0 }
 0x1f7   :  { %6072 = vmatprep.subr.bf16.mxu0 %v8158_v1  ;;  %6143 = vmatprep.subr.bf16.mxu1 %v8161_v17  ;;  %v1552_v22 = vadd.f32 %v10514_v61, %v1356_v58  ;;  %v12176_v19 = vld [vmem:[#allocation64_spill] sm:$0xff]  ;;  %v10702_v26 = vpack.c.bf16 %v1760_v12, %v1744_v52  ;;  %v1773_v8 = vmax.f32 %v1661_v62, 0.0  ;;  %v2200_v6 = vld [vmem:[#allocation2 + $0x58] sm:$0x11]  ;;  %v243_v40 = vld [vmem:[#allocation6 + $0x68] sm:$0xff] }
 0x1f8   :  { %v1662_v15 = vadd.f32 %v1550_v45, %v335_v55  ;;  %v1551_v18 = vadd.f32 %v10511_v51, %v1355_v47  ;;  %v1261_v9 = vmul.f32 %v10541_v21, %v12176_v19  ;;  %12178 = vst [vmem:[#allocation91_spill] sm:$0xff] %v10704_v53  ;;  %v8169_v55 = vld [vmem:[#allocation11 + $0xe24] ss:$16 sps:$4 sm:$0xff]   ;;  %v8164_v1 = vld [vmem:[#allocation11 + $0xc20] ss:$16 sps:$4 sm:$0xff]   ;;  %v12181_v58 = vld [vmem:[#allocation97_spill] sm:$0xff] }
 0x1f9   :  { %12177 = vst [vmem:[#allocation40_spill] sm:$0xff] %v10702_v26  ;;  %6073 = vmatpush1.bf16.msra.mxu0 %v8156_v33  ;;  %v8167_v17 = vld [vmem:[#allocation11 + $0xe20] ss:$16 sps:$4 sm:$0xff]   ;;  %v1664_v51 = vadd.f32 %v1552_v22, %v337_v0  ;;  %6043 = vmatprep.mubr.bf16.mxu1 %v10702_v26  ;;  %v8174_v12 = vld [vmem:[#allocation11 + $0xc04] ss:$16 sps:$4 sm:$0xff]   ;;  %v1278_v62 = vmul.f32 %v10544_v46, %v12181_v58  ;;  %v259_v22 = vld [vmem:[#allocation6 + $0xe8] sm:$0xff] }
 0x1fa   :  { %v1774_v44 = vmax.f32 %v1662_v15, 0.0  ;;  %v1663_v48 = vadd.f32 %v1551_v18, %v336_v34  ;;  %v242_v45 = vld [vmem:[#allocation6 + $0x60] sm:$0xff]  ;;  %6144 = vmatpush1.bf16.msra.mxu1 %v8159_v38  ;;  %v1457_v15 = vadd.f32 %v10517_v36, %v1261_v9  ;;  %6074 = vmatprep.subr.bf16.mxu0 %v8166_v23 }
 0x1fb   :  { %v12179_v61 = vld [vmem:[#allocation96_spill] sm:$0xff]  ;;  %6044 = vmatmul.mubr.bf16.gmra.mxu1 %v10704_v53  ;;  %v1776_v0 = vmax.f32 %v1664_v51, 0.0  ;;  %6145 = vmatprep.subr.bf16.mxu1 %v8169_v55  ;;  %v10734_v55 = vpop.f32.mrf.mxu0 }
 0x1fc   :  { %v1262_v60 = vmul.f32 %v10544_v46, %v12179_v61  ;;  %v12180_v47 = vld [vmem:[#allocation68_spill] sm:$0xff]  ;;  %v7811_v13 = vpack.c.bf16 %v1774_v44, %v1773_v8  ;;  %v1775_v34 = vmax.f32 %v1663_v48, 0.0  ;;  %v2203_v61 = vld [vmem:[#allocation2 + $0xf0] sm:$0x11]  ;;  %v10724_v58 = vadd.f32 %v1457_v15, %v242_v45  ;;  %v10728_v48 = vpop.f32.mrf.mxu1 }
 0x1fd   :  { %v1277_v52 = vmul.f32 %v10541_v21, %v12180_v47  ;;  %v258_v33 = vld [vmem:[#allocation6 + $0xe0] sm:$0xff]  ;;  %v1474_v47 = vadd.f32 %v10520_v14, %v1278_v62  ;;  %6075 = vmatpush1.bf16.msra.mxu0 %v8164_v1 }
 0x1fe   :  { %v8177_v18 = vld [vmem:[#allocation11 + $0xe04] ss:$16 sps:$4 sm:$0xff]   ;;  %v1458_v19 = vadd.f32 %v10520_v14, %v1262_v60  ;;  %v2201_v44 = vsel %vm9653_vm6, %v7811_v13, %v2200_v6  ;;  %v7812_v51 = vpack.c.bf16 %v1776_v0, %v1775_v34  ;;  %v8172_v60 = vld [vmem:[#allocation11 + $0xc00] ss:$16 sps:$4 sm:$0xff]   ;;  %6146 = vmatpush1.bf16.msra.mxu1 %v8167_v17  ;;  %6076 = vmatprep.subr.bf16.mxu0 %v8174_v12  ;;  %v12186_v34 = vld [vmem:[#allocation29_spill] sm:$0xff]  ;;  %v10748_v26 = vpop.f32.mrf.mxu1 }
 0x1ff   :  { %v1473_v38 = vadd.f32 %v10517_v36, %v1277_v52  ;;  %v12183_v9 = vld [vmem:[#allocation28_spill] sm:$0xff]  ;;  %2202 = vst [vmem:[#allocation2 + $0x58] sm:$0x11] %v2201_v44  ;;  %v1586_v62 = vadd.f32 %v1474_v47, %v259_v22  ;;  %v12185_v44 = vld [vmem:[#allocation35_spill] sm:$0xff]  ;;  %6147 = vmatprep.subr.bf16.mxu1 %v8177_v18 }
 0x200   :  { %v1263_v23 = vmul.f32 %v10547_v11, %v12183_v9  ;;  %v1570_v53 = vadd.f32 %v1458_v19, %v243_v40  ;;  %v12184_v7 = vld [vmem:[#allocation36_spill] sm:$0xff]  ;;  %v244_v9 = vld [vmem:[#allocation6 + $0x70] sm:$0xff]  ;;  %v1279_v1 = vmul.f32 %v10547_v11, %v12185_v44  ;;  %v1280_v40 = vmul.f32 %v10550_v43, %v12186_v34  ;;  %v245_v12 = vld [vmem:[#allocation6 + $0x78] sm:$0xff] }
 0x201   :  { %v10730_v52 = vadd.f32 %v1473_v38, %v258_v33  ;;  %v1264_v6 = vmul.f32 %v10550_v43, %v12184_v7  ;;  %v8175_v45 = vld [vmem:[#allocation11 + $0xe00] ss:$16 sps:$4 sm:$0xff]   ;;  %v8180_v13 = vld [vmem:[#allocation11 + $0xde4] ss:$16 sps:$4 sm:$0xff]   ;;  %v2204_v33 = vsel %vm9653_vm6, %v7812_v51, %v2203_v61  ;;  %v1698_v38 = vmax.f32 %v1586_v62, 0.0  ;;  %v261_v47 = vld [vmem:[#allocation6 + $0xf8] sm:$0xff]  ;;  %6077 = vmatpush1.bf16.msra.mxu0 %v8172_v60  ;;  %v10760_v51 = vpop.f32.mrf.mxu0 }
 0x202   :  { %v8183_v7 = vld [vmem:[#allocation11 + $0xfe4] ss:$16 sps:$4 sm:$0xff]   ;;  %v1682_v0 = vmax.f32 %v1570_v53, 0.0  ;;  %v1459_v22 = vadd.f32 %v10523_v50, %v1263_v23  ;;  %2205 = vst [vmem:[#allocation2 + $0xf0] sm:$0x11] %v2204_v33  ;;  %v1475_v15 = vadd.f32 %v10523_v50, %v1279_v1  ;;  %v1476_v34 = vadd.f32 %v10526_v57, %v1280_v40  ;;  %12187 = vst [vmem:[#allocation63_spill] sm:$0xff] %v10760_v51 }
 0x203   :  { %v260_v19 = vld [vmem:[#allocation6 + $0xf0] sm:$0xff]  ;;  %v1460_v44 = vadd.f32 %v10526_v57, %v1264_v6  ;;  %v10754_v61 = vadd.f32 %v10582_v49, %v10576_v39  ;;  %v10758_v23 = vadd.f32 %v10607_v27, %v10588_v20  ;;  %6148 = vmatpush1.bf16.msra.mxu1 %v8175_v45  ;;  %6078 = vmatprep.subr.bf16.mxu0 %v8180_v13  ;;  %v10772_v13 = vpop.f32.mrf.mxu1  ;;  %v12195_v33 = vld [vmem:[#allocation100_spill] sm:$0xff] }
 0x204   :  { %v8178_v18 = vld [vmem:[#allocation11 + $0xde0] ss:$16 sps:$4 sm:$0xff]   ;;  %v10750_v53 = vadd.f32 %v1459_v22, %v244_v9  ;;  %v8186_v62 = vld [vmem:[#allocation11 + $0xdc4] ss:$16 sps:$4 sm:$0xff]   ;;  %v10762_v40 = vadd.f32 %v1475_v15, %v260_v19  ;;  %6149 = vmatprep.subr.bf16.mxu1 %v8183_v7  ;;  %v1588_v9 = vadd.f32 %v1476_v34, %v261_v47  ;;  %v10767_v39 = vadd.f32 %v10624_v25, %v10609_v56  ;;  %v12192_v22 = vld [vmem:[#allocation93_spill] sm:$0xff]  ;;  %v10780_v56 = vpop.f32.mrf.mxu0 }
 0x205   :  { %v8181_v6 = vld [vmem:[#allocation11 + $0xfe0] ss:$16 sps:$4 sm:$0xff]   ;;  %v1572_v1 = vadd.f32 %v1460_v44, %v245_v12  ;;  %v8189_v60 = vld [vmem:[#allocation11 + $0xfc4] ss:$16 sps:$4 sm:$0xff]   ;;  %v10769_v20 = vpack.c.bf16 %v1698_v38, %v1682_v0  ;;  %12189 = vst [vmem:[#allocation67_spill] sm:$0xff] %v10772_v13  ;;  %6079 = vmatpush2.bf16.msra.mxu0 %v8178_v18  ;;  %v1293_v47 = vmul.f32 %v10541_v21, %v12192_v22  ;;  %v10786_v45 = vpop.f32.mrf.mxu1 }
 0x206   :  { %v2264_v49 = vld [vmem:[#allocation2 + $0x58] sm:$0x11]  ;;  %v8184_v7 = vld [vmem:[#allocation11 + $0xdc0] ss:$16 sps:$4 sm:$0xff]   ;;  %v1700_v19 = vmax.f32 %v1588_v9, 0.0  ;;  %6080 = vmatprep.subr.bf16.mxu0 %v8186_v62  ;;  %v275_v9 = vld [vmem:[#allocation6 + $0x168] sm:$0xff]  ;;  %v10792_v17 = vpop.f32.mrf.mxu0 }
 0x207   :  { %12188 = vst [vmem:[#allocation41_spill] sm:$0xff] %v10769_v20  ;;  %v1684_v27 = vmax.f32 %v1572_v1, 0.0  ;;  %v10774_v12 = vcombine.high %v2264_v49, %v2264_v49  ;;  %v10776_v15 = vcombine.low %v2264_v49, %v2264_v49  ;;  %6150 = vmatpush2.bf16.msra.mxu1 %v8181_v6  ;;  %v8187_v25 = vld [vmem:[#allocation11 + $0xfc0] ss:$16 sps:$4 sm:$0xff]   ;;  %v8192_v0 = vld [vmem:[#allocation11 + $0xda4] ss:$16 sps:$4 sm:$0xff]   ;;  %v1310_v6 = vmul.f32 %v10544_v46, %v12195_v33  ;;  %v10801_v24 = vpop.f32.mrf.mxu1 }
 0x208   :  { %v274_v38 = vld [vmem:[#allocation6 + $0x160] sm:$0xff]  ;;  %v12193_v44 = vld [vmem:[#allocation98_spill] sm:$0xff]  ;;  %v12194_v1 = vld [vmem:[#allocation99_spill] sm:$0xff]  ;;  %6151 = vmatprep.subr.bf16.mxu1 %v8189_v60  ;;  %v1489_v62 = vadd.f32 %v10517_v36, %v1293_v47  ;;  %v5704_v5 = vpop.f32.mrf.mxu0 }
 0x209   :  { %12190 = vst [vmem:[#allocation42_spill] sm:$0xff] %v10774_v12  ;;  %12191 = vst [vmem:[#allocation51_spill] sm:$0xff] %v10776_v15  ;;  %v1294_v34 = vmul.f32 %v10544_v46, %v12193_v44  ;;  %v1309_v49 = vmul.f32 %v10541_v21, %v12194_v1  ;;  %5982 = vmatprep.mubr.bf16.mxu0 %v10774_v12  ;;  %v2265_v18 = vld [vmem:[#allocation2 + $0xf0] sm:$0x11]  ;;  %v290_v22 = vld [vmem:[#allocation6 + $0x1e0] sm:$0xff]  ;;  %6081 = vmatpush2.bf16.msra.mxu0 %v8184_v7  ;;  %v5775_v7 = vpop.f32.mrf.mxu1 }
 0x20a   :  { %5983 = vmatmul.mubr.bf16.gmra.mxu0 %v10776_v15  ;;  %v10795_v44 = vcombine.high %v2265_v18, %v2265_v18  ;;  %v10797_v1 = vcombine.low %v2265_v18, %v2265_v18  ;;  %v8195_v2 = vld [vmem:[#allocation11 + $0xfa4] ss:$16 sps:$4 sm:$0xff]   ;;  %v8190_v33 = vld [vmem:[#allocation11 + $0xda0] ss:$16 sps:$4 sm:$0xff]   ;;  %v10804_v47 = vpack.c.bf16 %v1700_v19, %v1684_v27  ;;  %v1506_v15 = vadd.f32 %v10520_v14, %v1310_v6 }
 0x20b   :  { %v1490_v12 = vadd.f32 %v10520_v14, %v1294_v34  ;;  %v1505_v60 = vadd.f32 %v10517_v36, %v1309_v49  ;;  %6094 = vmatprep.mubr.bf16.mxu0 %v10769_v20  ;;  %6152 = vmatpush2.bf16.msra.mxu1 %v8187_v25  ;;  %v8193_v18 = vld [vmem:[#allocation11 + $0xfa0] ss:$16 sps:$4 sm:$0xff]   ;;  %v10808_v63 = vadd.f32 %v1489_v62, %v274_v38  ;;  %v8201_v27 = vld [vmem:[#allocation11 + $0xf84] ss:$16 sps:$4 sm:$0xff]   ;;  %v12201_v20 = vld [vmem:[#allocation43_spill] sm:$0xff]  ;;  %v5776_v62 = vpop.f32.mrf.mxu1 }
 0x20c   :  { %12196 = vst [vmem:[#allocation61_spill] sm:$0xff] %v10795_v44  ;;  %12197 = vst [vmem:[#allocation62_spill] sm:$0xff] %v10797_v1  ;;  %6053 = vmatprep.mubr.bf16.mxu1 %v10795_v44  ;;  %6082 = vmatprep.subr.bf16.mxu0 %v8192_v0  ;;  %v10815_v19 = vadd.f32 %v1506_v15, %v291_v28  ;;  %v12200_v6 = vld [vmem:[#allocation38_spill] sm:$0xff]  ;;  %v1296_v25 = vmul.f32 %v10550_v43, %v12201_v20  ;;  %v5705_v44 = vpop.f32.mrf.mxu0  ;;  %v12202_v28 = vld [vmem:[#allocation109_spill] sm:$0xff] }
 0x20d   :  { %12198 = vst [vmem:[#allocation58_spill] sm:$0xff] %v10804_v47  ;;  %v10810_v34 = vadd.f32 %v1490_v12, %v275_v9  ;;  %v10812_v49 = vadd.f32 %v1505_v60, %v290_v22  ;;  %6054 = vmatmul.mubr.bf16.gmra.mxu1 %v10797_v1  ;;  %v1295_v5 = vmul.f32 %v10547_v11, %v12200_v6  ;;  %v276_v0 = vld [vmem:[#allocation6 + $0x170] sm:$0xff]  ;;  %v277_v22 = vld [vmem:[#allocation6 + $0x178] sm:$0xff]  ;;  %v12209_v37 = vld [vmem:[#allocation44_spill] sm:$0xff] }
 0x20e   :  { %6153 = vmatprep.subr.bf16.mxu1 %v8195_v2  ;;  %6165 = vmatprep.mubr.bf16.mxu1 %v10804_v47  ;;  %v1311_v15 = vmul.f32 %v10547_v11, %v12202_v28  ;;  %v8196_v60 = vld [vmem:[#allocation11 + $0xd80] ss:$16 sps:$4 sm:$0xff]   ;;  %v1492_v12 = vadd.f32 %v10526_v57, %v1296_v25  ;;  %v8204_v38 = vld [vmem:[#allocation11 + $0xd64] ss:$16 sps:$4 sm:$0xff]   ;;  %v293_v47 = vld [vmem:[#allocation6 + $0x1f8] sm:$0xff] }
 0x20f   :  { %12199 = vst [vmem:[#allocation92_spill] sm:$0xff] %v10812_v49  ;;  %6083 = vmatpush2.bf16.msra.mxu0 %v8190_v33  ;;  %v292_v44 = vld [vmem:[#allocation6 + $0x1f0] sm:$0xff]  ;;  %v1491_v6 = vadd.f32 %v10523_v50, %v1295_v5  ;;  %6154 = vmatpush2.bf16.msra.mxu1 %v8193_v18  ;;  %v12204_v62 = vld [vmem:[#allocation103_spill] sm:$0xff] }
 0x210   :  { %v12203_v2 = vld [vmem:[#allocation110_spill] sm:$0xff]  ;;  %6084 = vmatprep.subr.bf16.mxu0 %v8198_v59  ;;  %v1507_v28 = vadd.f32 %v10523_v50, %v1311_v15  ;;  %v1325_v33 = vmul.f32 %v10541_v21, %v12204_v62  ;;  %6155 = vmatprep.subr.bf16.mxu1 %v8201_v27  ;;  %v12207_v59 = vld [vmem:[#allocation104_spill] sm:$0xff]  ;;  %v1342_v62 = vmul.f32 %v10544_v46, %v12209_v37 }
 0x211   :  { %v1312_v7 = vmul.f32 %v10550_v43, %v12203_v2  ;;  %v8199_v9 = vld [vmem:[#allocation11 + $0xf80] ss:$16 sps:$4 sm:$0xff]   ;;  %v8207_v20 = vld [vmem:[#allocation11 + $0xf64] ss:$16 sps:$4 sm:$0xff]   ;;  %v10836_v13 = vadd.f32 %v1491_v6, %v276_v0  ;;  %v10838_v2 = vadd.f32 %v1492_v12, %v277_v22  ;;  %v1326_v18 = vmul.f32 %v10544_v46, %v12207_v59  ;;  %v307_v22 = vld [vmem:[#allocation6 + $0x268] sm:$0xff] }
 0x212   :  { %v8202_v5 = vld [vmem:[#allocation11 + $0xd60] ss:$16 sps:$4 sm:$0xff]   ;;  %v10840_v25 = vadd.f32 %v1507_v28, %v292_v44  ;;  %v8210_v44 = vld [vmem:[#allocation11 + $0xd44] ss:$16 sps:$4 sm:$0xff]   ;;  %v1521_v59 = vadd.f32 %v10517_v36, %v1325_v33 }
 0x213   :  { %v1508_v1 = vadd.f32 %v10526_v57, %v1312_v7  ;;  %12205 = vst [vmem:[#allocation94_spill] sm:$0xff] %v10836_v13  ;;  %v12208_v51 = vld [vmem:[#allocation30_spill] sm:$0xff]  ;;  %6085 = vmatpush2.bf16.msra.mxu0 %v8196_v60  ;;  %v306_v12 = vld [vmem:[#allocation6 + $0x260] sm:$0xff]  ;;  %6156 = vmatpush2.bf16.msra.mxu1 %v8199_v9  ;;  %v1522_v37 = vadd.f32 %v10520_v14, %v1326_v18 }
 0x214   :  { %12206 = vst [vmem:[#allocation95_spill] sm:$0xff] %v10840_v25  ;;  %v1341_v15 = vmul.f32 %v10541_v21, %v12208_v51  ;;  %v8205_v27 = vld [vmem:[#allocation11 + $0xf60] ss:$16 sps:$4 sm:$0xff]   ;;  %6086 = vmatprep.subr.bf16.mxu0 %v8204_v38  ;;  %v323_v51 = vld [vmem:[#allocation6 + $0x2e8] sm:$0xff]  ;;  %6157 = vmatprep.subr.bf16.mxu1 %v8207_v20  ;;  %v1538_v9 = vadd.f32 %v10520_v14, %v1342_v62  ;;  %v12210_v38 = vld [vmem:[#allocation111_spill] sm:$0xff] }
 0x215   :  { %v10848_v54 = vadd.f32 %v1508_v1, %v293_v47  ;;  %v322_v28 = vld [vmem:[#allocation6 + $0x2e0] sm:$0xff]  ;;  %v1327_v0 = vmul.f32 %v10547_v11, %v12210_v38  ;;  %v10860_v7 = vadd.f32 %v1521_v59, %v306_v12  ;;  %v10862_v6 = vadd.f32 %v1522_v37, %v307_v22  ;;  %v308_v37 = vld [vmem:[#allocation6 + $0x270] sm:$0xff] }
 0x216   :  { %v8213_v1 = vld [vmem:[#allocation11 + $0xf44] ss:$16 sps:$4 sm:$0xff]   ;;  %v1537_v60 = vadd.f32 %v10517_v36, %v1341_v15  ;;  %v8208_v18 = vld [vmem:[#allocation11 + $0xd40] ss:$16 sps:$4 sm:$0xff]   ;;  %v10868_v47 = vadd.f32 %v1538_v9, %v323_v51  ;;  %v12215_v15 = vld [vmem:[#allocation113_spill] sm:$0xff] }
 0x217   :  { %12211 = vst [vmem:[#allocation75_spill] sm:$0xff] %v10860_v7  ;;  %v12212_v25 = vld [vmem:[#allocation112_spill] sm:$0xff]  ;;  %6087 = vmatpush2.bf16.msra.mxu0 %v8202_v5  ;;  %v1343_v62 = vmul.f32 %v10547_v11, %v12215_v15  ;;  %6158 = vmatpush2.bf16.msra.mxu1 %v8205_v27  ;;  %v1523_v38 = vadd.f32 %v10523_v50, %v1327_v0  ;;  %v324_v9 = vld [vmem:[#allocation6 + $0x2f0] sm:$0xff]  ;;  %v325_v27 = vld [vmem:[#allocation6 + $0x2f8] sm:$0xff] }
 0x218   :  { %v1328_v33 = vmul.f32 %v10550_v43, %v12212_v25  ;;  %v8211_v20 = vld [vmem:[#allocation11 + $0xf40] ss:$16 sps:$4 sm:$0xff]   ;;  %v8216_v13 = vld [vmem:[#allocation11 + $0xd24] ss:$16 sps:$4 sm:$0xff]   ;;  %v10866_v49 = vadd.f32 %v1537_v60, %v322_v28  ;;  %12214 = vst [vmem:[#allocation105_spill] sm:$0xff] %v10868_v47  ;;  %6088 = vmatprep.subr.bf16.mxu0 %v8210_v44  ;;  %6159 = vmatprep.subr.bf16.mxu1 %v8213_v1  ;;  %v309_v60 = vld [vmem:[#allocation6 + $0x278] sm:$0xff] }
 0x219   :  { %v8219_v12 = vld [vmem:[#allocation11 + $0xf24] ss:$16 sps:$4 sm:$0xff]   ;;  %v1539_v15 = vadd.f32 %v10523_v50, %v1343_v62  ;;  %v8214_v59 = vld [vmem:[#allocation11 + $0xd20] ss:$16 sps:$4 sm:$0xff]   ;;  %v10882_v7 = vadd.f32 %v1523_v38, %v308_v37  ;;  %v12218_v1 = vld [vmem:[#allocation27_spill] sm:$0xff] }
 0x21a   :  { %12213 = vst [vmem:[#allocation76_spill] sm:$0xff] %v10866_v49  ;;  %v12216_v25 = vld [vmem:[#allocation114_spill] sm:$0xff]  ;;  %v1524_v44 = vadd.f32 %v10526_v57, %v1328_v33  ;;  %v1358_v28 = vmul.f32 %v10544_v46, %v12218_v1  ;;  %v339_v46 = vld [vmem:[#allocation6 + $0x368] sm:$0x1] }
 0x21b   :  { %v1344_v5 = vmul.f32 %v10550_v43, %v12216_v25  ;;  %6089 = vmatpush2.bf16.msra.mxu0 %v8208_v18  ;;  %v12217_v25 = vld [vmem:[#allocation22_spill] sm:$0xff]  ;;  %6160 = vmatpush2.bf16.msra.mxu1 %v8211_v20  ;;  %v10890_v33 = vadd.f32 %v1539_v15, %v324_v9  ;;  %v338_v18 = vld [vmem:[#allocation6 + $0x360] sm:$0x1] }
 0x21c   :  { %v1357_v0 = vmul.f32 %v10541_v21, %v12217_v25  ;;  %6090 = vmatprep.subr.bf16.mxu0 %v8216_v13  ;;  %v8217_v51 = vld [vmem:[#allocation11 + $0xf20] ss:$16 sps:$4 sm:$0xff]   ;;  %v8222_v49 = vld [vmem:[#allocation11 + $0xd04] ss:$16 sps:$4 sm:$0xff]   ;;  %v10888_v47 = vadd.f32 %v1524_v44, %v309_v60  ;;  %6161 = vmatprep.subr.bf16.mxu1 %v8219_v12  ;;  %v1747_v21 = vmax.f32 %v10882_v7, 0.0  ;;  %v12219_v44 = vld [vmem:[#allocation37_spill] sm:$0xff]  ;;  %v5812_v25 = vpop.f32.mrf.mxu0 }
 0x21d   :  { %v1540_v22 = vadd.f32 %v10526_v57, %v1344_v5  ;;  %v8225_v37 = vld [vmem:[#allocation11 + $0xf04] ss:$16 sps:$4 sm:$0xff]   ;;  %v10896_v5 = vadd.f32 %v10643_v4, %v10626_v35  ;;  %v1763_v38 = vmax.f32 %v10890_v33, 0.0  ;;  %v8220_v12 = vld [vmem:[#allocation11 + $0xd00] ss:$16 sps:$4 sm:$0xff]   ;;  %v1359_v35 = vmul.f32 %v10547_v11, %v12219_v44 }
 0x21e   :  { %v1553_v13 = vadd.f32 %v10517_v36, %v1357_v0  ;;  %v1748_v20 = vmax.f32 %v10888_v47, 0.0  ;;  %v8223_v9 = vld [vmem:[#allocation11 + $0xf00] ss:$16 sps:$4 sm:$0xff]   ;;  %v10910_v36 = vadd.f32 %v10654_v3, %v10634_v16  ;;  %v8228_v0 = vld [vmem:[#allocation11 + $0xec] ss:$16 sps:$4 sm:$0xff]   ;;  %v5814_v16 = vpop.f32.mrf.mxu0  ;;  %v12221_v3 = vmax.f32 %v10724_v58, 0.0 }
 0x21f   :  { %v10892_v62 = vadd.f32 %v1540_v22, %v325_v27  ;;  %v1554_v22 = vadd.f32 %v10520_v14, %v1358_v28  ;;  %6091 = vmatpush2.bf16.msra.mxu0 %v8214_v59  ;;  %v12220_v4 = vld [vmem:[#allocation118_spill] sm:$0xff]  ;;  %6162 = vmatpush2.bf16.msra.mxu1 %v8217_v51  ;;  %v341_v59 = vld [vmem:[#allocation6 + $0x378] sm:$0x1]  ;;  %v5883_v28 = vpop.f32.mrf.mxu1  ;;  %v1555_v11 = vadd.f32 %v10523_v50, %v1359_v35  ;;  %v12225_v58 = vmax.f32 %v10810_v34, 0.0  ;;  %v8261_v7 = vld [vmem:[#allocation11 + $0x24c] ss:$16 sps:$4 sm:$0xff]  }
 0x220   :  { %v1665_v27 = vadd.f32 %v1553_v13, %v338_v18  ;;  %v1360_v15 = vmul.f32 %v10550_v43, %v12220_v4  ;;  %6092 = vmatprep.subr.bf16.mxu0 %v8222_v49  ;;  %v340_v14 = vld [vmem:[#allocation6 + $0x370] sm:$0x1]  ;;  %6163 = vmatprep.subr.bf16.mxu1 %v8225_v37  ;;  %v8231_v18 = vld [vmem:[#allocation11 + $0x2ec] ss:$16 sps:$4 sm:$0xff]   ;;  %v10916_v43 = vadd.f32 %v10666_v32, %v10645_v31  ;;  %v12222_v49 = vmax.f32 %v10730_v52, 0.0 }
 0x221   :  { %v1764_v60 = vmax.f32 %v10892_v62, 0.0  ;;  %v1666_v1 = vadd.f32 %v1554_v22, %v339_v46  ;;  %v12223_v46 = vmax.f32 %v10750_v53, 0.0  ;;  %v12224_v37 = vmax.f32 %v10762_v40, 0.0  ;;  %v5885_v31 = vpop.f32.mrf.mxu1  ;;  %v8226_v32 = vld [vmem:[#allocation11 + $0xe8] ss:$16 sps:$4 sm:$0xff]  }
 0x222   :  { %v1777_v13 = vmax.f32 %v1665_v27, 0.0  ;;  %v1556_v44 = vadd.f32 %v10526_v57, %v1360_v15  ;;  %v10922_v51 = vpack.c.bf16 %v12222_v49, %v12221_v3  ;;  %v10932_v57 = vadd.f32 %v10675_v41, %v10660_v10  ;;  %v2206_v35 = vld [vmem:[#allocation2 + $0x30] sm:$0x11]  ;;  %v5816_v15 = vpop.f32.mrf.mxu0  ;;  %v8229_v10 = vld [vmem:[#allocation11 + $0x2e8] ss:$16 sps:$4 sm:$0xff]  }
 0x223   :  { %v10928_v22 = vpack.c.bf16 %v12224_v37, %v12223_v46  ;;  %v1778_v50 = vmax.f32 %v1666_v1, 0.0  ;;  %6093 = vmatpush2.bf16.msra.mxu0 %v8220_v12  ;;  %v12226_v52 = vmax.f32 %v10815_v19, 0.0  ;;  %v1667_v53 = vadd.f32 %v1555_v11, %v340_v14  ;;  %6164 = vmatpush2.bf16.msra.mxu1 %v8223_v9  ;;  %v8234_v41 = vld [vmem:[#allocation11 + $0xcc] ss:$16 sps:$4 sm:$0xff]   ;;  %v5887_v1 = vpop.f32.mrf.mxu1 }
 0x224   :  { %v1668_v4 = vadd.f32 %v1556_v44, %v341_v59  ;;  %v10942_v40 = vadd.f32 %v10706_v29, %v10695_v42  ;;  %6204 = vmatprep.subr.bf16.mxu0 %v8228_v0  ;;  %v10946_v34 = vadd.f32 %v10728_v48, %v10712_v30  ;;  %v10950_v19 = vadd.f32 %v10748_v26, %v10734_v55  ;;  %v8237_v14 = vld [vmem:[#allocation11 + $0x2cc] ss:$16 sps:$4 sm:$0xff]   ;;  %v5818_v30 = vpop.f32.mrf.mxu0 }
 0x225   :  { %v10938_v27 = vpack.c.bf16 %v12226_v52, %v12225_v58  ;;  %v7813_v12 = vpack.c.bf16 %v1778_v50, %v1777_v13  ;;  %6275 = vmatprep.subr.bf16.mxu1 %v8231_v18  ;;  %v12227_v42 = vmax.f32 %v10838_v2, 0.0  ;;  %v12228_v29 = vmax.f32 %v10848_v54, 0.0  ;;  %v2209_v48 = vld [vmem:[#allocation2 + $0x198] sm:$0x11]  ;;  %v5889_v18 = vpop.f32.mrf.mxu1  ;;  %v12230_v50 = vld [vmem:[#allocation92_spill] sm:$0xff] }
 0x226   :  { %v1779_v0 = vmax.f32 %v1667_v53, 0.0  ;;  %v1780_v59 = vmax.f32 %v1668_v4, 0.0  ;;  %v10960_v13 = vadd.f32 %v10786_v45, %v10780_v56  ;;  %6095 = vmatmul.mubr.bf16.vlgmr.msra.gmra.mxu0 %v10922_v51  ;;  %v10967_v55 = vadd.f32 %v10801_v24, %v10792_v17  ;;  %6166 = vmatmul.mubr.bf16.vlgmr.msra.gmra.mxu1 %v10928_v22  ;;  %v8232_v45 = vld [vmem:[#allocation11 + $0xc8] ss:$16 sps:$4 sm:$0xff]   ;;  %v5822_v3 = vpop.f32.mrf.mxu0  ;;  %v8240_v17 = vld [vmem:[#allocation11 + $0xac] ss:$16 sps:$4 sm:$0xff]  }
 0x227   :  { %v10956_v9 = vpack.c.bf16 %v12228_v29, %v12227_v42  ;;  %v2207_v26 = vsel %vm9653_vm6, %v7813_v12, %v2206_v35  ;;  %v5813_v54 = vadd.f32 %v5812_v25, %v10754_v61  ;;  %v5815_v2 = vadd.f32 %v5814_v16, %v10758_v23  ;;  %6205 = vmatpush1.bf16.msra.mxu0 %v8226_v32  ;;  %v8235_v24 = vld [vmem:[#allocation11 + $0x2c8] ss:$16 sps:$4 sm:$0xff]   ;;  %v5893_v25 = vpop.f32.mrf.mxu1  ;;  %v8243_v16 = vld [vmem:[#allocation11 + $0x2ac] ss:$16 sps:$4 sm:$0xff]   ;;  %v12232_v35 = vld [vmem:[#allocation94_spill] sm:$0xff] }
 0x228   :  { %2208 = vst [vmem:[#allocation2 + $0x30] sm:$0x11] %v2207_v26  ;;  %v7814_v56 = vpack.c.bf16 %v1780_v59, %v1779_v0  ;;  %v5817_v11 = vadd.f32 %v5816_v15, %v10767_v39  ;;  %v5819_v44 = vadd.f32 %v5818_v30, %v10896_v5  ;;  %6276 = vmatpush1.bf16.msra.mxu1 %v8229_v10  ;;  %v5824_v37 = vpop.f32.mrf.mxu0  ;;  %v8238_v52 = vld [vmem:[#allocation11 + $0xa8] ss:$16 sps:$4 sm:$0xff]   ;;  %v12233_v53 = vmax.f32 %v12232_v35, 0.0 }
 0x229   :  { %6206 = vmatprep.subr.bf16.mxu0 %v8234_v41  ;;  %v10974_v49 = vadd.f32 %v5883_v28, %v5813_v54  ;;  %v10976_v61 = vadd.f32 %v5885_v31, %v5815_v2  ;;  %v5823_v23 = vadd.f32 %v5822_v3, %v10910_v36  ;;  %6277 = vmatprep.subr.bf16.mxu1 %v8237_v14  ;;  %v12229_v28 = vmax.f32 %v10808_v63, 0.0  ;;  %v5895_v8 = vpop.f32.mrf.mxu1  ;;  %v12234_v4 = vld [vmem:[#allocation95_spill] sm:$0xff]  ;;  %v12237_v14 = vld [vmem:[#allocation90_spill] sm:$0xff]  ;;  %v12239_v26 = vld [vmem:[#allocation105_spill] sm:$0xff] }
 0x22a   :  { %6104 = vmatprep.mubr.bf16.mxu0 %v10938_v27  ;;  %v2210_v39 = vsel %vm9653_vm6, %v7814_v56, %v2209_v48  ;;  %v10982_v5 = vadd.f32 %v5887_v1, %v5817_v11  ;;  %v10984_v46 = vadd.f32 %v5889_v18, %v5819_v44  ;;  %v12231_v31 = vmax.f32 %v12230_v50, 0.0  ;;  %6175 = vmatprep.mubr.bf16.mxu1 %v10956_v9  ;;  %v5826_v63 = vpop.f32.mrf.mxu0  ;;  %v8241_v41 = vld [vmem:[#allocation11 + $0x2a8] ss:$16 sps:$4 sm:$0xff]   ;;  %v8246_v12 = vld [vmem:[#allocation11 + $0x8c] ss:$16 sps:$4 sm:$0xff]  }
 0x22b   :  { %2211 = vst [vmem:[#allocation2 + $0x198] sm:$0x11] %v2210_v39  ;;  %v5825_v36 = vadd.f32 %v5824_v37, %v10916_v43  ;;  %v10994_v58 = vadd.f32 %v5893_v25, %v5823_v23  ;;  %6207 = vmatpush1.bf16.msra.mxu0 %v8232_v45  ;;  %v12235_v15 = vmax.f32 %v12234_v4, 0.0  ;;  %v12236_v1 = vld [vmem:[#allocation85_spill] sm:$0xff]  ;;  %v5827_v43 = vadd.f32 %v5826_v63, %v10932_v57  ;;  %v5897_v0 = vpop.f32.mrf.mxu1  ;;  %v12243_v25 = vld [vmem:[#allocation76_spill] sm:$0xff]  ;;  %v12245_v4 = vld [vmem:[#allocation63_spill] sm:$0xff] }
 0x22c   :  { %v10990_v32 = vpack.c.bf16 %v12231_v31, %v12229_v28  ;;  %6278 = vmatpush1.bf16.msra.mxu1 %v8235_v24  ;;  %6208 = vmatprep.subr.bf16.mxu0 %v8240_v17  ;;  %v5758_v42 = vadd.f32 %v12237_v14, %v12236_v1  ;;  %v8249_v59 = vld [vmem:[#allocation11 + $0x28c] ss:$16 sps:$4 sm:$0xff]   ;;  %v12238_v30 = vmax.f32 %v10862_v6, 0.0  ;;  %v12240_v48 = vmax.f32 %v12239_v26, 0.0  ;;  %v5828_v2 = vpop.f32.mrf.mxu0  ;;  %v8244_v6 = vld [vmem:[#allocation11 + $0x88] ss:$16 sps:$4 sm:$0xff]  }
 0x22d   :  { %v11000_v10 = vpack.c.bf16 %v12235_v15, %v12233_v53  ;;  %v11005_v29 = vadd.f32 %v5895_v8, %v5825_v36  ;;  %6279 = vmatprep.subr.bf16.mxu1 %v8243_v16  ;;  %v11018_v18 = vpack.c.bf16 %v1764_v60, %v1748_v20  ;;  %v11020_v45 = vadd.f32 %v5897_v0, %v5827_v43  ;;  %v5899_v56 = vpop.f32.mrf.mxu1  ;;  %v8247_v44 = vld [vmem:[#allocation11 + $0x288] ss:$16 sps:$4 sm:$0xff]   ;;  %v8252_v3 = vld [vmem:[#allocation11 + $0x6c] ss:$16 sps:$4 sm:$0xff]  }
 0x22e   :  { %v11011_v54 = vpack.c.bf16 %v12240_v48, %v12238_v30  ;;  %6105 = vmatmul.mubr.bf16.gmra.mxu0 %v10990_v32  ;;  %v5829_v57 = vadd.f32 %v5828_v2, %v5758_v42  ;;  %v5832_v11 = vpop.f32.mrf.mxu0  ;;  %v8255_v20 = vld [vmem:[#allocation11 + $0x26c] ss:$16 sps:$4 sm:$0xff]   ;;  %v12244_v16 = vmax.f32 %v12243_v25, 0.0  ;;  %v8250_v31 = vld [vmem:[#allocation11 + $0x68] ss:$16 sps:$4 sm:$0xff]   ;;  %v11041_v36 = vpack.c.bf16 %v1763_v38, %v1747_v21 }
 0x22f   :  { %6209 = vmatpush1.bf16.msra.mxu0 %v8238_v52  ;;  %6176 = vmatmul.mubr.bf16.gmra.mxu1 %v11000_v10  ;;  %v5833_v24 = vadd.f32 %v5832_v11, %v10942_v40  ;;  %v5903_v62 = vpop.f32.mrf.mxu1  ;;  %v12241_v17 = vld [vmem:[#allocation75_spill] sm:$0xff]  ;;  %v2266_v37 = vld [vmem:[#allocation2 + $0x30] sm:$0x11] }
 0x230   :  { %6280 = vmatpush1.bf16.msra.mxu1 %v8241_v41  ;;  %6210 = vmatprep.subr.bf16.mxu0 %v8246_v12  ;;  %v11024_v47 = vadd.f32 %v5899_v56, %v5829_v57  ;;  %v5834_v60 = vpop.f32.mrf.mxu0  ;;  %v12242_v23 = vmax.f32 %v12241_v17, 0.0  ;;  %v8253_v35 = vld [vmem:[#allocation11 + $0x268] ss:$16 sps:$4 sm:$0xff]   ;;  %v8258_v53 = vld [vmem:[#allocation11 + $0x4c] ss:$16 sps:$4 sm:$0xff]   ;;  %v11048_v1 = vcombine.high %v2266_v37, %v2266_v37  ;;  %v11060_v56 = vcombine.low %v2266_v37, %v2266_v37 }
 0x231   :  { %6281 = vmatprep.subr.bf16.mxu1 %v8249_v59  ;;  %6114 = vmatprep.mubr.bf16.mxu0 %v11011_v54  ;;  %v5835_v28 = vadd.f32 %v5834_v60, %v10946_v34  ;;  %v11035_v40 = vadd.f32 %v5903_v62, %v5833_v24  ;;  %v5905_v50 = vpop.f32.mrf.mxu1  ;;  %v12246_v15 = vld [vmem:[#allocation67_spill] sm:$0xff] }
 0x232   :  { %v11031_v39 = vpack.c.bf16 %v12244_v16, %v12242_v23  ;;  %6185 = vmatprep.mubr.bf16.mxu1 %v11018_v18  ;;  %v2267_v8 = vld [vmem:[#allocation2 + $0x198] sm:$0x11]  ;;  %v5836_v52 = vpop.f32.mrf.mxu0  ;;  %v5768_v34 = vadd.f32 %v12246_v15, %v12245_v4 }
 0x233   :  { %6211 = vmatpush1.bf16.msra.mxu0 %v8244_v6  ;;  %v5837_v63 = vadd.f32 %v5836_v52, %v10950_v19  ;;  %v11046_v41 = vadd.f32 %v5905_v50, %v5835_v28  ;;  %v5907_v12 = vpop.f32.mrf.mxu1  ;;  %v11051_v21 = vcombine.high %v2267_v8, %v2267_v8  ;;  %v8256_v19 = vld [vmem:[#allocation11 + $0x48] ss:$16 sps:$4 sm:$0xff]   ;;  %v8266_v59 = vld [vmem:[#allocation11 + $0x2c] ss:$16 sps:$4 sm:$0xff]  }
 0x234   :  { %6282 = vmatpush1.bf16.msra.mxu1 %v8247_v44  ;;  %6212 = vmatprep.subr.bf16.mxu0 %v8252_v3  ;;  %v5838_v33 = vpop.f32.mrf.mxu0  ;;  %v8259_v0 = vld [vmem:[#allocation11 + $0x248] ss:$16 sps:$4 sm:$0xff]   ;;  %v8269_v2 = vld [vmem:[#allocation11 + $0x22c] ss:$16 sps:$4 sm:$0xff]  }
 0x235   :  { %6283 = vmatprep.subr.bf16.mxu1 %v8255_v20  ;;  %v5839_v38 = vadd.f32 %v5838_v33, %v5768_v34  ;;  %v11053_v14 = vadd.f32 %v5907_v12, %v5837_v63  ;;  %v5909_v42 = vpop.f32.mrf.mxu1  ;;  %v8264_v3 = vld [vmem:[#allocation11 + $0x28] ss:$16 sps:$4 sm:$0xff]   ;;  %v8274_v20 = vld [vmem:[#allocation11 + $0xc] ss:$16 sps:$4 sm:$0xff]  }
 0x236   :  { %6115 = vmatmul.mubr.bf16.gmra.mxu0 %v11031_v39  ;;  %v5842_v43 = vpop.f32.mrf.mxu0  ;;  %v8267_v62 = vld [vmem:[#allocation11 + $0x228] ss:$16 sps:$4 sm:$0xff]   ;;  %v8277_v23 = vld [vmem:[#allocation11 + $0x20c] ss:$16 sps:$4 sm:$0xff]  }
 0x237   :  { %6213 = vmatpush1.bf16.msra.mxu0 %v8250_v31  ;;  %6186 = vmatmul.mubr.bf16.gmra.mxu1 %v11041_v36  ;;  %v5843_v30 = vadd.f32 %v5842_v43, %v10960_v13  ;;  %v11057_v26 = vadd.f32 %v5909_v42, %v5839_v38  ;;  %v5913_v48 = vpop.f32.mrf.mxu1  ;;  %v11066_v13 = vcombine.low %v2267_v8, %v2267_v8  ;;  %v8272_v16 = vld [vmem:[#allocation11 + $0x8] ss:$16 sps:$4 sm:$0xff]   ;;  %v8280_v28 = vld [vmem:[#allocation11 + $0x1ec] ss:$16 sps:$4 sm:$0xff]   ;;  %v12247_v31 = vld [vmem:[#allocation48_spill] sm:$0xff] }
 0x238   :  { %6284 = vmatpush1.bf16.msra.mxu1 %v8253_v35  ;;  %6214 = vmatprep.subr.bf16.mxu0 %v8258_v53  ;;  %v5844_v57 = vpop.f32.mrf.mxu0  ;;  %v8275_v37 = vld [vmem:[#allocation11 + $0x208] ss:$16 sps:$4 sm:$0xff]   ;;  %v8283_v50 = vld [vmem:[#allocation11 + $0x3ec] ss:$16 sps:$4 sm:$0xff]   ;;  %v12248_v8 = vld [vmem:[#allocation54_spill] sm:$0xff] }
 0x239   :  { %6285 = vmatprep.subr.bf16.mxu1 %v8261_v7  ;;  %6124 = vmatprep.mubr.bf16.mxu0 %v11048_v1  ;;  %v5845_v6 = vadd.f32 %v5844_v57, %v10967_v55  ;;  %v11064_v11 = vadd.f32 %v5913_v48, %v5843_v30  ;;  %v5915_v44 = vpop.f32.mrf.mxu1  ;;  %v8278_v52 = vld [vmem:[#allocation11 + $0x1e8] ss:$16 sps:$4 sm:$0xff]   ;;  %v8286_v53 = vld [vmem:[#allocation11 + $0x1cc] ss:$16 sps:$4 sm:$0xff]  }
 0x23a   :  { %6195 = vmatprep.mubr.bf16.mxu1 %v11051_v21  ;;  %v5846_v24 = vpop.f32.mrf.mxu0  ;;  %v8281_v35 = vld [vmem:[#allocation11 + $0x3e8] ss:$16 sps:$4 sm:$0xff]   ;;  %v8289_v4 = vld [vmem:[#allocation11 + $0x3cc] ss:$16 sps:$4 sm:$0xff]  }
 0x23b   :  { %6215 = vmatpush1.bf16.msra.mxu0 %v8256_v19  ;;  %v11068_v60 = vadd.f32 %v5915_v44, %v5845_v6  ;;  %v5917_v17 = vpop.f32.mrf.mxu1  ;;  %v8284_v15 = vld [vmem:[#allocation11 + $0x1c8] ss:$16 sps:$4 sm:$0xff]   ;;  %v8292_v63 = vld [vmem:[#allocation11 + $0x1ac] ss:$16 sps:$4 sm:$0xff]  }
 0x23c   :  { %6286 = vmatpush1.bf16.msra.mxu1 %v8259_v0  ;;  %6216 = vmatprep.subr.bf16.mxu0 %v8266_v59  ;;  %v5847_v25 = vpop.f32.mrf.mxu0  ;;  %v8287_v34 = vld [vmem:[#allocation11 + $0x3c8] ss:$16 sps:$4 sm:$0xff]   ;;  %v8295_v12 = vld [vmem:[#allocation11 + $0x3ac] ss:$16 sps:$4 sm:$0xff]  }
 0x23d   :  { %6287 = vmatprep.subr.bf16.mxu1 %v8269_v2  ;;  %v5918_v55 = vpop.f32.mrf.mxu1  ;;  %v8290_v7 = vld [vmem:[#allocation11 + $0x1a8] ss:$16 sps:$4 sm:$0xff]   ;;  %v8298_v38 = vld [vmem:[#allocation11 + $0x18c] ss:$16 sps:$4 sm:$0xff]  }
 0x23e   :  { %6125 = vmatmul.mubr.bf16.gmra.mxu0 %v11060_v56  ;;  %v8293_v33 = vld [vmem:[#allocation11 + $0x3a8] ss:$16 sps:$4 sm:$0xff]   ;;  %v8301_v42 = vld [vmem:[#allocation11 + $0x38c] ss:$16 sps:$4 sm:$0xff]  }
 0x23f   :  { %6217 = vmatpush1.bf16.msra.mxu0 %v8264_v3  ;;  %6196 = vmatmul.mubr.bf16.gmra.mxu1 %v11066_v13  ;;  %v8296_v19 = vld [vmem:[#allocation11 + $0x188] ss:$16 sps:$4 sm:$0xff]   ;;  %v8304_v0 = vld [vmem:[#allocation11 + $0x16c] ss:$16 sps:$4 sm:$0xff]  }
 0x240   :  { %6288 = vmatpush1.bf16.msra.mxu1 %v8267_v62  ;;  %6218 = vmatprep.subr.bf16.mxu0 %v8274_v20  ;;  %v8299_v43 = vld [vmem:[#allocation11 + $0x388] ss:$16 sps:$4 sm:$0xff]   ;;  %v8307_v59 = vld [vmem:[#allocation11 + $0x36c] ss:$16 sps:$4 sm:$0xff]  }
 0x241   :  { %6289 = vmatprep.subr.bf16.mxu1 %v8277_v23  ;;  %6236 = vmatprep.mubr.bf16.mxu0 %v12247_v31  ;;  %v8302_v30 = vld [vmem:[#allocation11 + $0x168] ss:$16 sps:$4 sm:$0xff]   ;;  %v8310_v2 = vld [vmem:[#allocation11 + $0x14c] ss:$16 sps:$4 sm:$0xff]  }
 0x242   :  { %6307 = vmatprep.mubr.bf16.mxu1 %v12248_v8  ;;  %v8305_v48 = vld [vmem:[#allocation11 + $0x368] ss:$16 sps:$4 sm:$0xff]   ;;  %v8313_v57 = vld [vmem:[#allocation11 + $0x34c] ss:$16 sps:$4 sm:$0xff]  }
 0x243   :  { %6219 = vmatpush1.bf16.msra.mxu0 %v8272_v16  ;;  %v8308_v6 = vld [vmem:[#allocation11 + $0x148] ss:$16 sps:$4 sm:$0xff]   ;;  %v8316_v3 = vld [vmem:[#allocation11 + $0x12c] ss:$16 sps:$4 sm:$0xff]  }
 0x244   :  { %6290 = vmatpush1.bf16.msra.mxu1 %v8275_v37  ;;  %6220 = vmatprep.subr.bf16.mxu0 %v8280_v28  ;;  %v8311_v44 = vld [vmem:[#allocation11 + $0x348] ss:$16 sps:$4 sm:$0xff]   ;;  %v8319_v24 = vld [vmem:[#allocation11 + $0x32c] ss:$16 sps:$4 sm:$0xff]  }
 0x245   :  { %6291 = vmatprep.subr.bf16.mxu1 %v8283_v50  ;;  %v8314_v62 = vld [vmem:[#allocation11 + $0x128] ss:$16 sps:$4 sm:$0xff]   ;;  %v8322_v17 = vld [vmem:[#allocation11 + $0x10c] ss:$16 sps:$4 sm:$0xff]  }
 0x246   :  { %v8317_v20 = vld [vmem:[#allocation11 + $0x328] ss:$16 sps:$4 sm:$0xff]   ;;  %v8325_v23 = vld [vmem:[#allocation11 + $0x30c] ss:$16 sps:$4 sm:$0xff]  }
 0x247   :  { %6221 = vmatpush2.bf16.msra.mxu0 %v8278_v52  ;;  %v8320_v25 = vld [vmem:[#allocation11 + $0x108] ss:$16 sps:$4 sm:$0xff]   ;;  %v8328_v16 = vld [vmem:[#allocation11 + $0x4ec] ss:$16 sps:$4 sm:$0xff]  }
 0x248   :  { %6292 = vmatpush2.bf16.msra.mxu1 %v8281_v35  ;;  %6222 = vmatprep.subr.bf16.mxu0 %v8286_v53  ;;  %v8323_v55 = vld [vmem:[#allocation11 + $0x308] ss:$16 sps:$4 sm:$0xff]   ;;  %v8331_v37 = vld [vmem:[#allocation11 + $0x6ec] ss:$16 sps:$4 sm:$0xff]  }
 0x249   :  { %6293 = vmatprep.subr.bf16.mxu1 %v8289_v4  ;;  %v8326_v28 = vld [vmem:[#allocation11 + $0x4e8] ss:$16 sps:$4 sm:$0xff]   ;;  %v8334_v31 = vld [vmem:[#allocation11 + $0x4cc] ss:$16 sps:$4 sm:$0xff]  }
 0x24a   :  { %v8329_v50 = vld [vmem:[#allocation11 + $0x6e8] ss:$16 sps:$4 sm:$0xff]   ;;  %v8337_v8 = vld [vmem:[#allocation11 + $0x6cc] ss:$16 sps:$4 sm:$0xff]  }
 0x24b   :  { %6223 = vmatpush2.bf16.msra.mxu0 %v8284_v15  ;;  %v12249_v52 = vld [vmem:[#allocation47_spill] sm:$0xff]  ;;  %v12250_v35 = vld [vmem:[#allocation53_spill] sm:$0xff] }
 0x24c   :  { %6294 = vmatpush2.bf16.msra.mxu1 %v8287_v34  ;;  %6224 = vmatprep.subr.bf16.mxu0 %v8292_v63  ;;  %v8332_v53 = vld [vmem:[#allocation11 + $0x4c8] ss:$16 sps:$4 sm:$0xff]   ;;  %v8340_v15 = vld [vmem:[#allocation11 + $0x4ac] ss:$16 sps:$4 sm:$0xff]  }
 0x24d   :  { %6295 = vmatprep.subr.bf16.mxu1 %v8295_v12  ;;  %v8335_v4 = vld [vmem:[#allocation11 + $0x6c8] ss:$16 sps:$4 sm:$0xff]   ;;  %v8343_v34 = vld [vmem:[#allocation11 + $0x6ac] ss:$16 sps:$4 sm:$0xff]  }
 0x24e   :  { %v12251_v63 = vld [vmem:[#allocation49_spill] sm:$0xff]  ;;  %v12252_v12 = vld [vmem:[#allocation55_spill] sm:$0xff] }
 0x24f   :  { %6225 = vmatpush2.bf16.msra.mxu0 %v8290_v7  ;;  %v8338_v7 = vld [vmem:[#allocation11 + $0x4a8] ss:$16 sps:$4 sm:$0xff]  }
 0x250   :  { %6296 = vmatpush2.bf16.msra.mxu1 %v8293_v33  ;;  %6226 = vmatprep.subr.bf16.mxu0 %v8298_v38  ;;  %v8341_v33 = vld [vmem:[#allocation11 + $0x6a8] ss:$16 sps:$4 sm:$0xff]   ;;  %v8346_v38 = vld [vmem:[#allocation11 + $0x48c] ss:$16 sps:$4 sm:$0xff]  }
 0x251   :  { %6297 = vmatprep.subr.bf16.mxu1 %v8301_v42  ;;  %v8349_v42 = vld [vmem:[#allocation11 + $0x68c] ss:$16 sps:$4 sm:$0xff]  }
 0x253   :  { %6227 = vmatpush2.bf16.msra.mxu0 %v8296_v19  ;;  %v12253_v19 = vld [vmem:[#allocation50_spill] sm:$0xff] }
 0x254   :  { %6298 = vmatpush2.bf16.msra.mxu1 %v8299_v43  ;;  %6228 = vmatprep.subr.bf16.mxu0 %v8304_v0  ;;  %v8344_v43 = vld [vmem:[#allocation11 + $0x488] ss:$16 sps:$4 sm:$0xff]   ;;  %v12254_v0 = vld [vmem:[#allocation56_spill] sm:$0xff] }
 0x255   :  { %6299 = vmatprep.subr.bf16.mxu1 %v8307_v59  ;;  %v8347_v59 = vld [vmem:[#allocation11 + $0x688] ss:$16 sps:$4 sm:$0xff]  }
 0x257   :  { %6229 = vmatpush2.bf16.msra.mxu0 %v8302_v30  ;;  %v8352_v30 = vld [vmem:[#allocation11 + $0x46c] ss:$16 sps:$4 sm:$0xff]  }
 0x258   :  { %6300 = vmatpush2.bf16.msra.mxu1 %v8305_v48  ;;  %6230 = vmatprep.subr.bf16.mxu0 %v8310_v2  ;;  %v8355_v48 = vld [vmem:[#allocation11 + $0x66c] ss:$16 sps:$4 sm:$0xff]  }
 0x259   :  { %6301 = vmatprep.subr.bf16.mxu1 %v8313_v57  ;;  %v12255_v2 = vld [vmem:[#allocation59_spill] sm:$0xff]  ;;  %v12256_v57 = vld [vmem:[#allocation72_spill] sm:$0xff] }
 0x25b   :  { %6231 = vmatpush2.bf16.msra.mxu0 %v8308_v6  ;;  %v8350_v6 = vld [vmem:[#allocation11 + $0x468] ss:$16 sps:$4 sm:$0xff]  }
 0x25c   :  { %6302 = vmatpush2.bf16.msra.mxu1 %v8311_v44  ;;  %6232 = vmatprep.subr.bf16.mxu0 %v8316_v3  ;;  %v8353_v44 = vld [vmem:[#allocation11 + $0x668] ss:$16 sps:$4 sm:$0xff]   ;;  %v8358_v3 = vld [vmem:[#allocation11 + $0x44c] ss:$16 sps:$4 sm:$0xff]  }
 0x25d   :  { %6303 = vmatprep.subr.bf16.mxu1 %v8319_v24  ;;  %v8361_v24 = vld [vmem:[#allocation11 + $0x64c] ss:$16 sps:$4 sm:$0xff]  }
 0x25f   :  { %6233 = vmatpush2.bf16.msra.mxu0 %v8314_v62  ;;  %v12257_v62 = vld [vmem:[#allocation60_spill] sm:$0xff] }
 0x260   :  { %6304 = vmatpush2.bf16.msra.mxu1 %v8317_v20  ;;  %6234 = vmatprep.subr.bf16.mxu0 %v8322_v17  ;;  %v8356_v20 = vld [vmem:[#allocation11 + $0x448] ss:$16 sps:$4 sm:$0xff]  }
 0x261   :  { %6305 = vmatprep.subr.bf16.mxu1 %v8325_v23  ;;  %v12258_v17 = vld [vmem:[#allocation65_spill] sm:$0xff] }
 0x262   :  { %v8359_v23 = vld [vmem:[#allocation11 + $0x648] ss:$16 sps:$4 sm:$0xff]  }
 0x263   :  { %6235 = vmatpush2.bf16.msra.mxu0 %v8320_v25  ;;  %v8364_v25 = vld [vmem:[#allocation11 + $0x42c] ss:$16 sps:$4 sm:$0xff]  }
 0x264   :  { %6306 = vmatpush2.bf16.msra.mxu1 %v8323_v55  ;;  %6346 = vmatprep.subr.bf16.mxu0 %v8328_v16  ;;  %v8367_v55 = vld [vmem:[#allocation11 + $0x62c] ss:$16 sps:$4 sm:$0xff]   ;;  %v12259_v16 = vld [vmem:[#allocation74_spill] sm:$0xff] }
 0x265   :  { %6417 = vmatprep.subr.bf16.mxu1 %v8331_v37  ;;  %v12260_v37 = vld [vmem:[#allocation24_spill] sm:$0xff] }
 0x266   :  { %6237 = vmatmul.mubr.bf16.vlgmr.msra.gmra.mxu0 %v12249_v52  ;;  %v12261_v52 = vld [vmem:[#allocation23_spill] sm:$0xff] }
 0x267   :  { %6308 = vmatmul.mubr.bf16.vlgmr.msra.gmra.mxu1 %v12250_v35  ;;  %6347 = vmatpush1.bf16.msra.mxu0 %v8326_v28  ;;  %v8362_v28 = vld [vmem:[#allocation11 + $0x428] ss:$16 sps:$4 sm:$0xff]  }
 0x268   :  { %6418 = vmatpush1.bf16.msra.mxu1 %v8329_v50  ;;  %6348 = vmatprep.subr.bf16.mxu0 %v8334_v31  ;;  %v8365_v50 = vld [vmem:[#allocation11 + $0x628] ss:$16 sps:$4 sm:$0xff]   ;;  %v8370_v31 = vld [vmem:[#allocation11 + $0x40c] ss:$16 sps:$4 sm:$0xff]  }
 0x269   :  { %6419 = vmatprep.subr.bf16.mxu1 %v8337_v8  ;;  %6246 = vmatprep.mubr.bf16.mxu0 %v12251_v63  ;;  %v8373_v8 = vld [vmem:[#allocation11 + $0x60c] ss:$16 sps:$4 sm:$0xff]   ;;  %v8368_v35 = vld [vmem:[#allocation11 + $0x408] ss:$16 sps:$4 sm:$0xff]  }
 0x26a   :  { %6317 = vmatprep.mubr.bf16.mxu1 %v12252_v12  ;;  %v12263_v63 = vld [vmem:[#allocation73_spill] sm:$0xff] }
 0x26b   :  { %6349 = vmatpush1.bf16.msra.mxu0 %v8332_v53  ;;  %v12262_v53 = vld [vmem:[#allocation31_spill] sm:$0xff]  ;;  %v12264_v12 = vld [vmem:[#allocation25_spill] sm:$0xff] }
 0x26c   :  { %6420 = vmatpush1.bf16.msra.mxu1 %v8335_v4  ;;  %6350 = vmatprep.subr.bf16.mxu0 %v8340_v15  ;;  %v8371_v4 = vld [vmem:[#allocation11 + $0x608] ss:$16 sps:$4 sm:$0xff]   ;;  %v8376_v15 = vld [vmem:[#allocation11 + $0x5ec] ss:$16 sps:$4 sm:$0xff]  }
 0x26d   :  { %6421 = vmatprep.subr.bf16.mxu1 %v8343_v34  ;;  %v8379_v34 = vld [vmem:[#allocation11 + $0x7ec] ss:$16 sps:$4 sm:$0xff]  }
 0x26e   :  { %6247 = vmatmul.mubr.bf16.gmra.mxu0 %v12253_v19  ;;  %v8380_v19 = vld [vmem:[#allocation11 + $0x5c8] ss:$16 sps:$4 sm:$0xff]  }
 0x26f   :  { %6351 = vmatpush1.bf16.msra.mxu0 %v8338_v7  ;;  %6318 = vmatmul.mubr.bf16.gmra.mxu1 %v12254_v0  ;;  %v8374_v7 = vld [vmem:[#allocation11 + $0x5e8] ss:$16 sps:$4 sm:$0xff]   ;;  %v8388_v0 = vld [vmem:[#allocation11 + $0x5ac] ss:$16 sps:$4 sm:$0xff]  }
 0x270   :  { %6422 = vmatpush1.bf16.msra.mxu1 %v8341_v33  ;;  %6352 = vmatprep.subr.bf16.mxu0 %v8346_v38  ;;  %v8377_v33 = vld [vmem:[#allocation11 + $0x7e8] ss:$16 sps:$4 sm:$0xff]   ;;  %v8382_v38 = vld [vmem:[#allocation11 + $0x5cc] ss:$16 sps:$4 sm:$0xff]  }
 0x271   :  { %6423 = vmatprep.subr.bf16.mxu1 %v8349_v42  ;;  %6256 = vmatprep.mubr.bf16.mxu0 %v12255_v2  ;;  %v8385_v42 = vld [vmem:[#allocation11 + $0x7cc] ss:$16 sps:$4 sm:$0xff]  }
 0x272   :  { %6327 = vmatprep.mubr.bf16.mxu1 %v12256_v57  ;;  %v8394_v2 = vld [vmem:[#allocation11 + $0x58c] ss:$16 sps:$4 sm:$0xff]  }
 0x273   :  { %6353 = vmatpush1.bf16.msra.mxu0 %v8344_v43  ;;  %v8383_v43 = vld [vmem:[#allocation11 + $0x7c8] ss:$16 sps:$4 sm:$0xff]   ;;  %v8397_v57 = vld [vmem:[#allocation11 + $0x78c] ss:$16 sps:$4 sm:$0xff]  }
 0x274   :  { %6424 = vmatpush1.bf16.msra.mxu1 %v8347_v59  ;;  %6354 = vmatprep.subr.bf16.mxu0 %v8352_v30  ;;  %v8391_v59 = vld [vmem:[#allocation11 + $0x7ac] ss:$16 sps:$4 sm:$0xff]   ;;  %v8386_v30 = vld [vmem:[#allocation11 + $0x5a8] ss:$16 sps:$4 sm:$0xff]  }
 0x275   :  { %6425 = vmatprep.subr.bf16.mxu1 %v8355_v48  ;;  %v8389_v48 = vld [vmem:[#allocation11 + $0x7a8] ss:$16 sps:$4 sm:$0xff]  }
 0x276   :  { %6257 = vmatmul.mubr.bf16.gmra.mxu0 %v12257_v62  ;;  %v8398_v62 = vld [vmem:[#allocation11 + $0x568] ss:$16 sps:$4 sm:$0xff]  }
 0x277   :  { %6355 = vmatpush1.bf16.msra.mxu0 %v8350_v6  ;;  %6328 = vmatmul.mubr.bf16.gmra.mxu1 %v12258_v17  ;;  %v8392_v6 = vld [vmem:[#allocation11 + $0x588] ss:$16 sps:$4 sm:$0xff]   ;;  %v8406_v17 = vld [vmem:[#allocation11 + $0x54c] ss:$16 sps:$4 sm:$0xff]  }
 0x278   :  { %6426 = vmatpush1.bf16.msra.mxu1 %v8353_v44  ;;  %6356 = vmatprep.subr.bf16.mxu0 %v8358_v3  ;;  %v8395_v44 = vld [vmem:[#allocation11 + $0x788] ss:$16 sps:$4 sm:$0xff]   ;;  %v8400_v3 = vld [vmem:[#allocation11 + $0x56c] ss:$16 sps:$4 sm:$0xff]  }
 0x279   :  { %6427 = vmatprep.subr.bf16.mxu1 %v8361_v24  ;;  %6266 = vmatprep.mubr.bf16.mxu0 %v12259_v16  ;;  %v8403_v24 = vld [vmem:[#allocation11 + $0x76c] ss:$16 sps:$4 sm:$0xff]  }
 0x27a   :  { %6337 = vmatprep.mubr.bf16.mxu1 %v12260_v37  ;;  %v8412_v16 = vld [vmem:[#allocation11 + $0x52c] ss:$16 sps:$4 sm:$0xff]  }
 0x27b   :  { %6357 = vmatpush1.bf16.msra.mxu0 %v8356_v20  ;;  %v8401_v20 = vld [vmem:[#allocation11 + $0x768] ss:$16 sps:$4 sm:$0xff]   ;;  %v8415_v37 = vld [vmem:[#allocation11 + $0x72c] ss:$16 sps:$4 sm:$0xff]  }
 0x27c   :  { %6428 = vmatpush1.bf16.msra.mxu1 %v8359_v23  ;;  %6358 = vmatprep.subr.bf16.mxu0 %v8364_v25  ;;  %v8409_v23 = vld [vmem:[#allocation11 + $0x74c] ss:$16 sps:$4 sm:$0xff]   ;;  %v8404_v25 = vld [vmem:[#allocation11 + $0x548] ss:$16 sps:$4 sm:$0xff]  }
 0x27d   :  { %6429 = vmatprep.subr.bf16.mxu1 %v8367_v55  ;;  %v8407_v55 = vld [vmem:[#allocation11 + $0x748] ss:$16 sps:$4 sm:$0xff]  }
 0x27e   :  { %6267 = vmatmul.mubr.bf16.gmra.mxu0 %v12261_v52  ;;  %v8416_v52 = vld [vmem:[#allocation11 + $0x508] ss:$16 sps:$4 sm:$0xff]  }
 0x27f   :  { %6359 = vmatpush1.bf16.msra.mxu0 %v8362_v28  ;;  %6338 = vmatmul.mubr.bf16.gmra.mxu1 %v12262_v53  ;;  %v8410_v28 = vld [vmem:[#allocation11 + $0x528] ss:$16 sps:$4 sm:$0xff]   ;;  %v8424_v53 = vld [vmem:[#allocation11 + $0x8ec] ss:$16 sps:$4 sm:$0xff]  }
 0x280   :  { %6430 = vmatpush1.bf16.msra.mxu1 %v8365_v50  ;;  %6360 = vmatprep.subr.bf16.mxu0 %v8370_v31  ;;  %v8413_v50 = vld [vmem:[#allocation11 + $0x728] ss:$16 sps:$4 sm:$0xff]   ;;  %v8418_v31 = vld [vmem:[#allocation11 + $0x50c] ss:$16 sps:$4 sm:$0xff]  }
 0x281   :  { %6431 = vmatprep.subr.bf16.mxu1 %v8373_v8  ;;  %6378 = vmatprep.mubr.bf16.mxu0 %v12263_v63  ;;  %v8421_v8 = vld [vmem:[#allocation11 + $0x70c] ss:$16 sps:$4 sm:$0xff]  }
 0x282   :  { %6449 = vmatprep.mubr.bf16.mxu1 %v12264_v12  ;;  %v8430_v63 = vld [vmem:[#allocation11 + $0x8cc] ss:$16 sps:$4 sm:$0xff]  }
 0x283   :  { %6361 = vmatpush1.bf16.msra.mxu0 %v8368_v35  ;;  %v8419_v35 = vld [vmem:[#allocation11 + $0x708] ss:$16 sps:$4 sm:$0xff]  }
 0x284   :  { %6432 = vmatpush1.bf16.msra.mxu1 %v8371_v4  ;;  %6362 = vmatprep.subr.bf16.mxu0 %v8376_v15  ;;  %v8427_v4 = vld [vmem:[#allocation11 + $0xaec] ss:$16 sps:$4 sm:$0xff]   ;;  %v8422_v15 = vld [vmem:[#allocation11 + $0x8e8] ss:$16 sps:$4 sm:$0xff]  }
 0x285   :  { %6433 = vmatprep.subr.bf16.mxu1 %v8379_v34  ;;  %v8425_v34 = vld [vmem:[#allocation11 + $0xae8] ss:$16 sps:$4 sm:$0xff]  }
 0x287   :  { %6363 = vmatpush2.bf16.msra.mxu0 %v8374_v7  ;;  %v8433_v7 = vld [vmem:[#allocation11 + $0xacc] ss:$16 sps:$4 sm:$0xff]  }
 0x288   :  { %6434 = vmatpush2.bf16.msra.mxu1 %v8377_v33  ;;  %6364 = vmatprep.subr.bf16.mxu0 %v8382_v38 }
 0x289   :  { %6435 = vmatprep.subr.bf16.mxu1 %v8385_v42  ;;  %v12265_v42 = vld [vmem:[#allocation66_spill] sm:$0xff] }
 0x28b   :  { %6365 = vmatpush2.bf16.msra.mxu0 %v8380_v19  ;;  %v12266_v19 = vld [vmem:[#allocation32_spill] sm:$0xff] }
 0x28c   :  { %6436 = vmatpush2.bf16.msra.mxu1 %v8383_v43  ;;  %6366 = vmatprep.subr.bf16.mxu0 %v8388_v0  ;;  %v8428_v0 = vld [vmem:[#allocation11 + $0x8c8] ss:$16 sps:$4 sm:$0xff]  }
 0x28d   :  { %6437 = vmatprep.subr.bf16.mxu1 %v8391_v59 }
 0x28f   :  { %6367 = vmatpush2.bf16.msra.mxu0 %v8386_v30 }
 0x290   :  { %6438 = vmatpush2.bf16.msra.mxu1 %v8389_v48  ;;  %6368 = vmatprep.subr.bf16.mxu0 %v8394_v2  ;;  %v8431_v2 = vld [vmem:[#allocation11 + $0xac8] ss:$16 sps:$4 sm:$0xff]  }
 0x291   :  { %6439 = vmatprep.subr.bf16.mxu1 %v8397_v57  ;;  %v8436_v57 = vld [vmem:[#allocation11 + $0x8ac] ss:$16 sps:$4 sm:$0xff]  }
 0x293   :  { %6369 = vmatpush2.bf16.msra.mxu0 %v8392_v6 }
 0x294   :  { %6440 = vmatpush2.bf16.msra.mxu1 %v8395_v44  ;;  %6370 = vmatprep.subr.bf16.mxu0 %v8400_v3  ;;  %v8439_v44 = vld [vmem:[#allocation11 + $0xaac] ss:$16 sps:$4 sm:$0xff]  }
 0x295   :  { %6441 = vmatprep.subr.bf16.mxu1 %v8403_v24 }
 0x297   :  { %6371 = vmatpush2.bf16.msra.mxu0 %v8398_v62 }
 0x298   :  { %6442 = vmatpush2.bf16.msra.mxu1 %v8401_v20  ;;  %6372 = vmatprep.subr.bf16.mxu0 %v8406_v17  ;;  %v12268_v20 = vld [vmem:[#allocation34_spill] sm:$0xff] }
 0x299   :  { %6443 = vmatprep.subr.bf16.mxu1 %v8409_v23  ;;  %v8434_v23 = vld [vmem:[#allocation11 + $0x8a8] ss:$16 sps:$4 sm:$0xff]  }
 0x29b   :  { %6373 = vmatpush2.bf16.msra.mxu0 %v8404_v25 }
 0x29c   :  { %6444 = vmatpush2.bf16.msra.mxu1 %v8407_v55  ;;  %6374 = vmatprep.subr.bf16.mxu0 %v8412_v16  ;;  %v8437_v55 = vld [vmem:[#allocation11 + $0xaa8] ss:$16 sps:$4 sm:$0xff]   ;;  %v8442_v16 = vld [vmem:[#allocation11 + $0x88c] ss:$16 sps:$4 sm:$0xff]  }
 0x29d   :  { %6445 = vmatprep.subr.bf16.mxu1 %v8415_v37 }
 0x29f   :  { %6375 = vmatpush2.bf16.msra.mxu0 %v8410_v28  ;;  %v8445_v28 = vld [vmem:[#allocation11 + $0xa8c] ss:$16 sps:$4 sm:$0xff]  }
 0x2a0   :  { %6446 = vmatpush2.bf16.msra.mxu1 %v8413_v50  ;;  %6376 = vmatprep.subr.bf16.mxu0 %v8418_v31  ;;  %v12269_v31 = vld [vmem:[#allocation33_spill] sm:$0xff] }
 0x2a1   :  { %6447 = vmatprep.subr.bf16.mxu1 %v8421_v8 }
 0x2a3   :  { %6377 = vmatpush2.bf16.msra.mxu0 %v8416_v52  ;;  %v12270_v52 = vld [vmem:[#allocation39_spill] sm:$0xff] }
 0x2a4   :  { %6448 = vmatpush2.bf16.msra.mxu1 %v8419_v35  ;;  %6488 = vmatprep.subr.bf16.mxu0 %v8424_v53  ;;  %v5954_v12 = vpop.f32.mrf.mxu0  ;;  %v8440_v35 = vld [vmem:[#allocation11 + $0x888] ss:$16 sps:$4 sm:$0xff]  }
 0x2a5   :  { %6559 = vmatprep.subr.bf16.mxu1 %v8427_v4  ;;  %v5955_v33 = vadd.f32 %v5954_v12, %v10974_v49  ;;  %v6025_v38 = vpop.f32.mrf.mxu1  ;;  %v12267_v49 = vld [vmem:[#allocation26_spill] sm:$0xff]  ;;  %v8448_v4 = vld [vmem:[#allocation11 + $0x86c] ss:$16 sps:$4 sm:$0xff]  }
 0x2a6   :  { %6379 = vmatmul.mubr.bf16.vlgmr.msra.gmra.mxu0 %v12265_v42  ;;  %v5956_v43 = vpop.f32.mrf.mxu0 }
 0x2a7   :  { %6450 = vmatmul.mubr.bf16.vlgmr.msra.gmra.mxu1 %v12266_v19  ;;  %6489 = vmatpush1.bf16.msra.mxu0 %v8422_v15  ;;  %v11093_v59 = vadd.f32 %v6025_v38, %v5955_v33  ;;  %v5957_v30 = vadd.f32 %v5956_v43, %v10976_v61  ;;  %v6027_v48 = vpop.f32.mrf.mxu1  ;;  %v8446_v38 = vld [vmem:[#allocation11 + $0x868] ss:$16 sps:$4 sm:$0xff]  }
 0x2a8   :  { %6560 = vmatpush1.bf16.msra.mxu1 %v8425_v34  ;;  %6490 = vmatprep.subr.bf16.mxu0 %v8430_v63  ;;  %v5958_v6 = vpop.f32.mrf.mxu0  ;;  %v12271_v34 = vld [vmem:[#allocation52_spill] sm:$0xff]  ;;  %v8451_v63 = vld [vmem:[#allocation11 + $0xa6c] ss:$16 sps:$4 sm:$0xff]   ;;  %v8449_v43 = vld [vmem:[#allocation11 + $0xa68] ss:$16 sps:$4 sm:$0xff]  }
 0x2a9   :  { %6561 = vmatprep.subr.bf16.mxu1 %v8433_v7  ;;  %6388 = vmatprep.mubr.bf16.mxu0 %v12267_v49  ;;  %v11097_v3 = vadd.f32 %v6027_v48, %v5957_v30  ;;  %v5959_v24 = vadd.f32 %v5958_v6, %v10982_v5  ;;  %v6029_v62 = vpop.f32.mrf.mxu1  ;;  %v12272_v7 = vld [vmem:[#allocation69_spill] sm:$0xff] }
 0x2aa   :  { %6459 = vmatprep.mubr.bf16.mxu1 %v12268_v20  ;;  %v5960_v17 = vpop.f32.mrf.mxu0  ;;  %v8457_v48 = vld [vmem:[#allocation11 + $0xa4c] ss:$16 sps:$4 sm:$0xff]   ;;  %v8452_v49 = vld [vmem:[#allocation11 + $0x848] ss:$16 sps:$4 sm:$0xff]  }
 0x2ab   :  { %6491 = vmatpush1.bf16.msra.mxu0 %v8428_v0  ;;  %v11101_v61 = vadd.f32 %v6029_v62, %v5959_v24  ;;  %v5961_v25 = vadd.f32 %v5960_v17, %v10984_v46  ;;  %v6031_v37 = vpop.f32.mrf.mxu1  ;;  %v8443_v46 = vld [vmem:[#allocation11 + $0xa88] ss:$16 sps:$4 sm:$0xff]   ;;  %v8454_v0 = vld [vmem:[#allocation11 + $0x84c] ss:$16 sps:$4 sm:$0xff]  }
 0x2ac   :  { %6562 = vmatpush1.bf16.msra.mxu1 %v8431_v2  ;;  %6492 = vmatprep.subr.bf16.mxu0 %v8436_v57  ;;  %v5964_v5 = vpop.f32.mrf.mxu0  ;;  %v12273_v57 = vld [vmem:[#allocation57_spill] sm:$0xff] }
 0x2ad   :  { %6563 = vmatprep.subr.bf16.mxu1 %v8439_v44  ;;  %v11104_v50 = vadd.f32 %v6031_v37, %v5961_v25  ;;  %v5965_v8 = vadd.f32 %v5964_v5, %v10994_v58  ;;  %v8455_v62 = vld [vmem:[#allocation11 + $0xa48] ss:$16 sps:$4 sm:$0xff]   ;;  %v8460_v20 = vld [vmem:[#allocation11 + $0x82c] ss:$16 sps:$4 sm:$0xff]   ;;  %v12276_v37 = vld [vmem:[#allocation86_spill] sm:$0xff] }
 0x2ae   :  { %6389 = vmatmul.mubr.bf16.gmra.mxu0 %v12269_v31  ;;  %v5966_v53 = vpop.f32.mrf.mxu0  ;;  %v8463_v25 = vld [vmem:[#allocation11 + $0xa2c] ss:$16 sps:$4 sm:$0xff]   ;;  %v8458_v5 = vld [vmem:[#allocation11 + $0x828] ss:$16 sps:$4 sm:$0xff]  }
 0x2af   :  { %6493 = vmatpush1.bf16.msra.mxu0 %v8434_v23  ;;  %6460 = vmatmul.mubr.bf16.gmra.mxu1 %v12270_v52  ;;  %v5967_v15 = vadd.f32 %v5966_v53, %v11005_v29  ;;  %v12275_v23 = vld [vmem:[#allocation45_spill] sm:$0xff] }
 0x2b0   :  { %6564 = vmatpush1.bf16.msra.mxu1 %v8437_v55  ;;  %6494 = vmatprep.subr.bf16.mxu0 %v8442_v16  ;;  %v5968_v12 = vpop.f32.mrf.mxu0  ;;  %v8466_v52 = vld [vmem:[#allocation11 + $0x80c] ss:$16 sps:$4 sm:$0xff]  }
 0x2b1   :  { %6565 = vmatprep.subr.bf16.mxu1 %v8445_v28  ;;  %6398 = vmatprep.mubr.bf16.mxu0 %v12271_v34  ;;  %v6035_v33 = vpop.f32.mrf.mxu1  ;;  %v5969_v58 = vadd.f32 %v5968_v12, %v11020_v45  ;;  %v12274_v45 = vld [vmem:[#allocation70_spill] sm:$0xff]  ;;  %v8469_v53 = vld [vmem:[#allocation11 + $0xa0c] ss:$16 sps:$4 sm:$0xff]   ;;  %v8464_v12 = vld [vmem:[#allocation11 + $0x808] ss:$16 sps:$4 sm:$0xff]  }
 0x2b2   :  { %6469 = vmatprep.mubr.bf16.mxu1 %v12272_v7  ;;  %v11113_v42 = vadd.f32 %v6035_v33, %v5965_v8  ;;  %v5970_v19 = vpop.f32.mrf.mxu0  ;;  %v8461_v8 = vld [vmem:[#allocation11 + $0xa28] ss:$16 sps:$4 sm:$0xff]  }
 0x2b3   :  { %6495 = vmatpush1.bf16.msra.mxu0 %v8440_v35  ;;  %v6037_v29 = vpop.f32.mrf.mxu1  ;;  %v5971_v30 = vadd.f32 %v5970_v19, %v11024_v47  ;;  %v8467_v33 = vld [vmem:[#allocation11 + $0xa08] ss:$16 sps:$4 sm:$0xff]  }
 0x2b4   :  { %6566 = vmatpush1.bf16.msra.mxu1 %v8443_v46  ;;  %6496 = vmatprep.subr.bf16.mxu0 %v8448_v4  ;;  %v11116_v2 = vadd.f32 %v6037_v29, %v5967_v15  ;;  %v12277_v15 = vld [vmem:[#allocation46_spill] sm:$0xff]  ;;  %v12279_v19 = vld [vmem:[#allocation121_spill] sm:$0xff] }
 0x2b5   :  { %6567 = vmatprep.subr.bf16.mxu1 %v8451_v63  ;;  %v6039_v6 = vpop.f32.mrf.mxu1  ;;  %v12278_v63 = vld [vmem:[#allocation87_spill] sm:$0xff] }
 0x2b6   :  { %6399 = vmatmul.mubr.bf16.gmra.mxu0 %v12273_v57  ;;  %v11120_v44 = vadd.f32 %v6039_v6, %v5969_v58  ;;  %v5974_v24 = vpop.f32.mrf.mxu0  ;;  %v8470_v29 = vld [vmem:[#allocation11 + $0x9e8] ss:$16 sps:$4 sm:$0xff]   ;;  %v8478_v57 = vld [vmem:[#allocation11 + $0x9cc] ss:$16 sps:$4 sm:$0xff]  }
 0x2b7   :  { %6497 = vmatpush1.bf16.msra.mxu0 %v8446_v38  ;;  %6470 = vmatmul.mubr.bf16.gmra.mxu1 %v12274_v45  ;;  %v5975_v47 = vadd.f32 %v5974_v24, %v11035_v40  ;;  %v6041_v17 = vpop.f32.mrf.mxu1  ;;  %v8475_v38 = vld [vmem:[#allocation11 + $0xbec] ss:$16 sps:$4 sm:$0xff]   ;;  %v8476_v45 = vld [vmem:[#allocation11 + $0x9c8] ss:$16 sps:$4 sm:$0xff]  }
 0x2b8   :  { %6568 = vmatpush1.bf16.msra.mxu1 %v8449_v43  ;;  %6498 = vmatprep.subr.bf16.mxu0 %v8454_v0  ;;  %v11124_v55 = vadd.f32 %v6041_v17, %v5971_v30  ;;  %v5976_v16 = vpop.f32.mrf.mxu0  ;;  %v12280_v0 = vld [vmem:[#allocation123_spill] sm:$0xff] }
 0x2b9   :  { %6569 = vmatprep.subr.bf16.mxu1 %v8457_v48  ;;  %6408 = vmatprep.mubr.bf16.mxu0 %v12275_v23  ;;  %v5977_v28 = vadd.f32 %v5976_v16, %v11046_v41  ;;  %v8473_v48 = vld [vmem:[#allocation11 + $0xbe8] ss:$16 sps:$4 sm:$0xff]   ;;  %v8481_v6 = vld [vmem:[#allocation11 + $0xbcc] ss:$16 sps:$4 sm:$0xff]  }
 0x2ba   :  { %6479 = vmatprep.mubr.bf16.mxu1 %v12276_v37  ;;  %v5978_v31 = vpop.f32.mrf.mxu0  ;;  %v8484_v24 = vld [vmem:[#allocation11 + $0x9ac] ss:$16 sps:$4 sm:$0xff]   ;;  %v8482_v17 = vld [vmem:[#allocation11 + $0x9a8] ss:$16 sps:$4 sm:$0xff]  }
 0x2bb   :  { %6499 = vmatpush1.bf16.msra.mxu0 %v8452_v49  ;;  %v6045_v40 = vpop.f32.mrf.mxu1  ;;  %v5979_v35 = vadd.f32 %v5978_v31, %v11053_v14  ;;  %v8472_v14 = vld [vmem:[#allocation11 + $0x9ec] ss:$16 sps:$4 sm:$0xff]   ;;  %v8479_v49 = vld [vmem:[#allocation11 + $0xbc8] ss:$16 sps:$4 sm:$0xff]  }
 0x2bc   :  { %6570 = vmatpush1.bf16.msra.mxu1 %v8455_v62  ;;  %6500 = vmatprep.subr.bf16.mxu0 %v8460_v20  ;;  %v11129_v46 = vadd.f32 %v6045_v40, %v5975_v47  ;;  %v5980_v4 = vpop.f32.mrf.mxu0  ;;  %v8487_v62 = vld [vmem:[#allocation11 + $0xbac] ss:$16 sps:$4 sm:$0xff]   ;;  %v8488_v40 = vld [vmem:[#allocation11 + $0x988] ss:$16 sps:$4 sm:$0xff]  }
 0x2bd   :  { %6571 = vmatprep.subr.bf16.mxu1 %v8463_v25  ;;  %v6047_v34 = vpop.f32.mrf.mxu1  ;;  %v5981_v41 = vadd.f32 %v5980_v4, %v11057_v26  ;;  %v8485_v25 = vld [vmem:[#allocation11 + $0xba8] ss:$16 sps:$4 sm:$0xff]   ;;  %v8490_v16 = vld [vmem:[#allocation11 + $0x98c] ss:$16 sps:$4 sm:$0xff]  }
 0x2be   :  { %6409 = vmatmul.mubr.bf16.gmra.mxu0 %v12277_v15  ;;  %v11134_v7 = vadd.f32 %v6047_v34, %v5977_v28  ;;  %v8499_v15 = vld [vmem:[#allocation11 + $0xb6c] ss:$16 sps:$4 sm:$0xff]  }
 0x2bf   :  { %6501 = vmatpush1.bf16.msra.mxu0 %v8458_v5  ;;  %6480 = vmatmul.mubr.bf16.gmra.mxu1 %v12278_v63  ;;  %v6049_v58 = vpop.f32.mrf.mxu1  ;;  %v8493_v5 = vld [vmem:[#allocation11 + $0xb8c] ss:$16 sps:$4 sm:$0xff]   ;;  %v8497_v63 = vld [vmem:[#allocation11 + $0xb68] ss:$16 sps:$4 sm:$0xff]  }
 0x2c0   :  { %6572 = vmatpush1.bf16.msra.mxu1 %v8461_v8  ;;  %6502 = vmatprep.subr.bf16.mxu0 %v8466_v52  ;;  %v11137_v43 = vadd.f32 %v6049_v58, %v5979_v35  ;;  %v8503_v58 = vld [vmem:[#allocation11 + $0xb48] ss:$16 sps:$4 sm:$0xff]  }
 0x2c1   :  { %6573 = vmatprep.subr.bf16.mxu1 %v8469_v53  ;;  %6520 = vmatprep.mubr.bf16.mxu0 %v12279_v19  ;;  %v6051_v26 = vpop.f32.mrf.mxu1  ;;  %v8496_v53 = vld [vmem:[#allocation11 + $0x96c] ss:$16 sps:$4 sm:$0xff]  }
 0x2c2   :  { %6591 = vmatprep.mubr.bf16.mxu1 %v12280_v0  ;;  %v11140_v30 = vadd.f32 %v6051_v26, %v5981_v41  ;;  %v8511_v19 = vld [vmem:[#allocation11 + $0xb2c] ss:$16 sps:$4 sm:$0xff]   ;;  %v8506_v0 = vld [vmem:[#allocation11 + $0x928] ss:$16 sps:$4 sm:$0xff]  }
 0x2c3   :  { %6503 = vmatpush1.bf16.msra.mxu0 %v8464_v12  ;;  %v8502_v12 = vld [vmem:[#allocation11 + $0x94c] ss:$16 sps:$4 sm:$0xff]   ;;  %v8509_v26 = vld [vmem:[#allocation11 + $0xb28] ss:$16 sps:$4 sm:$0xff]  }
 0x2c4   :  { %6574 = vmatpush1.bf16.msra.mxu1 %v8467_v33  ;;  %6504 = vmatprep.subr.bf16.mxu0 %v8472_v14  ;;  %v8505_v33 = vld [vmem:[#allocation11 + $0xb4c] ss:$16 sps:$4 sm:$0xff]   ;;  %v8500_v14 = vld [vmem:[#allocation11 + $0x948] ss:$16 sps:$4 sm:$0xff]  }
 0x2c5   :  { %6575 = vmatprep.subr.bf16.mxu1 %v8475_v38  ;;  %v8508_v38 = vld [vmem:[#allocation11 + $0x92c] ss:$16 sps:$4 sm:$0xff]  }
 0x2c7   :  { %6505 = vmatpush2.bf16.msra.mxu0 %v8470_v29  ;;  %v8514_v29 = vld [vmem:[#allocation11 + $0x90c] ss:$16 sps:$4 sm:$0xff]  }
 0x2c8   :  { %6576 = vmatpush2.bf16.msra.mxu1 %v8473_v48  ;;  %6506 = vmatprep.subr.bf16.mxu0 %v8478_v57  ;;  %v8517_v48 = vld [vmem:[#allocation11 + $0xb0c] ss:$16 sps:$4 sm:$0xff]   ;;  %v8512_v57 = vld [vmem:[#allocation11 + $0x908] ss:$16 sps:$4 sm:$0xff]  }
 0x2c9   :  { %6577 = vmatprep.subr.bf16.mxu1 %v8481_v6  ;;  %v8515_v6 = vld [vmem:[#allocation11 + $0xb08] ss:$16 sps:$4 sm:$0xff]  }
 0x2ca   :  { %v5984_v20 = vpop.f32.mrf.mxu0 }
 0x2cb   :  { %v5985_v47 = vadd.f32 %v5984_v20, %v11064_v11  ;;  %6507 = vmatpush2.bf16.msra.mxu0 %v8476_v45  ;;  %v8491_v11 = vld [vmem:[#allocation11 + $0xb88] ss:$16 sps:$4 sm:$0xff]   ;;  %v8520_v45 = vld [vmem:[#allocation11 + $0xcec] ss:$16 sps:$4 sm:$0xff]  }
 0x2cc   :  { %v5986_v23 = vpop.f32.mrf.mxu0  ;;  %6578 = vmatpush2.bf16.msra.mxu1 %v8479_v49  ;;  %6508 = vmatprep.subr.bf16.mxu0 %v8484_v24  ;;  %v8523_v49 = vld [vmem:[#allocation11 + $0xeec] ss:$16 sps:$4 sm:$0xff]   ;;  %v8518_v24 = vld [vmem:[#allocation11 + $0xce8] ss:$16 sps:$4 sm:$0xff]  }
 0x2cd   :  { %v5987_v37 = vadd.f32 %v5986_v23, %v11068_v60  ;;  %v6055_v28 = vpop.f32.mrf.mxu1  ;;  %6579 = vmatprep.subr.bf16.mxu1 %v8487_v62  ;;  %v8494_v60 = vld [vmem:[#allocation11 + $0x968] ss:$16 sps:$4 sm:$0xff]   ;;  %v8526_v20 = vld [vmem:[#allocation11 + $0xccc] ss:$16 sps:$4 sm:$0xff]  }
 0x2ce   :  { %v11144_v31 = vadd.f32 %v6055_v28, %v5985_v47  ;;  %v5988_v8 = vpop.f32.mrf.mxu0  ;;  %v8521_v62 = vld [vmem:[#allocation11 + $0xee8] ss:$16 sps:$4 sm:$0xff]   ;;  %v8529_v47 = vld [vmem:[#allocation11 + $0xecc] ss:$16 sps:$4 sm:$0xff]  }
 0x2cf   :  { %v6057_v52 = vpop.f32.mrf.mxu1  ;;  %6509 = vmatpush2.bf16.msra.mxu0 %v8482_v17  ;;  %v12281_v23 = vld [vmem:[#allocation119_spill] sm:$0xff] }
 0x2d0   :  { %v11146_v35 = vadd.f32 %v6057_v52, %v5987_v37  ;;  %6580 = vmatpush2.bf16.msra.mxu1 %v8485_v25  ;;  %6510 = vmatprep.subr.bf16.mxu0 %v8490_v16  ;;  %v5989_v4 = vpop.f32.mrf.mxu0  ;;  %v12282_v37 = vld [vmem:[#allocation120_spill] sm:$0xff]  ;;  %v8524_v28 = vld [vmem:[#allocation11 + $0xcc8] ss:$16 sps:$4 sm:$0xff]   ;;  %v8532_v52 = vld [vmem:[#allocation11 + $0xcac] ss:$16 sps:$4 sm:$0xff]  }
 0x2d1   :  { %6581 = vmatprep.subr.bf16.mxu1 %v8493_v5  ;;  %v6059_v34 = vpop.f32.mrf.mxu1  ;;  %v8527_v8 = vld [vmem:[#allocation11 + $0xec8] ss:$16 sps:$4 sm:$0xff]   ;;  %v12283_v4 = vld [vmem:[#allocation122_spill] sm:$0xff] }
 0x2d2   :  { %v12284_v34 = vld [vmem:[#allocation83_spill] sm:$0xff] }
 0x2d3   :  { %6511 = vmatpush2.bf16.msra.mxu0 %v8488_v40  ;;  %v6060_v41 = vpop.f32.mrf.mxu1 }
 0x2d4   :  { %6582 = vmatpush2.bf16.msra.mxu1 %v8491_v11  ;;  %6512 = vmatprep.subr.bf16.mxu0 %v8496_v53 }
 0x2d5   :  { %6583 = vmatprep.subr.bf16.mxu1 %v8499_v15  ;;  %v8535_v15 = vld [vmem:[#allocation11 + $0xeac] ss:$16 sps:$4 sm:$0xff]  }
 0x2d7   :  { %6513 = vmatpush2.bf16.msra.mxu0 %v8494_v60 }
 0x2d8   :  { %6584 = vmatpush2.bf16.msra.mxu1 %v8497_v63  ;;  %6514 = vmatprep.subr.bf16.mxu0 %v8502_v12  ;;  %v8530_v12 = vld [vmem:[#allocation11 + $0xca8] ss:$16 sps:$4 sm:$0xff]  }
 0x2d9   :  { %6585 = vmatprep.subr.bf16.mxu1 %v8505_v33 }
 0x2db   :  { %6515 = vmatpush2.bf16.msra.mxu0 %v8500_v14  ;;  %v8533_v14 = vld [vmem:[#allocation11 + $0xea8] ss:$16 sps:$4 sm:$0xff]  }
 0x2dc   :  { %6586 = vmatpush2.bf16.msra.mxu1 %v8503_v58  ;;  %6516 = vmatprep.subr.bf16.mxu0 %v8508_v38 }
 0x2dd   :  { %6587 = vmatprep.subr.bf16.mxu1 %v8511_v19 }
 0x2df   :  { %6517 = vmatpush2.bf16.msra.mxu0 %v8506_v0  ;;  %v8541_v0 = vld [vmem:[#allocation11 + $0xe8c] ss:$16 sps:$4 sm:$0xff]  }
 0x2e0   :  { %6588 = vmatpush2.bf16.msra.mxu1 %v8509_v26  ;;  %6518 = vmatprep.subr.bf16.mxu0 %v8514_v29  ;;  %v12285_v29 = vld [vmem:[#allocation82_spill] sm:$0xff] }
 0x2e1   :  { %6589 = vmatprep.subr.bf16.mxu1 %v8517_v48 }
 0x2e3   :  { %6519 = vmatpush2.bf16.msra.mxu0 %v8512_v57 }
 0x2e4   :  { %6590 = vmatpush2.bf16.msra.mxu1 %v8515_v6  ;;  %6630 = vmatprep.subr.bf16.mxu0 %v8520_v45  ;;  %v12286_v45 = vld [vmem:[#allocation84_spill] sm:$0xff] }
 0x2e5   :  { %6701 = vmatprep.subr.bf16.mxu1 %v8523_v49  ;;  %v8536_v49 = vld [vmem:[#allocation11 + $0xc88] ss:$16 sps:$4 sm:$0xff]  }
 0x2e6   :  { %v6096_v17 = vpop.f32.mrf.mxu0  ;;  %6521 = vmatmul.mubr.bf16.vlgmr.msra.gmra.mxu0 %v12281_v23  ;;  %v6167_v16 = vpop.f32.mrf.mxu1 }
 0x2e7   :  { %v6097_v25 = vadd.f32 %v6096_v17, %v11093_v59  ;;  %6592 = vmatmul.mubr.bf16.vlgmr.msra.gmra.mxu1 %v12282_v37  ;;  %6631 = vmatpush1.bf16.msra.mxu0 %v8518_v24  ;;  %v8539_v24 = vld [vmem:[#allocation11 + $0xe88] ss:$16 sps:$4 sm:$0xff]   ;;  %v12288_v37 = vld [vmem:[#allocation40_spill] sm:$0xff] }
 0x2e8   :  { %6702 = vmatpush1.bf16.msra.mxu1 %v8521_v62  ;;  %v6098_v5 = vpop.f32.mrf.mxu0  ;;  %6632 = vmatprep.subr.bf16.mxu0 %v8526_v20  ;;  %v6169_v53 = vpop.f32.mrf.mxu1  ;;  %v8544_v62 = vld [vmem:[#allocation11 + $0xc6c] ss:$16 sps:$4 sm:$0xff]  }
 0x2e9   :  { %v11151_v40 = vadd.f32 %v6167_v16, %v6097_v25  ;;  %v6099_v11 = vadd.f32 %v6098_v5, %v11097_v3  ;;  %6703 = vmatprep.subr.bf16.mxu1 %v8529_v47  ;;  %6530 = vmatprep.mubr.bf16.mxu0 %v12283_v4  ;;  %v8538_v3 = vld [vmem:[#allocation11 + $0xc8c] ss:$16 sps:$4 sm:$0xff]  }
 0x2ea   :  { %v6100_v59 = vpop.f32.mrf.mxu0  ;;  %6601 = vmatprep.mubr.bf16.mxu1 %v12284_v34  ;;  %v6171_v63 = vpop.f32.mrf.mxu1  ;;  %v8547_v25 = vld [vmem:[#allocation11 + $0xe6c] ss:$16 sps:$4 sm:$0xff]  }
 0x2eb   :  { %v11156_v60 = vadd.f32 %v6169_v53, %v6099_v11  ;;  %v6101_v41 = vadd.f32 %v6100_v59, %v11101_v61  ;;  %6633 = vmatpush1.bf16.msra.mxu0 %v8524_v28  ;;  %v8542_v11 = vld [vmem:[#allocation11 + $0xc68] ss:$16 sps:$4 sm:$0xff]   ;;  %v8550_v4 = vld [vmem:[#allocation11 + $0xc4c] ss:$16 sps:$4 sm:$0xff]  }
 0x2ec   :  { %6704 = vmatpush1.bf16.msra.mxu1 %v8527_v8  ;;  %v6102_v33 = vpop.f32.mrf.mxu0  ;;  %6634 = vmatprep.subr.bf16.mxu0 %v8532_v52  ;;  %v6173_v19 = vpop.f32.mrf.mxu1  ;;  %v8545_v53 = vld [vmem:[#allocation11 + $0xe68] ss:$16 sps:$4 sm:$0xff]  }
 0x2ed   :  { %v11159_v58 = vadd.f32 %v6171_v63, %v6101_v41  ;;  %v6103_v38 = vadd.f32 %v6102_v33, %v11104_v50  ;;  %6705 = vmatprep.subr.bf16.mxu1 %v8535_v15  ;;  %v8553_v63 = vld [vmem:[#allocation11 + $0xe4c] ss:$16 sps:$4 sm:$0xff]  }
 0x2ee   :  { %v6106_v26 = vpop.f32.mrf.mxu0  ;;  %6531 = vmatmul.mubr.bf16.gmra.mxu0 %v12285_v29  ;;  %v8556_v29 = vld [vmem:[#allocation11 + $0xc2c] ss:$16 sps:$4 sm:$0xff]  }
 0x2ef   :  { %v6772_v61 = vadd.f32 %v11159_v58, %v11151_v40  ;;  %v11165_v48 = vadd.f32 %v6173_v19, %v6103_v38  ;;  %v6107_v57 = vadd.f32 %v6106_v26, %v11113_v42  ;;  %6635 = vmatpush1.bf16.msra.mxu0 %v8530_v12  ;;  %v6177_v6 = vpop.f32.mrf.mxu1  ;;  %6602 = vmatmul.mubr.bf16.gmra.mxu1 %v12286_v45  ;;  %v12287_v42 = vld [vmem:[#allocation88_spill] sm:$0xff]  ;;  %v12289_v12 = vld [vmem:[#allocation89_spill] sm:$0xff]  ;;  %v12290_v19 = vld [vmem:[#allocation91_spill] sm:$0xff] }
 0x2f0   :  { %6706 = vmatpush1.bf16.msra.mxu1 %v8533_v14  ;;  %v6108_v50 = vpop.f32.mrf.mxu0  ;;  %6636 = vmatprep.subr.bf16.mxu0 %v8538_v3  ;;  %v8551_v26 = vld [vmem:[#allocation11 + $0xe48] ss:$16 sps:$4 sm:$0xff]  }
 0x2f1   :  { %v6786_v20 = vadd.f32 %v11165_v48, %v11156_v60  ;;  %v6109_v47 = vadd.f32 %v6108_v50, %v11116_v2  ;;  %v11172_v17 = vadd.f32 %v6177_v6, %v6107_v57  ;;  %v6179_v23 = vpop.f32.mrf.mxu1  ;;  %6707 = vmatprep.subr.bf16.mxu1 %v8541_v0  ;;  %6540 = vmatprep.mubr.bf16.mxu0 %v12287_v42  ;;  %v8548_v0 = vld [vmem:[#allocation11 + $0xc48] ss:$16 sps:$4 sm:$0xff]  }
 0x2f2   :  { %v6110_v16 = vpop.f32.mrf.mxu0  ;;  %6611 = vmatprep.mubr.bf16.mxu1 %v12288_v37  ;;  %v8554_v42 = vld [vmem:[#allocation11 + $0xc28] ss:$16 sps:$4 sm:$0xff]  }
 0x2f3   :  { %v6773_v28 = vadd.f32 %v6772_v61, %v11172_v17  ;;  %v6111_v5 = vadd.f32 %v6110_v16, %v11120_v44  ;;  %v11178_v8 = vadd.f32 %v6179_v23, %v6109_v47  ;;  %6637 = vmatpush1.bf16.msra.mxu0 %v8536_v49  ;;  %v6181_v52 = vpop.f32.mrf.mxu1  ;;  %v8559_v49 = vld [vmem:[#allocation11 + $0xe2c] ss:$16 sps:$4 sm:$0xff]  }
 0x2f4   :  { %6708 = vmatpush1.bf16.msra.mxu1 %v8539_v24  ;;  %v6112_v2 = vpop.f32.mrf.mxu0  ;;  %6638 = vmatprep.subr.bf16.mxu0 %v8544_v62  ;;  %v12292_v24 = vld [vmem:[#allocation61_spill] sm:$0xff] }
 0x2f5   :  { %v6787_v15 = vadd.f32 %v6786_v20, %v11178_v8  ;;  %v6113_v59 = vadd.f32 %v6112_v2, %v11124_v55  ;;  %v11182_v34 = vadd.f32 %v6181_v52, %v6111_v5  ;;  %v6183_v41 = vpop.f32.mrf.mxu1  ;;  %6709 = vmatprep.subr.bf16.mxu1 %v8547_v25  ;;  %v8557_v25 = vld [vmem:[#allocation11 + $0xe28] ss:$16 sps:$4 sm:$0xff]   ;;  %v8562_v16 = vld [vmem:[#allocation11 + $0xc0c] ss:$16 sps:$4 sm:$0xff]  }
 0x2f6   :  { %v6116_v44 = vpop.f32.mrf.mxu0  ;;  %6541 = vmatmul.mubr.bf16.gmra.mxu0 %v12289_v12  ;;  %v12293_v2 = vld [vmem:[#allocation51_spill] sm:$0xff] }
 0x2f7   :  { %v6774_v33 = vadd.f32 %v6773_v28, %v11182_v34  ;;  %v6117_v14 = vadd.f32 %v6116_v44, %v11129_v46  ;;  %v11187_v3 = vadd.f32 %v6183_v41, %v6113_v59  ;;  %6639 = vmatpush1.bf16.msra.mxu0 %v8542_v11  ;;  %v6187_v38 = vpop.f32.mrf.mxu1  ;;  %6612 = vmatmul.mubr.bf16.gmra.mxu1 %v12290_v19  ;;  %v12291_v46 = vld [vmem:[#allocation42_spill] sm:$0xff]  ;;  %v8565_v11 = vld [vmem:[#allocation11 + $0xe0c] ss:$16 sps:$4 sm:$0xff]   ;;  %v8563_v44 = vld [vmem:[#allocation11 + $0xe08] ss:$16 sps:$4 sm:$0xff]  }
 0x2f8   :  { %6710 = vmatpush1.bf16.msra.mxu1 %v8545_v53  ;;  %v6118_v55 = vpop.f32.mrf.mxu0  ;;  %6640 = vmatprep.subr.bf16.mxu0 %v8550_v4  ;;  %v12294_v41 = vld [vmem:[#allocation62_spill] sm:$0xff]  ;;  %v8568_v12 = vld [vmem:[#allocation11 + $0xdec] ss:$16 sps:$4 sm:$0xff]  }
 0x2f9   :  { %v6788_v61 = vadd.f32 %v6787_v15, %v11187_v3  ;;  %v6119_v57 = vadd.f32 %v6118_v55, %v11134_v7  ;;  %v11192_v6 = vadd.f32 %v6187_v38, %v6117_v14  ;;  %v6189_v45 = vpop.f32.mrf.mxu1  ;;  %6711 = vmatprep.subr.bf16.mxu1 %v8553_v63  ;;  %6550 = vmatprep.mubr.bf16.mxu0 %v12291_v46  ;;  %v8560_v63 = vld [vmem:[#allocation11 + $0xc08] ss:$16 sps:$4 sm:$0xff]  }
 0x2fa   :  { %v6120_v50 = vpop.f32.mrf.mxu0  ;;  %6621 = vmatprep.mubr.bf16.mxu1 %v12292_v24 }
 0x2fb   :  { %v6775_v62 = vadd.f32 %v6774_v33, %v11192_v6  ;;  %v6121_v20 = vadd.f32 %v6120_v50, %v11137_v43  ;;  %v11198_v47 = vadd.f32 %v6189_v45, %v6119_v57  ;;  %6641 = vmatpush1.bf16.msra.mxu0 %v8548_v0  ;;  %v6191_v23 = vpop.f32.mrf.mxu1  ;;  %v12295_v0 = vld [vmem:[#allocation41_spill] sm:$0xff] }
 0x2fc   :  { %6712 = vmatpush1.bf16.msra.mxu1 %v8551_v26  ;;  %v6122_v7 = vpop.f32.mrf.mxu0  ;;  %6642 = vmatprep.subr.bf16.mxu0 %v8556_v29  ;;  %v12296_v26 = vld [vmem:[#allocation58_spill] sm:$0xff]  ;;  %v8566_v57 = vld [vmem:[#allocation11 + $0xde8] ss:$16 sps:$4 sm:$0xff]  }
 0x2fd   :  { %v6789_v37 = vadd.f32 %v6788_v61, %v11198_v47  ;;  %v6123_v28 = vadd.f32 %v6122_v7, %v11140_v30  ;;  %v11202_v5 = vadd.f32 %v6191_v23, %v6121_v20  ;;  %v6193_v52 = vpop.f32.mrf.mxu1  ;;  %6713 = vmatprep.subr.bf16.mxu1 %v8559_v49  ;;  %v8574_v49 = vld [vmem:[#allocation11 + $0xdcc] ss:$16 sps:$4 sm:$0xff]   ;;  %v8572_v7 = vld [vmem:[#allocation11 + $0xdc8] ss:$16 sps:$4 sm:$0xff]  }
 0x2fe   :  { %v6126_v43 = vpop.f32.mrf.mxu0  ;;  %6551 = vmatmul.mubr.bf16.gmra.mxu0 %v12293_v2  ;;  %v8578_v2 = vld [vmem:[#allocation11 + $0xda8] ss:$16 sps:$4 sm:$0xff]  }
 0x2ff   :  { %v6776_v53 = vadd.f32 %v6775_v62, %v11202_v5  ;;  %v6127_v4 = vadd.f32 %v6126_v43, %v11144_v31  ;;  %v11207_v15 = vadd.f32 %v6193_v52, %v6123_v28  ;;  %6643 = vmatpush1.bf16.msra.mxu0 %v8554_v42  ;;  %v6197_v59 = vpop.f32.mrf.mxu1  ;;  %6622 = vmatmul.mubr.bf16.gmra.mxu1 %v12294_v41  ;;  %v8571_v31 = vld [vmem:[#allocation11 + $0xfec] ss:$16 sps:$4 sm:$0xff]  }
 0x300   :  { %6714 = vmatpush1.bf16.msra.mxu1 %v8557_v25  ;;  %v6128_v30 = vpop.f32.mrf.mxu0  ;;  %6644 = vmatprep.subr.bf16.mxu0 %v8562_v16  ;;  %v8577_v62 = vld [vmem:[#allocation11 + $0xfcc] ss:$16 sps:$4 sm:$0xff]  }
 0x301   :  { %v6790_v33 = vadd.f32 %v6789_v37, %v11207_v15  ;;  %v6129_v14 = vadd.f32 %v6128_v30, %v11146_v35  ;;  %v11212_v38 = vadd.f32 %v6197_v59, %v6127_v4  ;;  %v6199_v19 = vpop.f32.mrf.mxu1  ;;  %6715 = vmatprep.subr.bf16.mxu1 %v8565_v11  ;;  %6662 = vmatprep.mubr.bf16.mxu0 %v12295_v0  ;;  %v8569_v35 = vld [vmem:[#allocation11 + $0xfe8] ss:$16 sps:$4 sm:$0xff]   ;;  %v8580_v28 = vld [vmem:[#allocation11 + $0xdac] ss:$16 sps:$4 sm:$0xff]  }
 0x302   :  { %v6130_v55 = vpop.f32.mrf.mxu0  ;;  %6733 = vmatprep.mubr.bf16.mxu1 %v12296_v26  ;;  %v8575_v37 = vld [vmem:[#allocation11 + $0xfc8] ss:$16 sps:$4 sm:$0xff]   ;;  %v8583_v52 = vld [vmem:[#allocation11 + $0xfac] ss:$16 sps:$4 sm:$0xff]  }
 0x303   :  { %v6778_v29 = vsel %vm347_vm0, %v11212_v38, 0.0  ;;  %v11218_v61 = vadd.f32 %v6199_v19, %v6129_v14  ;;  %6645 = vmatpush1.bf16.msra.mxu0 %v8560_v63  ;;  %v6201_v45 = vpop.f32.mrf.mxu1  ;;  %v8581_v59 = vld [vmem:[#allocation11 + $0xfa8] ss:$16 sps:$4 sm:$0xff]   ;;  %v8586_v41 = vld [vmem:[#allocation11 + $0xd8c] ss:$16 sps:$4 sm:$0xff]  }
 0x304   :  { %v6779_v46 = vadd.f32 %v6778_v29, %v6776_v53  ;;  %6716 = vmatpush1.bf16.msra.mxu1 %v8563_v44  ;;  %6646 = vmatprep.subr.bf16.mxu0 %v8568_v12  ;;  %v6131_v50 = vpop.f32.mrf.mxu0  ;;  %v8589_v63 = vld [vmem:[#allocation11 + $0xf8c] ss:$16 sps:$4 sm:$0xff]   ;;  %v8584_v12 = vld [vmem:[#allocation11 + $0xd88] ss:$16 sps:$4 sm:$0xff]  }
 0x305   :  { %v6791_v24 = vsel %vm347_vm0, %v11218_v61, 0.0  ;;  %6717 = vmatprep.subr.bf16.mxu1 %v8571_v31  ;;  %v6202_v20 = vpop.f32.mrf.mxu1  ;;  %v8587_v19 = vld [vmem:[#allocation11 + $0xf88] ss:$16 sps:$4 sm:$0xff]   ;;  %v8592_v31 = vld [vmem:[#allocation11 + $0xd6c] ss:$16 sps:$4 sm:$0xff]  }
 0x306   :  { %v6780_v23 = vrot.slane %v6779_v46, 4  ;;  %v6792_v42 = vadd.f32 %v6791_v24, %v6790_v33  ;;  %v8595_v0 = vld [vmem:[#allocation11 + $0xf6c] ss:$16 sps:$4 sm:$0xff]   ;;  %v8590_v29 = vld [vmem:[#allocation11 + $0xd68] ss:$16 sps:$4 sm:$0xff]  }
 0x307   :  { %6647 = vmatpush2.bf16.msra.mxu0 %v8566_v57 }
 0x308   :  { %v6781_v25 = vadd.f32 %v6780_v23, %v6779_v46  ;;  %v6793_v16 = vrot.slane %v6792_v42, 4  ;;  %6718 = vmatpush2.bf16.msra.mxu1 %v8569_v35  ;;  %6648 = vmatprep.subr.bf16.mxu0 %v8574_v49  ;;  %v8593_v49 = vld [vmem:[#allocation11 + $0xf68] ss:$16 sps:$4 sm:$0xff]  }
 0x309   :  { %6719 = vmatprep.subr.bf16.mxu1 %v8577_v62 }
 0x30a   :  { %v6782_v11 = vrot.slane %v6781_v25, 2  ;;  %v6794_v43 = vadd.f32 %v6793_v16, %v6792_v42  ;;  %v8599_v16 = vld [vmem:[#allocation11 + $0xf48] ss:$16 sps:$4 sm:$0xff]  }
 0x30b   :  { %6649 = vmatpush2.bf16.msra.mxu0 %v8572_v7 }
 0x30c   :  { %v6783_v53 = vadd.f32 %v6782_v11, %v6781_v25  ;;  %v6795_v4 = vrot.slane %v6794_v43, 2  ;;  %6720 = vmatpush2.bf16.msra.mxu1 %v8575_v37  ;;  %6650 = vmatprep.subr.bf16.mxu0 %v8580_v28  ;;  %v8604_v37 = vld [vmem:[#allocation11 + $0xd2c] ss:$16 sps:$4 sm:$0xff]  }
 0x30d   :  { %6721 = vmatprep.subr.bf16.mxu1 %v8583_v52 }
 0x30e   :  { %v6784_v30 = vrot.slane %v6783_v53, 1  ;;  %v6796_v44 = vadd.f32 %v6795_v4, %v6794_v43  ;;  %v8602_v43 = vld [vmem:[#allocation11 + $0xd28] ss:$16 sps:$4 sm:$0xff]  }
 0x30f   :  { %6651 = vmatpush2.bf16.msra.mxu0 %v8578_v2  ;;  %v8605_v4 = vld [vmem:[#allocation11 + $0xf28] ss:$16 sps:$4 sm:$0xff]  }
 0x310   :  { %v6785_v33 = vadd.f32 %v6784_v30, %v6783_v53  ;;  %v6797_v14 = vrot.slane %v6796_v44, 1  ;;  %6722 = vmatpush2.bf16.msra.mxu1 %v8581_v59  ;;  %6652 = vmatprep.subr.bf16.mxu0 %v8586_v41  ;;  %v8610_v59 = vld [vmem:[#allocation11 + $0xd0c] ss:$16 sps:$4 sm:$0xff]  }
 0x311   :  { %6723 = vmatprep.subr.bf16.mxu1 %v8589_v63  ;;  %v8613_v63 = vld [vmem:[#allocation11 + $0xf0c] ss:$16 sps:$4 sm:$0xff]  }
 0x312   :  { %v6825_v55 = vmul.f32 0.020408163, %v6785_v33  ;;  %v6798_v26 = vadd.f32 %v6797_v14, %v6796_v44  ;;  %v8608_v14 = vld [vmem:[#allocation11 + $0xd08] ss:$16 sps:$4 sm:$0xff]  }
 0x313   :  { %6653 = vmatpush2.bf16.msra.mxu0 %v8584_v12 }
 0x314   :  { %v11223_v57 = vsub.f32 %v11151_v40, %v6825_v55  ;;  %v11226_v45 = vsub.f32 %v11159_v58, %v6825_v55  ;;  %v11229_v46 = vsub.f32 %v11172_v17, %v6825_v55  ;;  %v11232_v35 = vsub.f32 %v11182_v34, %v6825_v55  ;;  %6724 = vmatpush2.bf16.msra.mxu1 %v8587_v19  ;;  %v8598_v58 = vld [vmem:[#allocation11 + $0xd4c] ss:$16 sps:$4 sm:$0xff]  }
 0x315   :  { %v11235_v50 = vsub.f32 %v11192_v6, %v6825_v55  ;;  %v11238_v24 = vsub.f32 %v11202_v5, %v6825_v55  ;;  %v11241_v40 = vsub.f32 %v11212_v38, %v6825_v55  ;;  %v6826_v62 = vmul.f32 0.020408163, %v6798_v26  ;;  %6654 = vmatprep.subr.bf16.mxu0 %v8592_v31  ;;  %6725 = vmatprep.subr.bf16.mxu1 %v8595_v0  ;;  %v8601_v17 = vld [vmem:[#allocation11 + $0xf4c] ss:$16 sps:$4 sm:$0xff]   ;;  %v8596_v38 = vld [vmem:[#allocation11 + $0xd48] ss:$16 sps:$4 sm:$0xff]  }
 0x316   :  { %v6857_v34 = vmul.f32 %v11223_v57, %v11223_v57  ;;  %v6861_v20 = vmul.f32 %v11226_v45, %v11226_v45  ;;  %v6865_v6 = vmul.f32 %v11229_v46, %v11229_v46  ;;  %v8611_v55 = vld [vmem:[#allocation11 + $0xf08] ss:$16 sps:$4 sm:$0xff]  }
 0x317   :  { %v11250_v5 = vsub.f32 %v11156_v60, %v6826_v62  ;;  %6655 = vmatpush2.bf16.msra.mxu0 %v8590_v29  ;;  %v11253_v42 = vsub.f32 %v11165_v48, %v6826_v62  ;;  %v11256_v7 = vsub.f32 %v11178_v8, %v6826_v62  ;;  %v11259_v25 = vsub.f32 %v11187_v3, %v6826_v62  ;;  %v8607_v48 = vld [vmem:[#allocation11 + $0xf2c] ss:$16 sps:$4 sm:$0xff]  }
 0x318   :  { %v6885_v23 = vadd.f32 %v6861_v20, %v6857_v34  ;;  %6726 = vmatpush2.bf16.msra.mxu1 %v8593_v49  ;;  %v11262_v28 = vsub.f32 %v11198_v47, %v6826_v62  ;;  %v11265_v60 = vsub.f32 %v11207_v15, %v6826_v62  ;;  %v11268_v52 = vsub.f32 %v11218_v61, %v6826_v62 }
 0x319   :  { %6656 = vmatprep.subr.bf16.mxu0 %v8598_v58  ;;  %6727 = vmatprep.subr.bf16.mxu1 %v8601_v17  ;;  %v6869_v8 = vmul.f32 %v11232_v35, %v11232_v35  ;;  %v6858_v11 = vmul.f32 %v11250_v5, %v11250_v5  ;;  %v6862_v47 = vmul.f32 %v11253_v42, %v11253_v42 }
 0x31a   :  { %v6886_v3 = vadd.f32 %v6885_v23, %v6865_v6  ;;  %v6873_v15 = vmul.f32 %v11235_v50, %v11235_v50  ;;  %v6866_v2 = vmul.f32 %v11256_v7, %v11256_v7  ;;  %v6881_v41 = vmul.f32 %v11241_v40, %v11241_v40 }
 0x31b   :  { %6657 = vmatpush2.bf16.msra.mxu0 %v8596_v38  ;;  %v6898_v53 = vadd.f32 %v6862_v47, %v6858_v11  ;;  %v6877_v30 = vmul.f32 %v11238_v24, %v11238_v24  ;;  %v6870_v12 = vmul.f32 %v11259_v25, %v11259_v25  ;;  %v6874_v31 = vmul.f32 %v11262_v28, %v11262_v28 }
 0x31c   :  { %v6887_v61 = vadd.f32 %v6886_v3, %v6869_v8  ;;  %6728 = vmatpush2.bf16.msra.mxu1 %v8599_v16  ;;  %6658 = vmatprep.subr.bf16.mxu0 %v8604_v37  ;;  %v6890_v26 = vsel %vm347_vm0, %v6881_v41, 0.0  ;;  %v6882_v29 = vmul.f32 %v11268_v52, %v11268_v52  ;;  %v6878_v62 = vmul.f32 %v11265_v60, %v11265_v60 }
 0x31d   :  { %6729 = vmatprep.subr.bf16.mxu1 %v8607_v48  ;;  %v6899_v33 = vadd.f32 %v6898_v53, %v6866_v2 }
 0x31e   :  { %v6888_v44 = vadd.f32 %v6887_v61, %v6873_v15  ;;  %v6903_v20 = vsel %vm347_vm0, %v6882_v29, 0.0 }
 0x31f   :  { %6659 = vmatpush2.bf16.msra.mxu0 %v8602_v43  ;;  %v6900_v0 = vadd.f32 %v6899_v33, %v6870_v12 }
 0x320   :  { %v6889_v19 = vadd.f32 %v6888_v44, %v6877_v30  ;;  %6730 = vmatpush2.bf16.msra.mxu1 %v8605_v4  ;;  %6660 = vmatprep.subr.bf16.mxu0 %v8610_v59 }
 0x321   :  { %6731 = vmatprep.subr.bf16.mxu1 %v8613_v63  ;;  %v6901_v58 = vadd.f32 %v6900_v0, %v6874_v31 }
 0x322   :  { %v6891_v49 = vadd.f32 %v6890_v26, %v6889_v19 }
 0x323   :  { %6661 = vmatpush2.bf16.msra.mxu0 %v8608_v14  ;;  %v6902_v34 = vadd.f32 %v6901_v58, %v6878_v62 }
 0x324   :  { %v6892_v17 = vrot.slane %v6891_v49, 4  ;;  %6732 = vmatpush2.bf16.msra.mxu1 %v8611_v55 }
 0x325   :  { %v6904_v38 = vadd.f32 %v6903_v20, %v6902_v34 }
 0x326   :  { %v6893_v6 = vadd.f32 %v6892_v17, %v6891_v49  ;;  %v6238_v23 = vpop.f32.mrf.mxu0  ;;  %6663 = vmatmul.mubr.bf16.vlgmr.msra.gmra.mxu0 %v10922_v51 }
 0x327   :  { %v6309_v16 = vpop.f32.mrf.mxu1  ;;  %6734 = vmatmul.mubr.bf16.vlgmr.msra.gmra.mxu1 %v10928_v22  ;;  %6672 = vmatprep.mubr.bf16.mxu0 %v10938_v27  ;;  %v6905_v48 = vrot.slane %v6904_v38, 4 }
 0x328   :  { %v6894_v37 = vrot.slane %v6893_v6, 2  ;;  %v11297_v8 = vadd.f32 %v6309_v16, %v6238_v23  ;;  %v6240_v3 = vpop.f32.mrf.mxu0  ;;  %6743 = vmatprep.mubr.bf16.mxu1 %v10956_v9 }
 0x329   :  { %v6311_v11 = vpop.f32.mrf.mxu1  ;;  %v6906_v15 = vadd.f32 %v6905_v48, %v6904_v38 }
 0x32a   :  { %v6895_v47 = vadd.f32 %v6894_v37, %v6893_v6  ;;  %v11300_v43 = vadd.f32 %v6311_v11, %v6240_v3  ;;  %v6242_v61 = vpop.f32.mrf.mxu0 }
 0x32b   :  { %v6313_v2 = vpop.f32.mrf.mxu1  ;;  %v6907_v53 = vrot.slane %v6906_v15, 2 }
 0x32c   :  { %v6896_v51 = vrot.slane %v6895_v47, 1  ;;  %v11302_v4 = vadd.f32 %v6313_v2, %v6242_v61  ;;  %v6244_v22 = vpop.f32.mrf.mxu0 }
 0x32d   :  { %v6315_v27 = vpop.f32.mrf.mxu1  ;;  %v6908_v41 = vadd.f32 %v6907_v53, %v6906_v15 }
 0x32e   :  { %v6897_v59 = vadd.f32 %v6896_v51, %v6895_v47  ;;  %v11304_v63 = vadd.f32 %v6315_v27, %v6244_v22  ;;  %6673 = vmatmul.mubr.bf16.gmra.mxu0 %v10990_v32  ;;  %v6248_v9 = vpop.f32.mrf.mxu0 }
 0x32f   :  { %6744 = vmatmul.mubr.bf16.gmra.mxu1 %v11000_v10  ;;  %6682 = vmatprep.mubr.bf16.mxu0 %v11011_v54  ;;  %v6319_v30 = vpop.f32.mrf.mxu1  ;;  %v6909_v12 = vrot.slane %v6908_v41, 1 }
 0x330   :  { %v6937_v44 = vmul.f32 0.020408163, %v6897_v59  ;;  %6753 = vmatprep.mubr.bf16.mxu1 %v11018_v18  ;;  %v11310_v33 = vadd.f32 %v6319_v30, %v6248_v9  ;;  %v6250_v14 = vpop.f32.mrf.mxu0 }
 0x331   :  { %v6321_v19 = vpop.f32.mrf.mxu1  ;;  %v6910_v31 = vadd.f32 %v6909_v12, %v6908_v41 }
 0x332   :  { %v11312_v0 = vadd.f32 %v6321_v19, %v6250_v14  ;;  %v6252_v55 = vpop.f32.mrf.mxu0  ;;  %v6942_v26 = vadd.f32 1e-05, %v6937_v44 }
 0x333   :  { %v6323_v32 = vpop.f32.mrf.mxu1  ;;  %v6938_v29 = vmul.f32 0.020408163, %v6910_v31 }
 0x334   :  { %v6324_v49 = vadd.f32 %v6323_v32, %v6252_v55  ;;  %v6254_v10 = vpop.f32.mrf.mxu0  ;;  %8646 = vrsqrt.f32 %v6942_v26 }
 0x335   :  { %v6325_v62 = vpop.f32.mrf.mxu1  ;;  %v6943_v54 = vadd.f32 1e-05, %v6938_v29 }
 0x336   :  { %6683 = vmatmul.mubr.bf16.gmra.mxu0 %v11031_v39  ;;  %v6326_v58 = vadd.f32 %v6325_v62, %v6254_v10  ;;  %v6258_v17 = vpop.f32.mrf.mxu0 }
 0x337   :  { %6754 = vmatmul.mubr.bf16.gmra.mxu1 %v11041_v36  ;;  %6692 = vmatprep.mubr.bf16.mxu0 %v11048_v1  ;;  %v6329_v18 = vpop.f32.mrf.mxu1  ;;  %8648 = vrsqrt.f32 %v6943_v54 }
 0x338   :  { %6763 = vmatprep.mubr.bf16.mxu1 %v11051_v21  ;;  %v6330_v34 = vadd.f32 %v6329_v18, %v6258_v17  ;;  %v6260_v20 = vpop.f32.mrf.mxu0 }
 0x339   :  { %v6331_v6 = vpop.f32.mrf.mxu1 }
 0x33a   :  { %v6332_v38 = vadd.f32 %v6331_v6, %v6260_v20  ;;  %v6262_v23 = vpop.f32.mrf.mxu0 }
 0x33b   :  { %v6333_v16 = vpop.f32.mrf.mxu1 }
 0x33c   :  { %v6334_v37 = vadd.f32 %v6333_v16, %v6262_v23  ;;  %v6264_v48 = vpop.f32.mrf.mxu0 }
 0x33d   :  { %v6335_v39 = vpop.f32.mrf.mxu1 }
 0x33e   :  { %6693 = vmatmul.mubr.bf16.gmra.mxu0 %v11060_v56  ;;  %v6336_v3 = vadd.f32 %v6335_v39, %v6264_v48  ;;  %v6268_v11 = vpop.f32.mrf.mxu0 }
 0x33f   :  { %6764 = vmatmul.mubr.bf16.gmra.mxu1 %v11066_v13  ;;  %v6339_v36 = vpop.f32.mrf.mxu1 }
 0x340   :  { %v6270_v1 = vpop.f32.mrf.mxu0  ;;  %v6340_v47 = vadd.f32 %v6339_v36, %v6268_v11 }
 0x341   :  { %v6341_v15 = vpop.f32.mrf.mxu1  ;;  %v11320_v51 = vpop.eup %8646 }
 0x342   :  { %v6272_v21 = vpop.f32.mrf.mxu0  ;;  %v6342_v61 = vadd.f32 %v6341_v15, %v6270_v1 }
 0x343   :  { %v6343_v2 = vpop.f32.mrf.mxu1 }
 0x344   :  { %v6273_v53 = vpop.f32.mrf.mxu0  ;;  %v11322_v22 = vpop.eup %8648 }
 0x345   :  { %v6344_v27 = vpop.f32.mrf.mxu1  ;;  %v6954_v56 = vcombine.low %v11320_v51, %v11322_v22 }
 0x366   :  { %v6380_v59 = vpop.f32.mrf.mxu0 }
 0x367   :  { %v6381_v41 = vadd.f32 %v6380_v59, %v11297_v8  ;;  %v6451_v13 = vpop.f32.mrf.mxu1 }
 0x368   :  { %v6382_v9 = vpop.f32.mrf.mxu0 }
 0x369   :  { %v6452_v30 = vadd.f32 %v6451_v13, %v6381_v41  ;;  %v6383_v44 = vadd.f32 %v6382_v9, %v11300_v43  ;;  %v6453_v12 = vpop.f32.mrf.mxu1 }
 0x36a   :  { %v6384_v14 = vpop.f32.mrf.mxu0 }
 0x36b   :  { %v6454_v19 = vadd.f32 %v6453_v12, %v6383_v44  ;;  %v6385_v31 = vadd.f32 %v6384_v14, %v11302_v4  ;;  %v6455_v55 = vpop.f32.mrf.mxu1 }
 0x36c   :  { %v6386_v26 = vpop.f32.mrf.mxu0 }
 0x36d   :  { %v6456_v32 = vadd.f32 %v6455_v55, %v6385_v31  ;;  %v6387_v29 = vadd.f32 %v6386_v26, %v11304_v63  ;;  %v6457_v10 = vpop.f32.mrf.mxu1 }
 0x36e   :  { %v6390_v62 = vpop.f32.mrf.mxu0 }
 0x36f   :  { %v6458_v54 = vadd.f32 %v6457_v10, %v6387_v29  ;;  %v6391_v8 = vadd.f32 %v6390_v62, %v11310_v33  ;;  %v6461_v17 = vpop.f32.mrf.mxu1 }
 0x370   :  { %v6392_v18 = vpop.f32.mrf.mxu0 }
 0x371   :  { %v6393_v20 = vadd.f32 %v6392_v18, %v11312_v0  ;;  %v6462_v43 = vadd.f32 %v6461_v17, %v6391_v8  ;;  %v6463_v6 = vpop.f32.mrf.mxu1 }
 0x372   :  { %v6394_v23 = vpop.f32.mrf.mxu0 }
 0x373   :  { %v6395_v16 = vadd.f32 %v6394_v23, %v6324_v49  ;;  %v6464_v48 = vadd.f32 %v6463_v6, %v6393_v20  ;;  %v6465_v4 = vpop.f32.mrf.mxu1 }
 0x374   :  { %v6396_v39 = vpop.f32.mrf.mxu0 }
 0x375   :  { %v6397_v11 = vadd.f32 %v6396_v39, %v6326_v58  ;;  %v6466_v36 = vadd.f32 %v6465_v4, %v6395_v16  ;;  %v6467_v1 = vpop.f32.mrf.mxu1 }
 0x376   :  { %v6400_v63 = vpop.f32.mrf.mxu0 }
 0x377   :  { %v6401_v15 = vadd.f32 %v6400_v63, %v6330_v34  ;;  %v6468_v21 = vadd.f32 %v6467_v1, %v6397_v11  ;;  %v6471_v2 = vpop.f32.mrf.mxu1 }
 0x378   :  { %v6402_v53 = vpop.f32.mrf.mxu0 }
 0x379   :  { %v6403_v33 = vadd.f32 %v6402_v53, %v6332_v38  ;;  %v6472_v27 = vadd.f32 %v6471_v2, %v6401_v15  ;;  %v6473_v59 = vpop.f32.mrf.mxu1 }
 0x37a   :  { %v6404_v41 = vpop.f32.mrf.mxu0 }
 0x37b   :  { %v6405_v0 = vadd.f32 %v6404_v41, %v6334_v37  ;;  %v6474_v13 = vadd.f32 %v6473_v59, %v6403_v33  ;;  %v6475_v9 = vpop.f32.mrf.mxu1 }
 0x37c   :  { %v6406_v44 = vpop.f32.mrf.mxu0 }
 0x37d   :  { %v6407_v49 = vadd.f32 %v6406_v44, %v6336_v3  ;;  %v6476_v12 = vadd.f32 %v6475_v9, %v6405_v0  ;;  %v6477_v14 = vpop.f32.mrf.mxu1 }
 0x37e   :  { %v6410_v31 = vpop.f32.mrf.mxu0 }
 0x37f   :  { %v6411_v58 = vadd.f32 %v6410_v31, %v6340_v47  ;;  %v6478_v55 = vadd.f32 %v6477_v14, %v6407_v49  ;;  %v6481_v26 = vpop.f32.mrf.mxu1 }
 0x380   :  { %v6412_v29 = vpop.f32.mrf.mxu0 }
 0x381   :  { %v6413_v34 = vadd.f32 %v6412_v29, %v6342_v61  ;;  %v6482_v10 = vadd.f32 %v6481_v26, %v6411_v58  ;;  %v6483_v62 = vpop.f32.mrf.mxu1 }
 0x382   :  { %v6414_v8 = vpop.f32.mrf.mxu0 }
 0x383   :  { %v6484_v38 = vadd.f32 %v6483_v62, %v6413_v34  ;;  %v6485_v17 = vpop.f32.mrf.mxu1 }
 0x384   :  { %v6415_v18 = vpop.f32.mrf.mxu0 }
 0x385   :  { %v6486_v20 = vpop.f32.mrf.mxu1 }
 0x3a6   :  { %v6522_v37 = vpop.f32.mrf.mxu0 }
 0x3a7   :  { %v6523_v6 = vadd.f32 %v6522_v37, %v6452_v30  ;;  %v6593_v23 = vpop.f32.mrf.mxu1 }
 0x3a8   :  { %v6524_v16 = vpop.f32.mrf.mxu0 }
 0x3a9   :  { %v6594_v3 = vadd.f32 %v6593_v23, %v6523_v6  ;;  %v6525_v4 = vadd.f32 %v6524_v16, %v6454_v19  ;;  %v6595_v39 = vpop.f32.mrf.mxu1 }
 0x3aa   :  { %v6526_v11 = vpop.f32.mrf.mxu0 }
 0x3ab   :  { %v6596_v47 = vadd.f32 %v6595_v39, %v6525_v4  ;;  %v6527_v1 = vadd.f32 %v6526_v11, %v6456_v32  ;;  %v6597_v63 = vpop.f32.mrf.mxu1 }
 0x3ac   :  { %v6528_v15 = vpop.f32.mrf.mxu0 }
 0x3ad   :  { %v6598_v61 = vadd.f32 %v6597_v63, %v6527_v1  ;;  %v6529_v2 = vadd.f32 %v6528_v15, %v6458_v54  ;;  %v6599_v53 = vpop.f32.mrf.mxu1 }
 0x3ae   :  { %v6532_v33 = vpop.f32.mrf.mxu0 }
 0x3af   :  { %v6600_v59 = vadd.f32 %v6599_v53, %v6529_v2  ;;  %v6533_v41 = vadd.f32 %v6532_v33, %v6462_v43  ;;  %v6603_v0 = vpop.f32.mrf.mxu1 }
 0x3b0   :  { %v6534_v9 = vpop.f32.mrf.mxu0 }
 0x3b1   :  { %v6535_v44 = vadd.f32 %v6534_v9, %v6464_v48  ;;  %v6604_v30 = vadd.f32 %v6603_v0, %v6533_v41  ;;  %v6605_v49 = vpop.f32.mrf.mxu1 }
 0x3b2   :  { %v6536_v14 = vpop.f32.mrf.mxu0 }
 0x3b3   :  { %v6537_v31 = vadd.f32 %v6536_v14, %v6466_v36  ;;  %v6606_v19 = vadd.f32 %v6605_v49, %v6535_v44  ;;  %v6607_v58 = vpop.f32.mrf.mxu1 }
 0x3b4   :  { %v6538_v26 = vpop.f32.mrf.mxu0 }
 0x3b5   :  { %v6539_v29 = vadd.f32 %v6538_v26, %v6468_v21  ;;  %v6608_v32 = vadd.f32 %v6607_v58, %v6537_v31  ;;  %v6609_v34 = vpop.f32.mrf.mxu1 }
 0x3b6   :  { %v6542_v62 = vpop.f32.mrf.mxu0 }
 0x3b7   :  { %v6543_v8 = vadd.f32 %v6542_v62, %v6472_v27  ;;  %v6610_v54 = vadd.f32 %v6609_v34, %v6539_v29  ;;  %v6613_v17 = vpop.f32.mrf.mxu1 }
 0x3b8   :  { %v6544_v18 = vpop.f32.mrf.mxu0 }
 0x3b9   :  { %v6545_v20 = vadd.f32 %v6544_v18, %v6474_v13  ;;  %v6614_v43 = vadd.f32 %v6613_v17, %v6543_v8  ;;  %v6615_v37 = vpop.f32.mrf.mxu1 }
 0x3ba   :  { %v6546_v6 = vpop.f32.mrf.mxu0 }
 0x3bb   :  { %v6547_v48 = vadd.f32 %v6546_v6, %v6476_v12  ;;  %v6616_v23 = vadd.f32 %v6615_v37, %v6545_v20  ;;  %v6617_v16 = vpop.f32.mrf.mxu1 }
 0x3bc   :  { %v6548_v4 = vpop.f32.mrf.mxu0 }
 0x3bd   :  { %v6549_v36 = vadd.f32 %v6548_v4, %v6478_v55  ;;  %v11332_v39 = vadd.f32 %v6617_v16, %v6547_v48  ;;  %v6619_v11 = vpop.f32.mrf.mxu1 }
 0x3be   :  { %v6552_v21 = vpop.f32.mrf.mxu0 }
 0x3bf   :  { %v6553_v1 = vadd.f32 %v6552_v21, %v6482_v10  ;;  %v11334_v63 = vadd.f32 %v6619_v11, %v6549_v36  ;;  %v6623_v27 = vpop.f32.mrf.mxu1 }
 0x3c0   :  { %v6554_v15 = vpop.f32.mrf.mxu0 }
 0x3c1   :  { %v6555_v2 = vadd.f32 %v6554_v15, %v6484_v38  ;;  %v11336_v53 = vadd.f32 %v6623_v27, %v6553_v1  ;;  %v6625_v13 = vpop.f32.mrf.mxu1 }
 0x3c2   :  { %v6556_v33 = vpop.f32.mrf.mxu0 }
 0x3c3   :  { %v11338_v41 = vadd.f32 %v6625_v13, %v6555_v2  ;;  %v6627_v12 = vpop.f32.mrf.mxu1 }
 0x3c4   :  { %v6557_v0 = vpop.f32.mrf.mxu0 }
 0x3c5   :  { %v6628_v9 = vpop.f32.mrf.mxu1 }
 0x3e6   :  { %v6664_v55 = vpop.f32.mrf.mxu0 }
 0x3e7   :  { %v6735_v44 = vpop.f32.mrf.mxu1  ;;  %v6665_v14 = vadd.f32 %v6664_v55, %v6594_v3 }
 0x3e8   :  { %v6666_v49 = vpop.f32.mrf.mxu0 }
 0x3e9   :  { %v6737_v31 = vpop.f32.mrf.mxu1  ;;  %v6667_v58 = vadd.f32 %v6666_v49, %v6596_v47  ;;  %v11340_v38 = vadd.f32 %v6735_v44, %v6665_v14 }
 0x3ea   :  { %v6668_v10 = vpop.f32.mrf.mxu0 }
 0x3eb   :  { %v6669_v26 = vadd.f32 %v6668_v10, %v6598_v61  ;;  %v6739_v29 = vpop.f32.mrf.mxu1  ;;  %v11344_v20 = vadd.f32 %v6737_v31, %v6667_v58 }
 0x3ec   :  { %v6670_v34 = vpop.f32.mrf.mxu0 }
 0x3ed   :  { %v11342_v62 = vadd.f32 %v6739_v29, %v6669_v26  ;;  %v6671_v8 = vadd.f32 %v6670_v34, %v6600_v59  ;;  %v6741_v17 = vpop.f32.mrf.mxu1 }
 0x3ee   :  { %v6674_v18 = vpop.f32.mrf.mxu0 }
 0x3ef   :  { %v6799_v37 = vadd.f32 %v11342_v62, %v11340_v38  ;;  %v11348_v6 = vadd.f32 %v6741_v17, %v6671_v8  ;;  %v6675_v3 = vadd.f32 %v6674_v18, %v6604_v30  ;;  %v6745_v48 = vpop.f32.mrf.mxu1 }
 0x3f0   :  { %v6676_v47 = vpop.f32.mrf.mxu0 }
 0x3f1   :  { %v6812_v61 = vadd.f32 %v11348_v6, %v11344_v20  ;;  %v11352_v16 = vadd.f32 %v6745_v48, %v6675_v3  ;;  %v6677_v4 = vadd.f32 %v6676_v47, %v6606_v19  ;;  %v6747_v36 = vpop.f32.mrf.mxu1 }
 0x3f2   :  { %v6678_v59 = vpop.f32.mrf.mxu0 }
 0x3f3   :  { %v6800_v11 = vadd.f32 %v6799_v37, %v11352_v16  ;;  %v11355_v21 = vadd.f32 %v6747_v36, %v6677_v4  ;;  %v6679_v1 = vadd.f32 %v6678_v59, %v6608_v32  ;;  %v6749_v27 = vpop.f32.mrf.mxu1 }
 0x3f4   :  { %v6680_v15 = vpop.f32.mrf.mxu0 }
 0x3f5   :  { %v6813_v2 = vadd.f32 %v6812_v61, %v11355_v21  ;;  %v6750_v30 = vadd.f32 %v6749_v27, %v6679_v1  ;;  %v6681_v13 = vadd.f32 %v6680_v15, %v6610_v54  ;;  %v6751_v33 = vpop.f32.mrf.mxu1 }
 0x3f6   :  { %v6684_v12 = vpop.f32.mrf.mxu0 }
 0x3f7   :  { %v6801_v0 = vadd.f32 %v6800_v11, %v6750_v30  ;;  %v11358_v9 = vadd.f32 %v6751_v33, %v6681_v13  ;;  %v6685_v55 = vadd.f32 %v6684_v12, %v6614_v43  ;;  %v6755_v19 = vpop.f32.mrf.mxu1 }
 0x3f8   :  { %v6686_v44 = vpop.f32.mrf.mxu0 }
 0x3f9   :  { %v6814_v49 = vadd.f32 %v6813_v2, %v11358_v9  ;;  %v6756_v14 = vadd.f32 %v6755_v19, %v6685_v55  ;;  %v6687_v31 = vadd.f32 %v6686_v44, %v6616_v23  ;;  %v6757_v10 = vpop.f32.mrf.mxu1 }
 0x3fa   :  { %v6688_v32 = vpop.f32.mrf.mxu0 }
 0x3fb   :  { %v6802_v58 = vadd.f32 %v6801_v0, %v6756_v14  ;;  %v6758_v26 = vadd.f32 %v6757_v10, %v6687_v31  ;;  %v6689_v29 = vadd.f32 %v6688_v32, %v11332_v39  ;;  %v6759_v34 = vpop.f32.mrf.mxu1 }
 0x3fc   :  { %v6690_v54 = vpop.f32.mrf.mxu0 }
 0x3fd   :  { %v6815_v8 = vadd.f32 %v6814_v49, %v6758_v26  ;;  %v6760_v17 = vadd.f32 %v6759_v34, %v6689_v29  ;;  %v6691_v18 = vadd.f32 %v6690_v54, %v11334_v63  ;;  %v6761_v37 = vpop.f32.mrf.mxu1 }
 0x3fe   :  { %v6694_v43 = vpop.f32.mrf.mxu0 }
 0x3ff   :  { %v6803_v3 = vadd.f32 %v6802_v58, %v6760_v17  ;;  %v6762_v48 = vadd.f32 %v6761_v37, %v6691_v18  ;;  %v6695_v47 = vadd.f32 %v6694_v43, %v11336_v53  ;;  %v6765_v61 = vpop.f32.mrf.mxu1 }
 0x400   :  { %v6696_v23 = vpop.f32.mrf.mxu0 }
 0x401   :  { %v6816_v4 = vadd.f32 %v6815_v8, %v6762_v48  ;;  %v6766_v36 = vadd.f32 %v6765_v61, %v6695_v47  ;;  %v6697_v59 = vadd.f32 %v6696_v23, %v11338_v41  ;;  %v6767_v11 = vpop.f32.mrf.mxu1 }
 0x402   :  { %v6698_v39 = vpop.f32.mrf.mxu0 }
 0x403   :  { %v6804_v1 = vsel %vm347_vm0, %v6766_v36, 0.0  ;;  %v6768_v27 = vadd.f32 %v6767_v11, %v6697_v59  ;;  %v6769_v15 = vpop.f32.mrf.mxu1 }
 0x404   :  { %v6805_v2 = vadd.f32 %v6804_v1, %v6803_v3  ;;  %v6699_v63 = vpop.f32.mrf.mxu0 }
 0x405   :  { %v6817_v13 = vsel %vm347_vm0, %v6768_v27, 0.0  ;;  %v6770_v33 = vpop.f32.mrf.mxu1 }
 0x406   :  { %v6806_v12 = vrot.slane %v6805_v2, 4  ;;  %v6818_v0 = vadd.f32 %v6817_v13, %v6816_v4 }
 0x408   :  { %v6807_v53 = vadd.f32 %v6806_v12, %v6805_v2  ;;  %v6819_v55 = vrot.slane %v6818_v0, 4 }
 0x40a   :  { %v6808_v19 = vrot.slane %v6807_v53, 2  ;;  %v6820_v44 = vadd.f32 %v6819_v55, %v6818_v0 }
 0x40c   :  { %v6809_v49 = vadd.f32 %v6808_v19, %v6807_v53  ;;  %v6821_v31 = vrot.slane %v6820_v44, 2 }
 0x40e   :  { %v6810_v41 = vrot.slane %v6809_v49, 1  ;;  %v6822_v10 = vadd.f32 %v6821_v31, %v6820_v44 }
 0x410   :  { %v6811_v32 = vadd.f32 %v6810_v41, %v6809_v49  ;;  %v6823_v58 = vrot.slane %v6822_v10, 1 }
 0x412   :  { %v6827_v29 = vmul.f32 0.020408163, %v6811_v32  ;;  %v6824_v34 = vadd.f32 %v6823_v58, %v6822_v10 }
 0x414   :  { %v11368_v54 = vsub.f32 %v11340_v38, %v6827_v29  ;;  %v11371_v8 = vsub.f32 %v11342_v62, %v6827_v29  ;;  %v11374_v18 = vsub.f32 %v11352_v16, %v6827_v29  ;;  %v11376_v37 = vsub.f32 %v6750_v30, %v6827_v29 }
 0x415   :  { %v11378_v43 = vsub.f32 %v6756_v14, %v6827_v29  ;;  %v11380_v3 = vsub.f32 %v6760_v17, %v6827_v29  ;;  %v11382_v47 = vsub.f32 %v6766_v36, %v6827_v29  ;;  %v6828_v61 = vmul.f32 0.020408163, %v6824_v34 }
 0x416   :  { %v6859_v23 = vmul.f32 %v11368_v54, %v11368_v54  ;;  %v6863_v38 = vmul.f32 %v11371_v8, %v11371_v8  ;;  %v6867_v62 = vmul.f32 %v11374_v18, %v11374_v18 }
 0x417   :  { %v11391_v16 = vsub.f32 %v11344_v20, %v6828_v61  ;;  %v11394_v14 = vsub.f32 %v11348_v6, %v6828_v61  ;;  %v11397_v17 = vsub.f32 %v11355_v21, %v6828_v61  ;;  %v11400_v4 = vsub.f32 %v11358_v9, %v6828_v61 }
 0x418   :  { %v6911_v30 = vadd.f32 %v6863_v38, %v6859_v23  ;;  %v11402_v36 = vsub.f32 %v6758_v26, %v6828_v61  ;;  %v11404_v59 = vsub.f32 %v6762_v48, %v6828_v61  ;;  %v11406_v11 = vsub.f32 %v6768_v27, %v6828_v61 }
 0x419   :  { %v6871_v20 = vmul.f32 %v11376_v37, %v11376_v37  ;;  %v6860_v6 = vmul.f32 %v11391_v16, %v11391_v16  ;;  %v6864_v21 = vmul.f32 %v11394_v14, %v11394_v14  ;;  %v6875_v9 = vmul.f32 %v11378_v43, %v11378_v43 }
 0x41a   :  { %v6912_v39 = vadd.f32 %v6911_v30, %v6867_v62  ;;  %v6868_v26 = vmul.f32 %v11397_v17, %v11397_v17  ;;  %v6883_v27 = vmul.f32 %v11382_v47, %v11382_v47  ;;  %v6879_v15 = vmul.f32 %v11380_v3, %v11380_v3 }
 0x41b   :  { %v6924_v48 = vadd.f32 %v6864_v21, %v6860_v6  ;;  %v6872_v63 = vmul.f32 %v11400_v4, %v11400_v4  ;;  %v6876_v12 = vmul.f32 %v11402_v36, %v11402_v36  ;;  %v6884_v55 = vmul.f32 %v11406_v11, %v11406_v11 }
 0x41c   :  { %v6913_v1 = vadd.f32 %v6912_v39, %v6871_v20  ;;  %v6916_v53 = vsel %vm347_vm0, %v6883_v27, 0.0  ;;  %v6880_v44 = vmul.f32 %v11404_v59, %v11404_v59 }
 0x41d   :  { %v6925_v13 = vadd.f32 %v6924_v48, %v6868_v26  ;;  %v6929_v10 = vsel %vm347_vm0, %v6884_v55, 0.0  ;;  %v7029_v55 = vld [vmem:[#allocation14] sm:$0xf] }
 0x41e   :  { %v6914_v2 = vadd.f32 %v6913_v1, %v6875_v9 }
 0x41f   :  { %v6926_v0 = vadd.f32 %v6925_v13, %v6872_v63 }
 0x420   :  { %v6915_v33 = vadd.f32 %v6914_v2, %v6879_v15  ;;  %v12297_v2 = vld [vmem:[#allocation77_spill] sm:$0xff] }
 0x421   :  { %v6927_v49 = vadd.f32 %v6926_v0, %v6876_v12  ;;  %v6962_v63 = vrot.slane %v6954_v56, %v12297_v2  ;;  %v6941_v12 = vld [vmem:[#allocation12] sm:$0xf] }
 0x422   :  { %v6917_v19 = vadd.f32 %v6916_v53, %v6915_v33 }
 0x423   :  { %v6928_v41 = vadd.f32 %v6927_v49, %v6880_v44  ;;  %v12299_v49 = vld [vmem:[#allocation78_spill] sm:$0xff] }
 0x424   :  { %v6918_v31 = vrot.slane %v6917_v19, 4  ;;  %v11446_v51 = vrot.slane %v7029_v55, %v12299_v49 }
 0x425   :  { %v6930_v58 = vadd.f32 %v6929_v10, %v6928_v41  ;;  %v12300_v41 = vld [vmem:[#allocation81_spill] sm:$0xff] }
 0x426   :  { %v6919_v32 = vadd.f32 %v6918_v31, %v6917_v19  ;;  %v12298_v19 = vld [vmem:[#allocation79_spill] sm:$0xff]  ;;  %v11449_v22 = vrot.slane %v7029_v55, %v12300_v41 }
 0x427   :  { %v6931_v34 = vrot.slane %v6930_v58, 4 }
 0x428   :  { %v6920_v29 = vrot.slane %v6919_v32, 2 }
 0x429   :  { %v6932_v23 = vadd.f32 %v6931_v34, %v6930_v58 }
 0x42a   :  { %v6921_v61 = vadd.f32 %v6920_v29, %v6919_v32  ;;  %v12301_v32 = vld [vmem:[#allocation80_spill] sm:$0xff]  ;;  %v11443_v29 = vrot.slane %v7029_v55, %v12298_v19 }
 0x42b   :  { %v6933_v62 = vrot.slane %v6932_v23, 2  ;;  %v11452_v56 = vrot.slane %v7029_v55, %v12301_v32 }
 0x42c   :  { %v6922_v38 = vrot.slane %v6921_v61, 1 }
 0x42d   :  { %v6934_v20 = vadd.f32 %v6933_v62, %v6932_v23 }
 0x42e   :  { %v6923_v30 = vadd.f32 %v6922_v38, %v6921_v61 }
 0x42f   :  { %v6935_v6 = vrot.slane %v6934_v20, 1 }
 0x430   :  { %v6939_v39 = vmul.f32 0.020408163, %v6923_v30 }
 0x431   :  { %v6936_v21 = vadd.f32 %v6935_v6, %v6934_v20 }
 0x432   :  { %v6944_v9 = vadd.f32 1e-05, %v6939_v39 }
 0x433   :  { %v6940_v1 = vmul.f32 0.020408163, %v6936_v21 }
 0x434   :  { %8650 = vrsqrt.f32 %v6944_v9 }
 0x435   :  { %v6945_v26 = vadd.f32 1e-05, %v6940_v1 }
 0x437   :  { %8652 = vrsqrt.f32 %v6945_v26 }
 0x441   :  { %v8651_v48 = vpop.eup %8650 }
 0x444   :  { %v8653_v27 = vpop.eup %8652 }
 0x445   :  { %v6955_v15 = vcombine.low %v8651_v48, %v8653_v27 }
 0x447   :  { %v6969_v13 = vrot.slane %v6955_v15, %v12297_v2 }
 0x449   :  { %v6970_v33 = vcombine.low %v6962_v63, %v6969_v13 }
 0x44b   :  { %v6977_v0 = vrot.slane %v6970_v33, %v12297_v2 }
 0x44d   :  { %v6979_v53 = vmul.f32 %v6977_v0, %v6941_v12 }
 0x44f   :  { %v6984_v44 = vrot.slane %v6979_v53, %v12298_v19  ;;  %v6988_v31 = vrot.slane %v6979_v53, %v12299_v49  ;;  %v6992_v10 = vrot.slane %v6979_v53, %v12300_v41  ;;  %v6996_v58 = vrot.slane %v6979_v53, %v12301_v32 }
 0x451   :  { %v7001_v34 = vmul.f32 %v6984_v44, %v11223_v57  ;;  %v7002_v61 = vmul.f32 %v6988_v31, %v11250_v5  ;;  %v7003_v23 = vmul.f32 %v6992_v10, %v11368_v54  ;;  %v7004_v38 = vmul.f32 %v6996_v58, %v11391_v16 }
 0x452   :  { %v7005_v62 = vmul.f32 %v6984_v44, %v11226_v45  ;;  %v7006_v30 = vmul.f32 %v6988_v31, %v11253_v42  ;;  %v7007_v20 = vmul.f32 %v6992_v10, %v11371_v8  ;;  %v7008_v39 = vmul.f32 %v6996_v58, %v11394_v14 }
 0x453   :  { %v7009_v6 = vmul.f32 %v6984_v44, %v11229_v46  ;;  %v7010_v21 = vmul.f32 %v6988_v31, %v11256_v7  ;;  %v7011_v57 = vmul.f32 %v6992_v10, %v11374_v18  ;;  %v7012_v5 = vmul.f32 %v6996_v58, %v11397_v17 }
 0x454   :  { %v7013_v54 = vmul.f32 %v6984_v44, %v11232_v35  ;;  %v7014_v16 = vmul.f32 %v6988_v31, %v11259_v25  ;;  %v7015_v45 = vmul.f32 %v6992_v10, %v11376_v37  ;;  %v7016_v42 = vmul.f32 %v6996_v58, %v11400_v4 }
 0x455   :  { %v7017_v8 = vmul.f32 %v6984_v44, %v11235_v50  ;;  %v7018_v14 = vmul.f32 %v6988_v31, %v11262_v28  ;;  %v7019_v46 = vmul.f32 %v6992_v10, %v11378_v43  ;;  %v7020_v7 = vmul.f32 %v6996_v58, %v11402_v36 }
 0x456   :  { %v7021_v18 = vmul.f32 %v6984_v44, %v11238_v24  ;;  %v7022_v17 = vmul.f32 %v6988_v31, %v11265_v60  ;;  %v7023_v35 = vmul.f32 %v6992_v10, %v11380_v3  ;;  %v7024_v25 = vmul.f32 %v6996_v58, %v11404_v59 }
 0x457   :  { %v7025_v37 = vmul.f32 %v6984_v44, %v11241_v40  ;;  %v7026_v4 = vmul.f32 %v6988_v31, %v11268_v52  ;;  %v7027_v50 = vmul.f32 %v6992_v10, %v11382_v47  ;;  %v7028_v28 = vmul.f32 %v6996_v58, %v11406_v11 }
 0x458   :  { %v7051_v43 = vadd.f32 %v11443_v29, %v7001_v34  ;;  %v7052_v36 = vadd.f32 %v11446_v51, %v7002_v61  ;;  %v7053_v24 = vadd.f32 %v11449_v22, %v7003_v23  ;;  %v7054_v60 = vadd.f32 %v11452_v56, %v7004_v38 }
 0x459   :  { %v7055_v3 = vadd.f32 %v11443_v29, %v7005_v62  ;;  %v7056_v59 = vadd.f32 %v11446_v51, %v7006_v30  ;;  %v7057_v40 = vadd.f32 %v11449_v22, %v7007_v20  ;;  %v7058_v52 = vadd.f32 %v11452_v56, %v7008_v39 }
 0x45a   :  { %v7059_v47 = vadd.f32 %v11443_v29, %v7009_v6  ;;  %v7060_v11 = vadd.f32 %v11446_v51, %v7010_v21  ;;  %v7061_v9 = vadd.f32 %v11449_v22, %v7011_v57  ;;  %v7062_v1 = vadd.f32 %v11452_v56, %v7012_v5  ;;  %7079 = vst [vmem:[#allocation15] sm:$0xff] %v7051_v43 }
 0x45b   :  { %7080 = vst [vmem:[#allocation15 + $0x8] sm:$0xff] %v7052_v36  ;;  %7081 = vst [vmem:[#allocation15 + $0x10] sm:$0xff] %v7053_v24  ;;  %v7063_v26 = vadd.f32 %v11443_v29, %v7013_v54  ;;  %v7064_v48 = vadd.f32 %v11446_v51, %v7014_v16  ;;  %v7065_v27 = vadd.f32 %v11449_v22, %v7015_v45 }
 0x45c   :  { %7082 = vst [vmem:[#allocation15 + $0x18] sm:$0xff] %v7054_v60  ;;  %v7066_v15 = vadd.f32 %v11452_v56, %v7016_v42  ;;  %7083 = vst [vmem:[#allocation15 + $0x20] sm:$0xff] %v7055_v3  ;;  %v7067_v2 = vadd.f32 %v11443_v29, %v7017_v8  ;;  %v7068_v63 = vadd.f32 %v11446_v51, %v7018_v14 }
 0x45d   :  { %7084 = vst [vmem:[#allocation15 + $0x28] sm:$0xff] %v7056_v59  ;;  %7085 = vst [vmem:[#allocation15 + $0x30] sm:$0xff] %v7057_v40  ;;  %v7069_v13 = vadd.f32 %v11449_v22, %v7019_v46  ;;  %v7070_v33 = vadd.f32 %v11452_v56, %v7020_v7  ;;  %v7071_v12 = vadd.f32 %v11443_v29, %v7021_v18 }
 0x45e   :  { %7086 = vst [vmem:[#allocation15 + $0x38] sm:$0xff] %v7058_v52  ;;  %7087 = vst [vmem:[#allocation15 + $0x40] sm:$0xff] %v7059_v47  ;;  %v7072_v0 = vadd.f32 %v11446_v51, %v7022_v17  ;;  %v7073_v53 = vadd.f32 %v11449_v22, %v7023_v35  ;;  %v7074_v55 = vadd.f32 %v11452_v56, %v7024_v25 }
 0x45f   :  { %7088 = vst [vmem:[#allocation15 + $0x48] sm:$0xff] %v7060_v11  ;;  %7089 = vst [vmem:[#allocation15 + $0x50] sm:$0xff] %v7061_v9  ;;  %v7075_v19 = vadd.f32 %v11443_v29, %v7025_v37  ;;  %v7076_v44 = vadd.f32 %v11446_v51, %v7026_v4  ;;  %v7077_v49 = vadd.f32 %v11449_v22, %v7027_v50 }
 0x460   :  { %7090 = vst [vmem:[#allocation15 + $0x58] sm:$0xff] %v7062_v1  ;;  %7091 = vst [vmem:[#allocation15 + $0x60] sm:$0xff] %v7063_v26  ;;  %v7078_v31 = vadd.f32 %v11452_v56, %v7028_v28 }
 0x461   :  { %7092 = vst [vmem:[#allocation15 + $0x68] sm:$0xff] %v7064_v48  ;;  %7093 = vst [vmem:[#allocation15 + $0x70] sm:$0xff] %v7065_v27 }
 0x462   :  { %7094 = vst [vmem:[#allocation15 + $0x78] sm:$0xff] %v7066_v15  ;;  %7095 = vst [vmem:[#allocation15 + $0x80] sm:$0xff] %v7067_v2 }
 0x463   :  { %7096 = vst [vmem:[#allocation15 + $0x88] sm:$0xff] %v7068_v63  ;;  %7097 = vst [vmem:[#allocation15 + $0x90] sm:$0xff] %v7069_v13 }
 0x464   :  { %7098 = vst [vmem:[#allocation15 + $0x98] sm:$0xff] %v7070_v33  ;;  %7099 = vst [vmem:[#allocation15 + $0xa0] sm:$0xff] %v7071_v12 }
 0x465   :  { %7100 = vst [vmem:[#allocation15 + $0xa8] sm:$0xff] %v7072_v0  ;;  %7101 = vst [vmem:[#allocation15 + $0xb0] sm:$0xff] %v7073_v53 }
 0x466   :  { %7102 = vst [vmem:[#allocation15 + $0xb8] sm:$0xff] %v7074_v55  ;;  %7103 = vst [vmem:[#allocation15 + $0xc0] sm:$0x1] %v7075_v19 }
 0x467   :  { %7104 = vst [vmem:[#allocation15 + $0xc8] sm:$0x1] %v7076_v44  ;;  %7105 = vst [vmem:[#allocation15 + $0xd0] sm:$0x1] %v7077_v49 }
 0x468   :  { %7106 = vst [vmem:[#allocation15 + $0xd8] sm:$0x1] %v7078_v31 }
 0x469   :  { %8856 = shalt.err (!%p8853_p11)
}
 0x46a   :  { %s8888_s13 = smov 512   ;;  %s8889_s14 = smov 32  }
 0x46b   :  { %7118 = dma.vmem_to_hbm [thread:$0]  %s11506_s6, 3584, %s11527_s7, [#allocation5], %s8888_s13, %s8888_s13, %s8889_s14  }
 0x46c   :  { %8873 = dma.done.wait [#allocation5], 3584  }
 0x46d   :  { %8874 = vsyncadd [#allocation5], 4294963712 }
 0x46e   :  { %7122 = vsyncpa [#allocation4], 1 }
 0x46f   :  { %7123 = vsyncpa [#allocation7], 1 }
 0x470   :  { %7124 = vsyncpa [#allocation10], 1 }
 0x471   :  { %7125 = vsyncpa [#allocation13], 1 }
 0x472   :  { %7126 = vsyncpa [#allocation5], 1 }

</bundles_post_ra>
